<compile_context>
chip_gen: v7x
topology: tpu7x:2x2x1
jax: 0.10.0
libtpu: 0.0.40
codegen_flags: <defaults>
</compile_context>

<pallas_src>
import functools

import jax
import jax.numpy as jnp
from jax.experimental import pallas as pl
from jax.experimental.pallas import tpu as pltpu

LANE = 128        # TPU vreg lane width
BN_EPS = 1e-5


# ----------------------------------------------------------------------------
# Fused Pallas kernel: conv1 -> ReLU -> BN(train) -> conv2 -> residual add
# ----------------------------------------------------------------------------
def _make_resblock_kernel(N, H, W, C, res_scale):
    """C is the lane-padded channel count (multiple of 128)."""
    M = N * H * W
    K = 9 * C

    def kernel(x_ref, w1_ref, b1_ref, g_ref, bt_ref, w2_ref, b2_ref,
               o_ref, col_ref, act_ref):
        # ---- zero ONLY the halo strips of the im2col scratch ---------------
        # Taps that read past the image keep these zeros (the pad=1 boundary).
        # Both convs scatter into exactly the same interior regions, so one
        # strip-zeroing at the top covers both matmuls.
        zrow = jnp.zeros((N, 1, W, C), jnp.bfloat16)
        zcol = jnp.zeros((N, H, 1, C), jnp.bfloat16)
        for dy in range(3):
            for dx in range(3):
                lo = (dy * 3 + dx) * C
                hi = lo + C
                if dy == 0:
                    col_ref[:, 0:1, :, lo:hi] = zrow
                if dy == 2:
                    col_ref[:, H - 1:H, :, lo:hi] = zrow
                if dx == 0:
                    col_ref[:, :, 0:1, lo:hi] = zcol
                if dx == 2:
                    col_ref[:, :, W - 1:W, lo:hi] = zcol

        def conv3x3(src_ref, w_ref_, b_ref_):
            # Scatter the 9 shifted taps of src_ref into the lane-aligned
            # im2col scratch (each tap slab starts at a multiple of C = 128k),
            # casting to bf16 on the way in.
            for dy in range(3):
                for dx in range(3):
                    t = dy * 3 + dx
                    oy0, oy1 = max(0, 1 - dy), min(H, H + 1 - dy)
                    ox0, ox1 = max(0, 1 - dx), min(W, W + 1 - dx)
                    sy0, sy1 = oy0 + dy - 1, oy1 + dy - 1
                    sx0, sx1 = ox0 + dx - 1, ox1 + dx - 1
                    col_ref[:, oy0:oy1, ox0:ox1, t * C:(t + 1) * C] = (
                        src_ref[:, sy0:sy1, sx0:sx1, :].astype(jnp.bfloat16))
            # One MXU matmul per conv: (M, 9C)bf16 x (9C, C)bf16 -> f32 acc.
            lhs = col_ref[...].reshape(M, K)
            out = jnp.dot(lhs, w_ref_[...],
                          preferred_element_type=jnp.float32)
            return out + b_ref_[...]

        # ---- conv1 + bias + ReLU (scatter straight from x_ref) -------------
        y = jnp.maximum(conv3x3(x_ref, w1_ref, b1_ref), 0.0)       # (M, C) f32

        # ---- BatchNorm2d (training mode), single fused normalize pass ------
        # Per-channel batch stats over N*H*W; var = E[y^2] - mean^2 (f32).
        inv_m = 1.0 / float(M)
        mean = jnp.sum(y, axis=0, keepdims=True) * inv_m            # (1, C)
        var = jnp.sum(y * y, axis=0, keepdims=True) * inv_m - mean * mean
        a = g_ref[...] * jax.lax.rsqrt(var + BN_EPS)                # scale
        b = bt_ref[...] - mean * a                                  # shift
        act_ref[...] = (y * a + b).reshape(N, H, W, C).astype(jnp.bfloat16)

        # ---- conv2 + bias, residual add -------------------------------------
        z = conv3x3(act_ref, w2_ref, b2_ref)                        # (M, C) f32
        out = x_ref[...].astype(jnp.float32) + (
            res_scale * z).reshape(N, H, W, C)
        o_ref[...] = out.astype(o_ref.dtype)

    return kernel


# ----------------------------------------------------------------------------
# Wrapper
# ----------------------------------------------------------------------------
def _pad_lanes(a, axis, cp):
    c = a.shape[axis]
    if c == cp:
        return a
    pads = [(0, 0)] * a.ndim
    pads[axis] = (0, cp - c)
    return jnp.pad(a, pads)


def _vmem_limit_bytes(footprint):
    """Generation-aware scoped-VMEM limit (leaves headroom for the compiler)."""
    cap = 64 << 20                       # v7x has the smallest physical VMEM
    try:
        cap = int(pltpu.get_tpu_info().vmem_capacity_bytes)
    except Exception:
        pass
    return int(min(max(3 * footprint, 32 << 20), (cap * 3) // 4))


@functools.partial(jax.jit, static_argnames=("res_scale",))
def residual_block_no_bn(x_nchw, params, res_scale=1.0):
    """Forward of ResidualBlockNoBN.  Input/output are PyTorch-style NCHW."""
    w1, b1, gamma, beta, w2, b2 = params                  # w: (Cout, Cin, 3, 3)
    N, C, H, W = x_nchw.shape
    CP = ((C + LANE - 1) // LANE) * LANE                  # lane-padded channels

    # NCHW -> NHWC (channels on the 128-lane axis), zero-pad channels to CP.
    # TODO(synk): keep the surrounding model NHWC / channel-padded end-to-end
    # so these wrapper-side HBM transpose/pad/slice passes disappear.
    x = _pad_lanes(jnp.transpose(x_nchw, (0, 2, 3, 1)), 3, CP)

    def pack_w(w):                                        # -> bf16 (9*CP, CP)
        whwio = jnp.transpose(w, (2, 3, 1, 0))            # (3, 3, Cin, Cout)
        whwio = _pad_lanes(_pad_lanes(whwio, 2, CP), 3, CP)
        return whwio.reshape(9 * CP, CP).astype(jnp.bfloat16)

    def pack_v(v):                                        # (C,) -> f32 (1, CP)
        return _pad_lanes(v.reshape(1, C).astype(jnp.float32), 1, CP)

    kernel = _make_resblock_kernel(N, H, W, CP, float(res_scale))

    footprint = (2 * N * H * W * CP * 4            # x in + out (f32)
                 + 2 * 9 * CP * CP * 2             # w1 + w2 (bf16)
                 + 4 * CP * 4                      # b1, gamma, beta, b2
                 + N * H * W * 9 * CP * 2          # im2col scratch (bf16)
                 + N * H * W * CP * 2)             # activation scratch (bf16)

    out = pl.pallas_call(
        kernel,
        out_shape=jax.ShapeDtypeStruct((N, H, W, CP), x.dtype),
        # TODO(synk): for large feature maps / v7x dual-core, tile over N or
        # H row-bands (1-row halo) with a two-phase cross-step BN reduction.
        grid=(1,),
        in_specs=[
            pl.BlockSpec((N, H, W, CP), lambda i: (0, 0, 0, 0)),   # x (f32)
            pl.BlockSpec((9 * CP, CP), lambda i: (0, 0)),          # w1 (bf16)
            pl.BlockSpec((1, CP), lambda i: (0, 0)),               # b1
            pl.BlockSpec((1, CP), lambda i: (0, 0)),               # gamma
            pl.BlockSpec((1, CP), lambda i: (0, 0)),               # beta
            pl.BlockSpec((9 * CP, CP), lambda i: (0, 0)),          # w2 (bf16)
            pl.BlockSpec((1, CP), lambda i: (0, 0)),               # b2
        ],
        out_specs=pl.BlockSpec((N, H, W, CP), lambda i: (0, 0, 0, 0)),
        scratch_shapes=[
            pltpu.VMEM((N, H, W, 9 * CP), jnp.bfloat16),  # im2col scratch
            pltpu.VMEM((N, H, W, CP), jnp.bfloat16),      # BN'd activation
        ],
        compiler_params=pltpu.CompilerParams(
            dimension_semantics=("arbitrary",),
            vmem_limit_bytes=_vmem_limit_bytes(footprint),
        ),
    )(x, pack_w(w1), pack_v(b1), pack_v(gamma), pack_v(beta),
      pack_w(w2), pack_v(b2))

    # Drop channel padding, NHWC -> NCHW.
    return jnp.transpose(out[..., :C], (0, 3, 1, 2))


# ----------------------------------------------------------------------------
# Parameters (PyTorch-layout, deterministic init) and pure-JAX reference
# ----------------------------------------------------------------------------
def init_params(key, mid_channels):
    c = mid_channels
    k1, k2, k3, k4 = jax.random.split(key, 4)
    bound = 1.0 / float(c * 9) ** 0.5                     # PyTorch-style uniform
    w1 = jax.random.uniform(k1, (c, c, 3, 3), jnp.float32, -bound, bound)
    b1 = jax.random.uniform(k2, (c,), jnp.float32, -bound, bound)
    w2 = jax.random.uniform(k3, (c, c, 3, 3), jnp.float32, -bound, bound)
    b2 = jax.random.uniform(k4, (c,), jnp.float32, -bound, bound)
    gamma = jnp.ones((c,), jnp.float32)                   # BatchNorm2d defaults
    beta = jnp.zeros((c,), jnp.float32)
    return (w1, b1, gamma, beta, w2, b2)


def reference_forward(x_nchw, params, res_scale=1.0):
    w1, b1, gamma, beta, w2, b2 = params
    x = jnp.transpose(x_nchw, (0, 2, 3, 1))

    def conv(v, w, b):
        y = jax.lax.conv_general_dilated(
            v, jnp.transpose(w, (2, 3, 1, 0)), (1, 1), "SAME",
            dimension_numbers=("NHWC", "HWIO", "NHWC"))
        return y + b.reshape(1, 1, 1, -1)

    y = jnp.maximum(conv(x, w1, b1), 0.0)
    mean = jnp.mean(y, axis=(0, 1, 2), keepdims=True)
    var = jnp.mean(jnp.square(y - mean), axis=(0, 1, 2), keepdims=True)
    y = (y - mean) * jax.lax.rsqrt(var + BN_EPS)
    y = y * gamma.reshape(1, 1, 1, -1) + beta.reshape(1, 1, 1, -1)
    out = x + res_scale * conv(y, w2, b2)
    return jnp.transpose(out, (0, 3, 1, 2))


# ----------------------------------------------------------------------------
if __name__ == "__main__":
    N, H, W = 2, 16, 16
    MID_CHANNELS = 64                                     # module default
    RES_SCALE = 1.0

    key = jax.random.PRNGKey(0)
    k_x, k_p = jax.random.split(key)
    x = jax.random.normal(k_x, (N, MID_CHANNELS, H, W), jnp.float32)  # NCHW
    params = init_params(k_p, MID_CHANNELS)

    out = jax.block_until_ready(
        residual_block_no_bn(x, params, res_scale=RES_SCALE))
    assert out.shape == (N, MID_CHANNELS, H, W), out.shape

    ref = jax.block_until_ready(reference_forward(x, params, RES_SCALE))
    max_err = float(jnp.max(jnp.abs(out - ref)))
    # loose tolerance: kernel uses bf16 matmul operands (f32 accumulation)
    assert jnp.allclose(out, ref, atol=5e-2, rtol=5e-2), max_err

    print("KERNEL_OK")
</pallas_src>

<mosaic_0001>
module attributes {stable_mosaic.version = 11 : i64} {
  func.func @kernel(%arg0: i32, %arg1: memref<2x16x16x128xf32, #tpu.memory_space<vmem>>, %arg2: memref<1152x128xbf16, #tpu.memory_space<vmem>>, %arg3: memref<1x128xf32, #tpu.memory_space<vmem>>, %arg4: memref<1x128xf32, #tpu.memory_space<vmem>>, %arg5: memref<1x128xf32, #tpu.memory_space<vmem>>, %arg6: memref<1152x128xbf16, #tpu.memory_space<vmem>>, %arg7: memref<1x128xf32, #tpu.memory_space<vmem>>, %arg8: memref<2x16x16x128xf32, #tpu.memory_space<vmem>>, %arg9: memref<2x16x16x1152xbf16, #tpu.memory_space<vmem>>, %arg10: memref<2x16x16x128xbf16, #tpu.memory_space<vmem>>) attributes {dimension_semantics = [#tpu.dimension_semantics<arbitrary>], iteration_bounds = array<i64: 1>, scalar_prefetch = 0 : i64, scratch_operands = 2 : i64, tpu.core_type = #tpu.core_type<tc>, window_params = [{pipeline_mode = #tpu.pipeline_mode<synchronous>, transform_indices = @transform_0, window_bounds = array<i64: 2, 16, 16, 128>}, {pipeline_mode = #tpu.pipeline_mode<synchronous>, transform_indices = @transform_1, window_bounds = array<i64: 1152, 128>}, {pipeline_mode = #tpu.pipeline_mode<synchronous>, transform_indices = @transform_2, window_bounds = array<i64: 1, 128>}, {pipeline_mode = #tpu.pipeline_mode<synchronous>, transform_indices = @transform_3, window_bounds = array<i64: 1, 128>}, {pipeline_mode = #tpu.pipeline_mode<synchronous>, transform_indices = @transform_4, window_bounds = array<i64: 1, 128>}, {pipeline_mode = #tpu.pipeline_mode<synchronous>, transform_indices = @transform_5, window_bounds = array<i64: 1152, 128>}, {pipeline_mode = #tpu.pipeline_mode<synchronous>, transform_indices = @transform_6, window_bounds = array<i64: 1, 128>}, {pipeline_mode = #tpu.pipeline_mode<synchronous>, transform_indices = @transform_7, window_bounds = array<i64: 2, 16, 16, 128>}]} {
    %cst = arith.constant 0.000000e+00 : bf16
    %0 = vector.broadcast %cst : bf16 to vector<2x1x16x128xbf16>
    %cst_0 = arith.constant 0.000000e+00 : bf16
    %1 = vector.broadcast %cst_0 : bf16 to vector<2x16x1x128xbf16>
    %c0 = arith.constant 0 : index
    %c0_1 = arith.constant 0 : index
    %c0_2 = arith.constant 0 : index
    %c0_3 = arith.constant 0 : index
    %2 = vector.load %arg9[%c0, %c0_1, %c0_2, %c0_3] : memref<2x16x16x1152xbf16, #tpu.memory_space<vmem>>, vector<2x1x16x128xbf16>
    tpu.vector_store %arg9[%c0, %c0_1, %c0_2, %c0_3], %0 {strides = array<i32>} : memref<2x16x16x1152xbf16, #tpu.memory_space<vmem>>, vector<2x1x16x128xbf16>,
    %c0_4 = arith.constant 0 : index
    %c0_5 = arith.constant 0 : index
    %c0_6 = arith.constant 0 : index
    %c0_7 = arith.constant 0 : index
    %3 = vector.load %arg9[%c0_4, %c0_5, %c0_6, %c0_7] : memref<2x16x16x1152xbf16, #tpu.memory_space<vmem>>, vector<2x16x1x128xbf16>
    tpu.vector_store %arg9[%c0_4, %c0_5, %c0_6, %c0_7], %1 {strides = array<i32>} : memref<2x16x16x1152xbf16, #tpu.memory_space<vmem>>, vector<2x16x1x128xbf16>,
    %c0_8 = arith.constant 0 : index
    %c0_9 = arith.constant 0 : index
    %c0_10 = arith.constant 0 : index
    %c128 = arith.constant 128 : index
    %4 = vector.load %arg9[%c0_8, %c0_9, %c0_10, %c128] : memref<2x16x16x1152xbf16, #tpu.memory_space<vmem>>, vector<2x1x16x128xbf16>
    tpu.vector_store %arg9[%c0_8, %c0_9, %c0_10, %c128], %0 {strides = array<i32>} : memref<2x16x16x1152xbf16, #tpu.memory_space<vmem>>, vector<2x1x16x128xbf16>,
    %c0_11 = arith.constant 0 : index
    %c0_12 = arith.constant 0 : index
    %c0_13 = arith.constant 0 : index
    %c256 = arith.constant 256 : index
    %5 = vector.load %arg9[%c0_11, %c0_12, %c0_13, %c256] : memref<2x16x16x1152xbf16, #tpu.memory_space<vmem>>, vector<2x1x16x128xbf16>
    tpu.vector_store %arg9[%c0_11, %c0_12, %c0_13, %c256], %0 {strides = array<i32>} : memref<2x16x16x1152xbf16, #tpu.memory_space<vmem>>, vector<2x1x16x128xbf16>,
    %c0_14 = arith.constant 0 : index
    %c0_15 = arith.constant 0 : index
    %c15 = arith.constant 15 : index
    %c256_16 = arith.constant 256 : index
    %6 = vector.load %arg9[%c0_14, %c0_15, %c15, %c256_16] : memref<2x16x16x1152xbf16, #tpu.memory_space<vmem>>, vector<2x16x1x128xbf16>
    tpu.vector_store %arg9[%c0_14, %c0_15, %c15, %c256_16], %1 {strides = array<i32>} : memref<2x16x16x1152xbf16, #tpu.memory_space<vmem>>, vector<2x16x1x128xbf16>,
    %c0_17 = arith.constant 0 : index
    %c0_18 = arith.constant 0 : index
    %c0_19 = arith.constant 0 : index
    %c384 = arith.constant 384 : index
    %7 = vector.load %arg9[%c0_17, %c0_18, %c0_19, %c384] : memref<2x16x16x1152xbf16, #tpu.memory_space<vmem>>, vector<2x16x1x128xbf16>
    tpu.vector_store %arg9[%c0_17, %c0_18, %c0_19, %c384], %1 {strides = array<i32>} : memref<2x16x16x1152xbf16, #tpu.memory_space<vmem>>, vector<2x16x1x128xbf16>,
    %c0_20 = arith.constant 0 : index
    %c0_21 = arith.constant 0 : index
    %c15_22 = arith.constant 15 : index
    %c640 = arith.constant 640 : index
    %8 = vector.load %arg9[%c0_20, %c0_21, %c15_22, %c640] : memref<2x16x16x1152xbf16, #tpu.memory_space<vmem>>, vector<2x16x1x128xbf16>
    tpu.vector_store %arg9[%c0_20, %c0_21, %c15_22, %c640], %1 {strides = array<i32>} : memref<2x16x16x1152xbf16, #tpu.memory_space<vmem>>, vector<2x16x1x128xbf16>,
    %c0_23 = arith.constant 0 : index
    %c15_24 = arith.constant 15 : index
    %c0_25 = arith.constant 0 : index
    %c768 = arith.constant 768 : index
    %9 = vector.load %arg9[%c0_23, %c15_24, %c0_25, %c768] : memref<2x16x16x1152xbf16, #tpu.memory_space<vmem>>, vector<2x1x16x128xbf16>
    tpu.vector_store %arg9[%c0_23, %c15_24, %c0_25, %c768], %0 {strides = array<i32>} : memref<2x16x16x1152xbf16, #tpu.memory_space<vmem>>, vector<2x1x16x128xbf16>,
    %c0_26 = arith.constant 0 : index
    %c0_27 = arith.constant 0 : index
    %c0_28 = arith.constant 0 : index
    %c768_29 = arith.constant 768 : index
    %10 = vector.load %arg9[%c0_26, %c0_27, %c0_28, %c768_29] : memref<2x16x16x1152xbf16, #tpu.memory_space<vmem>>, vector<2x16x1x128xbf16>
    tpu.vector_store %arg9[%c0_26, %c0_27, %c0_28, %c768_29], %1 {strides = array<i32>} : memref<2x16x16x1152xbf16, #tpu.memory_space<vmem>>, vector<2x16x1x128xbf16>,
    %c0_30 = arith.constant 0 : index
    %c15_31 = arith.constant 15 : index
    %c0_32 = arith.constant 0 : index
    %c896 = arith.constant 896 : index
    %11 = vector.load %arg9[%c0_30, %c15_31, %c0_32, %c896] : memref<2x16x16x1152xbf16, #tpu.memory_space<vmem>>, vector<2x1x16x128xbf16>
    tpu.vector_store %arg9[%c0_30, %c15_31, %c0_32, %c896], %0 {strides = array<i32>} : memref<2x16x16x1152xbf16, #tpu.memory_space<vmem>>, vector<2x1x16x128xbf16>,
    %c0_33 = arith.constant 0 : index
    %c15_34 = arith.constant 15 : index
    %c0_35 = arith.constant 0 : index
    %c1024 = arith.constant 1024 : index
    %12 = vector.load %arg9[%c0_33, %c15_34, %c0_35, %c1024] : memref<2x16x16x1152xbf16, #tpu.memory_space<vmem>>, vector<2x1x16x128xbf16>
    tpu.vector_store %arg9[%c0_33, %c15_34, %c0_35, %c1024], %0 {strides = array<i32>} : memref<2x16x16x1152xbf16, #tpu.memory_space<vmem>>, vector<2x1x16x128xbf16>,
    %c0_36 = arith.constant 0 : index
    %c0_37 = arith.constant 0 : index
    %c15_38 = arith.constant 15 : index
    %c1024_39 = arith.constant 1024 : index
    %13 = vector.load %arg9[%c0_36, %c0_37, %c15_38, %c1024_39] : memref<2x16x16x1152xbf16, #tpu.memory_space<vmem>>, vector<2x16x1x128xbf16>
    tpu.vector_store %arg9[%c0_36, %c0_37, %c15_38, %c1024_39], %1 {strides = array<i32>} : memref<2x16x16x1152xbf16, #tpu.memory_space<vmem>>, vector<2x16x1x128xbf16>,
    %c0_40 = arith.constant 0 : index
    %c0_41 = arith.constant 0 : index
    %c0_42 = arith.constant 0 : index
    %c0_43 = arith.constant 0 : index
    %14 = vector.load %arg1[%c0_40, %c0_41, %c0_42, %c0_43] : memref<2x16x16x128xf32, #tpu.memory_space<vmem>>, vector<2x15x15x128xf32>
    %15 = arith.truncf %14 : vector<2x15x15x128xf32> to vector<2x15x15x128xbf16>
    %c0_44 = arith.constant 0 : index
    %c1 = arith.constant 1 : index
    %c1_45 = arith.constant 1 : index
    %c0_46 = arith.constant 0 : index
    %16 = vector.load %arg9[%c0_44, %c1, %c1_45, %c0_46] : memref<2x16x16x1152xbf16, #tpu.memory_space<vmem>>, vector<2x15x15x128xbf16>
    tpu.vector_store %arg9[%c0_44, %c1, %c1_45, %c0_46], %15 {strides = array<i32>} : memref<2x16x16x1152xbf16, #tpu.memory_space<vmem>>, vector<2x15x15x128xbf16>,
    %c0_47 = arith.constant 0 : index
    %c0_48 = arith.constant 0 : index
    %c0_49 = arith.constant 0 : index
    %c0_50 = arith.constant 0 : index
    %17 = vector.load %arg1[%c0_47, %c0_48, %c0_49, %c0_50] : memref<2x16x16x128xf32, #tpu.memory_space<vmem>>, vector<2x15x16x128xf32>
    %18 = arith.truncf %17 : vector<2x15x16x128xf32> to vector<2x15x16x128xbf16>
    %c0_51 = arith.constant 0 : index
    %c1_52 = arith.constant 1 : index
    %c0_53 = arith.constant 0 : index
    %c128_54 = arith.constant 128 : index
    %19 = vector.load %arg9[%c0_51, %c1_52, %c0_53, %c128_54] : memref<2x16x16x1152xbf16, #tpu.memory_space<vmem>>, vector<2x15x16x128xbf16>
    tpu.vector_store %arg9[%c0_51, %c1_52, %c0_53, %c128_54], %18 {strides = array<i32>} : memref<2x16x16x1152xbf16, #tpu.memory_space<vmem>>, vector<2x15x16x128xbf16>,
    %c0_55 = arith.constant 0 : index
    %c0_56 = arith.constant 0 : index
    %c1_57 = arith.constant 1 : index
    %c0_58 = arith.constant 0 : index
    %20 = vector.load %arg1[%c0_55, %c0_56, %c1_57, %c0_58] : memref<2x16x16x128xf32, #tpu.memory_space<vmem>>, vector<2x15x15x128xf32>
    %21 = arith.truncf %20 : vector<2x15x15x128xf32> to vector<2x15x15x128xbf16>
    %c0_59 = arith.constant 0 : index
    %c1_60 = arith.constant 1 : index
    %c0_61 = arith.constant 0 : index
    %c256_62 = arith.constant 256 : index
    %22 = vector.load %arg9[%c0_59, %c1_60, %c0_61, %c256_62] : memref<2x16x16x1152xbf16, #tpu.memory_space<vmem>>, vector<2x15x15x128xbf16>
    tpu.vector_store %arg9[%c0_59, %c1_60, %c0_61, %c256_62], %21 {strides = array<i32>} : memref<2x16x16x1152xbf16, #tpu.memory_space<vmem>>, vector<2x15x15x128xbf16>,
    %c0_63 = arith.constant 0 : index
    %c0_64 = arith.constant 0 : index
    %c0_65 = arith.constant 0 : index
    %c0_66 = arith.constant 0 : index
    %23 = vector.load %arg1[%c0_63, %c0_64, %c0_65, %c0_66] : memref<2x16x16x128xf32, #tpu.memory_space<vmem>>, vector<2x16x15x128xf32>
    %24 = arith.truncf %23 : vector<2x16x15x128xf32> to vector<2x16x15x128xbf16>
    %c0_67 = arith.constant 0 : index
    %c0_68 = arith.constant 0 : index
    %c1_69 = arith.constant 1 : index
    %c384_70 = arith.constant 384 : index
    %25 = vector.load %arg9[%c0_67, %c0_68, %c1_69, %c384_70] : memref<2x16x16x1152xbf16, #tpu.memory_space<vmem>>, vector<2x16x15x128xbf16>
    tpu.vector_store %arg9[%c0_67, %c0_68, %c1_69, %c384_70], %24 {strides = array<i32>} : memref<2x16x16x1152xbf16, #tpu.memory_space<vmem>>, vector<2x16x15x128xbf16>,
    %c0_71 = arith.constant 0 : index
    %c0_72 = arith.constant 0 : index
    %c0_73 = arith.constant 0 : index
    %c0_74 = arith.constant 0 : index
    %26 = vector.load %arg1[%c0_71, %c0_72, %c0_73, %c0_74] : memref<2x16x16x128xf32, #tpu.memory_space<vmem>>, vector<2x16x16x128xf32>
    %27 = arith.truncf %26 : vector<2x16x16x128xf32> to vector<2x16x16x128xbf16>
    %c0_75 = arith.constant 0 : index
    %c0_76 = arith.constant 0 : index
    %c0_77 = arith.constant 0 : index
    %c512 = arith.constant 512 : index
    %28 = vector.load %arg9[%c0_75, %c0_76, %c0_77, %c512] : memref<2x16x16x1152xbf16, #tpu.memory_space<vmem>>, vector<2x16x16x128xbf16>
    tpu.vector_store %arg9[%c0_75, %c0_76, %c0_77, %c512], %27 {strides = array<i32>} : memref<2x16x16x1152xbf16, #tpu.memory_space<vmem>>, vector<2x16x16x128xbf16>,
    %c0_78 = arith.constant 0 : index
    %c0_79 = arith.constant 0 : index
    %c1_80 = arith.constant 1 : index
    %c0_81 = arith.constant 0 : index
    %29 = vector.load %arg1[%c0_78, %c0_79, %c1_80, %c0_81] : memref<2x16x16x128xf32, #tpu.memory_space<vmem>>, vector<2x16x15x128xf32>
    %30 = arith.truncf %29 : vector<2x16x15x128xf32> to vector<2x16x15x128xbf16>
    %c0_82 = arith.constant 0 : index
    %c0_83 = arith.constant 0 : index
    %c0_84 = arith.constant 0 : index
    %c640_85 = arith.constant 640 : index
    %31 = vector.load %arg9[%c0_82, %c0_83, %c0_84, %c640_85] : memref<2x16x16x1152xbf16, #tpu.memory_space<vmem>>, vector<2x16x15x128xbf16>
    tpu.vector_store %arg9[%c0_82, %c0_83, %c0_84, %c640_85], %30 {strides = array<i32>} : memref<2x16x16x1152xbf16, #tpu.memory_space<vmem>>, vector<2x16x15x128xbf16>,
    %c0_86 = arith.constant 0 : index
    %c1_87 = arith.constant 1 : index
    %c0_88 = arith.constant 0 : index
    %c0_89 = arith.constant 0 : index
    %32 = vector.load %arg1[%c0_86, %c1_87, %c0_88, %c0_89] : memref<2x16x16x128xf32, #tpu.memory_space<vmem>>, vector<2x15x15x128xf32>
    %33 = arith.truncf %32 : vector<2x15x15x128xf32> to vector<2x15x15x128xbf16>
    %c0_90 = arith.constant 0 : index
    %c0_91 = arith.constant 0 : index
    %c1_92 = arith.constant 1 : index
    %c768_93 = arith.constant 768 : index
    %34 = vector.load %arg9[%c0_90, %c0_91, %c1_92, %c768_93] : memref<2x16x16x1152xbf16, #tpu.memory_space<vmem>>, vector<2x15x15x128xbf16>
    tpu.vector_store %arg9[%c0_90, %c0_91, %c1_92, %c768_93], %33 {strides = array<i32>} : memref<2x16x16x1152xbf16, #tpu.memory_space<vmem>>, vector<2x15x15x128xbf16>,
    %c0_94 = arith.constant 0 : index
    %c1_95 = arith.constant 1 : index
    %c0_96 = arith.constant 0 : index
    %c0_97 = arith.constant 0 : index
    %35 = vector.load %arg1[%c0_94, %c1_95, %c0_96, %c0_97] : memref<2x16x16x128xf32, #tpu.memory_space<vmem>>, vector<2x15x16x128xf32>
    %36 = arith.truncf %35 : vector<2x15x16x128xf32> to vector<2x15x16x128xbf16>
    %c0_98 = arith.constant 0 : index
    %c0_99 = arith.constant 0 : index
    %c0_100 = arith.constant 0 : index
    %c896_101 = arith.constant 896 : index
    %37 = vector.load %arg9[%c0_98, %c0_99, %c0_100, %c896_101] : memref<2x16x16x1152xbf16, #tpu.memory_space<vmem>>, vector<2x15x16x128xbf16>
    tpu.vector_store %arg9[%c0_98, %c0_99, %c0_100, %c896_101], %36 {strides = array<i32>} : memref<2x16x16x1152xbf16, #tpu.memory_space<vmem>>, vector<2x15x16x128xbf16>,
    %c0_102 = arith.constant 0 : index
    %c1_103 = arith.constant 1 : index
    %c1_104 = arith.constant 1 : index
    %c0_105 = arith.constant 0 : index
    %38 = vector.load %arg1[%c0_102, %c1_103, %c1_104, %c0_105] : memref<2x16x16x128xf32, #tpu.memory_space<vmem>>, vector<2x15x15x128xf32>
    %39 = arith.truncf %38 : vector<2x15x15x128xf32> to vector<2x15x15x128xbf16>
    %c0_106 = arith.constant 0 : index
    %c0_107 = arith.constant 0 : index
    %c0_108 = arith.constant 0 : index
    %c1024_109 = arith.constant 1024 : index
    %40 = vector.load %arg9[%c0_106, %c0_107, %c0_108, %c1024_109] : memref<2x16x16x1152xbf16, #tpu.memory_space<vmem>>, vector<2x15x15x128xbf16>
    tpu.vector_store %arg9[%c0_106, %c0_107, %c0_108, %c1024_109], %39 {strides = array<i32>} : memref<2x16x16x1152xbf16, #tpu.memory_space<vmem>>, vector<2x15x15x128xbf16>,
    %c0_110 = arith.constant 0 : index
    %c0_111 = arith.constant 0 : index
    %c0_112 = arith.constant 0 : index
    %c0_113 = arith.constant 0 : index
    %41 = vector.load %arg9[%c0_110, %c0_111, %c0_112, %c0_113] : memref<2x16x16x1152xbf16, #tpu.memory_space<vmem>>, vector<2x16x16x1152xbf16>
    %42 = vector.shape_cast %41 : vector<2x16x16x1152xbf16> to vector<512x1152xbf16>
    %c0_114 = arith.constant 0 : index
    %c0_115 = arith.constant 0 : index
    %43 = vector.load %arg2[%c0_114, %c0_115] : memref<1152x128xbf16, #tpu.memory_space<vmem>>, vector<1152x128xbf16>
    %cst_116 = arith.constant dense<0.000000e+00> : vector<512x128xf32>
    %44 = tpu.matmul %42, %43, %cst_116 {dimension_numbers = #tpu.dot_dimension_numbers<[1], [0], [0], [1], [0, 0, 1, 1], [], []>} : vector<512x1152xbf16>, vector<1152x128xbf16>, vector<512x128xf32> -> vector<512x128xf32>
    %c0_117 = arith.constant 0 : index
    %c0_118 = arith.constant 0 : index
    %45 = vector.load %arg3[%c0_117, %c0_118] : memref<1x128xf32, #tpu.memory_space<vmem>>, vector<1x128xf32>
    %46 = vector.broadcast %45 : vector<1x128xf32> to vector<512x128xf32>
    %47 = arith.addf %44, %46 : vector<512x128xf32>
    %cst_119 = arith.constant 0.000000e+00 : f32
    %48 = vector.broadcast %cst_119 : f32 to vector<512x128xf32>
    %49 = arith.maximumf %47, %48 : vector<512x128xf32>
    %cst_120 = arith.constant dense<0.000000e+00> : vector<128xf32>
    %50 = vector.multi_reduction <add>, %49, %cst_120 [0] : vector<512x128xf32> to vector<128xf32>
    %51 = vector.shape_cast %50 : vector<128xf32> to vector<1x128xf32>
    %cst_121 = arith.constant 0.001953125 : f32
    %52 = vector.broadcast %cst_121 : f32 to vector<1x128xf32>
    %53 = arith.mulf %51, %52 : vector<1x128xf32>
    %54 = arith.mulf %49, %49 : vector<512x128xf32>
    %cst_122 = arith.constant dense<0.000000e+00> : vector<128xf32>
    %55 = vector.multi_reduction <add>, %54, %cst_122 [0] : vector<512x128xf32> to vector<128xf32>
    %56 = vector.shape_cast %55 : vector<128xf32> to vector<1x128xf32>
    %cst_123 = arith.constant 0.001953125 : f32
    %57 = vector.broadcast %cst_123 : f32 to vector<1x128xf32>
    %58 = arith.mulf %56, %57 : vector<1x128xf32>
    %59 = arith.mulf %53, %53 : vector<1x128xf32>
    %60 = arith.subf %58, %59 : vector<1x128xf32>
    %c0_124 = arith.constant 0 : index
    %c0_125 = arith.constant 0 : index
    %61 = vector.load %arg4[%c0_124, %c0_125] : memref<1x128xf32, #tpu.memory_space<vmem>>, vector<1x128xf32>
    %cst_126 = arith.constant 9.99999974E-6 : f32
    %62 = vector.broadcast %cst_126 : f32 to vector<1x128xf32>
    %63 = arith.addf %60, %62 : vector<1x128xf32>
    %64 = math.rsqrt %63 : vector<1x128xf32>
    %65 = arith.mulf %61, %64 : vector<1x128xf32>
    %c0_127 = arith.constant 0 : index
    %c0_128 = arith.constant 0 : index
    %66 = vector.load %arg5[%c0_127, %c0_128] : memref<1x128xf32, #tpu.memory_space<vmem>>, vector<1x128xf32>
    %67 = arith.mulf %53, %65 : vector<1x128xf32>
    %68 = arith.subf %66, %67 : vector<1x128xf32>
    %69 = vector.broadcast %65 : vector<1x128xf32> to vector<512x128xf32>
    %70 = arith.mulf %49, %69 : vector<512x128xf32>
    %71 = vector.broadcast %68 : vector<1x128xf32> to vector<512x128xf32>
    %72 = arith.addf %70, %71 : vector<512x128xf32>
    %73 = vector.shape_cast %72 : vector<512x128xf32> to vector<2x16x16x128xf32>
    %74 = arith.truncf %73 : vector<2x16x16x128xf32> to vector<2x16x16x128xbf16>
    %c0_129 = arith.constant 0 : index
    %c0_130 = arith.constant 0 : index
    %c0_131 = arith.constant 0 : index
    %c0_132 = arith.constant 0 : index
    %75 = vector.load %arg10[%c0_129, %c0_130, %c0_131, %c0_132] : memref<2x16x16x128xbf16, #tpu.memory_space<vmem>>, vector<2x16x16x128xbf16>
    tpu.vector_store %arg10[%c0_129, %c0_130, %c0_131, %c0_132], %74 {strides = array<i32>} : memref<2x16x16x128xbf16, #tpu.memory_space<vmem>>, vector<2x16x16x128xbf16>,
    %c0_133 = arith.constant 0 : index
    %c0_134 = arith.constant 0 : index
    %c0_135 = arith.constant 0 : index
    %c0_136 = arith.constant 0 : index
    %76 = vector.load %arg10[%c0_133, %c0_134, %c0_135, %c0_136] : memref<2x16x16x128xbf16, #tpu.memory_space<vmem>>, vector<2x15x15x128xbf16>
    %c0_137 = arith.constant 0 : index
    %c1_138 = arith.constant 1 : index
    %c1_139 = arith.constant 1 : index
    %c0_140 = arith.constant 0 : index
    %77 = vector.load %arg9[%c0_137, %c1_138, %c1_139, %c0_140] : memref<2x16x16x1152xbf16, #tpu.memory_space<vmem>>, vector<2x15x15x128xbf16>
    tpu.vector_store %arg9[%c0_137, %c1_138, %c1_139, %c0_140], %76 {strides = array<i32>} : memref<2x16x16x1152xbf16, #tpu.memory_space<vmem>>, vector<2x15x15x128xbf16>,
    %c0_141 = arith.constant 0 : index
    %c0_142 = arith.constant 0 : index
    %c0_143 = arith.constant 0 : index
    %c0_144 = arith.constant 0 : index
    %78 = vector.load %arg10[%c0_141, %c0_142, %c0_143, %c0_144] : memref<2x16x16x128xbf16, #tpu.memory_space<vmem>>, vector<2x15x16x128xbf16>
    %c0_145 = arith.constant 0 : index
    %c1_146 = arith.constant 1 : index
    %c0_147 = arith.constant 0 : index
    %c128_148 = arith.constant 128 : index
    %79 = vector.load %arg9[%c0_145, %c1_146, %c0_147, %c128_148] : memref<2x16x16x1152xbf16, #tpu.memory_space<vmem>>, vector<2x15x16x128xbf16>
    tpu.vector_store %arg9[%c0_145, %c1_146, %c0_147, %c128_148], %78 {strides = array<i32>} : memref<2x16x16x1152xbf16, #tpu.memory_space<vmem>>, vector<2x15x16x128xbf16>,
    %c0_149 = arith.constant 0 : index
    %c0_150 = arith.constant 0 : index
    %c1_151 = arith.constant 1 : index
    %c0_152 = arith.constant 0 : index
    %80 = vector.load %arg10[%c0_149, %c0_150, %c1_151, %c0_152] : memref<2x16x16x128xbf16, #tpu.memory_space<vmem>>, vector<2x15x15x128xbf16>
    %c0_153 = arith.constant 0 : index
    %c1_154 = arith.constant 1 : index
    %c0_155 = arith.constant 0 : index
    %c256_156 = arith.constant 256 : index
    %81 = vector.load %arg9[%c0_153, %c1_154, %c0_155, %c256_156] : memref<2x16x16x1152xbf16, #tpu.memory_space<vmem>>, vector<2x15x15x128xbf16>
    tpu.vector_store %arg9[%c0_153, %c1_154, %c0_155, %c256_156], %80 {strides = array<i32>} : memref<2x16x16x1152xbf16, #tpu.memory_space<vmem>>, vector<2x15x15x128xbf16>,
    %c0_157 = arith.constant 0 : index
    %c0_158 = arith.constant 0 : index
    %c0_159 = arith.constant 0 : index
    %c0_160 = arith.constant 0 : index
    %82 = vector.load %arg10[%c0_157, %c0_158, %c0_159, %c0_160] : memref<2x16x16x128xbf16, #tpu.memory_space<vmem>>, vector<2x16x15x128xbf16>
    %c0_161 = arith.constant 0 : index
    %c0_162 = arith.constant 0 : index
    %c1_163 = arith.constant 1 : index
    %c384_164 = arith.constant 384 : index
    %83 = vector.load %arg9[%c0_161, %c0_162, %c1_163, %c384_164] : memref<2x16x16x1152xbf16, #tpu.memory_space<vmem>>, vector<2x16x15x128xbf16>
    tpu.vector_store %arg9[%c0_161, %c0_162, %c1_163, %c384_164], %82 {strides = array<i32>} : memref<2x16x16x1152xbf16, #tpu.memory_space<vmem>>, vector<2x16x15x128xbf16>,
    %c0_165 = arith.constant 0 : index
    %c0_166 = arith.constant 0 : index
    %c0_167 = arith.constant 0 : index
    %c0_168 = arith.constant 0 : index
    %84 = vector.load %arg10[%c0_165, %c0_166, %c0_167, %c0_168] : memref<2x16x16x128xbf16, #tpu.memory_space<vmem>>, vector<2x16x16x128xbf16>
    %c0_169 = arith.constant 0 : index
    %c0_170 = arith.constant 0 : index
    %c0_171 = arith.constant 0 : index
    %c512_172 = arith.constant 512 : index
    %85 = vector.load %arg9[%c0_169, %c0_170, %c0_171, %c512_172] : memref<2x16x16x1152xbf16, #tpu.memory_space<vmem>>, vector<2x16x16x128xbf16>
    tpu.vector_store %arg9[%c0_169, %c0_170, %c0_171, %c512_172], %84 {strides = array<i32>} : memref<2x16x16x1152xbf16, #tpu.memory_space<vmem>>, vector<2x16x16x128xbf16>,
    %c0_173 = arith.constant 0 : index
    %c0_174 = arith.constant 0 : index
    %c1_175 = arith.constant 1 : index
    %c0_176 = arith.constant 0 : index
    %86 = vector.load %arg10[%c0_173, %c0_174, %c1_175, %c0_176] : memref<2x16x16x128xbf16, #tpu.memory_space<vmem>>, vector<2x16x15x128xbf16>
    %c0_177 = arith.constant 0 : index
    %c0_178 = arith.constant 0 : index
    %c0_179 = arith.constant 0 : index
    %c640_180 = arith.constant 640 : index
    %87 = vector.load %arg9[%c0_177, %c0_178, %c0_179, %c640_180] : memref<2x16x16x1152xbf16, #tpu.memory_space<vmem>>, vector<2x16x15x128xbf16>
    tpu.vector_store %arg9[%c0_177, %c0_178, %c0_179, %c640_180], %86 {strides = array<i32>} : memref<2x16x16x1152xbf16, #tpu.memory_space<vmem>>, vector<2x16x15x128xbf16>,
    %c0_181 = arith.constant 0 : index
    %c1_182 = arith.constant 1 : index
    %c0_183 = arith.constant 0 : index
    %c0_184 = arith.constant 0 : index
    %88 = vector.load %arg10[%c0_181, %c1_182, %c0_183, %c0_184] : memref<2x16x16x128xbf16, #tpu.memory_space<vmem>>, vector<2x15x15x128xbf16>
    %c0_185 = arith.constant 0 : index
    %c0_186 = arith.constant 0 : index
    %c1_187 = arith.constant 1 : index
    %c768_188 = arith.constant 768 : index
    %89 = vector.load %arg9[%c0_185, %c0_186, %c1_187, %c768_188] : memref<2x16x16x1152xbf16, #tpu.memory_space<vmem>>, vector<2x15x15x128xbf16>
    tpu.vector_store %arg9[%c0_185, %c0_186, %c1_187, %c768_188], %88 {strides = array<i32>} : memref<2x16x16x1152xbf16, #tpu.memory_space<vmem>>, vector<2x15x15x128xbf16>,
    %c0_189 = arith.constant 0 : index
    %c1_190 = arith.constant 1 : index
    %c0_191 = arith.constant 0 : index
    %c0_192 = arith.constant 0 : index
    %90 = vector.load %arg10[%c0_189, %c1_190, %c0_191, %c0_192] : memref<2x16x16x128xbf16, #tpu.memory_space<vmem>>, vector<2x15x16x128xbf16>
    %c0_193 = arith.constant 0 : index
    %c0_194 = arith.constant 0 : index
    %c0_195 = arith.constant 0 : index
    %c896_196 = arith.constant 896 : index
    %91 = vector.load %arg9[%c0_193, %c0_194, %c0_195, %c896_196] : memref<2x16x16x1152xbf16, #tpu.memory_space<vmem>>, vector<2x15x16x128xbf16>
    tpu.vector_store %arg9[%c0_193, %c0_194, %c0_195, %c896_196], %90 {strides = array<i32>} : memref<2x16x16x1152xbf16, #tpu.memory_space<vmem>>, vector<2x15x16x128xbf16>,
    %c0_197 = arith.constant 0 : index
    %c1_198 = arith.constant 1 : index
    %c1_199 = arith.constant 1 : index
    %c0_200 = arith.constant 0 : index
    %92 = vector.load %arg10[%c0_197, %c1_198, %c1_199, %c0_200] : memref<2x16x16x128xbf16, #tpu.memory_space<vmem>>, vector<2x15x15x128xbf16>
    %c0_201 = arith.constant 0 : index
    %c0_202 = arith.constant 0 : index
    %c0_203 = arith.constant 0 : index
    %c1024_204 = arith.constant 1024 : index
    %93 = vector.load %arg9[%c0_201, %c0_202, %c0_203, %c1024_204] : memref<2x16x16x1152xbf16, #tpu.memory_space<vmem>>, vector<2x15x15x128xbf16>
    tpu.vector_store %arg9[%c0_201, %c0_202, %c0_203, %c1024_204], %92 {strides = array<i32>} : memref<2x16x16x1152xbf16, #tpu.memory_space<vmem>>, vector<2x15x15x128xbf16>,
    %c0_205 = arith.constant 0 : index
    %c0_206 = arith.constant 0 : index
    %c0_207 = arith.constant 0 : index
    %c0_208 = arith.constant 0 : index
    %94 = vector.load %arg9[%c0_205, %c0_206, %c0_207, %c0_208] : memref<2x16x16x1152xbf16, #tpu.memory_space<vmem>>, vector<2x16x16x1152xbf16>
    %95 = vector.shape_cast %94 : vector<2x16x16x1152xbf16> to vector<512x1152xbf16>
    %c0_209 = arith.constant 0 : index
    %c0_210 = arith.constant 0 : index
    %96 = vector.load %arg6[%c0_209, %c0_210] : memref<1152x128xbf16, #tpu.memory_space<vmem>>, vector<1152x128xbf16>
    %cst_211 = arith.constant dense<0.000000e+00> : vector<512x128xf32>
    %97 = tpu.matmul %95, %96, %cst_211 {dimension_numbers = #tpu.dot_dimension_numbers<[1], [0], [0], [1], [0, 0, 1, 1], [], []>} : vector<512x1152xbf16>, vector<1152x128xbf16>, vector<512x128xf32> -> vector<512x128xf32>
    %c0_212 = arith.constant 0 : index
    %c0_213 = arith.constant 0 : index
    %98 = vector.load %arg7[%c0_212, %c0_213] : memref<1x128xf32, #tpu.memory_space<vmem>>, vector<1x128xf32>
    %99 = vector.broadcast %98 : vector<1x128xf32> to vector<512x128xf32>
    %100 = arith.addf %97, %99 : vector<512x128xf32>
    %c0_214 = arith.constant 0 : index
    %c0_215 = arith.constant 0 : index
    %c0_216 = arith.constant 0 : index
    %c0_217 = arith.constant 0 : index
    %101 = vector.load %arg1[%c0_214, %c0_215, %c0_216, %c0_217] : memref<2x16x16x128xf32, #tpu.memory_space<vmem>>, vector<2x16x16x128xf32>
    %cst_218 = arith.constant 1.000000e+00 : f32
    %102 = vector.broadcast %cst_218 : f32 to vector<512x128xf32>
    %103 = arith.mulf %102, %100 : vector<512x128xf32>
    %104 = vector.shape_cast %103 : vector<512x128xf32> to vector<2x16x16x128xf32>
    %105 = arith.addf %101, %104 : vector<2x16x16x128xf32>
    %c0_219 = arith.constant 0 : index
    %c0_220 = arith.constant 0 : index
    %c0_221 = arith.constant 0 : index
    %c0_222 = arith.constant 0 : index
    %106 = vector.load %arg8[%c0_219, %c0_220, %c0_221, %c0_222] : memref<2x16x16x128xf32, #tpu.memory_space<vmem>>, vector<2x16x16x128xf32>
    tpu.vector_store %arg8[%c0_219, %c0_220, %c0_221, %c0_222], %105 {strides = array<i32>} : memref<2x16x16x128xf32, #tpu.memory_space<vmem>>, vector<2x16x16x128xf32>,
    return
  }
  func.func @transform_0(%arg0: i32) -> (i32, i32, i32, i32) {
    %c0_i32 = arith.constant 0 : i32
    %c0_i32_0 = arith.constant 0 : i32
    %c0_i32_1 = arith.constant 0 : i32
    %c0_i32_2 = arith.constant 0 : i32
    %c0_i32_3 = arith.constant 0 : i32
    return %c0_i32, %c0_i32_0, %c0_i32_1, %c0_i32_2 : i32, i32, i32, i32
  }
  func.func @transform_1(%arg0: i32) -> (i32, i32) {
    %c0_i32 = arith.constant 0 : i32
    %c0_i32_0 = arith.constant 0 : i32
    %c0_i32_1 = arith.constant 0 : i32
    return %c0_i32, %c0_i32_0 : i32, i32
  }
  func.func @transform_2(%arg0: i32) -> (i32, i32) {
    %c0_i32 = arith.constant 0 : i32
    %c0_i32_0 = arith.constant 0 : i32
    %c0_i32_1 = arith.constant 0 : i32
    return %c0_i32, %c0_i32_0 : i32, i32
  }
  func.func @transform_3(%arg0: i32) -> (i32, i32) {
    %c0_i32 = arith.constant 0 : i32
    %c0_i32_0 = arith.constant 0 : i32
    %c0_i32_1 = arith.constant 0 : i32
    return %c0_i32, %c0_i32_0 : i32, i32
  }
  func.func @transform_4(%arg0: i32) -> (i32, i32) {
    %c0_i32 = arith.constant 0 : i32
    %c0_i32_0 = arith.constant 0 : i32
    %c0_i32_1 = arith.constant 0 : i32
    return %c0_i32, %c0_i32_0 : i32, i32
  }
  func.func @transform_5(%arg0: i32) -> (i32, i32) {
    %c0_i32 = arith.constant 0 : i32
    %c0_i32_0 = arith.constant 0 : i32
    %c0_i32_1 = arith.constant 0 : i32
    return %c0_i32, %c0_i32_0 : i32, i32
  }
  func.func @transform_6(%arg0: i32) -> (i32, i32) {
    %c0_i32 = arith.constant 0 : i32
    %c0_i32_0 = arith.constant 0 : i32
    %c0_i32_1 = arith.constant 0 : i32
    return %c0_i32, %c0_i32_0 : i32, i32
  }
  func.func @transform_7(%arg0: i32) -> (i32, i32, i32, i32) {
    %c0_i32 = arith.constant 0 : i32
    %c0_i32_0 = arith.constant 0 : i32
    %c0_i32_1 = arith.constant 0 : i32
    %c0_i32_2 = arith.constant 0 : i32
    %c0_i32_3 = arith.constant 0 : i32
    return %c0_i32, %c0_i32_0, %c0_i32_1, %c0_i32_2 : i32, i32, i32, i32
  }
}

</mosaic_0001>

<bundles_post_ra>
// kernel: residual_block_no_bn.1
= control target key start
LH: loop header
LB: loop body
LE: loop exit
PB: predicated region body
PF: predicated region fallthrough
CT: control target
= control target key end

     0   :  { %v12197_v0 = vmov 0   ;;  %vm29_vm0 = vcmask 1040384   ;;  %vm30_vm1 = vsmask.f32 256  ;;  %v35_v5 = vld [vmem:[#allocation2 + $0x48] sm:$0x1]  ;;  %s19326_s1 = inlined_call_operand.vmem [shape: bf16[1152,128], index: 1, kind: input, shape index: {}]   ;;  %s19327_s0 = inlined_call_operand.vmem [shape: f32[2,16,16,128], index: 0, kind: input, shape index: {}]   ;;  %s19328_s2 = inlined_call_operand.vmem [shape: f32[1,128], index: 2, kind: input, shape index: {}]   ;;  %s19329_s5 = inlined_call_operand.vmem [shape: bf16[1152,128], index: 5, kind: input, shape index: {}]   ;;  %s19330_s3 = inlined_call_operand.vmem [shape: f32[1,128], index: 3, kind: input, shape index: {}]   ;;  %s19331_s4 = inlined_call_operand.vmem [shape: f32[1,128], index: 4, kind: input, shape index: {}]   ;;  %s19332_s6 = inlined_call_operand.vmem [shape: f32[1,128], index: 6, kind: input, shape index: {}]   ;;  %s19333_s7 = inlined_call_operand.vmem [shape: f32[2,16,16,128], index: 7, kind: output, shape index: {}]  }
   0x1   :  { %3708 = vmatprep.subr.bf16.mxu0 %v12197_v0  ;;  %27 = vst [vmem:[#allocation2] sm:$0xff] %v12197_v0  ;;  %28 = vst [vmem:[#allocation2 + $0x480] sm:$0xff] %v12197_v0  ;;  %v12018_v1 = vld [vmem:[%s19326_s1] sm:$0xff]   ;;  %3740 = vmatprep.mubr.bf16.mxu0 %v12197_v0  ;;  %v12019_v2 = vld [vmem:[%s19326_s1 + $0x8] sm:$0xff]   ;;  %vm954_vm3 = vsmask.f32 7938 }
   0x2   :  { %128 = vst [vmem:[#allocation2 + $0x8] sm:$0xff] %v12197_v0  ;;  %130 = vst [vmem:[#allocation2 + $0x10] sm:$0xff] %v12197_v0  ;;  %3709 = vmatpush1.bf16.msra.mxu0 %v12018_v1  ;;  %v12020_v3 = vld [vmem:[%s19326_s1 + $0x10] sm:$0xff]   ;;  %v12021_v4 = vld [vmem:[%s19326_s1 + $0x18] sm:$0xff]   ;;  %vm953_vm4 = vcmask 1047552   ;;  %v19529_v28 = vmov 0 }
   0x3   :  { %131 = vst [vmem:[#allocation2 + $0x490] sm:$0xff] %v12197_v0  ;;  %424 = vst [vmem:[#allocation2 + $0x468] sm:$0xff] %v12197_v0  ;;  %3710 = vmatprep.subr.bf16.mxu0 %v12197_v0  ;;  %v12022_v6 = vld [vmem:[%s19326_s1 + $0x20] sm:$0xff]   ;;  %v12023_v12 = vld [vmem:[%s19326_s1 + $0x28] sm:$0xff]   ;;  %vm132_vm6 = vcmask 1047559  }
   0x4   :  { %425 = vst [vmem:[#allocation2 + $0x8e8] sm:$0xff] %v12197_v0  ;;  %524 = vst [vmem:[#allocation2 + $0x478] sm:$0xff] %v12197_v0  ;;  %v12277_v10 = vld [vmem:[%s19327_s0] sm:$0xff]  ;;  %v623_v13 = vld [vmem:[%s19327_s0 + $0x8] sm:$0x7f] }
   0x5   :  { %525 = vst [vmem:[#allocation2 + $0x8f8] sm:$0xff] %v12197_v0  ;;  %vm12268_vm2 = vmand %vm29_vm0, %vm30_vm1  ;;  %v682_v14 = vpack.c.bf16 %v623_v13, %v12277_v10  ;;  %v12292_v15 = vld [vmem:[%s19327_s0 + $0x10] sm:$0xff]  ;;  %v625_v18 = vld [vmem:[%s19327_s0 + $0x18] sm:$0x7f]  ;;  %vm133_vm7 = vsmask.f32 7966 }
   0x6   :  { %3711 = vmatpush1.bf16.msra.mxu0 %v12019_v2  ;;  %v36_v11 = vsel %vm12268_vm2, 0, %v35_v5  ;;  %v38_v16 = vld [vmem:[#allocation2 + $0x90] sm:$0x1]  ;;  %v683_v22 = vpack.c.bf16 %v625_v18, %v12292_v15  ;;  %v12306_v23 = vld [vmem:[%s19327_s0 + $0x20] sm:$0xff]  ;;  %v41_v24 = vld [vmem:[#allocation2 + $0xd8] sm:$0x1] }
   0x7   :  { %3712 = vmatprep.subr.bf16.mxu0 %v12197_v0  ;;  %37 = vst [vmem:[#allocation2 + $0x48] sm:$0x1] %v36_v11  ;;  %v39_v17 = vsel %vm12268_vm2, 0, %v38_v16  ;;  %v12024_v19 = vld [vmem:[%s19326_s1 + $0x30] sm:$0xff]   ;;  %v713_v20 = vshrl.u32 %v682_v14, 16  ;;  %v716_v21 = vshll.u32 %v682_v14, 16  ;;  %vm12319_vm5 = vmand %vm953_vm4, %vm954_vm3 }
   0x8   :  { %v32_v8 = vld [vmem:[#allocation2] sm:$0x1]  ;;  %40 = vst [vmem:[#allocation2 + $0x90] sm:$0x1] %v39_v17  ;;  %v627_v25 = vld [vmem:[%s19327_s0 + $0x28] sm:$0x7f]  ;;  %vm12954_vm8 = vmand %vm132_vm6, %vm133_vm7 }
   0x9   :  { %v33_v9 = vsel %vm12268_vm2, 0, %v32_v8  ;;  %v12314_v26 = vld [vmem:[%s19327_s0 + $0x30] sm:$0xff]  ;;  %v715_v27 = vrot.slane %v713_v20, 7  ;;  %v19530_v28 = vsel %vm12319_vm5, 4294967295, %v19529_v28  ;;  %v720_v29 = vshrl.u32 %v683_v22, 16  ;;  %v12025_v40 = vld [vmem:[%s19326_s1 + $0x38] sm:$0xff]  }
   0xa   :  { %3713 = vmatpush1.bf16.msra.mxu0 %v12020_v3  ;;  %34 = vst [vmem:[#allocation2] sm:$0x1] %v33_v9  ;;  %19531 = vst [vmem:[#allocation4_spill] sm:$0xff] %v19530_v28  ;;  %v723_v30 = vshll.u32 %v683_v22, 16  ;;  %v42_v31 = vsel %vm12268_vm2, 0, %v41_v24  ;;  %v684_v32 = vpack.c.bf16 %v627_v25, %v12306_v23  ;;  %v12338_v43 = vld [vmem:[%s19327_s0 + $0x40] sm:$0xff] }
   0xb   :  { %3714 = vmatprep.subr.bf16.mxu0 %v12197_v0  ;;  %43 = vst [vmem:[#allocation2 + $0xd8] sm:$0x1] %v42_v31  ;;  %v44_v33 = vld [vmem:[#allocation2 + $0x120] sm:$0x1]  ;;  %v629_v34 = vld [vmem:[%s19327_s0 + $0x38] sm:$0x7f]  ;;  %v718_v35 = vor.u32 %v716_v21, %v715_v27 }
   0xc   :  { %v722_v37 = vrot.slane %v720_v29, 7  ;;  %v45_v38 = vsel %vm12268_vm2, 0, %v44_v33  ;;  %v685_v39 = vpack.c.bf16 %v629_v34, %v12314_v26  ;;  %v727_v41 = vshrl.u32 %v684_v32, 16  ;;  %v47_v44 = vld [vmem:[#allocation2 + $0x168] sm:$0x1]  ;;  %v12351_v50 = vld [vmem:[%s19327_s0 + $0x50] sm:$0xff] }
   0xd   :  { %v730_v42 = vshll.u32 %v684_v32, 16  ;;  %46 = vst [vmem:[#allocation2 + $0x120] sm:$0x1] %v45_v38  ;;  %v631_v49 = vld [vmem:[%s19327_s0 + $0x48] sm:$0x7f]  ;;  %v48_v53 = vsel %vm12268_vm2, 0, %v47_v44 }
   0xe   :  { %3715 = vmatpush1.bf16.msra.mxu0 %v12021_v4  ;;  %v956_v36 = vld [vmem:[#allocation2 + $0x48] sm:$0xff]  ;;  %v725_v46 = vor.u32 %v723_v30, %v722_v37  ;;  %v734_v47 = vshrl.u32 %v685_v39, 16  ;;  %v737_v48 = vshll.u32 %v685_v39, 16  ;;  %v729_v52 = vrot.slane %v727_v41, 7  ;;  %v50_v55 = vld [vmem:[#allocation2 + $0x1b0] sm:$0x1] }
   0xf   :  { %3716 = vmatprep.subr.bf16.mxu0 %v12197_v0  ;;  %v12343_v45 = vsel %vm12319_vm5, %v718_v35, %v956_v36  ;;  %v959_v51 = vld [vmem:[#allocation2 + $0x90] sm:$0xff]  ;;  %v686_v54 = vpack.c.bf16 %v631_v49, %v12338_v43  ;;  %49 = vst [vmem:[#allocation2 + $0x168] sm:$0x1] %v48_v53  ;;  %v51_v58 = vsel %vm12268_vm2, 0, %v50_v55  ;;  %v633_v59 = vld [vmem:[%s19327_s0 + $0x58] sm:$0x7f] }
  0x10   :  { %958 = vst [vmem:[#allocation2 + $0x48] sm:$0xff] %v12343_v45  ;;  %v12359_v56 = vsel %vm12319_vm5, %v725_v46, %v959_v51  ;;  %v736_v57 = vrot.slane %v734_v47, 7  ;;  %v12026_v60 = vld [vmem:[%s19326_s1 + $0x40] sm:$0xff]   ;;  %v732_v61 = vor.u32 %v730_v42, %v729_v52  ;;  %52 = vst [vmem:[#allocation2 + $0x1b0] sm:$0x1] %v51_v58  ;;  %v687_v1 = vpack.c.bf16 %v633_v59, %v12351_v50  ;;  %v12027_v8 = vld [vmem:[%s19326_s1 + $0x48] sm:$0xff]  }
  0x11   :  { %961 = vst [vmem:[#allocation2 + $0x90] sm:$0xff] %v12359_v56  ;;  %v741_v62 = vshrl.u32 %v686_v54, 16  ;;  %v744_v63 = vshll.u32 %v686_v54, 16  ;;  %v12374_v2 = vld [vmem:[%s19327_s0 + $0x60] sm:$0xff]  ;;  %v53_v5 = vld [vmem:[#allocation2 + $0x1f8] sm:$0x1] }
  0x12   :  { %3717 = vmatpush1.bf16.msra.mxu0 %v12022_v6  ;;  %v962_v3 = vld [vmem:[#allocation2 + $0xd8] sm:$0xff]  ;;  %v739_v4 = vor.u32 %v737_v48, %v736_v57  ;;  %v635_v6 = vld [vmem:[%s19327_s0 + $0x68] sm:$0x7f]  ;;  %v751_v13 = vshll.u32 %v687_v1, 16  ;;  %v12390_v14 = vld [vmem:[%s19327_s0 + $0x70] sm:$0xff]  ;;  %v54_v17 = vsel %vm12268_vm2, 0, %v53_v5 }
  0x13   :  { %3718 = vmatprep.subr.bf16.mxu0 %v12197_v0  ;;  %v12385_v9 = vsel %vm12319_vm5, %v732_v61, %v962_v3  ;;  %v743_v11 = vrot.slane %v741_v62, 7  ;;  %v688_v18 = vpack.c.bf16 %v635_v6, %v12374_v2  ;;  %v637_v20 = vld [vmem:[%s19327_s0 + $0x78] sm:$0x7f]  ;;  %55 = vst [vmem:[#allocation2 + $0x1f8] sm:$0x1] %v54_v17  ;;  %v12411_v31 = vld [vmem:[%s19327_s0 + $0x80] sm:$0xff] }
  0x14   :  { %964 = vst [vmem:[#allocation2 + $0xd8] sm:$0xff] %v12385_v9  ;;  %v965_v16 = vld [vmem:[#allocation2 + $0x120] sm:$0xff]  ;;  %v689_v30 = vpack.c.bf16 %v637_v20, %v12390_v14  ;;  %v59_v32 = vld [vmem:[#allocation2 + $0x288] sm:$0x1]  ;;  %v12421_v37 = vld [vmem:[%s19327_s0 + $0x90] sm:$0xff] }
  0x15   :  { %v12401_v21 = vsel %vm12319_vm5, %v739_v4, %v965_v16  ;;  %v746_v22 = vor.u32 %v744_v63, %v743_v11  ;;  %v755_v27 = vshrl.u32 %v688_v18, 16  ;;  %v758_v29 = vshll.u32 %v688_v18, 16  ;;  %v639_v36 = vld [vmem:[%s19327_s0 + $0x88] sm:$0x7f]  ;;  %v12028_v38 = vld [vmem:[%s19326_s1 + $0x50] sm:$0xff]   ;;  %v12447_v55 = vld [vmem:[%s19327_s0 + $0xa0] sm:$0xff] }
  0x16   :  { %3719 = vmatpush1.bf16.msra.mxu0 %v12023_v12  ;;  %v748_v12 = vshrl.u32 %v687_v1, 16  ;;  %967 = vst [vmem:[#allocation2 + $0x120] sm:$0xff] %v12401_v21  ;;  %v968_v33 = vld [vmem:[#allocation2 + $0x168] sm:$0xff]  ;;  %v60_v35 = vsel %vm12268_vm2, 0, %v59_v32  ;;  %v762_v42 = vshrl.u32 %v689_v30, 16  ;;  %v765_v44 = vshll.u32 %v689_v30, 16 }
  0x17   :  { %3720 = vmatprep.subr.bf16.mxu0 %v12197_v0  ;;  %v12428_v39 = vsel %vm12319_vm5, %v746_v22, %v968_v33  ;;  %v757_v41 = vrot.slane %v755_v27, 7  ;;  %61 = vst [vmem:[#allocation2 + $0x288] sm:$0x1] %v60_v35  ;;  %v690_v47 = vpack.c.bf16 %v639_v36, %v12411_v31  ;;  %v62_v48 = vld [vmem:[#allocation2 + $0x2d0] sm:$0x1]  ;;  %v12029_v61 = vld [vmem:[%s19326_s1 + $0x58] sm:$0xff]  }
  0x18   :  { %v750_v24 = vrot.slane %v748_v12, 7  ;;  %970 = vst [vmem:[#allocation2 + $0x168] sm:$0xff] %v12428_v39  ;;  %v641_v49 = vld [vmem:[%s19327_s0 + $0x98] sm:$0x7f]  ;;  %v764_v52 = vrot.slane %v762_v42, 7  ;;  %v63_v53 = vsel %vm12268_vm2, 0, %v62_v48 }
  0x19   :  { %v760_v51 = vor.u32 %v758_v29, %v757_v41  ;;  %v691_v54 = vpack.c.bf16 %v641_v49, %v12421_v37  ;;  %v769_v57 = vshrl.u32 %v690_v47, 16  ;;  %v772_v58 = vshll.u32 %v690_v47, 16  ;;  %64 = vst [vmem:[#allocation2 + $0x2d0] sm:$0x1] %v63_v53  ;;  %v65_v59 = vld [vmem:[#allocation2 + $0x318] sm:$0x1] }
  0x1a   :  { %3721 = vmatpush1.bf16.msra.mxu0 %v12024_v19  ;;  %v56_v19 = vld [vmem:[#allocation2 + $0x240] sm:$0x1]  ;;  %v753_v34 = vor.u32 %v751_v13, %v750_v24  ;;  %v974_v62 = vld [vmem:[#allocation2 + $0x1f8] sm:$0xff]  ;;  %v767_v63 = vor.u32 %v765_v44, %v764_v52  ;;  %v66_v4 = vsel %vm12268_vm2, 0, %v65_v59  ;;  %v12460_v5 = vld [vmem:[%s19327_s0 + $0xb0] sm:$0xff] }
  0x1b   :  { %3722 = vmatprep.subr.bf16.mxu0 %v12197_v0  ;;  %v57_v25 = vsel %vm12268_vm2, 0, %v56_v19  ;;  %v776_v1 = vshrl.u32 %v691_v54, 16  ;;  %v779_v3 = vshll.u32 %v691_v54, 16  ;;  %v12464_v6 = vsel %vm12319_vm5, %v760_v51, %v974_v62  ;;  %67 = vst [vmem:[#allocation2 + $0x318] sm:$0x1] %v66_v4  ;;  %v12483_v29 = vld [vmem:[%s19327_s0 + $0xc0] sm:$0xff] }
  0x1c   :  { %58 = vst [vmem:[#allocation2 + $0x240] sm:$0x1] %v57_v25  ;;  %v771_v11 = vrot.slane %v769_v57, 7  ;;  %v68_v13 = vld [vmem:[#allocation2 + $0x360] sm:$0x1]  ;;  %976 = vst [vmem:[#allocation2 + $0x1f8] sm:$0xff] %v12464_v6 }
  0x1d   :  { %v645_v16 = vld [vmem:[%s19327_s0 + $0xb8] sm:$0x7f]  ;;  %v778_v18 = vrot.slane %v776_v1, 7  ;;  %v69_v19 = vsel %vm12268_vm2, 0, %v68_v13  ;;  %v12488_v35 = vld [vmem:[%s19327_s0 + $0xd0] sm:$0xff]  ;;  %v12030_v36 = vld [vmem:[%s19326_s1 + $0x60] sm:$0xff]  }
  0x1e   :  { %3723 = vmatpush1.bf16.msra.mxu0 %v12025_v40  ;;  %v971_v40 = vld [vmem:[#allocation2 + $0x1b0] sm:$0xff]  ;;  %v693_v20 = vpack.c.bf16 %v645_v16, %v12460_v5  ;;  %v774_v22 = vor.u32 %v772_v58, %v771_v11  ;;  %v980_v24 = vld [vmem:[#allocation2 + $0x288] sm:$0xff]  ;;  %70 = vst [vmem:[#allocation2 + $0x360] sm:$0x1] %v69_v19  ;;  %v649_v51 = vld [vmem:[%s19327_s0 + $0xd8] sm:$0x7f] }
  0x1f   :  { %3724 = vmatprep.subr.bf16.mxu0 %v12197_v0  ;;  %v12433_v46 = vsel %vm12319_vm5, %v753_v34, %v971_v40  ;;  %v781_v30 = vor.u32 %v779_v3, %v778_v18  ;;  %v71_v34 = vld [vmem:[#allocation2 + $0x3a8] sm:$0x1]  ;;  %v74_v49 = vld [vmem:[#allocation2 + $0x3f0] sm:$0x1]  ;;  %v695_v57 = vpack.c.bf16 %v649_v51, %v12488_v35  ;;  %v12518_v58 = vld [vmem:[%s19327_s0 + $0xe0] sm:$0xff] }
  0x20   :  { %973 = vst [vmem:[#allocation2 + $0x1b0] sm:$0xff] %v12433_v46  ;;  %v790_v32 = vshrl.u32 %v693_v20, 16  ;;  %v793_v33 = vshll.u32 %v693_v20, 16  ;;  %v72_v41 = vsel %vm12268_vm2, 0, %v71_v34  ;;  %v647_v42 = vld [vmem:[%s19327_s0 + $0xc8] sm:$0x7f] }
  0x21   :  { %v983_v44 = vld [vmem:[#allocation2 + $0x2d0] sm:$0xff]  ;;  %73 = vst [vmem:[#allocation2 + $0x3a8] sm:$0x1] %v72_v41  ;;  %v694_v48 = vpack.c.bf16 %v647_v42, %v12483_v29  ;;  %v75_v54 = vsel %vm12268_vm2, 0, %v74_v49  ;;  %v12031_v59 = vld [vmem:[%s19326_s1 + $0x68] sm:$0xff]   ;;  %v804_v3 = vshrl.u32 %v695_v57, 16 }
  0x22   :  { %3725 = vmatpush1.bf16.msra.mxu0 %v12026_v60  ;;  %v643_v60 = vld [vmem:[%s19327_s0 + $0xa8] sm:$0x7f]  ;;  %v792_v47 = vrot.slane %v790_v32, 7  ;;  %v12510_v52 = vsel %vm12319_vm5, %v781_v30, %v983_v44  ;;  %76 = vst [vmem:[#allocation2 + $0x3f0] sm:$0x1] %v75_v54  ;;  %v807_v4 = vshll.u32 %v695_v57, 16 }
  0x23   :  { %3726 = vmatprep.subr.bf16.mxu0 %v12197_v0  ;;  %v692_v12 = vpack.c.bf16 %v643_v60, %v12447_v55  ;;  %985 = vst [vmem:[#allocation2 + $0x2d0] sm:$0xff] %v12510_v52  ;;  %v986_v60 = vld [vmem:[#allocation2 + $0x318] sm:$0xff]  ;;  %v797_v62 = vshrl.u32 %v694_v48, 16  ;;  %v651_v11 = vld [vmem:[%s19327_s0 + $0xe8] sm:$0x7f]  ;;  %v12032_v19 = vld [vmem:[%s19326_s1 + $0x70] sm:$0xff]  }
  0x24   :  { %v696_v18 = vpack.c.bf16 %v651_v11, %v12518_v58  ;;  %v1047_v44 = vld [vmem:[%s19327_s0 + $0x8] sm:$0xff]  ;;  %v2837_v51 = vld [vmem:[#allocation2] sm:$0xff]  ;;  %v12036_v11 = vld [vmem:[%s19326_s1 + $0x90] sm:$0xff]   ;;  %vm1256_vm9 = vsmask.f32 7424 }
  0x25   :  { %v783_v25 = vshrl.u32 %v692_v12, 16  ;;  %v786_v27 = vshll.u32 %v692_v12, 16  ;;  %v989_v12 = vld [vmem:[#allocation2 + $0x360] sm:$0xff]  ;;  %v799_v13 = vrot.slane %v797_v62, 7  ;;  %v1106_v57 = vpack.c.bf16 %v1047_v44, %v12277_v10  ;;  %v653_v62 = vld [vmem:[%s19327_s0 + $0x108] sm:$0x7f]  ;;  %vm12992_vm10 = vmand %vm953_vm4, %vm1256_vm9 }
  0x26   :  { %3727 = vmatpush1.bf16.msra.mxu0 %v12027_v8  ;;  %v977_v8 = vld [vmem:[#allocation2 + $0x240] sm:$0xff]  ;;  %v1049_v10 = vld [vmem:[%s19327_s0 + $0x18] sm:$0xff] }
  0x27   :  { %3728 = vmatprep.subr.bf16.mxu0 %v12197_v0  ;;  %v12474_v17 = vsel %vm12319_vm5, %v767_v63, %v977_v8  ;;  %v785_v40 = vrot.slane %v783_v25, 7  ;;  %v800_v63 = vshll.u32 %v694_v48, 16  ;;  %v77_v8 = vld [vmem:[#allocation2 + $0x438] sm:$0x1]  ;;  %v811_v25 = vshrl.u32 %v696_v18, 16 }
  0x28   :  { %979 = vst [vmem:[#allocation2 + $0x240] sm:$0xff] %v12474_v17  ;;  %v78_v16 = vsel %vm12268_vm2, 0, %v77_v8  ;;  %v992_v30 = vld [vmem:[#allocation2 + $0x3a8] sm:$0xff]  ;;  %v89_v44 = vld [vmem:[#allocation2 + $0x558] sm:$0x1] }
  0x29   :  { %v788_v53 = vor.u32 %v786_v27, %v785_v40  ;;  %79 = vst [vmem:[#allocation2 + $0x438] sm:$0x1] %v78_v16  ;;  %v814_v27 = vshll.u32 %v696_v18, 16  ;;  %v813_v34 = vrot.slane %v811_v25, 7  ;;  %v12033_v40 = vld [vmem:[%s19326_s1 + $0x78] sm:$0xff]   ;;  %v995_v41 = vld [vmem:[#allocation2 + $0x3f0] sm:$0xff] }
  0x2a   :  { %3729 = vmatpush1.bf16.msra.mxu0 %v12028_v38  ;;  %v12495_v38 = vsel %vm12319_vm5, %v774_v22, %v980_v24  ;;  %v806_v22 = vrot.slane %v804_v3, 7  ;;  %v802_v24 = vor.u32 %v800_v63, %v799_v13  ;;  %v12035_v3 = vld [vmem:[%s19326_s1 + $0x88] sm:$0xff]   ;;  %v1107_v13 = vpack.c.bf16 %v1049_v10, %v12292_v15  ;;  %v86_v18 = vld [vmem:[#allocation2 + $0x510] sm:$0x1]  ;;  %v655_v25 = vld [vmem:[%s19327_s0 + $0x118] sm:$0x7f] }
  0x2b   :  { %3730 = vmatprep.subr.bf16.mxu0 %v12197_v0  ;;  %982 = vst [vmem:[#allocation2 + $0x288] sm:$0xff] %v12495_v38  ;;  %v12526_v1 = vsel %vm12319_vm5, %v788_v53, %v986_v60  ;;  %v816_v48 = vor.u32 %v814_v27, %v813_v34  ;;  %v12034_v53 = vld [vmem:[%s19326_s1 + $0x80] sm:$0xff]  }
  0x2c   :  { %988 = vst [vmem:[#allocation2 + $0x318] sm:$0xff] %v12526_v1  ;;  %v809_v32 = vor.u32 %v807_v4, %v806_v22  ;;  %v12577_v60 = vld [vmem:[%s19327_s0 + $0x100] sm:$0xff]  ;;  %v12600_v22 = vld [vmem:[%s19327_s0 + $0x110] sm:$0xff] }
  0x2d   :  { %v697_v63 = vpack.c.bf16 %v653_v62, %v12577_v60  ;;  %v698_v27 = vpack.c.bf16 %v655_v25, %v12600_v22 }
  0x2e   :  { %3731 = vmatpush1.bf16.msra.mxu0 %v12029_v61  ;;  %v795_v61 = vor.u32 %v793_v33, %v792_v47  ;;  %v12547_v33 = vsel %vm12319_vm5, %v802_v24, %v992_v30  ;;  %v12560_v47 = vsel %vm12319_vm5, %v809_v32, %v995_v41  ;;  %v87_v24 = vsel %vm12268_vm2, 0, %v86_v18  ;;  %v1051_v30 = vld [vmem:[%s19327_s0 + $0x28] sm:$0xff]  ;;  %v12037_v32 = vld [vmem:[%s19326_s1 + $0x98] sm:$0xff]  }
  0x2f   :  { %3732 = vmatprep.subr.bf16.mxu0 %v12197_v0  ;;  %994 = vst [vmem:[#allocation2 + $0x3a8] sm:$0xff] %v12547_v33  ;;  %997 = vst [vmem:[#allocation2 + $0x3f0] sm:$0xff] %v12560_v47  ;;  %v818_v4 = vshrl.u32 %v697_v63, 16  ;;  %v821_v8 = vshll.u32 %v697_v63, 16  ;;  %v825_v34 = vshrl.u32 %v698_v27, 16  ;;  %v1108_v41 = vpack.c.bf16 %v1051_v30, %v12306_v23 }
  0x30   :  { %v12541_v20 = vsel %vm12319_vm5, %v795_v61, %v989_v12  ;;  %v998_v49 = vld [vmem:[#allocation2 + $0x438] sm:$0xff]  ;;  %88 = vst [vmem:[#allocation2 + $0x510] sm:$0x1] %v87_v24 }
  0x31   :  { %991 = vst [vmem:[#allocation2 + $0x360] sm:$0xff] %v12541_v20  ;;  %v12569_v54 = vsel %vm12319_vm5, %v816_v48, %v998_v49  ;;  %v820_v12 = vrot.slane %v818_v4, 7  ;;  %v12629_v49 = vld [vmem:[%s19327_s0 + $0x120] sm:$0xff]  ;;  %v12041_v24 = vld [vmem:[%s19326_s1 + $0xb8] sm:$0xff]  }
  0x32   :  { %3733 = vmatpush1.bf16.msra.mxu0 %v12030_v36  ;;  %v80_v36 = vld [vmem:[#allocation2 + $0x480] sm:$0x1]  ;;  %1000 = vst [vmem:[#allocation2 + $0x438] sm:$0xff] %v12569_v54 }
  0x33   :  { %3734 = vmatprep.subr.bf16.mxu0 %v12197_v0  ;;  %v81_v42 = vsel %vm12268_vm2, 0, %v80_v36  ;;  %v823_v16 = vor.u32 %v821_v8, %v820_v12  ;;  %v828_v36 = vshll.u32 %v698_v27, 16  ;;  %v92_v8 = vld [vmem:[#allocation2 + $0x5a0] sm:$0x1]  ;;  %v12658_v12 = vld [vmem:[%s19327_s0 + $0x130] sm:$0xff] }
  0x34   :  { %82 = vst [vmem:[#allocation2 + $0x480] sm:$0x1] %v81_v42 }
  0x36   :  { %3735 = vmatpush1.bf16.msra.mxu0 %v12031_v59  ;;  %v83_v59 = vld [vmem:[#allocation2 + $0x4c8] sm:$0x1] }
  0x37   :  { %3736 = vmatprep.subr.bf16.mxu0 %v12197_v0  ;;  %v84_v61 = vsel %vm12268_vm2, 0, %v83_v59  ;;  %v1004_v48 = vld [vmem:[#allocation2 + $0x510] sm:$0xff]  ;;  %v1053_v59 = vld [vmem:[%s19327_s0 + $0x38] sm:$0xff] }
  0x38   :  { %85 = vst [vmem:[#allocation2 + $0x4c8] sm:$0x1] %v84_v61  ;;  %v12039_v61 = vld [vmem:[%s19326_s1 + $0xa8] sm:$0xff]  }
  0x3a   :  { %3737 = vmatpush1.bf16.msra.mxu0 %v12032_v19 }
  0x3b   :  { %3738 = vmatprep.subr.bf16.mxu0 %v12197_v0 }
  0x3e   :  { %3739 = vmatpush1.bf16.msra.mxu0 %v12033_v40  ;;  %v827_v40 = vrot.slane %v825_v34, 7 }
  0x3f   :  { %3997 = vmatprep.subr.bf16.mxu0 %v12197_v0  ;;  %v1001_v19 = vld [vmem:[#allocation2 + $0x4c8] sm:$0xff] }
  0x40   :  { %v12609_v15 = vsel %vm12319_vm5, %v823_v16, %v1001_v19  ;;  %v830_v42 = vor.u32 %v828_v36, %v827_v40  ;;  %v659_v16 = vld [vmem:[%s19327_s0 + $0x138] sm:$0x7f]  ;;  %v1055_v19 = vld [vmem:[%s19327_s0 + $0x48] sm:$0xff]  ;;  %v12687_v40 = vld [vmem:[%s19327_s0 + $0x140] sm:$0xff] }
  0x41   :  { %3741 = vmatmul.mubr.bf16.vlgmr.msra.gmra.mrb[0].mxu0 %v2837_v51  ;;  %1003 = vst [vmem:[#allocation2 + $0x4c8] sm:$0xff] %v12609_v15  ;;  %v90_v51 = vsel %vm12268_vm2, 0, %v89_v44  ;;  %v700_v18 = vpack.c.bf16 %v659_v16, %v12658_v12  ;;  %v95_v36 = vld [vmem:[#allocation2 + $0x5e8] sm:$0x1] }
  0x42   :  { %3998 = vmatpush1.bf16.msra.mxu0 %v12034_v53  ;;  %3748 = vmatprep.mubr.bf16.mxu0 %v1106_v57  ;;  %v657_v53 = vld [vmem:[%s19327_s0 + $0x128] sm:$0x7f]  ;;  %v12638_v23 = vsel %vm12319_vm5, %v830_v42, %v1004_v48  ;;  %91 = vst [vmem:[#allocation2 + $0x558] sm:$0x1] %v90_v51 }
  0x43   :  { %3999 = vmatprep.subr.bf16.mxu0 %v12197_v0  ;;  %v699_v57 = vpack.c.bf16 %v657_v53, %v12629_v49  ;;  %1006 = vst [vmem:[#allocation2 + $0x510] sm:$0xff] %v12638_v23  ;;  %v839_v25 = vshrl.u32 %v700_v18, 16  ;;  %v842_v27 = vshll.u32 %v700_v18, 16  ;;  %v661_v42 = vld [vmem:[%s19327_s0 + $0x148] sm:$0x7f]  ;;  %v1057_v53 = vld [vmem:[%s19327_s0 + $0x58] sm:$0xff] }
  0x44   :  { %v12043_v44 = vld [vmem:[%s19326_s1 + $0xc8] sm:$0xff]  }
  0x45   :  { %v832_v62 = vshrl.u32 %v699_v57, 16  ;;  %v835_v63 = vshll.u32 %v699_v57, 16  ;;  %v841_v30 = vrot.slane %v839_v25, 7  ;;  %v12707_v57 = vld [vmem:[#allocation2 + $0x8] sm:$0xff]  ;;  %v101_v25 = vld [vmem:[#allocation2 + $0x678] sm:$0x1] }
  0x46   :  { %4000 = vmatpush1.bf16.msra.mxu0 %v12035_v3  ;;  %v1109_v3 = vpack.c.bf16 %v1053_v59, %v12314_v26  ;;  %v1059_v16 = vld [vmem:[%s19327_s0 + $0x68] sm:$0xff] }
  0x47   :  { %4001 = vmatprep.subr.bf16.mxu0 %v12197_v0  ;;  %v834_v10 = vrot.slane %v832_v62, 7  ;;  %v844_v34 = vor.u32 %v842_v27, %v841_v30  ;;  %v665_v30 = vld [vmem:[%s19327_s0 + $0x168] sm:$0x7f] }
  0x49   :  { %3749 = vmatmul.mubr.bf16.gmra.mrb[4].mxu0 %v12343_v45  ;;  %v12038_v45 = vld [vmem:[%s19326_s1 + $0xa0] sm:$0xff]   ;;  %v837_v4 = vor.u32 %v835_v63, %v834_v10  ;;  %v98_v63 = vld [vmem:[#allocation2 + $0x630] sm:$0x1] }
  0x4a   :  { %3756 = vmatprep.mubr.bf16.mxu0 %v1107_v13  ;;  %4002 = vmatpush1.bf16.msra.mxu0 %v12036_v11  ;;  %v1007_v11 = vld [vmem:[#allocation2 + $0x558] sm:$0xff]  ;;  %v93_v13 = vsel %vm12268_vm2, 0, %v92_v8  ;;  %v12718_v10 = vld [vmem:[%s19327_s0 + $0x150] sm:$0xff] }
  0x4b   :  { %4003 = vmatprep.subr.bf16.mxu0 %v12197_v0  ;;  %v12667_v26 = vsel %vm12319_vm5, %v837_v4, %v1007_v11  ;;  %94 = vst [vmem:[#allocation2 + $0x5a0] sm:$0x1] %v93_v13 }
  0x4c   :  { %1009 = vst [vmem:[#allocation2 + $0x558] sm:$0xff] %v12667_v26 }
  0x4e   :  { %4004 = vmatpush1.bf16.msra.mxu0 %v12037_v32  ;;  %v1110_v32 = vpack.c.bf16 %v1055_v19, %v12338_v43  ;;  %v1112_v19 = vpack.c.bf16 %v1059_v16, %v12374_v2  ;;  %v669_v16 = vld [vmem:[%s19327_s0 + $0x188] sm:$0x7f] }
  0x4f   :  { %4005 = vmatprep.subr.bf16.mxu0 %v12197_v0 }
  0x51   :  { %3757 = vmatmul.mubr.bf16.gmra.mrb[8].mxu0 %v12359_v56  ;;  %v12040_v56 = vld [vmem:[%s19326_s1 + $0xb0] sm:$0xff]  }
  0x52   :  { %3764 = vmatprep.mubr.bf16.mxu0 %v1108_v41  ;;  %4006 = vmatpush1.bf16.msra.mxu0 %v12038_v45  ;;  %v1010_v45 = vld [vmem:[#allocation2 + $0x5a0] sm:$0xff]  ;;  %v96_v41 = vsel %vm12268_vm2, 0, %v95_v36 }
  0x53   :  { %4007 = vmatprep.subr.bf16.mxu0 %v12197_v0  ;;  %v12696_v43 = vsel %vm12319_vm5, %v844_v34, %v1010_v45  ;;  %97 = vst [vmem:[#allocation2 + $0x5e8] sm:$0x1] %v96_v41  ;;  %v12045_v34 = vld [vmem:[%s19326_s1 + $0xd8] sm:$0xff]  }
  0x54   :  { %1012 = vst [vmem:[#allocation2 + $0x5a0] sm:$0xff] %v12696_v43  ;;  %v1061_v41 = vld [vmem:[%s19327_s0 + $0x78] sm:$0xff] }
  0x56   :  { %4008 = vmatpush1.bf16.msra.mxu0 %v12039_v61  ;;  %v12044_v61 = vld [vmem:[%s19326_s1 + $0xd0] sm:$0xff]  }
  0x57   :  { %4009 = vmatprep.subr.bf16.mxu0 %v12197_v0 }
  0x59   :  { %3765 = vmatmul.mubr.bf16.gmra.mrb[12].mxu0 %v12385_v9  ;;  %v12042_v9 = vld [vmem:[%s19326_s1 + $0xc0] sm:$0xff]  }
  0x5a   :  { %3772 = vmatprep.mubr.bf16.mxu0 %v1109_v3  ;;  %4010 = vmatpush1.bf16.msra.mxu0 %v12040_v56  ;;  %v1013_v56 = vld [vmem:[#allocation2 + $0x5e8] sm:$0xff]  ;;  %v99_v3 = vsel %vm12268_vm2, 0, %v98_v63 }
  0x5b   :  { %4011 = vmatprep.subr.bf16.mxu0 %v12197_v0  ;;  %100 = vst [vmem:[#allocation2 + $0x630] sm:$0x1] %v99_v3  ;;  %v1063_v63 = vld [vmem:[%s19327_s0 + $0x88] sm:$0xff] }
  0x5c   :  { %v1114_v3 = vpack.c.bf16 %v1063_v63, %v12411_v31  ;;  %v673_v63 = vld [vmem:[%s19327_s0 + $0x1a8] sm:$0x7f] }
  0x5e   :  { %4012 = vmatpush1.bf16.msra.mxu0 %v12041_v24 }
  0x5f   :  { %4013 = vmatprep.subr.bf16.mxu0 %v12197_v0  ;;  %v701_v0 = vpack.c.bf16 %v661_v42, %v12687_v40 }
  0x61   :  { %3773 = vmatmul.mubr.bf16.gmra.mrb[16].mxu0 %v12401_v21  ;;  %v846_v48 = vshrl.u32 %v701_v0, 16  ;;  %v849_v51 = vshll.u32 %v701_v0, 16  ;;  %v1111_v21 = vpack.c.bf16 %v1057_v53, %v12351_v50  ;;  %v663_v50 = vld [vmem:[%s19327_s0 + $0x158] sm:$0x7f]  ;;  %v1113_v0 = vpack.c.bf16 %v1061_v41, %v12390_v14 }
  0x62   :  { %3780 = vmatprep.mubr.bf16.mxu0 %v1110_v32  ;;  %4014 = vmatpush1.bf16.msra.mxu0 %v12042_v9  ;;  %v702_v8 = vpack.c.bf16 %v663_v50, %v12718_v10  ;;  %v1016_v27 = vld [vmem:[#allocation2 + $0x630] sm:$0xff]  ;;  %v102_v9 = vsel %vm12268_vm2, 0, %v101_v25  ;;  %v671_v41 = vld [vmem:[%s19327_s0 + $0x198] sm:$0x7f] }
  0x63   :  { %4015 = vmatprep.subr.bf16.mxu0 %v12707_v57  ;;  %v848_v59 = vrot.slane %v846_v48, 7  ;;  %103 = vst [vmem:[#allocation2 + $0x678] sm:$0x1] %v102_v9 }
  0x64   :  { %v853_v11 = vshrl.u32 %v702_v8, 16  ;;  %v856_v13 = vshll.u32 %v702_v8, 16  ;;  %v107_v8 = vld [vmem:[#allocation2 + $0x708] sm:$0x1] }
  0x65   :  { %v851_v62 = vor.u32 %v849_v51, %v848_v59  ;;  %v12765_v51 = vld [vmem:[%s19327_s0 + $0x170] sm:$0xff]  ;;  %v667_v59 = vld [vmem:[%s19327_s0 + $0x178] sm:$0x7f] }
  0x66   :  { %4016 = vmatpush1.bf16.msra.mxu0 %v12043_v44  ;;  %v855_v18 = vrot.slane %v853_v11, 7  ;;  %v104_v44 = vld [vmem:[#allocation2 + $0x6c0] sm:$0x1]  ;;  %v704_v14 = vpack.c.bf16 %v667_v59, %v12765_v51 }
  0x67   :  { %4017 = vmatprep.subr.bf16.mxu0 %v12707_v57  ;;  %v12727_v4 = vsel %vm12319_vm5, %v851_v62, %v1013_v56  ;;  %v105_v53 = vsel %vm12268_vm2, 0, %v104_v44  ;;  %v1067_v44 = vld [vmem:[%s19327_s0 + $0xa8] sm:$0xff] }
  0x68   :  { %1015 = vst [vmem:[#allocation2 + $0x5e8] sm:$0xff] %v12727_v4  ;;  %v858_v24 = vor.u32 %v856_v13, %v855_v18  ;;  %106 = vst [vmem:[#allocation2 + $0x6c0] sm:$0x1] %v105_v53  ;;  %v870_v62 = vshll.u32 %v704_v14, 16  ;;  %v12786_v13 = vld [vmem:[%s19327_s0 + $0x180] sm:$0xff]  ;;  %v1116_v53 = vpack.c.bf16 %v1067_v44, %v12447_v55 }
  0x69   :  { %3781 = vmatmul.mubr.bf16.gmra.mrb[20].mxu0 %v12428_v39  ;;  %v12740_v39 = vld [vmem:[%s19327_s0 + $0x160] sm:$0xff]  ;;  %v705_v31 = vpack.c.bf16 %v669_v16, %v12786_v13  ;;  %v677_v44 = vld [vmem:[%s19327_s0 + $0x1c8] sm:$0x7f] }
  0x6a   :  { %3788 = vmatprep.mubr.bf16.mxu0 %v1111_v21  ;;  %4018 = vmatpush1.bf16.msra.mxu0 %v12044_v61  ;;  %v12749_v32 = vsel %vm12319_vm5, %v858_v24, %v1016_v27  ;;  %v703_v2 = vpack.c.bf16 %v665_v30, %v12740_v39  ;;  %v1019_v48 = vld [vmem:[#allocation2 + $0x678] sm:$0xff]  ;;  %v867_v61 = vshrl.u32 %v704_v14, 16 }
  0x6b   :  { %4019 = vmatprep.subr.bf16.mxu0 %v12707_v57  ;;  %1018 = vst [vmem:[#allocation2 + $0x630] sm:$0xff] %v12749_v32  ;;  %v874_v24 = vshrl.u32 %v705_v31, 16  ;;  %v877_v25 = vshll.u32 %v705_v31, 16  ;;  %v1065_v27 = vld [vmem:[%s19327_s0 + $0x98] sm:$0xff]  ;;  %v116_v31 = vld [vmem:[#allocation2 + $0x7e0] sm:$0x1] }
  0x6c   :  { %v860_v36 = vshrl.u32 %v703_v2, 16  ;;  %v863_v45 = vshll.u32 %v703_v2, 16  ;;  %v869_v56 = vrot.slane %v867_v61, 7  ;;  %v1115_v30 = vpack.c.bf16 %v1065_v27, %v12421_v37  ;;  %v110_v2 = vld [vmem:[#allocation2 + $0x750] sm:$0x1] }
  0x6d   :  { %v876_v9 = vrot.slane %v874_v24, 7  ;;  %v113_v14 = vld [vmem:[#allocation2 + $0x798] sm:$0x1]  ;;  %v12857_v24 = vld [vmem:[%s19327_s0 + $0x1b0] sm:$0xff] }
  0x6e   :  { %4020 = vmatpush1.bf16.msra.mxu0 %v12045_v34  ;;  %v862_v42 = vrot.slane %v860_v36, 7  ;;  %v872_v50 = vor.u32 %v870_v62, %v869_v56  ;;  %v12811_v36 = vld [vmem:[%s19327_s0 + $0x190] sm:$0xff]  ;;  %v12832_v62 = vld [vmem:[%s19327_s0 + $0x1a0] sm:$0xff]  ;;  %v675_v27 = vld [vmem:[%s19327_s0 + $0x1b8] sm:$0x7f] }
  0x6f   :  { %4021 = vmatprep.subr.bf16.mxu0 %v12707_v57  ;;  %v1022_v11 = vld [vmem:[#allocation2 + $0x6c0] sm:$0xff]  ;;  %v706_v37 = vpack.c.bf16 %v671_v41, %v12811_v36  ;;  %v707_v55 = vpack.c.bf16 %v673_v63, %v12832_v62 }
  0x70   :  { %v12795_v18 = vsel %vm12319_vm5, %v872_v50, %v1022_v11  ;;  %v1069_v11 = vld [vmem:[%s19327_s0 + $0xb8] sm:$0xff] }
  0x71   :  { %3789 = vmatmul.mubr.bf16.gmra.mrb[24].mxu0 %v12433_v46  ;;  %v865_v46 = vor.u32 %v863_v45, %v862_v42  ;;  %1024 = vst [vmem:[#allocation2 + $0x6c0] sm:$0xff] %v12795_v18  ;;  %v111_v45 = vsel %vm12268_vm2, 0, %v110_v2  ;;  %v888_v50 = vshrl.u32 %v707_v55, 16  ;;  %v1117_v16 = vpack.c.bf16 %v1069_v11, %v12460_v5  ;;  %v1071_v2 = vld [vmem:[%s19327_s0 + $0xc8] sm:$0xff]  ;;  %v679_v11 = vld [vmem:[%s19327_s0 + $0x1d8] sm:$0x7f] }
  0x72   :  { %3796 = vmatprep.mubr.bf16.mxu0 %v1112_v19  ;;  %v12046_v19 = vld [vmem:[%s19326_s1 + $0xe0] sm:$0xff]   ;;  %112 = vst [vmem:[#allocation2 + $0x750] sm:$0x1] %v111_v45  ;;  %v708_v5 = vpack.c.bf16 %v675_v27, %v12857_v24  ;;  %v1118_v45 = vpack.c.bf16 %v1071_v2, %v12483_v29  ;;  %v681_v2 = vld [vmem:[%s19327_s0 + $0x1e8] sm:$0x7f] }
  0x73   :  { %v12774_v21 = vsel %vm12319_vm5, %v865_v46, %v1019_v48  ;;  %4022 = vmatpush1.bf16.msra.mxu0 %v12046_v19  ;;  %v884_v46 = vshll.u32 %v706_v37, 16 }
  0x74   :  { %1021 = vst [vmem:[#allocation2 + $0x678] sm:$0xff] %v12774_v21  ;;  %4023 = vmatprep.subr.bf16.mxu0 %v12707_v57 }
  0x79   :  { %3797 = vmatmul.mubr.bf16.gmra.mrb[28].mxu0 %v12464_v6  ;;  %v108_v6 = vsel %vm12268_vm2, 0, %v107_v8  ;;  %v1028_v61 = vld [vmem:[#allocation2 + $0x750] sm:$0xff]  ;;  %v891_v8 = vshll.u32 %v707_v55, 16 }
  0x7a   :  { %3804 = vmatprep.mubr.bf16.mxu0 %v1113_v0  ;;  %109 = vst [vmem:[#allocation2 + $0x708] sm:$0x1] %v108_v6  ;;  %v881_v0 = vshrl.u32 %v706_v37, 16  ;;  %v890_v6 = vrot.slane %v888_v50, 7  ;;  %v119_v37 = vld [vmem:[#allocation2 + $0x828] sm:$0x1] }
  0x7b   :  { %v122_v55 = vld [vmem:[#allocation2 + $0x870] sm:$0x1] }
  0x7c   :  { %v883_v48 = vrot.slane %v881_v0, 7  ;;  %v12903_v50 = vld [vmem:[%s19327_s0 + $0x1d0] sm:$0xff] }
  0x7e   :  { %v886_v59 = vor.u32 %v884_v46, %v883_v48  ;;  %v12878_v46 = vld [vmem:[%s19327_s0 + $0x1c0] sm:$0xff] }
  0x7f   :  { %v709_v29 = vpack.c.bf16 %v677_v44, %v12878_v46 }
  0x80   :  { %v12841_v56 = vsel %vm12319_vm5, %v886_v59, %v1028_v61  ;;  %v1073_v61 = vld [vmem:[%s19327_s0 + $0xd8] sm:$0xff] }
  0x81   :  { %3805 = vmatmul.mubr.bf16.gmra.mrb[32].mxu0 %v12474_v17  ;;  %v879_v17 = vor.u32 %v877_v25, %v876_v9  ;;  %v1025_v34 = vld [vmem:[#allocation2 + $0x708] sm:$0xff]  ;;  %1030 = vst [vmem:[#allocation2 + $0x750] sm:$0xff] %v12841_v56  ;;  %v117_v25 = vsel %vm12268_vm2, 0, %v116_v31  ;;  %v902_v59 = vshrl.u32 %v709_v29, 16  ;;  %v1119_v63 = vpack.c.bf16 %v1073_v61, %v12488_v35  ;;  %v135_v61 = vld [vmem:[#allocation2 + $0x10] sm:$0x80] }
  0x82   :  { %3812 = vmatprep.mubr.bf16.mxu0 %v1114_v3  ;;  %v12047_v3 = vld [vmem:[%s19326_s1 + $0xe8] sm:$0xff]   ;;  %118 = vst [vmem:[#allocation2 + $0x7e0] sm:$0x1] %v117_v25  ;;  %v710_v35 = vpack.c.bf16 %v679_v11, %v12903_v50 }
  0x83   :  { %v12820_v42 = vsel %vm12319_vm5, %v879_v17, %v1025_v34  ;;  %4024 = vmatpush1.bf16.msra.mxu0 %v12047_v3  ;;  %v898_v17 = vshll.u32 %v708_v5, 16  ;;  %v1075_v31 = vld [vmem:[%s19327_s0 + $0xe8] sm:$0xff] }
  0x84   :  { %1027 = vst [vmem:[#allocation2 + $0x708] sm:$0xff] %v12820_v42  ;;  %4025 = vmatprep.subr.bf16.mxu0 %v12707_v57  ;;  %v1120_v25 = vpack.c.bf16 %v1075_v31, %v12518_v58 }
  0x89   :  { %3813 = vmatmul.mubr.bf16.gmra.mrb[36].mxu0 %v12495_v38  ;;  %v114_v38 = vsel %vm12268_vm2, 0, %v113_v14  ;;  %v1034_v0 = vld [vmem:[#allocation2 + $0x7e0] sm:$0xff]  ;;  %v905_v14 = vshll.u32 %v709_v29, 16 }
  0x8a   :  { %3820 = vmatprep.mubr.bf16.mxu0 %v1115_v30  ;;  %115 = vst [vmem:[#allocation2 + $0x798] sm:$0x1] %v114_v38  ;;  %v895_v30 = vshrl.u32 %v708_v5, 16  ;;  %v904_v38 = vrot.slane %v902_v59, 7  ;;  %v125_v5 = vld [vmem:[#allocation2 + $0x8b8] sm:$0x1] }
  0x8c   :  { %v897_v34 = vrot.slane %v895_v30, 7 }
  0x8e   :  { %v900_v41 = vor.u32 %v898_v17, %v897_v34  ;;  %v12924_v17 = vld [vmem:[%s19327_s0 + $0x1e0] sm:$0xff] }
  0x8f   :  { %v711_v58 = vpack.c.bf16 %v681_v2, %v12924_v17 }
  0x90   :  { %v12887_v48 = vsel %vm12319_vm5, %v900_v41, %v1034_v0 }
  0x91   :  { %3821 = vmatmul.mubr.bf16.gmra.mrb[40].mxu0 %v12510_v52  ;;  %v893_v52 = vor.u32 %v891_v8, %v890_v6  ;;  %v1031_v19 = vld [vmem:[#allocation2 + $0x798] sm:$0xff]  ;;  %1036 = vst [vmem:[#allocation2 + $0x7e0] sm:$0xff] %v12887_v48  ;;  %v123_v8 = vsel %vm12268_vm2, 0, %v122_v55  ;;  %v916_v41 = vshrl.u32 %v711_v58, 16 }
  0x92   :  { %3828 = vmatprep.mubr.bf16.mxu0 %v1116_v53  ;;  %v12048_v53 = vld [vmem:[%s19326_s1 + $0xf0] sm:$0xff]   ;;  %124 = vst [vmem:[#allocation2 + $0x870] sm:$0x1] %v123_v8  ;;  %v1077_v8 = vld [vmem:[%s19327_s0 + $0x108] sm:$0xff] }
  0x93   :  { %v12866_v9 = vsel %vm12319_vm5, %v893_v52, %v1031_v19  ;;  %4026 = vmatpush1.bf16.msra.mxu0 %v12048_v53  ;;  %v912_v52 = vshll.u32 %v710_v35, 16  ;;  %v918_v0 = vrot.slane %v916_v41, 7  ;;  %v1349_v53 = vld [vmem:[%s19327_s0 + $0x8] sm:$0x7f]  ;;  %v1079_v41 = vld [vmem:[%s19327_s0 + $0x118] sm:$0xff] }
  0x94   :  { %1033 = vst [vmem:[#allocation2 + $0x798] sm:$0xff] %v12866_v9  ;;  %4027 = vmatprep.subr.bf16.mxu0 %v12707_v57 }
  0x99   :  { %3829 = vmatmul.mubr.bf16.gmra.mrb[44].mxu0 %v12526_v1  ;;  %v120_v1 = vsel %vm12268_vm2, 0, %v119_v37  ;;  %v1040_v30 = vld [vmem:[#allocation2 + $0x870] sm:$0xff]  ;;  %v919_v37 = vshll.u32 %v711_v58, 16  ;;  %v1166_v58 = vld [vmem:[%s19327_s0 + $0x1] sm:$0xff] }
  0x9a   :  { %3836 = vmatprep.mubr.bf16.mxu0 %v1117_v16  ;;  %121 = vst [vmem:[#allocation2 + $0x828] sm:$0x1] %v120_v1  ;;  %v909_v16 = vshrl.u32 %v710_v35, 16  ;;  %v231_v1 = vld [vmem:[#allocation2 + $0x18] sm:$0x1]  ;;  %v2981_v35 = vld [vmem:[#allocation2 + $0x480] sm:$0xff] }
  0x9b   :  { %v921_v44 = vor.u32 %v919_v37, %v918_v0  ;;  %v232_v29 = vsel %vm12268_vm2, 0, %v231_v1 }
  0x9c   :  { %v911_v19 = vrot.slane %v909_v16, 7  ;;  %233 = vst [vmem:[#allocation2 + $0x18] sm:$0x1] %v232_v29  ;;  %v237_v29 = vld [vmem:[#allocation2 + $0xa8] sm:$0x1] }
  0x9e   :  { %v914_v27 = vor.u32 %v912_v52, %v911_v19  ;;  %v234_v52 = vld [vmem:[#allocation2 + $0x60] sm:$0x1] }
  0x9f   :  { %v235_v19 = vsel %vm12268_vm2, 0, %v234_v52  ;;  %v1168_v52 = vld [vmem:[%s19327_s0 + $0x11] sm:$0xff] }
  0xa0   :  { %v12933_v34 = vsel %vm12319_vm5, %v914_v27, %v1040_v30  ;;  %236 = vst [vmem:[#allocation2 + $0x60] sm:$0x1] %v235_v19  ;;  %v138_v30 = vld [vmem:[#allocation2 + $0x58] sm:$0x80] }
  0xa1   :  { %3837 = vmatmul.mubr.bf16.gmra.mrb[48].mxu0 %v12541_v20  ;;  %v907_v20 = vor.u32 %v905_v14, %v904_v38  ;;  %v1037_v3 = vld [vmem:[#allocation2 + $0x828] sm:$0xff]  ;;  %1042 = vst [vmem:[#allocation2 + $0x870] sm:$0xff] %v12933_v34 }
  0xa2   :  { %3844 = vmatprep.mubr.bf16.mxu0 %v1118_v45  ;;  %v12049_v45 = vld [vmem:[%s19326_s1 + $0xf8] sm:$0xff]  }
  0xa3   :  { %v12912_v6 = vsel %vm12319_vm5, %v907_v20, %v1037_v3  ;;  %4028 = vmatpush1.bf16.msra.mxu0 %v12049_v45  ;;  %v136_v3 = vsel %vm12954_vm8, 0, %v135_v61  ;;  %v1700_v31 = vld [vmem:[#allocation2 + $0x18] sm:$0xff]  ;;  %v1167_v45 = vld [vmem:[%s19327_s0 + $0x9] sm:$0x7f] }
  0xa4   :  { %1039 = vst [vmem:[#allocation2 + $0x828] sm:$0xff] %v12912_v6  ;;  %4286 = vmatprep.subr.bf16.mxu0 %v12707_v57  ;;  %137 = vst [vmem:[#allocation2 + $0x10] sm:$0x80] %v136_v3  ;;  %v1226_v1 = vpack.c.bf16 %v1167_v45, %v1166_v58  ;;  %v1353_v61 = vld [vmem:[%s19327_s0 + $0x28] sm:$0x7f] }
  0xa5   :  { %v141_v3 = vld [vmem:[#allocation2 + $0xa0] sm:$0x80] }
  0xa9   :  { %3845 = vmatmul.mubr.bf16.gmra.mrb[52].mxu0 %v12547_v33  ;;  %v126_v33 = vsel %vm12268_vm2, 0, %v125_v5 }
  0xaa   :  { %3852 = vmatprep.mubr.bf16.mxu0 %v1119_v63  ;;  %127 = vst [vmem:[#allocation2 + $0x8b8] sm:$0x1] %v126_v33  ;;  %v519_v63 = vld [vmem:[#allocation2 + $0x8e8] sm:$0x1] }
  0xb1   :  { %3853 = vmatmul.mubr.bf16.gmra.mrb[56].mxu0 %v12560_v47  ;;  %v1348_v47 = vld [vmem:[%s19327_s0] sm:$0xff]  ;;  %v1043_v59 = vld [vmem:[#allocation2 + $0x8b8] sm:$0xff] }
  0xb2   :  { %3860 = vmatprep.mubr.bf16.mxu0 %v1120_v25  ;;  %v1412_v14 = vpack.c.bf16 %v1349_v53, %v1348_v47  ;;  %v12952_v38 = vsel %vm12319_vm5, %v921_v44, %v1043_v59  ;;  %v1350_v25 = vld [vmem:[%s19327_s0 + $0x10] sm:$0xff]  ;;  %v19534_v44 = vmov 0  ;;  %v1122_v47 = vpack.c.bf16 %v1079_v41, %v12600_v22  ;;  %v1703_v53 = vld [vmem:[#allocation2 + $0x60] sm:$0xff]  ;;  %v144_v41 = vld [vmem:[#allocation2 + $0xe8] sm:$0x80] }
  0xb3   :  { %1045 = vst [vmem:[#allocation2 + $0x8b8] sm:$0xff] %v12952_v38  ;;  %v19535_v44 = vsel %vm12992_vm10, 4294967295, %v19534_v44  ;;  %v238_v59 = vsel %vm12268_vm2, 0, %v237_v29 }
  0xb4   :  { %v1445_v20 = vshrl.u32 %v1412_v14, 16  ;;  %v1448_v55 = vshll.u32 %v1412_v14, 16  ;;  %19536 = vst [vmem:[#allocation5_spill] sm:$0xff] %v19535_v44  ;;  %v1352_v14 = vld [vmem:[%s19327_s0 + $0x20] sm:$0xff]  ;;  %239 = vst [vmem:[#allocation2 + $0xa8] sm:$0x1] %v238_v59 }
  0xb6   :  { %v1447_v11 = vrot.slane %v1445_v20, 7 }
  0xb8   :  { %v1450_v16 = vor.u32 %v1448_v55, %v1447_v11  ;;  %v1414_v55 = vpack.c.bf16 %v1353_v61, %v1352_v14 }
  0xb9   :  { %3861 = vmatmul.mubr.bf16.gmra.mrb[60].mxu0 %v12569_v54  ;;  %v1121_v54 = vpack.c.bf16 %v1077_v8, %v12577_v60  ;;  %v139_v60 = vsel %vm12954_vm8, 0, %v138_v30  ;;  %v142_v8 = vsel %vm12954_vm8, 0, %v141_v3 }
  0xba   :  { %3868 = vmatprep.mubr.bf16.mxu0 %v12707_v57  ;;  %v1351_v57 = vld [vmem:[%s19327_s0 + $0x18] sm:$0x7f]  ;;  %v12977_v27 = vsel %vm12319_vm5, %v1450_v16, %v1700_v31  ;;  %140 = vst [vmem:[#allocation2 + $0x58] sm:$0x80] %v139_v60  ;;  %v1462_v16 = vshll.u32 %v1414_v55, 16 }
  0xbb   :  { %v1413_v5 = vpack.c.bf16 %v1351_v57, %v1350_v25  ;;  %1702 = vst [vmem:[#allocation2 + $0x18] sm:$0xff] %v12977_v27  ;;  %143 = vst [vmem:[#allocation2 + $0xa0] sm:$0x80] %v142_v8  ;;  %v240_v57 = vld [vmem:[#allocation2 + $0xf0] sm:$0x1]  ;;  %v1706_v30 = vld [vmem:[#allocation2 + $0xa8] sm:$0xff] }
  0xbc   :  { %v241_v60 = vsel %vm12268_vm2, 0, %v240_v57 }
  0xbd   :  { %v1452_v33 = vshrl.u32 %v1413_v5, 16  ;;  %v1455_v2 = vshll.u32 %v1413_v5, 16  ;;  %242 = vst [vmem:[#allocation2 + $0xf0] sm:$0x1] %v241_v60 }
  0xbf   :  { %v1454_v37 = vrot.slane %v1452_v33, 7  ;;  %v1354_v33 = vld [vmem:[%s19327_s0 + $0x30] sm:$0xff] }
  0xc1   :  { %3869 = vmatmul.mubr.bf16.gmra.mrb[64].mxu0 %v2981_v35  ;;  %v1457_v0 = vor.u32 %v1455_v2, %v1454_v37  ;;  %v1258_v22 = vld [vmem:[#allocation2 + $0x58] sm:$0xff]  ;;  %v1459_v35 = vshrl.u32 %v1414_v55, 16  ;;  %v145_v37 = vsel %vm12954_vm8, 0, %v144_v41 }
  0xc2   :  { %3876 = vmatprep.mubr.bf16.mxu0 %v1121_v54  ;;  %v13015_v11 = vsel %vm12992_vm10, %v1226_v1, %v1258_v22  ;;  %v1169_v54 = vld [vmem:[%s19327_s0 + $0x19] sm:$0x7f]  ;;  %146 = vst [vmem:[#allocation2 + $0xe8] sm:$0x80] %v145_v37  ;;  %v243_v55 = vld [vmem:[#allocation2 + $0x138] sm:$0x1] }
  0xc3   :  { %v13007_v20 = vsel %vm12319_vm5, %v1457_v0, %v1703_v53  ;;  %1260 = vst [vmem:[#allocation2 + $0x58] sm:$0xff] %v13015_v11  ;;  %v1461_v31 = vrot.slane %v1459_v35, 7  ;;  %v1227_v25 = vpack.c.bf16 %v1169_v54, %v1168_v52  ;;  %v1355_v2 = vld [vmem:[%s19327_s0 + $0x38] sm:$0x7f]  ;;  %v1171_v53 = vld [vmem:[%s19327_s0 + $0x29] sm:$0x7f] }
  0xc4   :  { %1705 = vst [vmem:[#allocation2 + $0x60] sm:$0xff] %v13007_v20  ;;  %v1415_v45 = vpack.c.bf16 %v1355_v2, %v1354_v33  ;;  %v1709_v22 = vld [vmem:[#allocation2 + $0xf0] sm:$0xff]  ;;  %v244_v8 = vsel %vm12268_vm2, 0, %v243_v55  ;;  %v1356_v35 = vld [vmem:[%s19327_s0 + $0x40] sm:$0xff] }
  0xc5   :  { %v1464_v19 = vor.u32 %v1462_v16, %v1461_v31  ;;  %v1357_v16 = vld [vmem:[%s19327_s0 + $0x48] sm:$0x7f]  ;;  %245 = vst [vmem:[#allocation2 + $0x138] sm:$0x1] %v244_v8 }
  0xc6   :  { %v1466_v1 = vshrl.u32 %v1415_v45, 16  ;;  %v1469_v29 = vshll.u32 %v1415_v45, 16  ;;  %v1416_v54 = vpack.c.bf16 %v1357_v16, %v1356_v35  ;;  %v246_v45 = vld [vmem:[#allocation2 + $0x180] sm:$0x1] }
  0xc7   :  { %v13038_v58 = vsel %vm12319_vm5, %v1464_v19, %v1706_v30  ;;  %v1173_v30 = vld [vmem:[%s19327_s0 + $0x39] sm:$0x7f]  ;;  %v247_v37 = vsel %vm12268_vm2, 0, %v246_v45 }
  0xc8   :  { %1708 = vst [vmem:[#allocation2 + $0xa8] sm:$0xff] %v13038_v58  ;;  %v1468_v59 = vrot.slane %v1466_v1, 7  ;;  %v1476_v57 = vshll.u32 %v1416_v54, 16  ;;  %v1358_v1 = vld [vmem:[%s19327_s0 + $0x50] sm:$0xff]  ;;  %248 = vst [vmem:[#allocation2 + $0x180] sm:$0x1] %v247_v37 }
  0xc9   :  { %3877 = vmatmul.mubr.bf16.gmra.mrb[68].mxu0 %v12609_v15  ;;  %v1081_v15 = vld [vmem:[%s19327_s0 + $0x128] sm:$0xff] }
  0xca   :  { %3884 = vmatprep.mubr.bf16.mxu0 %v1122_v47  ;;  %v1123_v5 = vpack.c.bf16 %v1081_v15, %v12629_v49  ;;  %v1261_v49 = vld [vmem:[#allocation2 + $0xa0] sm:$0xff]  ;;  %v1471_v14 = vor.u32 %v1469_v29, %v1468_v59  ;;  %v147_v15 = vld [vmem:[#allocation2 + $0x130] sm:$0x80]  ;;  %v1359_v29 = vld [vmem:[%s19327_s0 + $0x58] sm:$0x7f] }
  0xcb   :  { %v13046_v0 = vsel %vm12992_vm10, %v1227_v25, %v1261_v49  ;;  %v1170_v47 = vld [vmem:[%s19327_s0 + $0x21] sm:$0xff]  ;;  %v148_v31 = vsel %vm12954_vm8, 0, %v147_v15  ;;  %v1473_v25 = vshrl.u32 %v1416_v54, 16 }
  0xcc   :  { %1263 = vst [vmem:[#allocation2 + $0xa0] sm:$0xff] %v13046_v0  ;;  %v1228_v61 = vpack.c.bf16 %v1171_v53, %v1170_v47  ;;  %v13069_v52 = vsel %vm12319_vm5, %v1471_v14, %v1709_v22  ;;  %149 = vst [vmem:[#allocation2 + $0x130] sm:$0x80] %v148_v31  ;;  %v1712_v49 = vld [vmem:[#allocation2 + $0x138] sm:$0xff]  ;;  %v1417_v53 = vpack.c.bf16 %v1359_v29, %v1358_v1  ;;  %v1175_v22 = vld [vmem:[%s19327_s0 + $0x49] sm:$0x7f] }
  0xcd   :  { %1711 = vst [vmem:[#allocation2 + $0xf0] sm:$0xff] %v13069_v52  ;;  %v1475_v60 = vrot.slane %v1473_v25, 7  ;;  %v249_v54 = vld [vmem:[#allocation2 + $0x1c8] sm:$0x1]  ;;  %v1360_v25 = vld [vmem:[%s19327_s0 + $0x60] sm:$0xff] }
  0xce   :  { %v1483_v55 = vshll.u32 %v1417_v53, 16  ;;  %v250_v31 = vsel %vm12268_vm2, 0, %v249_v54 }
  0xcf   :  { %v1478_v33 = vor.u32 %v1476_v57, %v1475_v60  ;;  %v1361_v57 = vld [vmem:[%s19327_s0 + $0x68] sm:$0x7f]  ;;  %251 = vst [vmem:[#allocation2 + $0x1c8] sm:$0x1] %v250_v31 }
  0xd1   :  { %3885 = vmatmul.mubr.bf16.gmra.mrb[72].mxu0 %v12638_v23  ;;  %v1083_v23 = vld [vmem:[%s19327_s0 + $0x138] sm:$0xff]  ;;  %v13100_v47 = vsel %vm12319_vm5, %v1478_v33, %v1712_v49 }
  0xd2   :  { %3892 = vmatprep.mubr.bf16.mxu0 %v1123_v5  ;;  %v1124_v3 = vpack.c.bf16 %v1083_v23, %v12658_v12  ;;  %v1264_v12 = vld [vmem:[#allocation2 + $0xe8] sm:$0xff]  ;;  %v1172_v5 = vld [vmem:[%s19327_s0 + $0x31] sm:$0xff]  ;;  %v150_v23 = vld [vmem:[#allocation2 + $0x178] sm:$0x80]  ;;  %1714 = vst [vmem:[#allocation2 + $0x138] sm:$0xff] %v13100_v47 }
  0xd3   :  { %v13077_v19 = vsel %vm12992_vm10, %v1228_v61, %v1264_v12  ;;  %v1229_v2 = vpack.c.bf16 %v1173_v30, %v1172_v5  ;;  %v151_v59 = vsel %vm12954_vm8, 0, %v150_v23  ;;  %v1480_v61 = vshrl.u32 %v1417_v53, 16  ;;  %v1715_v12 = vld [vmem:[#allocation2 + $0x180] sm:$0xff]  ;;  %v1177_v49 = vld [vmem:[%s19327_s0 + $0x59] sm:$0x7f] }
  0xd4   :  { %1266 = vst [vmem:[#allocation2 + $0xe8] sm:$0xff] %v13077_v19  ;;  %152 = vst [vmem:[#allocation2 + $0x178] sm:$0x80] %v151_v59  ;;  %v1418_v30 = vpack.c.bf16 %v1361_v57, %v1360_v25  ;;  %v252_v53 = vld [vmem:[#allocation2 + $0x210] sm:$0x1] }
  0xd5   :  { %v1482_v8 = vrot.slane %v1480_v61, 7  ;;  %v253_v59 = vsel %vm12268_vm2, 0, %v252_v53  ;;  %v1362_v61 = vld [vmem:[%s19327_s0 + $0x70] sm:$0xff] }
  0xd6   :  { %v1490_v45 = vshll.u32 %v1418_v30, 16  ;;  %254 = vst [vmem:[#allocation2 + $0x210] sm:$0x1] %v253_v59 }
  0xd7   :  { %v1485_v35 = vor.u32 %v1483_v55, %v1482_v8  ;;  %v1363_v55 = vld [vmem:[%s19327_s0 + $0x78] sm:$0x7f] }
  0xd9   :  { %3893 = vmatmul.mubr.bf16.gmra.mrb[76].mxu0 %v12667_v26  ;;  %v1085_v26 = vld [vmem:[%s19327_s0 + $0x148] sm:$0xff]  ;;  %v13131_v5 = vsel %vm12319_vm5, %v1485_v35, %v1715_v12 }
  0xda   :  { %3900 = vmatprep.mubr.bf16.mxu0 %v1124_v3  ;;  %v1125_v41 = vpack.c.bf16 %v1085_v26, %v12687_v40  ;;  %v1267_v40 = vld [vmem:[#allocation2 + $0x130] sm:$0xff]  ;;  %v1174_v3 = vld [vmem:[%s19327_s0 + $0x41] sm:$0xff]  ;;  %1717 = vst [vmem:[#allocation2 + $0x180] sm:$0xff] %v13131_v5  ;;  %v1179_v12 = vld [vmem:[%s19327_s0 + $0x69] sm:$0x7f] }
  0xdb   :  { %v13108_v14 = vsel %vm12992_vm10, %v1229_v2, %v1267_v40  ;;  %v1230_v16 = vpack.c.bf16 %v1175_v22, %v1174_v3  ;;  %v153_v26 = vld [vmem:[#allocation2 + $0x1c0] sm:$0x80]  ;;  %v1487_v2 = vshrl.u32 %v1418_v30, 16  ;;  %v1718_v40 = vld [vmem:[#allocation2 + $0x1c8] sm:$0xff]  ;;  %v1419_v22 = vpack.c.bf16 %v1363_v55, %v1362_v61  ;;  %v255_v30 = vld [vmem:[#allocation2 + $0x258] sm:$0x1] }
  0xdc   :  { %1269 = vst [vmem:[#allocation2 + $0x130] sm:$0xff] %v13108_v14  ;;  %v154_v60 = vsel %vm12954_vm8, 0, %v153_v26 }
  0xdd   :  { %155 = vst [vmem:[#allocation2 + $0x1c0] sm:$0x80] %v154_v60  ;;  %v1489_v37 = vrot.slane %v1487_v2, 7  ;;  %v1497_v54 = vshll.u32 %v1419_v22, 16  ;;  %v256_v60 = vsel %vm12268_vm2, 0, %v255_v30  ;;  %v1364_v2 = vld [vmem:[%s19327_s0 + $0x80] sm:$0xff] }
  0xde   :  { %257 = vst [vmem:[#allocation2 + $0x258] sm:$0x1] %v256_v60 }
  0xdf   :  { %v1492_v1 = vor.u32 %v1490_v45, %v1489_v37  ;;  %v1365_v45 = vld [vmem:[%s19327_s0 + $0x88] sm:$0x7f] }
  0xe1   :  { %3901 = vmatmul.mubr.bf16.gmra.mrb[80].mxu0 %v12696_v43  ;;  %v1087_v43 = vld [vmem:[%s19327_s0 + $0x158] sm:$0xff]  ;;  %v13162_v3 = vsel %vm12319_vm5, %v1492_v1, %v1718_v40 }
  0xe2   :  { %3908 = vmatprep.mubr.bf16.mxu0 %v1125_v41  ;;  %v1126_v15 = vpack.c.bf16 %v1087_v43, %v12718_v10  ;;  %v1270_v10 = vld [vmem:[#allocation2 + $0x178] sm:$0xff]  ;;  %v156_v43 = vld [vmem:[#allocation2 + $0x208] sm:$0x80]  ;;  %1720 = vst [vmem:[#allocation2 + $0x1c8] sm:$0xff] %v13162_v3 }
  0xe3   :  { %v13139_v33 = vsel %vm12992_vm10, %v1230_v16, %v1270_v10  ;;  %v1176_v41 = vld [vmem:[%s19327_s0 + $0x51] sm:$0xff]  ;;  %v157_v8 = vsel %vm12954_vm8, 0, %v156_v43  ;;  %v1494_v16 = vshrl.u32 %v1419_v22, 16  ;;  %v1181_v40 = vld [vmem:[%s19327_s0 + $0x79] sm:$0x7f] }
  0xe4   :  { %1272 = vst [vmem:[#allocation2 + $0x178] sm:$0xff] %v13139_v33  ;;  %v1231_v29 = vpack.c.bf16 %v1177_v49, %v1176_v41  ;;  %158 = vst [vmem:[#allocation2 + $0x208] sm:$0x80] %v157_v8  ;;  %v1721_v10 = vld [vmem:[#allocation2 + $0x210] sm:$0xff]  ;;  %v1420_v49 = vpack.c.bf16 %v1365_v45, %v1364_v2  ;;  %v258_v22 = vld [vmem:[#allocation2 + $0x2a0] sm:$0x1] }
  0xe5   :  { %v1496_v31 = vrot.slane %v1494_v16, 7  ;;  %v259_v8 = vsel %vm12268_vm2, 0, %v258_v22  ;;  %v1366_v16 = vld [vmem:[%s19327_s0 + $0x90] sm:$0xff] }
  0xe6   :  { %v1504_v53 = vshll.u32 %v1420_v49, 16  ;;  %260 = vst [vmem:[#allocation2 + $0x2a0] sm:$0x1] %v259_v8 }
  0xe7   :  { %v1499_v25 = vor.u32 %v1497_v54, %v1496_v31  ;;  %v1367_v54 = vld [vmem:[%s19327_s0 + $0x98] sm:$0x7f] }
  0xe9   :  { %3909 = vmatmul.mubr.bf16.gmra.mrb[84].mxu0 %v12727_v4  ;;  %v1089_v4 = vld [vmem:[%s19327_s0 + $0x168] sm:$0xff]  ;;  %v13193_v41 = vsel %vm12319_vm5, %v1499_v25, %v1721_v10 }
  0xea   :  { %3916 = vmatprep.mubr.bf16.mxu0 %v1126_v15  ;;  %v1127_v23 = vpack.c.bf16 %v1089_v4, %v12740_v39  ;;  %v1273_v39 = vld [vmem:[#allocation2 + $0x1c0] sm:$0xff]  ;;  %v159_v4 = vld [vmem:[#allocation2 + $0x250] sm:$0x80]  ;;  %1723 = vst [vmem:[#allocation2 + $0x210] sm:$0xff] %v13193_v41  ;;  %v1183_v10 = vld [vmem:[%s19327_s0 + $0x89] sm:$0x7f] }
  0xeb   :  { %v13170_v35 = vsel %vm12992_vm10, %v1231_v29, %v1273_v39  ;;  %v1178_v15 = vld [vmem:[%s19327_s0 + $0x61] sm:$0xff]  ;;  %v160_v37 = vsel %vm12954_vm8, 0, %v159_v4  ;;  %v1501_v29 = vshrl.u32 %v1420_v49, 16  ;;  %v1724_v39 = vld [vmem:[#allocation2 + $0x258] sm:$0xff] }
  0xec   :  { %1275 = vst [vmem:[#allocation2 + $0x1c0] sm:$0xff] %v13170_v35  ;;  %v1232_v57 = vpack.c.bf16 %v1179_v12, %v1178_v15  ;;  %161 = vst [vmem:[#allocation2 + $0x250] sm:$0x80] %v160_v37  ;;  %v1421_v12 = vpack.c.bf16 %v1367_v54, %v1366_v16  ;;  %v261_v49 = vld [vmem:[#allocation2 + $0x2e8] sm:$0x1] }
  0xed   :  { %v1503_v59 = vrot.slane %v1501_v29, 7  ;;  %v262_v37 = vsel %vm12268_vm2, 0, %v261_v49  ;;  %v1368_v29 = vld [vmem:[%s19327_s0 + $0xa0] sm:$0xff] }
  0xee   :  { %v1511_v30 = vshll.u32 %v1421_v12, 16  ;;  %263 = vst [vmem:[#allocation2 + $0x2e8] sm:$0x1] %v262_v37 }
  0xef   :  { %v1506_v61 = vor.u32 %v1504_v53, %v1503_v59  ;;  %v1369_v53 = vld [vmem:[%s19327_s0 + $0xa8] sm:$0x7f] }
  0xf1   :  { %3917 = vmatmul.mubr.bf16.gmra.mrb[88].mxu0 %v12749_v32  ;;  %v1091_v32 = vld [vmem:[%s19327_s0 + $0x178] sm:$0xff]  ;;  %v13224_v15 = vsel %vm12319_vm5, %v1506_v61, %v1724_v39 }
  0xf2   :  { %3924 = vmatprep.mubr.bf16.mxu0 %v1127_v23  ;;  %v1128_v26 = vpack.c.bf16 %v1091_v32, %v12765_v51  ;;  %v1276_v51 = vld [vmem:[#allocation2 + $0x208] sm:$0xff]  ;;  %v1180_v23 = vld [vmem:[%s19327_s0 + $0x71] sm:$0xff]  ;;  %v162_v32 = vld [vmem:[#allocation2 + $0x298] sm:$0x80]  ;;  %1726 = vst [vmem:[#allocation2 + $0x258] sm:$0xff] %v13224_v15 }
  0xf3   :  { %v13201_v1 = vsel %vm12992_vm10, %v1232_v57, %v1276_v51  ;;  %v1233_v55 = vpack.c.bf16 %v1181_v40, %v1180_v23  ;;  %v163_v31 = vsel %vm12954_vm8, 0, %v162_v32  ;;  %v1508_v57 = vshrl.u32 %v1421_v12, 16  ;;  %v1727_v51 = vld [vmem:[#allocation2 + $0x2a0] sm:$0xff]  ;;  %v1185_v39 = vld [vmem:[%s19327_s0 + $0x99] sm:$0x7f] }
  0xf4   :  { %1278 = vst [vmem:[#allocation2 + $0x208] sm:$0xff] %v13201_v1  ;;  %164 = vst [vmem:[#allocation2 + $0x298] sm:$0x80] %v163_v31  ;;  %v1422_v40 = vpack.c.bf16 %v1369_v53, %v1368_v29  ;;  %v264_v12 = vld [vmem:[#allocation2 + $0x330] sm:$0x1] }
  0xf5   :  { %v1510_v60 = vrot.slane %v1508_v57, 7  ;;  %v265_v31 = vsel %vm12268_vm2, 0, %v264_v12  ;;  %v1370_v57 = vld [vmem:[%s19327_s0 + $0xb0] sm:$0xff] }
  0xf6   :  { %v1518_v22 = vshll.u32 %v1422_v40, 16  ;;  %266 = vst [vmem:[#allocation2 + $0x330] sm:$0x1] %v265_v31 }
  0xf7   :  { %v1513_v2 = vor.u32 %v1511_v30, %v1510_v60  ;;  %v1371_v30 = vld [vmem:[%s19327_s0 + $0xb8] sm:$0x7f] }
  0xf9   :  { %3925 = vmatmul.mubr.bf16.gmra.mrb[92].mxu0 %v12774_v21  ;;  %v1093_v21 = vld [vmem:[%s19327_s0 + $0x188] sm:$0xff]  ;;  %v13255_v23 = vsel %vm12319_vm5, %v1513_v2, %v1727_v51 }
  0xfa   :  { %3932 = vmatprep.mubr.bf16.mxu0 %v1128_v26  ;;  %v1129_v43 = vpack.c.bf16 %v1093_v21, %v12786_v13  ;;  %v1279_v13 = vld [vmem:[#allocation2 + $0x250] sm:$0xff]  ;;  %v1182_v26 = vld [vmem:[%s19327_s0 + $0x81] sm:$0xff]  ;;  %1729 = vst [vmem:[#allocation2 + $0x2a0] sm:$0xff] %v13255_v23  ;;  %v1187_v51 = vld [vmem:[%s19327_s0 + $0xa9] sm:$0x7f] }
  0xfb   :  { %v13232_v25 = vsel %vm12992_vm10, %v1233_v55, %v1279_v13  ;;  %v1234_v45 = vpack.c.bf16 %v1183_v10, %v1182_v26  ;;  %v165_v21 = vld [vmem:[#allocation2 + $0x2e0] sm:$0x80]  ;;  %v1515_v55 = vshrl.u32 %v1422_v40, 16  ;;  %v1730_v13 = vld [vmem:[#allocation2 + $0x2e8] sm:$0xff]  ;;  %v1423_v10 = vpack.c.bf16 %v1371_v30, %v1370_v57  ;;  %v267_v40 = vld [vmem:[#allocation2 + $0x378] sm:$0x1] }
  0xfc   :  { %1281 = vst [vmem:[#allocation2 + $0x250] sm:$0xff] %v13232_v25  ;;  %v166_v59 = vsel %vm12954_vm8, 0, %v165_v21 }
  0xfd   :  { %167 = vst [vmem:[#allocation2 + $0x2e0] sm:$0x80] %v166_v59  ;;  %v1517_v8 = vrot.slane %v1515_v55, 7  ;;  %v1525_v49 = vshll.u32 %v1423_v10, 16  ;;  %v268_v59 = vsel %vm12268_vm2, 0, %v267_v40  ;;  %v1372_v55 = vld [vmem:[%s19327_s0 + $0xc0] sm:$0xff] }
  0xfe   :  { %269 = vst [vmem:[#allocation2 + $0x378] sm:$0x1] %v268_v59 }
  0xff   :  { %v1520_v16 = vor.u32 %v1518_v22, %v1517_v8  ;;  %v1373_v22 = vld [vmem:[%s19327_s0 + $0xc8] sm:$0x7f] }
 0x101   :  { %3933 = vmatmul.mubr.bf16.gmra.mrb[96].mxu0 %v12795_v18  ;;  %v1095_v18 = vld [vmem:[%s19327_s0 + $0x198] sm:$0xff]  ;;  %v13286_v26 = vsel %vm12319_vm5, %v1520_v16, %v1730_v13 }
 0x102   :  { %3940 = vmatprep.mubr.bf16.mxu0 %v1129_v43  ;;  %v1130_v4 = vpack.c.bf16 %v1095_v18, %v12811_v36  ;;  %v1282_v36 = vld [vmem:[#allocation2 + $0x298] sm:$0xff]  ;;  %v168_v18 = vld [vmem:[#allocation2 + $0x328] sm:$0x80]  ;;  %1732 = vst [vmem:[#allocation2 + $0x2e8] sm:$0xff] %v13286_v26 }
 0x103   :  { %v13263_v61 = vsel %vm12992_vm10, %v1234_v45, %v1282_v36  ;;  %v1184_v43 = vld [vmem:[%s19327_s0 + $0x91] sm:$0xff]  ;;  %v169_v60 = vsel %vm12954_vm8, 0, %v168_v18  ;;  %v1522_v45 = vshrl.u32 %v1423_v10, 16  ;;  %v1189_v13 = vld [vmem:[%s19327_s0 + $0xb9] sm:$0x7f] }
 0x104   :  { %1284 = vst [vmem:[#allocation2 + $0x298] sm:$0xff] %v13263_v61  ;;  %v1235_v54 = vpack.c.bf16 %v1185_v39, %v1184_v43  ;;  %170 = vst [vmem:[#allocation2 + $0x328] sm:$0x80] %v169_v60  ;;  %v1733_v36 = vld [vmem:[#allocation2 + $0x330] sm:$0xff]  ;;  %v1424_v39 = vpack.c.bf16 %v1373_v22, %v1372_v55  ;;  %v270_v10 = vld [vmem:[#allocation2 + $0x3c0] sm:$0x1] }
 0x105   :  { %v1524_v37 = vrot.slane %v1522_v45, 7  ;;  %v271_v60 = vsel %vm12268_vm2, 0, %v270_v10  ;;  %v1374_v45 = vld [vmem:[%s19327_s0 + $0xd0] sm:$0xff] }
 0x106   :  { %v1532_v12 = vshll.u32 %v1424_v39, 16  ;;  %272 = vst [vmem:[#allocation2 + $0x3c0] sm:$0x1] %v271_v60 }
 0x107   :  { %v1527_v29 = vor.u32 %v1525_v49, %v1524_v37  ;;  %v1375_v49 = vld [vmem:[%s19327_s0 + $0xd8] sm:$0x7f] }
 0x109   :  { %3941 = vmatmul.mubr.bf16.gmra.mrb[100].mxu0 %v12820_v42  ;;  %v1097_v42 = vld [vmem:[%s19327_s0 + $0x1a8] sm:$0xff]  ;;  %v13317_v43 = vsel %vm12319_vm5, %v1527_v29, %v1733_v36 }
 0x10a   :  { %3948 = vmatprep.mubr.bf16.mxu0 %v1130_v4  ;;  %v1131_v32 = vpack.c.bf16 %v1097_v42, %v12832_v62  ;;  %v1285_v62 = vld [vmem:[#allocation2 + $0x2e0] sm:$0xff]  ;;  %v171_v42 = vld [vmem:[#allocation2 + $0x370] sm:$0x80]  ;;  %1735 = vst [vmem:[#allocation2 + $0x330] sm:$0xff] %v13317_v43  ;;  %v1191_v36 = vld [vmem:[%s19327_s0 + $0xc9] sm:$0x7f] }
 0x10b   :  { %v13294_v2 = vsel %vm12992_vm10, %v1235_v54, %v1285_v62  ;;  %v1186_v4 = vld [vmem:[%s19327_s0 + $0xa1] sm:$0xff]  ;;  %v172_v8 = vsel %vm12954_vm8, 0, %v171_v42  ;;  %v1529_v54 = vshrl.u32 %v1424_v39, 16  ;;  %v1736_v62 = vld [vmem:[#allocation2 + $0x378] sm:$0xff] }
 0x10c   :  { %1287 = vst [vmem:[#allocation2 + $0x2e0] sm:$0xff] %v13294_v2  ;;  %v1236_v53 = vpack.c.bf16 %v1187_v51, %v1186_v4  ;;  %173 = vst [vmem:[#allocation2 + $0x370] sm:$0x80] %v172_v8  ;;  %v1425_v51 = vpack.c.bf16 %v1375_v49, %v1374_v45  ;;  %v273_v39 = vld [vmem:[#allocation2 + $0x408] sm:$0x1] }
 0x10d   :  { %v1531_v31 = vrot.slane %v1529_v54, 7  ;;  %v274_v8 = vsel %vm12268_vm2, 0, %v273_v39  ;;  %v1376_v54 = vld [vmem:[%s19327_s0 + $0xe0] sm:$0xff] }
 0x10e   :  { %v1539_v40 = vshll.u32 %v1425_v51, 16  ;;  %275 = vst [vmem:[#allocation2 + $0x408] sm:$0x1] %v274_v8 }
 0x10f   :  { %v1534_v57 = vor.u32 %v1532_v12, %v1531_v31  ;;  %v1377_v12 = vld [vmem:[%s19327_s0 + $0xe8] sm:$0x7f] }
 0x111   :  { %3949 = vmatmul.mubr.bf16.gmra.mrb[104].mxu0 %v12841_v56  ;;  %v1099_v56 = vld [vmem:[%s19327_s0 + $0x1b8] sm:$0xff]  ;;  %v13348_v4 = vsel %vm12319_vm5, %v1534_v57, %v1736_v62 }
 0x112   :  { %3956 = vmatprep.mubr.bf16.mxu0 %v1131_v32  ;;  %v1132_v21 = vpack.c.bf16 %v1099_v56, %v12857_v24  ;;  %v1288_v24 = vld [vmem:[#allocation2 + $0x328] sm:$0xff]  ;;  %v1188_v32 = vld [vmem:[%s19327_s0 + $0xb1] sm:$0xff]  ;;  %v174_v56 = vld [vmem:[#allocation2 + $0x3b8] sm:$0x80]  ;;  %1738 = vst [vmem:[#allocation2 + $0x378] sm:$0xff] %v13348_v4 }
 0x113   :  { %v13325_v16 = vsel %vm12992_vm10, %v1236_v53, %v1288_v24  ;;  %v1237_v30 = vpack.c.bf16 %v1189_v13, %v1188_v32  ;;  %v175_v37 = vsel %vm12954_vm8, 0, %v174_v56  ;;  %v1536_v53 = vshrl.u32 %v1425_v51, 16  ;;  %v1739_v24 = vld [vmem:[#allocation2 + $0x3c0] sm:$0xff]  ;;  %v1193_v62 = vld [vmem:[%s19327_s0 + $0xd9] sm:$0x7f] }
 0x114   :  { %1290 = vst [vmem:[#allocation2 + $0x328] sm:$0xff] %v13325_v16  ;;  %176 = vst [vmem:[#allocation2 + $0x3b8] sm:$0x80] %v175_v37  ;;  %v1426_v13 = vpack.c.bf16 %v1377_v12, %v1376_v54  ;;  %v276_v51 = vld [vmem:[#allocation2 + $0x450] sm:$0x1] }
 0x115   :  { %v1538_v59 = vrot.slane %v1536_v53, 7  ;;  %v277_v37 = vsel %vm12268_vm2, 0, %v276_v51  ;;  %v1378_v53 = vld [vmem:[%s19327_s0 + $0xf0] sm:$0xff]  ;;  %v279_v12 = vld [vmem:[#allocation2 + $0x498] sm:$0x1] }
 0x116   :  { %v1546_v10 = vshll.u32 %v1426_v13, 16  ;;  %278 = vst [vmem:[#allocation2 + $0x450] sm:$0x1] %v277_v37 }
 0x117   :  { %v1541_v55 = vor.u32 %v1539_v40, %v1538_v59  ;;  %v1379_v40 = vld [vmem:[%s19327_s0 + $0xf8] sm:$0x7f] }
 0x119   :  { %3957 = vmatmul.mubr.bf16.gmra.mrb[108].mxu0 %v12866_v9  ;;  %v1101_v9 = vld [vmem:[%s19327_s0 + $0x1c8] sm:$0xff]  ;;  %v13379_v32 = vsel %vm12319_vm5, %v1541_v55, %v1739_v24 }
 0x11a   :  { %3964 = vmatprep.mubr.bf16.mxu0 %v1132_v21  ;;  %v1133_v18 = vpack.c.bf16 %v1101_v9, %v12878_v46  ;;  %v1291_v46 = vld [vmem:[#allocation2 + $0x370] sm:$0xff]  ;;  %v1190_v21 = vld [vmem:[%s19327_s0 + $0xc1] sm:$0xff]  ;;  %1741 = vst [vmem:[#allocation2 + $0x3c0] sm:$0xff] %v13379_v32  ;;  %v1195_v24 = vld [vmem:[%s19327_s0 + $0xe9] sm:$0x7f] }
 0x11b   :  { %v13356_v29 = vsel %vm12992_vm10, %v1237_v30, %v1291_v46  ;;  %v1238_v22 = vpack.c.bf16 %v1191_v36, %v1190_v21  ;;  %v177_v9 = vld [vmem:[#allocation2 + $0x400] sm:$0x80]  ;;  %v1543_v30 = vshrl.u32 %v1426_v13, 16  ;;  %v1742_v46 = vld [vmem:[#allocation2 + $0x408] sm:$0xff]  ;;  %v1427_v36 = vpack.c.bf16 %v1379_v40, %v1378_v53  ;;  %v282_v53 = vld [vmem:[#allocation2 + $0x4e0] sm:$0x1] }
 0x11c   :  { %1293 = vst [vmem:[#allocation2 + $0x370] sm:$0xff] %v13356_v29  ;;  %v178_v31 = vsel %vm12954_vm8, 0, %v177_v9  ;;  %v280_v9 = vsel %vm12268_vm2, 0, %v279_v12  ;;  %v283_v40 = vsel %vm12268_vm2, 0, %v282_v53 }
 0x11d   :  { %179 = vst [vmem:[#allocation2 + $0x400] sm:$0x80] %v178_v31  ;;  %v1545_v60 = vrot.slane %v1543_v30, 7  ;;  %v1553_v39 = vshll.u32 %v1427_v36, 16  ;;  %v1745_v13 = vld [vmem:[#allocation2 + $0x450] sm:$0xff] }
 0x11e   :  { %v1381_v31 = vld [vmem:[%s19327_s0 + $0x108] sm:$0x7f]  ;;  %281 = vst [vmem:[#allocation2 + $0x498] sm:$0x1] %v280_v9  ;;  %284 = vst [vmem:[#allocation2 + $0x4e0] sm:$0x1] %v283_v40 }
 0x11f   :  { %v1548_v45 = vor.u32 %v1546_v10, %v1545_v60  ;;  %v1199_v40 = vld [vmem:[%s19327_s0 + $0x119] sm:$0x7f] }
 0x121   :  { %3965 = vmatmul.mubr.bf16.gmra.mrb[112].mxu0 %v12887_v48  ;;  %v1103_v48 = vld [vmem:[%s19327_s0 + $0x1d8] sm:$0xff]  ;;  %v13410_v21 = vsel %vm12319_vm5, %v1548_v45, %v1742_v46  ;;  %v12050_v46 = vld [vmem:[%s19326_s1 + $0x100] sm:$0xff]  }
 0x122   :  { %3972 = vmatprep.mubr.bf16.mxu0 %v1133_v18  ;;  %v1134_v42 = vpack.c.bf16 %v1103_v48, %v12903_v50  ;;  %v1294_v50 = vld [vmem:[#allocation2 + $0x3b8] sm:$0xff]  ;;  %v180_v48 = vld [vmem:[#allocation2 + $0x448] sm:$0x80]  ;;  %1744 = vst [vmem:[#allocation2 + $0x408] sm:$0xff] %v13410_v21 }
 0x123   :  { %v13387_v57 = vsel %vm12992_vm10, %v1238_v22, %v1294_v50  ;;  %v1192_v18 = vld [vmem:[%s19327_s0 + $0xd1] sm:$0xff]  ;;  %v181_v59 = vsel %vm12954_vm8, 0, %v180_v48  ;;  %v1550_v22 = vshrl.u32 %v1427_v36, 16  ;;  %v1380_v50 = vld [vmem:[%s19327_s0 + $0x100] sm:$0xff] }
 0x124   :  { %1296 = vst [vmem:[#allocation2 + $0x3b8] sm:$0xff] %v13387_v57  ;;  %v1239_v49 = vpack.c.bf16 %v1193_v62, %v1192_v18  ;;  %182 = vst [vmem:[#allocation2 + $0x448] sm:$0x80] %v181_v59  ;;  %v1428_v10 = vpack.c.bf16 %v1381_v31, %v1380_v50  ;;  %v183_v18 = vld [vmem:[#allocation2 + $0x490] sm:$0x80] }
 0x125   :  { %v1552_v8 = vrot.slane %v1550_v22, 7  ;;  %v1382_v36 = vld [vmem:[%s19327_s0 + $0x110] sm:$0xff]  ;;  %v186_v59 = vld [vmem:[#allocation2 + $0x4d8] sm:$0x80]  ;;  %v285_v50 = vld [vmem:[#allocation2 + $0x528] sm:$0x1] }
 0x126   :  { %v1557_v45 = vshrl.u32 %v1428_v10, 16  ;;  %v187_v22 = vsel %vm12954_vm8, 0, %v186_v59  ;;  %v1751_v31 = vld [vmem:[#allocation2 + $0x4e0] sm:$0xff]  ;;  %v288_v59 = vld [vmem:[#allocation2 + $0x570] sm:$0x1] }
 0x127   :  { %188 = vst [vmem:[#allocation2 + $0x4d8] sm:$0x80] %v187_v22 }
 0x128   :  { %v1559_v51 = vrot.slane %v1557_v45, 7 }
 0x129   :  { %3973 = vmatmul.mubr.bf16.gmra.mrb[116].mxu0 %v12912_v6  ;;  %v1105_v6 = vld [vmem:[%s19327_s0 + $0x1e8] sm:$0xff] }
 0x12a   :  { %3980 = vmatprep.mubr.bf16.mxu0 %v1134_v42  ;;  %v1135_v56 = vpack.c.bf16 %v1105_v6, %v12924_v17  ;;  %v1297_v17 = vld [vmem:[#allocation2 + $0x400] sm:$0xff]  ;;  %v184_v6 = vsel %vm12954_vm8, 0, %v183_v18 }
 0x12b   :  { %v13418_v55 = vsel %vm12992_vm10, %v1239_v49, %v1297_v17  ;;  %v1194_v42 = vld [vmem:[%s19327_s0 + $0xe1] sm:$0xff]  ;;  %v1560_v49 = vshll.u32 %v1428_v10, 16  ;;  %185 = vst [vmem:[#allocation2 + $0x490] sm:$0x80] %v184_v6  ;;  %v286_v10 = vsel %vm12268_vm2, 0, %v285_v50 }
 0x12c   :  { %1299 = vst [vmem:[#allocation2 + $0x400] sm:$0xff] %v13418_v55  ;;  %v1240_v54 = vpack.c.bf16 %v1195_v24, %v1194_v42  ;;  %v1300_v62 = vld [vmem:[#allocation2 + $0x448] sm:$0xff]  ;;  %v1384_v18 = vld [vmem:[%s19327_s0 + $0x120] sm:$0xff]  ;;  %287 = vst [vmem:[#allocation2 + $0x528] sm:$0x1] %v286_v10 }
 0x12d   :  { %v1562_v37 = vor.u32 %v1560_v49, %v1559_v51  ;;  %v12051_v24 = vld [vmem:[%s19326_s1 + $0x108] sm:$0xff]   ;;  %v189_v49 = vld [vmem:[#allocation2 + $0x520] sm:$0x80] }
 0x12e   :  { %v13445_v60 = vsel %vm12992_vm10, %v1240_v54, %v1300_v62  ;;  %v13477_v54 = vld [vmem:[#allocation2 + $0x8] sm:$0xff]  ;;  %v1303_v51 = vld [vmem:[#allocation2 + $0x4d8] sm:$0xff] }
 0x12f   :  { %1302 = vst [vmem:[#allocation2 + $0x448] sm:$0xff] %v13445_v60  ;;  %v1385_v62 = vld [vmem:[%s19327_s0 + $0x128] sm:$0x7f] }
 0x130   :  { %v1430_v45 = vpack.c.bf16 %v1385_v62, %v1384_v18  ;;  %v12055_v10 = vld [vmem:[%s19326_s1 + $0x128] sm:$0xff]  }
 0x131   :  { %3981 = vmatmul.mubr.bf16.gmra.mrb[120].mxu0 %v12933_v34  ;;  %v1555_v34 = vor.u32 %v1553_v39, %v1552_v8  ;;  %v1196_v8 = vld [vmem:[%s19327_s0 + $0x101] sm:$0xff]  ;;  %v1201_v18 = vld [vmem:[%s19327_s0 + $0x129] sm:$0x7f] }
 0x132   :  { %3988 = vmatprep.mubr.bf16.mxu0 %v1135_v56  ;;  %v2839_v56 = vld [vmem:[#allocation2 + $0x10] sm:$0xff]  ;;  %v1574_v53 = vshll.u32 %v1430_v45, 16 }
 0x133   :  { %v13437_v30 = vsel %vm12319_vm5, %v1555_v34, %v1745_v13  ;;  %v1197_v34 = vld [vmem:[%s19327_s0 + $0x109] sm:$0x7f] }
 0x134   :  { %1747 = vst [vmem:[#allocation2 + $0x450] sm:$0xff] %v13437_v30  ;;  %v1241_v9 = vpack.c.bf16 %v1197_v34, %v1196_v8  ;;  %v1754_v22 = vld [vmem:[#allocation2 + $0x528] sm:$0xff] }
 0x139   :  { %3989 = vmatmul.mubr.bf16.gmra.mrb[124].mxu0 %v12952_v38  ;;  %v1748_v38 = vld [vmem:[#allocation2 + $0x498] sm:$0xff] }
 0x13a   :  { %4029 = vmatprep.mubr.bf16.mxu0 %v12977_v27  ;;  %v1383_v27 = vld [vmem:[%s19327_s0 + $0x118] sm:$0x7f]  ;;  %v13462_v48 = vsel %vm12319_vm5, %v1562_v37, %v1748_v38  ;;  %v1571_v37 = vshrl.u32 %v1430_v45, 16 }
 0x13b   :  { %v1429_v17 = vpack.c.bf16 %v1383_v27, %v1382_v36  ;;  %1750 = vst [vmem:[#allocation2 + $0x498] sm:$0xff] %v13462_v48  ;;  %v12053_v38 = vld [vmem:[%s19326_s1 + $0x118] sm:$0xff]  }
 0x13c   :  { %v1573_v36 = vrot.slane %v1571_v37, 7 }
 0x13d   :  { %v1564_v39 = vshrl.u32 %v1429_v17, 16  ;;  %v1567_v42 = vshll.u32 %v1429_v17, 16 }
 0x13e   :  { %v1576_v27 = vor.u32 %v1574_v53, %v1573_v36  ;;  %v1388_v53 = vld [vmem:[%s19327_s0 + $0x140] sm:$0xff]  ;;  %v195_v36 = vld [vmem:[#allocation2 + $0x5b0] sm:$0x80] }
 0x13f   :  { %v1566_v12 = vrot.slane %v1564_v39, 7  ;;  %v289_v39 = vsel %vm12268_vm2, 0, %v288_v59 }
 0x140   :  { %v13530_v8 = vsel %vm12319_vm5, %v1576_v27, %v1754_v22  ;;  %290 = vst [vmem:[#allocation2 + $0x570] sm:$0x1] %v289_v39  ;;  %v196_v27 = vsel %vm12954_vm8, 0, %v195_v36  ;;  %v12057_v39 = vld [vmem:[%s19326_s1 + $0x138] sm:$0xff]  }
 0x141   :  { %4030 = vmatmul.mubr.bf16.vlgmr.msra.gmra.mrb[0].mxu0 %v2839_v56  ;;  %v1569_v13 = vor.u32 %v1567_v42, %v1566_v12  ;;  %v190_v56 = vsel %vm12954_vm8, 0, %v189_v49  ;;  %v1386_v42 = vld [vmem:[%s19327_s0 + $0x130] sm:$0xff]  ;;  %v192_v12 = vld [vmem:[#allocation2 + $0x568] sm:$0x80]  ;;  %1756 = vst [vmem:[#allocation2 + $0x528] sm:$0xff] %v13530_v8 }
 0x142   :  { %4287 = vmatpush1.bf16.msra.mxu0 %v12050_v46  ;;  %4037 = vmatprep.mubr.bf16.mxu0 %v13007_v20  ;;  %v12052_v20 = vld [vmem:[%s19326_s1 + $0x110] sm:$0xff]   ;;  %v13502_v46 = vsel %vm12992_vm10, %v1241_v9, %v1303_v51  ;;  %191 = vst [vmem:[#allocation2 + $0x520] sm:$0x80] %v190_v56  ;;  %v291_v51 = vld [vmem:[#allocation2 + $0x5b8] sm:$0x1] }
 0x143   :  { %4288 = vmatprep.subr.bf16.mxu0 %v13477_v54  ;;  %v13494_v6 = vsel %vm12319_vm5, %v1569_v13, %v1751_v31  ;;  %1305 = vst [vmem:[#allocation2 + $0x4d8] sm:$0xff] %v13502_v46  ;;  %v193_v13 = vsel %vm12954_vm8, 0, %v192_v12  ;;  %v292_v37 = vsel %vm12268_vm2, 0, %v291_v51  ;;  %197 = vst [vmem:[#allocation2 + $0x5b0] sm:$0x80] %v196_v27 }
 0x144   :  { %1753 = vst [vmem:[#allocation2 + $0x4e0] sm:$0xff] %v13494_v6  ;;  %194 = vst [vmem:[#allocation2 + $0x568] sm:$0x80] %v193_v13 }
 0x145   :  { %293 = vst [vmem:[#allocation2 + $0x5b8] sm:$0x1] %v292_v37  ;;  %v12059_v37 = vld [vmem:[%s19326_s1 + $0x148] sm:$0xff]  }
 0x146   :  { %4289 = vmatpush1.bf16.msra.mxu0 %v12051_v24  ;;  %v1387_v24 = vld [vmem:[%s19327_s0 + $0x138] sm:$0x7f] }
 0x147   :  { %4290 = vmatprep.subr.bf16.mxu0 %v13477_v54  ;;  %v1431_v34 = vpack.c.bf16 %v1387_v24, %v1386_v42  ;;  %v1757_v56 = vld [vmem:[#allocation2 + $0x570] sm:$0xff]  ;;  %v1203_v42 = vld [vmem:[%s19327_s0 + $0x139] sm:$0x7f] }
 0x149   :  { %4038 = vmatmul.mubr.bf16.gmra.mrb[4].mxu0 %v13015_v11  ;;  %v1198_v11 = vld [vmem:[%s19327_s0 + $0x111] sm:$0xff]  ;;  %v1578_v50 = vshrl.u32 %v1431_v34, 16  ;;  %v1581_v31 = vshll.u32 %v1431_v34, 16 }
 0x14a   :  { %4045 = vmatprep.mubr.bf16.mxu0 %v13038_v58  ;;  %4291 = vmatpush1.bf16.msra.mxu0 %v12052_v20  ;;  %v12054_v58 = vld [vmem:[%s19326_s1 + $0x120] sm:$0xff]   ;;  %v1242_v17 = vpack.c.bf16 %v1199_v40, %v1198_v11 }
 0x14b   :  { %4292 = vmatprep.subr.bf16.mxu0 %v13477_v54  ;;  %v1306_v20 = vld [vmem:[#allocation2 + $0x520] sm:$0xff]  ;;  %v1580_v62 = vrot.slane %v1578_v50, 7 }
 0x14c   :  { %v13538_v9 = vsel %vm12992_vm10, %v1242_v17, %v1306_v20  ;;  %v294_v20 = vld [vmem:[#allocation2 + $0x600] sm:$0x1]  ;;  %v1760_v13 = vld [vmem:[#allocation2 + $0x5b8] sm:$0xff] }
 0x14d   :  { %1308 = vst [vmem:[#allocation2 + $0x520] sm:$0xff] %v13538_v9  ;;  %v1583_v45 = vor.u32 %v1581_v31, %v1580_v62  ;;  %v295_v50 = vsel %vm12268_vm2, 0, %v294_v20  ;;  %v1390_v31 = vld [vmem:[%s19327_s0 + $0x150] sm:$0xff]  ;;  %v198_v62 = vld [vmem:[#allocation2 + $0x5f8] sm:$0x80] }
 0x14e   :  { %4293 = vmatpush1.bf16.msra.mxu0 %v12053_v38  ;;  %v1389_v38 = vld [vmem:[%s19327_s0 + $0x148] sm:$0x7f]  ;;  %296 = vst [vmem:[#allocation2 + $0x600] sm:$0x1] %v295_v50  ;;  %v1206_v50 = vld [vmem:[%s19327_s0 + $0x151] sm:$0xff] }
 0x14f   :  { %4294 = vmatprep.subr.bf16.mxu0 %v13477_v54  ;;  %v13566_v11 = vsel %vm12319_vm5, %v1583_v45, %v1757_v56  ;;  %v1432_v40 = vpack.c.bf16 %v1389_v38, %v1388_v53  ;;  %v199_v45 = vsel %vm12954_vm8, 0, %v198_v62  ;;  %v1205_v53 = vld [vmem:[%s19327_s0 + $0x149] sm:$0x7f]  ;;  %v300_v62 = vld [vmem:[#allocation2 + $0x690] sm:$0x1] }
 0x150   :  { %1759 = vst [vmem:[#allocation2 + $0x570] sm:$0xff] %v13566_v11  ;;  %200 = vst [vmem:[#allocation2 + $0x5f8] sm:$0x80] %v199_v45  ;;  %v1394_v45 = vld [vmem:[%s19327_s0 + $0x170] sm:$0xff] }
 0x151   :  { %4046 = vmatmul.mubr.bf16.gmra.mrb[8].mxu0 %v13046_v0  ;;  %v1200_v0 = vld [vmem:[%s19327_s0 + $0x121] sm:$0xff]  ;;  %v1585_v59 = vshrl.u32 %v1432_v40, 16  ;;  %v1588_v22 = vshll.u32 %v1432_v40, 16 }
 0x152   :  { %4053 = vmatprep.mubr.bf16.mxu0 %v13069_v52  ;;  %4295 = vmatpush1.bf16.msra.mxu0 %v12054_v58  ;;  %v12056_v52 = vld [vmem:[%s19326_s1 + $0x130] sm:$0xff]   ;;  %v1243_v49 = vpack.c.bf16 %v1201_v18, %v1200_v0  ;;  %v1309_v58 = vld [vmem:[#allocation2 + $0x568] sm:$0xff] }
 0x153   :  { %4296 = vmatprep.subr.bf16.mxu0 %v13477_v54  ;;  %v1587_v24 = vrot.slane %v1585_v59, 7 }
 0x154   :  { %v13574_v17 = vsel %vm12992_vm10, %v1243_v49, %v1309_v58  ;;  %v297_v58 = vld [vmem:[#allocation2 + $0x648] sm:$0x1] }
 0x155   :  { %1311 = vst [vmem:[#allocation2 + $0x568] sm:$0xff] %v13574_v17  ;;  %v1590_v34 = vor.u32 %v1588_v22, %v1587_v24  ;;  %v1763_v27 = vld [vmem:[#allocation2 + $0x600] sm:$0xff]  ;;  %v298_v59 = vsel %vm12268_vm2, 0, %v297_v58 }
 0x156   :  { %4297 = vmatpush1.bf16.msra.mxu0 %v12055_v10  ;;  %v1391_v10 = vld [vmem:[%s19327_s0 + $0x158] sm:$0x7f]  ;;  %v1392_v22 = vld [vmem:[%s19327_s0 + $0x160] sm:$0xff]  ;;  %299 = vst [vmem:[#allocation2 + $0x648] sm:$0x1] %v298_v59 }
 0x157   :  { %4298 = vmatprep.subr.bf16.mxu0 %v13477_v54  ;;  %v13602_v0 = vsel %vm12319_vm5, %v1590_v34, %v1760_v13  ;;  %v1433_v18 = vpack.c.bf16 %v1391_v10, %v1390_v31  ;;  %v201_v24 = vld [vmem:[#allocation2 + $0x640] sm:$0x80] }
 0x158   :  { %1762 = vst [vmem:[#allocation2 + $0x5b8] sm:$0xff] %v13602_v0  ;;  %v202_v34 = vsel %vm12954_vm8, 0, %v201_v24 }
 0x159   :  { %4054 = vmatmul.mubr.bf16.gmra.mrb[12].mxu0 %v13077_v19  ;;  %v1202_v19 = vld [vmem:[%s19327_s0 + $0x131] sm:$0xff]  ;;  %v1592_v51 = vshrl.u32 %v1433_v18, 16  ;;  %v1595_v56 = vshll.u32 %v1433_v18, 16  ;;  %203 = vst [vmem:[#allocation2 + $0x640] sm:$0x80] %v202_v34 }
 0x15a   :  { %4061 = vmatprep.mubr.bf16.mxu0 %v13100_v47  ;;  %4299 = vmatpush1.bf16.msra.mxu0 %v12056_v52  ;;  %v12058_v47 = vld [vmem:[%s19326_s1 + $0x140] sm:$0xff]   ;;  %v1244_v12 = vpack.c.bf16 %v1203_v42, %v1202_v19  ;;  %v1312_v52 = vld [vmem:[#allocation2 + $0x5b0] sm:$0xff]  ;;  %v1397_v34 = vld [vmem:[%s19327_s0 + $0x188] sm:$0x7f] }
 0x15b   :  { %4300 = vmatprep.subr.bf16.mxu0 %v13477_v54  ;;  %v1594_v38 = vrot.slane %v1592_v51, 7  ;;  %v1395_v51 = vld [vmem:[%s19327_s0 + $0x178] sm:$0x7f] }
 0x15c   :  { %v13610_v49 = vsel %vm12992_vm10, %v1244_v12, %v1312_v52 }
 0x15d   :  { %1314 = vst [vmem:[#allocation2 + $0x5b0] sm:$0xff] %v13610_v49  ;;  %v1597_v40 = vor.u32 %v1595_v56, %v1594_v38  ;;  %v1766_v52 = vld [vmem:[#allocation2 + $0x648] sm:$0xff] }
 0x15e   :  { %4301 = vmatpush1.bf16.msra.mxu0 %v12057_v39  ;;  %v1393_v39 = vld [vmem:[%s19327_s0 + $0x168] sm:$0x7f] }
 0x15f   :  { %4302 = vmatprep.subr.bf16.mxu0 %v13477_v54  ;;  %v13638_v19 = vsel %vm12319_vm5, %v1597_v40, %v1763_v27  ;;  %v1434_v42 = vpack.c.bf16 %v1393_v39, %v1392_v22  ;;  %v12061_v40 = vld [vmem:[%s19326_s1 + $0x158] sm:$0xff]   ;;  %v1208_v27 = vld [vmem:[%s19327_s0 + $0x161] sm:$0xff] }
 0x160   :  { %1765 = vst [vmem:[#allocation2 + $0x600] sm:$0xff] %v13638_v19 }
 0x161   :  { %4062 = vmatmul.mubr.bf16.gmra.mrb[16].mxu0 %v13108_v14  ;;  %v1204_v14 = vld [vmem:[%s19327_s0 + $0x141] sm:$0xff]  ;;  %v1599_v20 = vshrl.u32 %v1434_v42, 16  ;;  %v1602_v13 = vshll.u32 %v1434_v42, 16  ;;  %v303_v42 = vld [vmem:[#allocation2 + $0x6d8] sm:$0x1] }
 0x162   :  { %4069 = vmatprep.mubr.bf16.mxu0 %v13131_v5  ;;  %4303 = vmatpush1.bf16.msra.mxu0 %v12058_v47  ;;  %v12060_v5 = vld [vmem:[%s19326_s1 + $0x150] sm:$0xff]   ;;  %v1245_v36 = vpack.c.bf16 %v1205_v53, %v1204_v14  ;;  %v1315_v47 = vld [vmem:[#allocation2 + $0x5f8] sm:$0xff]  ;;  %v204_v14 = vld [vmem:[#allocation2 + $0x688] sm:$0x80] }
 0x163   :  { %4304 = vmatprep.subr.bf16.mxu0 %v13477_v54  ;;  %v1601_v31 = vrot.slane %v1599_v20, 7  ;;  %v1318_v53 = vld [vmem:[#allocation2 + $0x640] sm:$0xff]  ;;  %v205_v38 = vsel %vm12954_vm8, 0, %v204_v14 }
 0x164   :  { %v13646_v12 = vsel %vm12992_vm10, %v1245_v36, %v1315_v47  ;;  %206 = vst [vmem:[#allocation2 + $0x688] sm:$0x80] %v205_v38  ;;  %v1396_v47 = vld [vmem:[%s19327_s0 + $0x180] sm:$0xff]  ;;  %v1399_v38 = vld [vmem:[%s19327_s0 + $0x198] sm:$0x7f] }
 0x165   :  { %1317 = vst [vmem:[#allocation2 + $0x5f8] sm:$0xff] %v13646_v12  ;;  %v1604_v10 = vor.u32 %v1602_v13, %v1601_v31  ;;  %v1436_v13 = vpack.c.bf16 %v1397_v34, %v1396_v47 }
 0x166   :  { %4305 = vmatpush1.bf16.msra.mxu0 %v12059_v37  ;;  %v1435_v37 = vpack.c.bf16 %v1395_v51, %v1394_v45 }
 0x167   :  { %4306 = vmatprep.subr.bf16.mxu0 %v13477_v54  ;;  %v13667_v56 = vsel %vm12319_vm5, %v1604_v10, %v1766_v52  ;;  %v1210_v52 = vld [vmem:[%s19327_s0 + $0x171] sm:$0xff] }
 0x168   :  { %1768 = vst [vmem:[#allocation2 + $0x648] sm:$0xff] %v13667_v56  ;;  %v1606_v36 = vshrl.u32 %v1435_v37, 16  ;;  %v1609_v58 = vshll.u32 %v1435_v37, 16  ;;  %v306_v37 = vld [vmem:[#allocation2 + $0x720] sm:$0x1] }
 0x169   :  { %4070 = vmatmul.mubr.bf16.gmra.mrb[20].mxu0 %v13139_v33  ;;  %v1207_v33 = vld [vmem:[%s19327_s0 + $0x159] sm:$0x7f] }
 0x16a   :  { %4077 = vmatprep.mubr.bf16.mxu0 %v13162_v3  ;;  %4307 = vmatpush1.bf16.msra.mxu0 %v12060_v5  ;;  %v1246_v18 = vpack.c.bf16 %v1207_v33, %v1206_v50  ;;  %v301_v3 = vsel %vm12268_vm2, 0, %v300_v62  ;;  %v1608_v59 = vrot.slane %v1606_v36, 7  ;;  %v207_v50 = vld [vmem:[#allocation2 + $0x6d0] sm:$0x80]  ;;  %v1616_v62 = vshll.u32 %v1436_v13, 16 }
 0x16b   :  { %4308 = vmatprep.subr.bf16.mxu0 %v13477_v54  ;;  %302 = vst [vmem:[#allocation2 + $0x690] sm:$0x1] %v301_v3  ;;  %v1321_v33 = vld [vmem:[#allocation2 + $0x688] sm:$0xff]  ;;  %v208_v31 = vsel %vm12954_vm8, 0, %v207_v50  ;;  %v1211_v3 = vld [vmem:[%s19327_s0 + $0x179] sm:$0x7f] }
 0x16c   :  { %v13675_v5 = vsel %vm12992_vm10, %v1246_v18, %v1318_v53  ;;  %v1611_v22 = vor.u32 %v1609_v58, %v1608_v59  ;;  %v1613_v18 = vshrl.u32 %v1436_v13, 16  ;;  %209 = vst [vmem:[#allocation2 + $0x6d0] sm:$0x80] %v208_v31  ;;  %v1248_v51 = vpack.c.bf16 %v1211_v3, %v1210_v52  ;;  %v210_v58 = vld [vmem:[#allocation2 + $0x718] sm:$0x80] }
 0x16d   :  { %1320 = vst [vmem:[#allocation2 + $0x640] sm:$0xff] %v13675_v5  ;;  %v307_v53 = vsel %vm12268_vm2, 0, %v306_v37  ;;  %v309_v13 = vld [vmem:[#allocation2 + $0x768] sm:$0x1]  ;;  %v213_v52 = vld [vmem:[#allocation2 + $0x760] sm:$0x80] }
 0x16e   :  { %4309 = vmatpush1.bf16.msra.mxu0 %v12061_v40  ;;  %308 = vst [vmem:[#allocation2 + $0x720] sm:$0x1] %v307_v53  ;;  %v1401_v31 = vld [vmem:[%s19327_s0 + $0x1a8] sm:$0x7f]  ;;  %v1215_v53 = vld [vmem:[%s19327_s0 + $0x199] sm:$0x7f] }
 0x16f   :  { %4310 = vmatprep.subr.bf16.mxu0 %v13477_v54 }
 0x171   :  { %4078 = vmatmul.mubr.bf16.gmra.mrb[24].mxu0 %v13170_v35  ;;  %v1209_v35 = vld [vmem:[%s19327_s0 + $0x169] sm:$0x7f] }
 0x172   :  { %4085 = vmatprep.mubr.bf16.mxu0 %v13193_v41  ;;  %v1247_v39 = vpack.c.bf16 %v1209_v35, %v1208_v27  ;;  %v1769_v24 = vld [vmem:[#allocation2 + $0x690] sm:$0xff]  ;;  %v304_v41 = vsel %vm12268_vm2, 0, %v303_v42  ;;  %v211_v35 = vsel %vm12954_vm8, 0, %v210_v58 }
 0x173   :  { %v13699_v20 = vsel %vm12319_vm5, %v1611_v22, %v1769_v24  ;;  %305 = vst [vmem:[#allocation2 + $0x6d8] sm:$0x1] %v304_v41  ;;  %v1324_v27 = vld [vmem:[#allocation2 + $0x6d0] sm:$0xff]  ;;  %v12062_v22 = vld [vmem:[%s19326_s1 + $0x160] sm:$0xff]   ;;  %212 = vst [vmem:[#allocation2 + $0x718] sm:$0x80] %v211_v35 }
 0x174   :  { %1771 = vst [vmem:[#allocation2 + $0x690] sm:$0xff] %v13699_v20  ;;  %v13707_v10 = vsel %vm12992_vm10, %v1247_v39, %v1321_v33  ;;  %v13735_v59 = vsel %vm12992_vm10, %v1248_v51, %v1324_v27  ;;  %v1212_v24 = vld [vmem:[%s19327_s0 + $0x181] sm:$0xff]  ;;  %4311 = vmatpush1.bf16.msra.mxu0 %v12062_v22  ;;  %v1403_v35 = vld [vmem:[%s19327_s0 + $0x1b8] sm:$0x7f] }
 0x175   :  { %1323 = vst [vmem:[#allocation2 + $0x688] sm:$0xff] %v13707_v10  ;;  %1326 = vst [vmem:[#allocation2 + $0x6d0] sm:$0xff] %v13735_v59  ;;  %4312 = vmatprep.subr.bf16.mxu0 %v13477_v54  ;;  %v1775_v50 = vld [vmem:[#allocation2 + $0x720] sm:$0xff] }
 0x176   :  { %v1400_v33 = vld [vmem:[%s19327_s0 + $0x1a0] sm:$0xff] }
 0x179   :  { %4086 = vmatmul.mubr.bf16.gmra.mrb[28].mxu0 %v13201_v1  ;;  %v1615_v1 = vrot.slane %v1613_v18, 7 }
 0x17a   :  { %4093 = vmatprep.mubr.bf16.mxu0 %v13224_v15  ;;  %v1772_v14 = vld [vmem:[#allocation2 + $0x6d8] sm:$0xff]  ;;  %v1398_v15 = vld [vmem:[%s19327_s0 + $0x190] sm:$0xff] }
 0x17b   :  { %v1618_v45 = vor.u32 %v1616_v62, %v1615_v1  ;;  %v1437_v36 = vpack.c.bf16 %v1399_v38, %v1398_v15  ;;  %v1438_v62 = vpack.c.bf16 %v1401_v31, %v1400_v33  ;;  %v1327_v3 = vld [vmem:[#allocation2 + $0x718] sm:$0xff]  ;;  %v214_v1 = vsel %vm12954_vm8, 0, %v213_v52 }
 0x17c   :  { %215 = vst [vmem:[#allocation2 + $0x760] sm:$0x80] %v214_v1  ;;  %v1405_v1 = vld [vmem:[%s19327_s0 + $0x1c8] sm:$0x7f] }
 0x17d   :  { %v13727_v40 = vsel %vm12319_vm5, %v1618_v45, %v1772_v14  ;;  %v1620_v39 = vshrl.u32 %v1437_v36, 16  ;;  %v1623_v42 = vshll.u32 %v1437_v36, 16  ;;  %v1627_v51 = vshrl.u32 %v1438_v62, 16  ;;  %v1214_v14 = vld [vmem:[%s19327_s0 + $0x191] sm:$0xff]  ;;  %v312_v36 = vld [vmem:[#allocation2 + $0x7b0] sm:$0x1] }
 0x17e   :  { %1774 = vst [vmem:[#allocation2 + $0x6d8] sm:$0xff] %v13727_v40  ;;  %v1630_v37 = vshll.u32 %v1438_v62, 16  ;;  %v1250_v38 = vpack.c.bf16 %v1215_v53, %v1214_v14  ;;  %v313_v27 = vsel %vm12268_vm2, 0, %v312_v36  ;;  %v315_v62 = vld [vmem:[#allocation2 + $0x7f8] sm:$0x1] }
 0x17f   :  { %v1622_v41 = vrot.slane %v1620_v39, 7  ;;  %314 = vst [vmem:[#allocation2 + $0x7b0] sm:$0x1] %v313_v27  ;;  %v219_v14 = vld [vmem:[#allocation2 + $0x7f0] sm:$0x80] }
 0x180   :  { %v1219_v27 = vld [vmem:[%s19327_s0 + $0x1b9] sm:$0x7f] }
 0x181   :  { %4094 = vmatmul.mubr.bf16.gmra.mrb[32].mxu0 %v13232_v25  ;;  %v1213_v25 = vld [vmem:[%s19327_s0 + $0x189] sm:$0x7f]  ;;  %v1625_v47 = vor.u32 %v1623_v42, %v1622_v41 }
 0x182   :  { %4101 = vmatprep.mubr.bf16.mxu0 %v13255_v23  ;;  %v1249_v34 = vpack.c.bf16 %v1213_v25, %v1212_v24  ;;  %v310_v23 = vsel %vm12268_vm2, 0, %v309_v13  ;;  %v216_v42 = vld [vmem:[#allocation2 + $0x7a8] sm:$0x80] }
 0x183   :  { %v13759_v18 = vsel %vm12319_vm5, %v1625_v47, %v1775_v50  ;;  %311 = vst [vmem:[#allocation2 + $0x768] sm:$0x1] %v310_v23  ;;  %v1330_v24 = vld [vmem:[#allocation2 + $0x760] sm:$0xff]  ;;  %v217_v25 = vsel %vm12954_vm8, 0, %v216_v42  ;;  %v12063_v47 = vld [vmem:[%s19326_s1 + $0x168] sm:$0xff]  }
 0x184   :  { %1777 = vst [vmem:[#allocation2 + $0x720] sm:$0xff] %v13759_v18  ;;  %v13767_v45 = vsel %vm12992_vm10, %v1249_v34, %v1327_v3  ;;  %v13795_v41 = vsel %vm12992_vm10, %v1250_v38, %v1330_v24  ;;  %218 = vst [vmem:[#allocation2 + $0x7a8] sm:$0x80] %v217_v25  ;;  %v1216_v50 = vld [vmem:[%s19327_s0 + $0x1a1] sm:$0xff]  ;;  %4313 = vmatpush1.bf16.msra.mxu0 %v12063_v47  ;;  %v1407_v25 = vld [vmem:[%s19327_s0 + $0x1d8] sm:$0x7f] }
 0x185   :  { %1329 = vst [vmem:[#allocation2 + $0x718] sm:$0xff] %v13767_v45  ;;  %1332 = vst [vmem:[#allocation2 + $0x760] sm:$0xff] %v13795_v41  ;;  %4314 = vmatprep.subr.bf16.mxu0 %v13477_v54  ;;  %v1404_v3 = vld [vmem:[%s19327_s0 + $0x1c0] sm:$0xff] }
 0x186   :  { %v1781_v52 = vld [vmem:[#allocation2 + $0x7b0] sm:$0xff] }
 0x189   :  { %4102 = vmatmul.mubr.bf16.gmra.mrb[36].mxu0 %v13263_v61  ;;  %v1629_v61 = vrot.slane %v1627_v51, 7 }
 0x18a   :  { %4109 = vmatprep.mubr.bf16.mxu0 %v13286_v26  ;;  %v1778_v58 = vld [vmem:[#allocation2 + $0x768] sm:$0xff]  ;;  %v1402_v26 = vld [vmem:[%s19327_s0 + $0x1b0] sm:$0xff] }
 0x18b   :  { %v1632_v15 = vor.u32 %v1630_v37, %v1629_v61  ;;  %v1439_v39 = vpack.c.bf16 %v1403_v35, %v1402_v26  ;;  %v1440_v37 = vpack.c.bf16 %v1405_v1, %v1404_v3  ;;  %v1333_v53 = vld [vmem:[#allocation2 + $0x7a8] sm:$0xff]  ;;  %v220_v61 = vsel %vm12954_vm8, 0, %v219_v14 }
 0x18c   :  { %221 = vst [vmem:[#allocation2 + $0x7f0] sm:$0x80] %v220_v61  ;;  %v1409_v61 = vld [vmem:[%s19327_s0 + $0x1e8] sm:$0x7f] }
 0x18d   :  { %v13787_v22 = vsel %vm12319_vm5, %v1632_v15, %v1778_v58  ;;  %v1634_v34 = vshrl.u32 %v1439_v39, 16  ;;  %v1637_v13 = vshll.u32 %v1439_v39, 16  ;;  %v1641_v38 = vshrl.u32 %v1440_v37, 16  ;;  %v1218_v58 = vld [vmem:[%s19327_s0 + $0x1b1] sm:$0xff]  ;;  %v318_v39 = vld [vmem:[#allocation2 + $0x840] sm:$0x1] }
 0x18e   :  { %1780 = vst [vmem:[#allocation2 + $0x768] sm:$0xff] %v13787_v22  ;;  %v1644_v36 = vshll.u32 %v1440_v37, 16  ;;  %v1252_v35 = vpack.c.bf16 %v1219_v27, %v1218_v58  ;;  %v319_v24 = vsel %vm12268_vm2, 0, %v318_v39  ;;  %v321_v37 = vld [vmem:[#allocation2 + $0x888] sm:$0x1] }
 0x18f   :  { %v1636_v23 = vrot.slane %v1634_v34, 7  ;;  %320 = vst [vmem:[#allocation2 + $0x840] sm:$0x1] %v319_v24  ;;  %v225_v58 = vld [vmem:[#allocation2 + $0x880] sm:$0x80] }
 0x190   :  { %v1223_v24 = vld [vmem:[%s19327_s0 + $0x1d9] sm:$0x7f] }
 0x191   :  { %4110 = vmatmul.mubr.bf16.gmra.mrb[40].mxu0 %v13294_v2  ;;  %v1217_v2 = vld [vmem:[%s19327_s0 + $0x1a9] sm:$0x7f]  ;;  %v1639_v33 = vor.u32 %v1637_v13, %v1636_v23  ;;  %v222_v13 = vld [vmem:[#allocation2 + $0x838] sm:$0x80] }
 0x192   :  { %4117 = vmatprep.mubr.bf16.mxu0 %v13317_v43  ;;  %v1251_v31 = vpack.c.bf16 %v1217_v2, %v1216_v50  ;;  %v316_v43 = vsel %vm12268_vm2, 0, %v315_v62  ;;  %v223_v2 = vsel %vm12954_vm8, 0, %v222_v13 }
 0x193   :  { %v13819_v51 = vsel %vm12319_vm5, %v1639_v33, %v1781_v52  ;;  %317 = vst [vmem:[#allocation2 + $0x7f8] sm:$0x1] %v316_v43  ;;  %v1336_v50 = vld [vmem:[#allocation2 + $0x7f0] sm:$0xff]  ;;  %224 = vst [vmem:[#allocation2 + $0x838] sm:$0x80] %v223_v2  ;;  %v1220_v52 = vld [vmem:[%s19327_s0 + $0x1c1] sm:$0xff] }
 0x194   :  { %1783 = vst [vmem:[#allocation2 + $0x7b0] sm:$0xff] %v13819_v51  ;;  %v13827_v15 = vsel %vm12992_vm10, %v1251_v31, %v1333_v53  ;;  %v13855_v23 = vsel %vm12992_vm10, %v1252_v35, %v1336_v50  ;;  %v12064_v33 = vld [vmem:[%s19326_s1 + $0x170] sm:$0xff]   ;;  %v1408_v53 = vld [vmem:[%s19327_s0 + $0x1e0] sm:$0xff]  ;;  %v1411_v2 = vld [vmem:[%s19327_s0 + $0x1f8] sm:$0x7f] }
 0x195   :  { %1335 = vst [vmem:[#allocation2 + $0x7a8] sm:$0xff] %v13827_v15  ;;  %1338 = vst [vmem:[#allocation2 + $0x7f0] sm:$0xff] %v13855_v23  ;;  %4315 = vmatpush1.bf16.msra.mxu0 %v12064_v33 }
 0x196   :  { %4316 = vmatprep.subr.bf16.mxu0 %v13477_v54  ;;  %v1787_v14 = vld [vmem:[#allocation2 + $0x840] sm:$0xff] }
 0x199   :  { %4118 = vmatmul.mubr.bf16.gmra.mrb[44].mxu0 %v13325_v16  ;;  %v1643_v16 = vrot.slane %v1641_v38, 7 }
 0x19a   :  { %4125 = vmatprep.mubr.bf16.mxu0 %v13348_v4  ;;  %v1784_v42 = vld [vmem:[#allocation2 + $0x7f8] sm:$0xff]  ;;  %v1406_v4 = vld [vmem:[%s19327_s0 + $0x1d0] sm:$0xff] }
 0x19b   :  { %v1646_v26 = vor.u32 %v1644_v36, %v1643_v16  ;;  %v1441_v34 = vpack.c.bf16 %v1407_v25, %v1406_v4  ;;  %v1442_v36 = vpack.c.bf16 %v1409_v61, %v1408_v53  ;;  %v1339_v27 = vld [vmem:[#allocation2 + $0x838] sm:$0xff]  ;;  %v226_v16 = vsel %vm12954_vm8, 0, %v225_v58 }
 0x19c   :  { %227 = vst [vmem:[#allocation2 + $0x880] sm:$0x80] %v226_v16 }
 0x19d   :  { %v13847_v47 = vsel %vm12319_vm5, %v1646_v26, %v1784_v42  ;;  %v1648_v31 = vshrl.u32 %v1441_v34, 16  ;;  %v1651_v62 = vshll.u32 %v1441_v34, 16  ;;  %v1655_v35 = vshrl.u32 %v1442_v36, 16  ;;  %v1222_v42 = vld [vmem:[%s19327_s0 + $0x1d1] sm:$0xff]  ;;  %v324_v34 = vld [vmem:[#allocation2 + $0x8d0] sm:$0x1] }
 0x19e   :  { %1786 = vst [vmem:[#allocation2 + $0x7f8] sm:$0xff] %v13847_v47  ;;  %v1658_v39 = vshll.u32 %v1442_v36, 16  ;;  %v1254_v25 = vpack.c.bf16 %v1223_v24, %v1222_v42  ;;  %v325_v50 = vsel %vm12268_vm2, 0, %v324_v34  ;;  %v327_v36 = vld [vmem:[#allocation2 + $0x28] sm:$0x80] }
 0x19f   :  { %v1650_v43 = vrot.slane %v1648_v31, 7  ;;  %326 = vst [vmem:[#allocation2 + $0x8d0] sm:$0x1] %v325_v50  ;;  %v330_v24 = vld [vmem:[#allocation2 + $0x70] sm:$0x80] }
 0x1a0   :  { %v1927_v34 = vld [vmem:[%s19327_s0 + $0x19] sm:$0x7f] }
 0x1a1   :  { %4126 = vmatmul.mubr.bf16.gmra.mrb[48].mxu0 %v13356_v29  ;;  %v1221_v29 = vld [vmem:[%s19327_s0 + $0x1c9] sm:$0x7f]  ;;  %v1653_v3 = vor.u32 %v1651_v62, %v1650_v43  ;;  %v333_v50 = vld [vmem:[#allocation2 + $0xb8] sm:$0x80] }
 0x1a2   :  { %4133 = vmatprep.mubr.bf16.mxu0 %v13379_v32  ;;  %v1253_v1 = vpack.c.bf16 %v1221_v29, %v1220_v52  ;;  %v322_v32 = vsel %vm12268_vm2, 0, %v321_v37  ;;  %v228_v62 = vld [vmem:[#allocation2 + $0x8c8] sm:$0x80] }
 0x1a3   :  { %v13879_v38 = vsel %vm12319_vm5, %v1653_v3, %v1787_v14  ;;  %323 = vst [vmem:[#allocation2 + $0x888] sm:$0x1] %v322_v32  ;;  %v1342_v52 = vld [vmem:[#allocation2 + $0x880] sm:$0xff]  ;;  %v229_v29 = vsel %vm12954_vm8, 0, %v228_v62  ;;  %v12065_v3 = vld [vmem:[%s19326_s1 + $0x178] sm:$0xff]  }
 0x1a4   :  { %1789 = vst [vmem:[#allocation2 + $0x840] sm:$0xff] %v13879_v38  ;;  %v13887_v26 = vsel %vm12992_vm10, %v1253_v1, %v1339_v27  ;;  %v13915_v43 = vsel %vm12992_vm10, %v1254_v25, %v1342_v52  ;;  %230 = vst [vmem:[#allocation2 + $0x8c8] sm:$0x80] %v229_v29  ;;  %v1224_v14 = vld [vmem:[%s19327_s0 + $0x1e1] sm:$0xff]  ;;  %4317 = vmatpush1.bf16.msra.mxu0 %v12065_v3  ;;  %v1929_v62 = vld [vmem:[%s19327_s0 + $0x29] sm:$0x7f] }
 0x1a5   :  { %1341 = vst [vmem:[#allocation2 + $0x838] sm:$0xff] %v13887_v26  ;;  %1344 = vst [vmem:[#allocation2 + $0x880] sm:$0xff] %v13915_v43  ;;  %4575 = vmatprep.subr.bf16.mxu0 %v13477_v54  ;;  %v336_v29 = vld [vmem:[#allocation2 + $0x100] sm:$0x80] }
 0x1a6   :  { %v1793_v58 = vld [vmem:[#allocation2 + $0x8d0] sm:$0xff] }
 0x1a9   :  { %4134 = vmatmul.mubr.bf16.gmra.mrb[52].mxu0 %v13387_v57  ;;  %v1657_v57 = vrot.slane %v1655_v35, 7  ;;  %v1924_v35 = vld [vmem:[%s19327_s0 + $0x1] sm:$0xff] }
 0x1aa   :  { %4141 = vmatprep.mubr.bf16.mxu0 %v13410_v21  ;;  %v1790_v13 = vld [vmem:[#allocation2 + $0x888] sm:$0xff]  ;;  %v1410_v21 = vld [vmem:[%s19327_s0 + $0x1f0] sm:$0xff] }
 0x1ab   :  { %v1660_v4 = vor.u32 %v1658_v39, %v1657_v57  ;;  %v1443_v31 = vpack.c.bf16 %v1411_v2, %v1410_v21  ;;  %v1345_v16 = vld [vmem:[#allocation2 + $0x8c8] sm:$0xff]  ;;  %v2983_v57 = vld [vmem:[#allocation2 + $0x490] sm:$0xff]  ;;  %v334_v2 = vsel %vm12954_vm8, 0, %v333_v50 }
 0x1ac   :  { %v1925_v39 = vld [vmem:[%s19327_s0 + $0x9] sm:$0x7f]  ;;  %335 = vst [vmem:[#allocation2 + $0xb8] sm:$0x80] %v334_v2 }
 0x1ad   :  { %v13907_v33 = vsel %vm12319_vm5, %v1660_v4, %v1790_v13  ;;  %v1662_v1 = vshrl.u32 %v1443_v31, 16  ;;  %v1665_v37 = vshll.u32 %v1443_v31, 16  ;;  %v1988_v42 = vpack.c.bf16 %v1925_v39, %v1924_v35  ;;  %v351_v2 = vld [vmem:[#allocation2 + $0x268] sm:$0x80] }
 0x1ae   :  { %1792 = vst [vmem:[#allocation2 + $0x888] sm:$0xff] %v13907_v33  ;;  %v331_v4 = vsel %vm12954_vm8, 0, %v330_v24 }
 0x1af   :  { %v1664_v32 = vrot.slane %v1662_v1, 7  ;;  %332 = vst [vmem:[#allocation2 + $0x70] sm:$0x80] %v331_v4  ;;  %v337_v1 = vsel %vm12954_vm8, 0, %v336_v29 }
 0x1b0   :  { %338 = vst [vmem:[#allocation2 + $0x100] sm:$0x80] %v337_v1 }
 0x1b1   :  { %4142 = vmatmul.mubr.bf16.gmra.mrb[56].mxu0 %v13418_v55  ;;  %v1225_v55 = vld [vmem:[%s19327_s0 + $0x1e9] sm:$0x7f]  ;;  %v1667_v53 = vor.u32 %v1665_v37, %v1664_v32 }
 0x1b2   :  { %4149 = vmatprep.mubr.bf16.mxu0 %v13437_v30  ;;  %v1255_v61 = vpack.c.bf16 %v1225_v55, %v1224_v14  ;;  %v328_v30 = vsel %vm12954_vm8, 0, %v327_v36  ;;  %v339_v55 = vld [vmem:[#allocation2 + $0x148] sm:$0x80] }
 0x1b3   :  { %v13933_v27 = vsel %vm12319_vm5, %v1667_v53, %v1793_v58  ;;  %329 = vst [vmem:[#allocation2 + $0x28] sm:$0x80] %v328_v30  ;;  %v2026_v3 = vld [vmem:[#allocation2 + $0xb8] sm:$0xff]  ;;  %v340_v53 = vsel %vm12954_vm8, 0, %v339_v55  ;;  %v342_v58 = vld [vmem:[#allocation2 + $0x190] sm:$0x80] }
 0x1b4   :  { %1795 = vst [vmem:[#allocation2 + $0x8d0] sm:$0xff] %v13933_v27  ;;  %v13939_v54 = vsel %vm12992_vm10, %v1255_v61, %v1345_v16  ;;  %341 = vst [vmem:[#allocation2 + $0x148] sm:$0x80] %v340_v53  ;;  %v343_v16 = vsel %vm12954_vm8, 0, %v342_v58  ;;  %v357_v55 = vld [vmem:[#allocation2 + $0x2f8] sm:$0x80] }
 0x1b5   :  { %1347 = vst [vmem:[#allocation2 + $0x8c8] sm:$0xff] %v13939_v54  ;;  %344 = vst [vmem:[#allocation2 + $0x190] sm:$0x80] %v343_v16  ;;  %v358_v53 = vsel %vm12954_vm8, 0, %v357_v55 }
 0x1b6   :  { %v2023_v21 = vld [vmem:[#allocation2 + $0x70] sm:$0xff]  ;;  %359 = vst [vmem:[#allocation2 + $0x2f8] sm:$0x80] %v358_v53  ;;  %v12066_v53 = vld [vmem:[%s19326_s1 + $0x180] sm:$0xff]  }
 0x1b7   :  { %v2029_v32 = vld [vmem:[#allocation2 + $0x100] sm:$0xff] }
 0x1b9   :  { %4150 = vmatmul.mubr.bf16.gmra.mrb[60].mxu0 %v13445_v60 }
 0x1ba   :  { %4157 = vmatprep.mubr.bf16.mxu0 %v13462_v48  ;;  %v2020_v60 = vld [vmem:[#allocation2 + $0x28] sm:$0xff]  ;;  %v1926_v48 = vld [vmem:[%s19327_s0 + $0x11] sm:$0xff] }
 0x1bb   :  { %v13953_v25 = vsel %vm12992_vm10, %v1988_v42, %v2020_v60  ;;  %v1989_v13 = vpack.c.bf16 %v1927_v34, %v1926_v48  ;;  %v2032_v30 = vld [vmem:[#allocation2 + $0x148] sm:$0xff]  ;;  %v345_v42 = vld [vmem:[#allocation2 + $0x1d8] sm:$0x80]  ;;  %v348_v48 = vld [vmem:[#allocation2 + $0x220] sm:$0x80] }
 0x1bc   :  { %2022 = vst [vmem:[#allocation2 + $0x28] sm:$0xff] %v13953_v25  ;;  %v2035_v24 = vld [vmem:[#allocation2 + $0x190] sm:$0xff] }
 0x1bd   :  { %v13967_v31 = vsel %vm12992_vm10, %v1989_v13, %v2023_v21  ;;  %v349_v13 = vsel %vm12954_vm8, 0, %v348_v48  ;;  %v2050_v58 = vld [vmem:[#allocation2 + $0x2f8] sm:$0xff] }
 0x1be   :  { %2025 = vst [vmem:[#allocation2 + $0x70] sm:$0xff] %v13967_v31  ;;  %350 = vst [vmem:[#allocation2 + $0x220] sm:$0x80] %v349_v13  ;;  %v369_v13 = vld [vmem:[#allocation2 + $0x418] sm:$0x80] }
 0x1c1   :  { %4158 = vmatmul.mubr.bf16.gmra.mrb[64].mxu0 %v2983_v57  ;;  %v346_v57 = vsel %vm12954_vm8, 0, %v345_v42 }
 0x1c2   :  { %4165 = vmatprep.mubr.bf16.mxu0 %v13494_v6  ;;  %v1928_v6 = vld [vmem:[%s19327_s0 + $0x21] sm:$0xff]  ;;  %347 = vst [vmem:[#allocation2 + $0x1d8] sm:$0x80] %v346_v57 }
 0x1c3   :  { %v1990_v52 = vpack.c.bf16 %v1929_v62, %v1928_v6  ;;  %v352_v62 = vsel %vm12954_vm8, 0, %v351_v2 }
 0x1c4   :  { %353 = vst [vmem:[#allocation2 + $0x268] sm:$0x80] %v352_v62 }
 0x1c5   :  { %v13982_v37 = vsel %vm12992_vm10, %v1990_v52, %v2026_v3  ;;  %v2041_v6 = vld [vmem:[#allocation2 + $0x220] sm:$0xff]  ;;  %v354_v3 = vld [vmem:[#allocation2 + $0x2b0] sm:$0x80] }
 0x1c6   :  { %2028 = vst [vmem:[#allocation2 + $0xb8] sm:$0xff] %v13982_v37 }
 0x1c9   :  { %4166 = vmatmul.mubr.bf16.gmra.mrb[68].mxu0 %v13502_v46  ;;  %v1930_v46 = vld [vmem:[%s19327_s0 + $0x31] sm:$0xff] }
 0x1ca   :  { %4173 = vmatprep.mubr.bf16.mxu0 %v13530_v8  ;;  %v1931_v8 = vld [vmem:[%s19327_s0 + $0x39] sm:$0x7f] }
 0x1cb   :  { %v1991_v14 = vpack.c.bf16 %v1931_v8, %v1930_v46  ;;  %v2038_v34 = vld [vmem:[#allocation2 + $0x1d8] sm:$0xff]  ;;  %v2044_v1 = vld [vmem:[#allocation2 + $0x268] sm:$0xff]  ;;  %v355_v46 = vsel %vm12954_vm8, 0, %v354_v3 }
 0x1cc   :  { %356 = vst [vmem:[#allocation2 + $0x2b0] sm:$0x80] %v355_v46  ;;  %v375_v3 = vld [vmem:[#allocation2 + $0x4a8] sm:$0x80] }
 0x1cd   :  { %v13997_v61 = vsel %vm12992_vm10, %v1991_v14, %v2029_v32  ;;  %v376_v46 = vsel %vm12954_vm8, 0, %v375_v3 }
 0x1ce   :  { %2031 = vst [vmem:[#allocation2 + $0x100] sm:$0xff] %v13997_v61  ;;  %377 = vst [vmem:[#allocation2 + $0x4a8] sm:$0x80] %v376_v46 }
 0x1d1   :  { %4174 = vmatmul.mubr.bf16.gmra.mrb[72].mxu0 %v13538_v9  ;;  %v1932_v9 = vld [vmem:[%s19327_s0 + $0x41] sm:$0xff] }
 0x1d2   :  { %4181 = vmatprep.mubr.bf16.mxu0 %v13566_v11  ;;  %v1933_v11 = vld [vmem:[%s19327_s0 + $0x49] sm:$0x7f] }
 0x1d3   :  { %v1992_v36 = vpack.c.bf16 %v1933_v11, %v1932_v9  ;;  %v2047_v32 = vld [vmem:[#allocation2 + $0x2b0] sm:$0xff] }
 0x1d5   :  { %v14012_v35 = vsel %vm12992_vm10, %v1992_v36, %v2032_v30  ;;  %v360_v36 = vld [vmem:[#allocation2 + $0x340] sm:$0x80] }
 0x1d6   :  { %2034 = vst [vmem:[#allocation2 + $0x148] sm:$0xff] %v14012_v35  ;;  %v361_v30 = vsel %vm12954_vm8, 0, %v360_v36  ;;  %v1959_v36 = vld [vmem:[%s19327_s0 + $0x119] sm:$0x7f] }
 0x1d7   :  { %362 = vst [vmem:[#allocation2 + $0x340] sm:$0x80] %v361_v30  ;;  %v1799_v30 = vld [vmem:[%s19327_s0 + $0x18] sm:$0xff] }
 0x1d9   :  { %4182 = vmatmul.mubr.bf16.gmra.mrb[76].mxu0 %v13574_v17  ;;  %v1934_v17 = vld [vmem:[%s19327_s0 + $0x51] sm:$0xff] }
 0x1da   :  { %4189 = vmatprep.mubr.bf16.mxu0 %v13602_v0  ;;  %v1935_v0 = vld [vmem:[%s19327_s0 + $0x59] sm:$0x7f] }
 0x1db   :  { %v1993_v39 = vpack.c.bf16 %v1935_v0, %v1934_v17  ;;  %v363_v0 = vld [vmem:[#allocation2 + $0x388] sm:$0x80] }
 0x1dc   :  { %v364_v42 = vsel %vm12954_vm8, 0, %v363_v0 }
 0x1dd   :  { %v14027_v60 = vsel %vm12992_vm10, %v1993_v39, %v2035_v24  ;;  %365 = vst [vmem:[#allocation2 + $0x388] sm:$0x80] %v364_v42 }
 0x1de   :  { %2037 = vst [vmem:[#allocation2 + $0x190] sm:$0xff] %v14027_v60  ;;  %v2053_v39 = vld [vmem:[#allocation2 + $0x340] sm:$0xff] }
 0x1e1   :  { %4190 = vmatmul.mubr.bf16.gmra.mrb[80].mxu0 %v13610_v49  ;;  %v1936_v49 = vld [vmem:[%s19327_s0 + $0x61] sm:$0xff] }
 0x1e2   :  { %4197 = vmatprep.mubr.bf16.mxu0 %v13638_v19  ;;  %v1937_v19 = vld [vmem:[%s19327_s0 + $0x69] sm:$0x7f] }
 0x1e3   :  { %v1994_v4 = vpack.c.bf16 %v1937_v19, %v1936_v49  ;;  %v366_v49 = vld [vmem:[#allocation2 + $0x3d0] sm:$0x80] }
 0x1e4   :  { %v2056_v19 = vld [vmem:[#allocation2 + $0x388] sm:$0xff] }
 0x1e5   :  { %v14042_v50 = vsel %vm12992_vm10, %v1994_v4, %v2038_v34  ;;  %v367_v4 = vsel %vm12954_vm8, 0, %v366_v49  ;;  %v1961_v49 = vld [vmem:[%s19327_s0 + $0x129] sm:$0x7f] }
 0x1e6   :  { %2040 = vst [vmem:[#allocation2 + $0x1d8] sm:$0xff] %v14042_v50  ;;  %368 = vst [vmem:[#allocation2 + $0x3d0] sm:$0x80] %v367_v4  ;;  %v1801_v4 = vld [vmem:[%s19327_s0 + $0x28] sm:$0xff] }
 0x1e9   :  { %4198 = vmatmul.mubr.bf16.gmra.mrb[84].mxu0 %v13646_v12  ;;  %v1938_v12 = vld [vmem:[%s19327_s0 + $0x71] sm:$0xff] }
 0x1ea   :  { %4205 = vmatprep.mubr.bf16.mxu0 %v13667_v56  ;;  %v1939_v56 = vld [vmem:[%s19327_s0 + $0x79] sm:$0x7f] }
 0x1eb   :  { %v1995_v21 = vpack.c.bf16 %v1939_v56, %v1938_v12  ;;  %v370_v56 = vsel %vm12954_vm8, 0, %v369_v13  ;;  %v384_v13 = vld [vmem:[#allocation2 + $0x580] sm:$0x80] }
 0x1ec   :  { %371 = vst [vmem:[#allocation2 + $0x418] sm:$0x80] %v370_v56  ;;  %v385_v56 = vsel %vm12954_vm8, 0, %v384_v13  ;;  %v396_v13 = vld [vmem:[#allocation2 + $0x6a0] sm:$0x80] }
 0x1ed   :  { %v14057_v52 = vsel %vm12992_vm10, %v1995_v21, %v2041_v6  ;;  %v2059_v12 = vld [vmem:[#allocation2 + $0x3d0] sm:$0xff]  ;;  %v372_v6 = vld [vmem:[#allocation2 + $0x460] sm:$0x80]  ;;  %386 = vst [vmem:[#allocation2 + $0x580] sm:$0x80] %v385_v56  ;;  %v12077_v56 = vld [vmem:[%s19326_s1 + $0x1d8] sm:$0xff]  }
 0x1ee   :  { %2043 = vst [vmem:[#allocation2 + $0x220] sm:$0xff] %v14057_v52 }
 0x1f1   :  { %4206 = vmatmul.mubr.bf16.gmra.mrb[88].mxu0 %v13675_v5  ;;  %v1940_v5 = vld [vmem:[%s19327_s0 + $0x81] sm:$0xff] }
 0x1f2   :  { %4213 = vmatprep.mubr.bf16.mxu0 %v13699_v20  ;;  %v1941_v20 = vld [vmem:[%s19327_s0 + $0x89] sm:$0x7f] }
 0x1f3   :  { %v1996_v29 = vpack.c.bf16 %v1941_v20, %v1940_v5  ;;  %v2062_v62 = vld [vmem:[#allocation2 + $0x418] sm:$0xff]  ;;  %v373_v5 = vsel %vm12954_vm8, 0, %v372_v6  ;;  %v1802_v6 = vld [vmem:[%s19327_s0 + $0x30] sm:$0xff] }
 0x1f4   :  { %374 = vst [vmem:[#allocation2 + $0x460] sm:$0x80] %v373_v5  ;;  %v12071_v5 = vld [vmem:[%s19326_s1 + $0x1a8] sm:$0xff]   ;;  %v2077_v3 = vld [vmem:[#allocation2 + $0x580] sm:$0xff] }
 0x1f5   :  { %v14072_v8 = vsel %vm12992_vm10, %v1996_v29, %v2044_v1 }
 0x1f6   :  { %2046 = vst [vmem:[#allocation2 + $0x268] sm:$0xff] %v14072_v8 }
 0x1f9   :  { %4214 = vmatmul.mubr.bf16.gmra.mrb[92].mxu0 %v13707_v10  ;;  %v1942_v10 = vld [vmem:[%s19327_s0 + $0x91] sm:$0xff] }
 0x1fa   :  { %4221 = vmatprep.mubr.bf16.mxu0 %v13727_v40  ;;  %v1943_v40 = vld [vmem:[%s19327_s0 + $0x99] sm:$0x7f] }
 0x1fb   :  { %v1997_v14 = vpack.c.bf16 %v1943_v40, %v1942_v10  ;;  %v2065_v1 = vld [vmem:[#allocation2 + $0x460] sm:$0xff] }
 0x1fc   :  { %v1796_v40 = vld [vmem:[%s19327_s0] sm:$0xff] }
 0x1fd   :  { %v14087_v9 = vsel %vm12992_vm10, %v1997_v14, %v2047_v32  ;;  %v1797_v14 = vld [vmem:[%s19327_s0 + $0x8] sm:$0xff]  ;;  %v378_v32 = vld [vmem:[#allocation2 + $0x4f0] sm:$0x80] }
 0x1fe   :  { %2049 = vst [vmem:[#allocation2 + $0x2b0] sm:$0xff] %v14087_v9 }
 0x201   :  { %4222 = vmatmul.mubr.bf16.gmra.mrb[96].mxu0 %v13735_v59  ;;  %v1944_v59 = vld [vmem:[%s19327_s0 + $0xa1] sm:$0xff] }
 0x202   :  { %4229 = vmatprep.mubr.bf16.mxu0 %v13759_v18  ;;  %v1945_v18 = vld [vmem:[%s19327_s0 + $0xa9] sm:$0x7f] }
 0x203   :  { %v1998_v11 = vpack.c.bf16 %v1945_v18, %v1944_v59  ;;  %v2068_v59 = vld [vmem:[#allocation2 + $0x4a8] sm:$0xff]  ;;  %v379_v18 = vsel %vm12954_vm8, 0, %v378_v32 }
 0x204   :  { %380 = vst [vmem:[#allocation2 + $0x4f0] sm:$0x80] %v379_v18 }
 0x205   :  { %v14102_v16 = vsel %vm12992_vm10, %v1998_v11, %v2050_v58  ;;  %v1958_v11 = vld [vmem:[%s19327_s0 + $0x111] sm:$0xff] }
 0x206   :  { %2052 = vst [vmem:[#allocation2 + $0x2f8] sm:$0xff] %v14102_v16  ;;  %v1798_v58 = vld [vmem:[%s19327_s0 + $0x10] sm:$0xff] }
 0x207   :  { %v1861_v0 = vpack.c.bf16 %v1799_v30, %v1798_v58  ;;  %v1967_v58 = vld [vmem:[%s19327_s0 + $0x159] sm:$0x7f]  ;;  %v1806_v30 = vld [vmem:[%s19327_s0 + $0x50] sm:$0xff] }
 0x209   :  { %4230 = vmatmul.mubr.bf16.gmra.mrb[100].mxu0 %v13767_v45  ;;  %v1946_v45 = vld [vmem:[%s19327_s0 + $0xb1] sm:$0xff] }
 0x20a   :  { %4237 = vmatprep.mubr.bf16.mxu0 %v13787_v22  ;;  %v1947_v22 = vld [vmem:[%s19327_s0 + $0xb9] sm:$0x7f] }
 0x20b   :  { %v1999_v17 = vpack.c.bf16 %v1947_v22, %v1946_v45  ;;  %v12067_v45 = vld [vmem:[%s19326_s1 + $0x188] sm:$0xff]   ;;  %v2071_v42 = vld [vmem:[#allocation2 + $0x4f0] sm:$0xff] }
 0x20c   :  { %v14220_v22 = vld [vmem:[#allocation2 + $0x8] sm:$0xff] }
 0x20d   :  { %v14117_v24 = vsel %vm12992_vm10, %v1999_v17, %v2053_v39  ;;  %v2005_v17 = vpack.c.bf16 %v1959_v36, %v1958_v11  ;;  %v381_v39 = vld [vmem:[#allocation2 + $0x538] sm:$0x80]  ;;  %v1966_v36 = vld [vmem:[%s19327_s0 + $0x151] sm:$0xff] }
 0x20e   :  { %2055 = vst [vmem:[#allocation2 + $0x340] sm:$0xff] %v14117_v24 }
 0x211   :  { %4238 = vmatmul.mubr.bf16.gmra.mrb[104].mxu0 %v13795_v41  ;;  %v1948_v41 = vld [vmem:[%s19327_s0 + $0xc1] sm:$0xff] }
 0x212   :  { %4245 = vmatprep.mubr.bf16.mxu0 %v13819_v51  ;;  %v1949_v51 = vld [vmem:[%s19327_s0 + $0xc9] sm:$0x7f] }
 0x213   :  { %v2000_v57 = vpack.c.bf16 %v1949_v51, %v1948_v41  ;;  %v382_v41 = vsel %vm12954_vm8, 0, %v381_v39  ;;  %v14231_v51 = vsel %vm12992_vm10, %v2005_v17, %v2071_v42  ;;  %v12075_v17 = vld [vmem:[%s19326_s1 + $0x1c8] sm:$0xff]  }
 0x214   :  { %383 = vst [vmem:[#allocation2 + $0x538] sm:$0x80] %v382_v41  ;;  %2073 = vst [vmem:[#allocation2 + $0x4f0] sm:$0xff] %v14231_v51 }
 0x215   :  { %v14132_v48 = vsel %vm12992_vm10, %v2000_v57, %v2056_v19  ;;  %v1960_v57 = vld [vmem:[%s19327_s0 + $0x121] sm:$0xff] }
 0x216   :  { %2058 = vst [vmem:[#allocation2 + $0x388] sm:$0xff] %v14132_v48  ;;  %v1800_v19 = vld [vmem:[%s19327_s0 + $0x20] sm:$0xff] }
 0x219   :  { %4246 = vmatmul.mubr.bf16.gmra.mrb[108].mxu0 %v13827_v15  ;;  %v1950_v15 = vld [vmem:[%s19327_s0 + $0xd1] sm:$0xff] }
 0x21a   :  { %4253 = vmatprep.mubr.bf16.mxu0 %v13847_v47  ;;  %v1951_v47 = vld [vmem:[%s19327_s0 + $0xd9] sm:$0x7f] }
 0x21b   :  { %v2001_v34 = vpack.c.bf16 %v1951_v47, %v1950_v15  ;;  %v12069_v15 = vld [vmem:[%s19326_s1 + $0x198] sm:$0xff]   ;;  %v2006_v47 = vpack.c.bf16 %v1961_v49, %v1960_v57  ;;  %v1968_v49 = vld [vmem:[%s19327_s0 + $0x161] sm:$0xff] }
 0x21d   :  { %v14147_v21 = vsel %vm12992_vm10, %v2001_v34, %v2059_v12  ;;  %v1862_v34 = vpack.c.bf16 %v1801_v4, %v1800_v19  ;;  %v2074_v12 = vld [vmem:[#allocation2 + $0x538] sm:$0xff]  ;;  %v1969_v19 = vld [vmem:[%s19327_s0 + $0x169] sm:$0x7f]  ;;  %v1808_v4 = vld [vmem:[%s19327_s0 + $0x60] sm:$0xff] }
 0x21e   :  { %2061 = vst [vmem:[#allocation2 + $0x3d0] sm:$0xff] %v14147_v21 }
 0x221   :  { %4254 = vmatmul.mubr.bf16.gmra.mrb[112].mxu0 %v13855_v23  ;;  %v1952_v23 = vld [vmem:[%s19327_s0 + $0xe1] sm:$0xff] }
 0x222   :  { %4261 = vmatprep.mubr.bf16.mxu0 %v13879_v38  ;;  %v1953_v38 = vld [vmem:[%s19327_s0 + $0xe9] sm:$0x7f] }
 0x223   :  { %v2002_v2 = vpack.c.bf16 %v1953_v38, %v1952_v23  ;;  %v14259_v23 = vsel %vm12992_vm10, %v2006_v47, %v2074_v12  ;;  %v1962_v38 = vld [vmem:[%s19327_s0 + $0x131] sm:$0xff]  ;;  %v2010_v47 = vpack.c.bf16 %v1969_v19, %v1968_v49  ;;  %v397_v12 = vsel %vm12954_vm8, 0, %v396_v13  ;;  %v408_v19 = vld [vmem:[#allocation2 + $0x7c0] sm:$0x80]  ;;  %v1979_v13 = vld [vmem:[%s19327_s0 + $0x1b9] sm:$0x7f] }
 0x224   :  { %2076 = vst [vmem:[#allocation2 + $0x538] sm:$0xff] %v14259_v23  ;;  %398 = vst [vmem:[#allocation2 + $0x6a0] sm:$0x80] %v397_v12  ;;  %v1819_v12 = vld [vmem:[%s19327_s0 + $0xb8] sm:$0xff] }
 0x225   :  { %v14162_v20 = vsel %vm12992_vm10, %v2002_v2, %v2062_v62  ;;  %v1963_v2 = vld [vmem:[%s19327_s0 + $0x139] sm:$0x7f] }
 0x226   :  { %2064 = vst [vmem:[#allocation2 + $0x418] sm:$0xff] %v14162_v20  ;;  %v1803_v62 = vld [vmem:[%s19327_s0 + $0x38] sm:$0xff] }
 0x229   :  { %4262 = vmatmul.mubr.bf16.gmra.mrb[116].mxu0 %v13887_v26  ;;  %v1954_v26 = vld [vmem:[%s19327_s0 + $0xf1] sm:$0xff] }
 0x22a   :  { %4269 = vmatprep.mubr.bf16.mxu0 %v13907_v33  ;;  %v1955_v33 = vld [vmem:[%s19327_s0 + $0xf9] sm:$0x7f] }
 0x22b   :  { %v2003_v29 = vpack.c.bf16 %v1955_v33, %v1954_v26  ;;  %v2007_v26 = vpack.c.bf16 %v1963_v2, %v1962_v38  ;;  %v1863_v33 = vpack.c.bf16 %v1803_v62, %v1802_v6  ;;  %v1970_v38 = vld [vmem:[%s19327_s0 + $0x171] sm:$0xff]  ;;  %v1971_v2 = vld [vmem:[%s19327_s0 + $0x179] sm:$0x7f] }
 0x22c   :  { %v1810_v6 = vld [vmem:[%s19327_s0 + $0x70] sm:$0xff]  ;;  %v1811_v62 = vld [vmem:[%s19327_s0 + $0x78] sm:$0xff] }
 0x22d   :  { %v14177_v10 = vsel %vm12992_vm10, %v2003_v29, %v2065_v1  ;;  %v387_v29 = vld [vmem:[#allocation2 + $0x5c8] sm:$0x80]  ;;  %v14287_v46 = vsel %vm12992_vm10, %v2007_v26, %v2077_v3  ;;  %v1867_v26 = vpack.c.bf16 %v1811_v62, %v1810_v6  ;;  %v1972_v3 = vld [vmem:[%s19327_s0 + $0x181] sm:$0xff] }
 0x22e   :  { %2067 = vst [vmem:[#allocation2 + $0x460] sm:$0xff] %v14177_v10  ;;  %v388_v1 = vsel %vm12954_vm8, 0, %v387_v29  ;;  %2079 = vst [vmem:[#allocation2 + $0x580] sm:$0xff] %v14287_v46  ;;  %v2089_v29 = vld [vmem:[#allocation2 + $0x6a0] sm:$0xff] }
 0x22f   :  { %389 = vst [vmem:[#allocation2 + $0x5c8] sm:$0x80] %v388_v1  ;;  %v1973_v1 = vld [vmem:[%s19327_s0 + $0x189] sm:$0x7f] }
 0x231   :  { %4270 = vmatmul.mubr.bf16.gmra.mrb[120].mxu0 %v13915_v43  ;;  %v1956_v43 = vld [vmem:[%s19327_s0 + $0x101] sm:$0xff] }
 0x232   :  { %4277 = vmatprep.mubr.bf16.mxu0 %v13933_v27  ;;  %v1957_v27 = vld [vmem:[%s19327_s0 + $0x109] sm:$0x7f] }
 0x233   :  { %v2004_v55 = vpack.c.bf16 %v1957_v27, %v1956_v43  ;;  %v1964_v43 = vld [vmem:[%s19327_s0 + $0x141] sm:$0xff]  ;;  %v1965_v27 = vld [vmem:[%s19327_s0 + $0x149] sm:$0x7f] }
 0x239   :  { %4278 = vmatmul.mubr.bf16.gmra.mrb[124].mxu0 %v13939_v54  ;;  %v1860_v54 = vpack.c.bf16 %v1797_v14, %v1796_v40  ;;  %v1804_v40 = vld [vmem:[%s19327_s0 + $0x40] sm:$0xff]  ;;  %v1805_v14 = vld [vmem:[%s19327_s0 + $0x48] sm:$0xff] }
 0x23a   :  { %4318 = vmatprep.mubr.bf16.mxu0 %v13953_v25  ;;  %v14201_v25 = vsel %vm12992_vm10, %v2004_v55, %v2068_v59  ;;  %v12073_v55 = vld [vmem:[%s19326_s1 + $0x1b8] sm:$0xff]   ;;  %v1864_v32 = vpack.c.bf16 %v1805_v14, %v1804_v40  ;;  %v2080_v59 = vld [vmem:[#allocation2 + $0x5c8] sm:$0xff]  ;;  %v2012_v40 = vpack.c.bf16 %v1973_v1, %v1972_v3  ;;  %v414_v1 = vld [vmem:[#allocation2 + $0x850] sm:$0x80] }
 0x23b   :  { %2070 = vst [vmem:[#allocation2 + $0x4a8] sm:$0xff] %v14201_v25 }
 0x241   :  { %4319 = vmatmul.mubr.bf16.vlgmr.msra.gmra.mrb[0].mxu0 %v1860_v54  ;;  %v2008_v54 = vpack.c.bf16 %v1965_v27, %v1964_v43  ;;  %v1812_v43 = vld [vmem:[%s19327_s0 + $0x80] sm:$0xff]  ;;  %v1813_v27 = vld [vmem:[%s19327_s0 + $0x88] sm:$0xff] }
 0x242   :  { %4576 = vmatpush1.bf16.msra.mxu0 %v12066_v53  ;;  %4326 = vmatprep.mubr.bf16.mxu0 %v13967_v31  ;;  %v12068_v31 = vld [vmem:[%s19326_s1 + $0x190] sm:$0xff]   ;;  %v1868_v14 = vpack.c.bf16 %v1813_v27, %v1812_v43  ;;  %v415_v27 = vsel %vm12954_vm8, 0, %v414_v1 }
 0x243   :  { %4577 = vmatprep.subr.bf16.mxu0 %v14220_v22  ;;  %v390_v53 = vld [vmem:[#allocation2 + $0x610] sm:$0x80]  ;;  %v14315_v11 = vsel %vm12992_vm10, %v2008_v54, %v2080_v59  ;;  %v1975_v59 = vld [vmem:[%s19327_s0 + $0x199] sm:$0x7f]  ;;  %416 = vst [vmem:[#allocation2 + $0x850] sm:$0x80] %v415_v27 }
 0x244   :  { %v391_v18 = vsel %vm12954_vm8, 0, %v390_v53  ;;  %2082 = vst [vmem:[#allocation2 + $0x5c8] sm:$0xff] %v14315_v11  ;;  %v12089_v27 = vld [vmem:[%s19326_s1 + $0x238] sm:$0xff]  }
 0x245   :  { %392 = vst [vmem:[#allocation2 + $0x610] sm:$0x80] %v391_v18  ;;  %v1814_v18 = vld [vmem:[%s19327_s0 + $0x90] sm:$0xff] }
 0x246   :  { %4578 = vmatpush1.bf16.msra.mxu0 %v12067_v45  ;;  %v1807_v45 = vld [vmem:[%s19327_s0 + $0x58] sm:$0xff] }
 0x247   :  { %4579 = vmatprep.subr.bf16.mxu0 %v14220_v22  ;;  %v1865_v39 = vpack.c.bf16 %v1807_v45, %v1806_v30  ;;  %v405_v45 = vld [vmem:[#allocation2 + $0x778] sm:$0x80] }
 0x249   :  { %4327 = vmatmul.mubr.bf16.gmra.mrb[4].mxu0 %v1861_v0  ;;  %v2009_v0 = vpack.c.bf16 %v1967_v58, %v1966_v36  ;;  %v1815_v36 = vld [vmem:[%s19327_s0 + $0x98] sm:$0xff] }
 0x24a   :  { %4334 = vmatprep.mubr.bf16.mxu0 %v13982_v37  ;;  %4580 = vmatpush1.bf16.msra.mxu0 %v12068_v31  ;;  %v12070_v37 = vld [vmem:[%s19326_s1 + $0x1a0] sm:$0xff]   ;;  %v393_v31 = vld [vmem:[#allocation2 + $0x658] sm:$0x80]  ;;  %v1869_v30 = vpack.c.bf16 %v1815_v36, %v1814_v18  ;;  %v2107_v36 = vld [vmem:[#allocation2 + $0x850] sm:$0xff] }
 0x24b   :  { %4581 = vmatprep.subr.bf16.mxu0 %v14220_v22  ;;  %v394_v41 = vsel %vm12954_vm8, 0, %v393_v31  ;;  %v1977_v31 = vld [vmem:[%s19327_s0 + $0x1a9] sm:$0x7f]  ;;  %v417_v18 = vld [vmem:[#allocation2 + $0x898] sm:$0x80] }
 0x24c   :  { %v2083_v42 = vld [vmem:[#allocation2 + $0x610] sm:$0xff]  ;;  %395 = vst [vmem:[#allocation2 + $0x658] sm:$0x80] %v394_v41 }
 0x24d   :  { %v14343_v57 = vsel %vm12992_vm10, %v2009_v0, %v2083_v42  ;;  %v406_v0 = vsel %vm12954_vm8, 0, %v405_v45  ;;  %v1817_v42 = vld [vmem:[%s19327_s0 + $0xa8] sm:$0xff]  ;;  %v12083_v45 = vld [vmem:[%s19326_s1 + $0x210] sm:$0xff]  }
 0x24e   :  { %4582 = vmatpush1.bf16.msra.mxu0 %v12069_v15  ;;  %2085 = vst [vmem:[#allocation2 + $0x610] sm:$0xff] %v14343_v57  ;;  %v1809_v15 = vld [vmem:[%s19327_s0 + $0x68] sm:$0xff]  ;;  %407 = vst [vmem:[#allocation2 + $0x778] sm:$0x80] %v406_v0 }
 0x24f   :  { %4583 = vmatprep.subr.bf16.mxu0 %v14220_v22  ;;  %v1984_v0 = vld [vmem:[%s19327_s0 + $0x1e1] sm:$0xff] }
 0x251   :  { %4335 = vmatmul.mubr.bf16.gmra.mrb[8].mxu0 %v1862_v34  ;;  %v1866_v34 = vpack.c.bf16 %v1809_v15, %v1808_v4  ;;  %v409_v15 = vsel %vm12954_vm8, 0, %v408_v19 }
 0x252   :  { %4342 = vmatprep.mubr.bf16.mxu0 %v13997_v61  ;;  %4584 = vmatpush1.bf16.msra.mxu0 %v12070_v37  ;;  %v12072_v61 = vld [vmem:[%s19326_s1 + $0x1b0] sm:$0xff]   ;;  %410 = vst [vmem:[#allocation2 + $0x7c0] sm:$0x80] %v409_v15  ;;  %v12086_v15 = vld [vmem:[%s19326_s1 + $0x220] sm:$0xff]  }
 0x253   :  { %4585 = vmatprep.subr.bf16.mxu0 %v14220_v22  ;;  %v2086_v37 = vld [vmem:[#allocation2 + $0x658] sm:$0xff] }
 0x255   :  { %v2098_v4 = vld [vmem:[#allocation2 + $0x778] sm:$0xff] }
 0x256   :  { %4586 = vmatpush1.bf16.msra.mxu0 %v12071_v5  ;;  %v2011_v5 = vpack.c.bf16 %v1971_v2, %v1970_v38  ;;  %v411_v2 = vld [vmem:[#allocation2 + $0x808] sm:$0x80] }
 0x257   :  { %4587 = vmatprep.subr.bf16.mxu0 %v14220_v22  ;;  %v412_v62 = vsel %vm12954_vm8, 0, %v411_v2 }
 0x258   :  { %413 = vst [vmem:[#allocation2 + $0x808] sm:$0x80] %v412_v62  ;;  %v526_v62 = vld [vmem:[#allocation2 + $0x40] sm:$0x80] }
 0x259   :  { %4343 = vmatmul.mubr.bf16.gmra.mrb[12].mxu0 %v1863_v33  ;;  %v399_v33 = vld [vmem:[#allocation2 + $0x6e8] sm:$0x80]  ;;  %v2101_v6 = vld [vmem:[#allocation2 + $0x7c0] sm:$0xff] }
 0x25a   :  { %4350 = vmatprep.mubr.bf16.mxu0 %v14012_v35  ;;  %4588 = vmatpush1.bf16.msra.mxu0 %v12072_v61  ;;  %v12074_v35 = vld [vmem:[%s19326_s1 + $0x1c0] sm:$0xff]   ;;  %v400_v61 = vsel %vm12954_vm8, 0, %v399_v33 }
 0x25b   :  { %4589 = vmatprep.subr.bf16.mxu0 %v14220_v22  ;;  %401 = vst [vmem:[#allocation2 + $0x6e8] sm:$0x80] %v400_v61  ;;  %v1820_v33 = vld [vmem:[%s19327_s0 + $0xc0] sm:$0xff] }
 0x25e   :  { %4590 = vmatpush1.bf16.msra.mxu0 %v12073_v55  ;;  %v402_v55 = vld [vmem:[#allocation2 + $0x730] sm:$0x80] }
 0x25f   :  { %4591 = vmatprep.subr.bf16.mxu0 %v14220_v22  ;;  %v2104_v43 = vld [vmem:[#allocation2 + $0x808] sm:$0xff] }
 0x261   :  { %4351 = vmatmul.mubr.bf16.gmra.mrb[16].mxu0 %v1864_v32  ;;  %v403_v32 = vsel %vm12954_vm8, 0, %v402_v55  ;;  %v12082_v55 = vld [vmem:[%s19326_s1 + $0x208] sm:$0xff]  }
 0x262   :  { %4358 = vmatprep.mubr.bf16.mxu0 %v14027_v60  ;;  %4592 = vmatpush1.bf16.msra.mxu0 %v12074_v35  ;;  %v12076_v60 = vld [vmem:[%s19326_s1 + $0x1d0] sm:$0xff]   ;;  %v2092_v54 = vld [vmem:[#allocation2 + $0x6e8] sm:$0xff]  ;;  %404 = vst [vmem:[#allocation2 + $0x730] sm:$0x80] %v403_v32 }
 0x263   :  { %4593 = vmatprep.subr.bf16.mxu0 %v14220_v22  ;;  %v14408_v53 = vsel %vm12992_vm10, %v2012_v40, %v2092_v54  ;;  %v1974_v35 = vld [vmem:[%s19327_s0 + $0x191] sm:$0xff] }
 0x264   :  { %2094 = vst [vmem:[#allocation2 + $0x6e8] sm:$0xff] %v14408_v53  ;;  %v2013_v58 = vpack.c.bf16 %v1975_v59, %v1974_v35  ;;  %v1982_v54 = vld [vmem:[%s19327_s0 + $0x1d1] sm:$0xff]  ;;  %v1983_v35 = vld [vmem:[%s19327_s0 + $0x1d9] sm:$0x7f] }
 0x265   :  { %v1822_v32 = vld [vmem:[%s19327_s0 + $0xd0] sm:$0xff]  ;;  %v2017_v59 = vpack.c.bf16 %v1983_v35, %v1982_v54 }
 0x266   :  { %4594 = vmatpush1.bf16.msra.mxu0 %v12075_v17 }
 0x267   :  { %4595 = vmatprep.subr.bf16.mxu0 %v14220_v22 }
 0x269   :  { %4359 = vmatmul.mubr.bf16.gmra.mrb[20].mxu0 %v1865_v39  ;;  %v2095_v17 = vld [vmem:[#allocation2 + $0x730] sm:$0xff]  ;;  %v1976_v39 = vld [vmem:[%s19327_s0 + $0x1a1] sm:$0xff] }
 0x26a   :  { %4366 = vmatprep.mubr.bf16.mxu0 %v14042_v50  ;;  %4596 = vmatpush1.bf16.msra.mxu0 %v12076_v60  ;;  %v14364_v50 = vsel %vm12992_vm10, %v2010_v47, %v2086_v37  ;;  %v1816_v60 = vld [vmem:[%s19327_s0 + $0xa0] sm:$0xff]  ;;  %v2014_v41 = vpack.c.bf16 %v1977_v31, %v1976_v39  ;;  %v1818_v37 = vld [vmem:[%s19327_s0 + $0xb0] sm:$0xff]  ;;  %v1985_v39 = vld [vmem:[%s19327_s0 + $0x1e9] sm:$0x7f] }
 0x26b   :  { %4597 = vmatprep.subr.bf16.mxu0 %v14220_v22  ;;  %2088 = vst [vmem:[#allocation2 + $0x658] sm:$0xff] %v14364_v50  ;;  %v1870_v49 = vpack.c.bf16 %v1817_v42, %v1816_v60  ;;  %v1871_v38 = vpack.c.bf16 %v1819_v12, %v1818_v37  ;;  %v1824_v31 = vld [vmem:[%s19327_s0 + $0xe0] sm:$0xff]  ;;  %v1825_v60 = vld [vmem:[%s19327_s0 + $0xe8] sm:$0xff]  ;;  %v2018_v42 = vpack.c.bf16 %v1985_v39, %v1984_v0  ;;  %v1826_v37 = vld [vmem:[%s19327_s0 + $0xf0] sm:$0xff] }
 0x26c   :  { %v14452_v47 = vsel %vm12992_vm10, %v2014_v41, %v2098_v4  ;;  %v1874_v41 = vpack.c.bf16 %v1825_v60, %v1824_v31  ;;  %v1827_v12 = vld [vmem:[%s19327_s0 + $0xf8] sm:$0xff]  ;;  %v14625_v31 = vld [vmem:[%s19327_s0 + $0x20] sm:$0xff] }
 0x26d   :  { %2100 = vst [vmem:[#allocation2 + $0x778] sm:$0xff] %v14452_v47  ;;  %v1875_v2 = vpack.c.bf16 %v1827_v12, %v1826_v37 }
 0x26e   :  { %4598 = vmatpush1.bf16.msra.mxu0 %v12077_v56 }
 0x26f   :  { %4599 = vmatprep.subr.bf16.mxu0 %v14220_v22 }
 0x271   :  { %4367 = vmatmul.mubr.bf16.gmra.mrb[24].mxu0 %v1866_v34  ;;  %v1978_v34 = vld [vmem:[%s19327_s0 + $0x1b1] sm:$0xff] }
 0x272   :  { %4374 = vmatprep.mubr.bf16.mxu0 %v14057_v52  ;;  %v14388_v52 = vsel %vm12992_vm10, %v2011_v5, %v2089_v29  ;;  %v2015_v56 = vpack.c.bf16 %v1979_v13, %v1978_v34  ;;  %v1980_v5 = vld [vmem:[%s19327_s0 + $0x1c1] sm:$0xff]  ;;  %v1986_v13 = vld [vmem:[%s19327_s0 + $0x1f1] sm:$0xff] }
 0x273   :  { %2091 = vst [vmem:[#allocation2 + $0x6a0] sm:$0xff] %v14388_v52  ;;  %v1821_v29 = vld [vmem:[%s19327_s0 + $0xc8] sm:$0xff] }
 0x274   :  { %v1872_v3 = vpack.c.bf16 %v1821_v29, %v1820_v33  ;;  %v12087_v34 = vld [vmem:[%s19326_s1 + $0x228] sm:$0xff]   ;;  %v10540_v29 = vld [vmem:[%s19327_s0 + $0x18] sm:$0x7f] }
 0x279   :  { %4375 = vmatmul.mubr.bf16.gmra.mrb[28].mxu0 %v1867_v26  ;;  %v1981_v26 = vld [vmem:[%s19327_s0 + $0x1c9] sm:$0x7f] }
 0x27a   :  { %4382 = vmatprep.mubr.bf16.mxu0 %v14072_v8  ;;  %v12078_v8 = vld [vmem:[%s19326_s1 + $0x1e0] sm:$0xff]   ;;  %v2016_v61 = vpack.c.bf16 %v1981_v26, %v1980_v5  ;;  %v14584_v26 = vld [vmem:[%s19327_s0 + $0x10] sm:$0xff] }
 0x27b   :  { %4600 = vmatpush1.bf16.msra.mxu0 %v12078_v8  ;;  %v1823_v8 = vld [vmem:[%s19327_s0 + $0xd8] sm:$0xff]  ;;  %v2177_v1 = vpack.c.bf16 %v10540_v29, %v14584_v26 }
 0x27c   :  { %4601 = vmatprep.subr.bf16.mxu0 %v14220_v22  ;;  %v14496_v40 = vsel %vm12992_vm10, %v2016_v61, %v2104_v43  ;;  %v527_v61 = vsel %vm12954_vm8, 0, %v526_v62  ;;  %v529_v43 = vld [vmem:[#allocation2 + $0x88] sm:$0x80]  ;;  %v10544_v62 = vld [vmem:[%s19327_s0 + $0x38] sm:$0x7f] }
 0x27d   :  { %2106 = vst [vmem:[#allocation2 + $0x808] sm:$0xff] %v14496_v40  ;;  %528 = vst [vmem:[#allocation2 + $0x40] sm:$0x80] %v527_v61  ;;  %v2208_v54 = vshrl.u32 %v2177_v1, 16  ;;  %v535_v61 = vld [vmem:[#allocation2 + $0x118] sm:$0x80] }
 0x281   :  { %4383 = vmatmul.mubr.bf16.gmra.mrb[32].mxu0 %v1868_v14  ;;  %v12080_v14 = vld [vmem:[%s19326_s1 + $0x1f0] sm:$0xff]  }
 0x282   :  { %4390 = vmatprep.mubr.bf16.mxu0 %v14087_v9  ;;  %v14432_v9 = vsel %vm12992_vm10, %v2013_v58, %v2095_v17  ;;  %v418_v58 = vsel %vm12954_vm8, 0, %v417_v18  ;;  %v12084_v17 = vld [vmem:[%s19326_s1 + $0x218] sm:$0xff]  }
 0x283   :  { %2097 = vst [vmem:[#allocation2 + $0x730] sm:$0xff] %v14432_v9  ;;  %419 = vst [vmem:[#allocation2 + $0x898] sm:$0x80] %v418_v58  ;;  %v10662_v58 = vld [vmem:[%s19327_s0 + $0x29] sm:$0x7f] }
 0x284   :  { %v2747_v0 = vld [vmem:[#allocation2 + $0x40] sm:$0xff] }
 0x289   :  { %4391 = vmatmul.mubr.bf16.gmra.mrb[36].mxu0 %v1869_v30  ;;  %v14526_v30 = vsel %vm12992_vm10, %v2017_v59, %v2107_v36  ;;  %v10660_v59 = vld [vmem:[%s19327_s0 + $0x19] sm:$0x7f]  ;;  %v10661_v36 = vld [vmem:[%s19327_s0 + $0x21] sm:$0xff] }
 0x28a   :  { %4398 = vmatprep.mubr.bf16.mxu0 %v14102_v16  ;;  %v12079_v16 = vld [vmem:[%s19326_s1 + $0x1e8] sm:$0xff]   ;;  %2109 = vst [vmem:[#allocation2 + $0x850] sm:$0xff] %v14526_v30  ;;  %v2110_v19 = vld [vmem:[#allocation2 + $0x898] sm:$0xff]  ;;  %v2718_v39 = vpack.c.bf16 %v10662_v58, %v10661_v36 }
 0x28b   :  { %4602 = vmatpush1.bf16.msra.mxu0 %v12079_v16  ;;  %v12085_v16 = vld [vmem:[%s19326_s1 + $0x1f8] sm:$0xff]  }
 0x28c   :  { %4603 = vmatprep.subr.bf16.mxu0 %v14220_v22 }
 0x28f   :  { %4604 = vmatpush1.bf16.msra.mxu0 %v12080_v14  ;;  %v1828_v14 = vld [vmem:[%s19327_s0 + $0x100] sm:$0xff] }
 0x290   :  { %4605 = vmatprep.subr.bf16.mxu0 %v14220_v22 }
 0x291   :  { %4399 = vmatmul.mubr.bf16.gmra.mrb[40].mxu0 %v1870_v49  ;;  %v420_v49 = vld [vmem:[#allocation2 + $0x8e0] sm:$0x80] }
 0x292   :  { %4406 = vmatprep.mubr.bf16.mxu0 %v14117_v24  ;;  %v14476_v24 = vsel %vm12992_vm10, %v2015_v56, %v2101_v6  ;;  %v421_v4 = vsel %vm12954_vm8, 0, %v420_v49  ;;  %v1987_v56 = vld [vmem:[%s19327_s0 + $0x1f9] sm:$0x7f]  ;;  %v10542_v49 = vld [vmem:[%s19327_s0 + $0x28] sm:$0x7f] }
 0x293   :  { %2103 = vst [vmem:[#allocation2 + $0x7c0] sm:$0xff] %v14476_v24  ;;  %422 = vst [vmem:[#allocation2 + $0x8e0] sm:$0x80] %v421_v4  ;;  %4606 = vmatpush1.bf16.msra.mxu0 %v12085_v16  ;;  %v2178_v4 = vpack.c.bf16 %v10542_v49, %v14625_v31  ;;  %v1831_v16 = vld [vmem:[%s19327_s0 + $0x118] sm:$0xff] }
 0x299   :  { %4407 = vmatmul.mubr.bf16.gmra.mrb[44].mxu0 %v1871_v38  ;;  %v2019_v38 = vpack.c.bf16 %v1987_v56, %v1986_v13  ;;  %v2218_v13 = vshll.u32 %v2178_v4, 16  ;;  %v432_v56 = vld [vmem:[#allocation2 + $0xc0] sm:$0x1] }
 0x29a   :  { %4414 = vmatprep.mubr.bf16.mxu0 %v14132_v48  ;;  %v12081_v48 = vld [vmem:[%s19326_s1 + $0x200] sm:$0xff]  }
 0x29b   :  { %10945 = vmatprep.subr.bf16.mxu1 %v12081_v48  ;;  %v2113_v6 = vld [vmem:[#allocation2 + $0x8e0] sm:$0xff] }
 0x29c   :  { %10946 = vmatpush3.bf16.msra.mxu1 %v12081_v48  ;;  %v14579_v5 = vsel %vm12992_vm10, %v2019_v38, %v2113_v6  ;;  %v530_v48 = vsel %vm12954_vm8, 0, %v529_v43  ;;  %v532_v38 = vld [vmem:[#allocation2 + $0xd0] sm:$0x80]  ;;  %v1832_v43 = vld [vmem:[%s19327_s0 + $0x120] sm:$0xff] }
 0x29d   :  { %10947 = vmatprep.subr.bf16.mxu1 %v12082_v55  ;;  %2115 = vst [vmem:[#allocation2 + $0x8e0] sm:$0xff] %v14579_v5  ;;  %531 = vst [vmem:[#allocation2 + $0x88] sm:$0x80] %v530_v48  ;;  %v14653_v6 = vld [vmem:[%s19327_s0 + $0x30] sm:$0xff] }
 0x29e   :  { %v2179_v29 = vpack.c.bf16 %v10544_v62, %v14653_v6 }
 0x2a0   :  { %10948 = vmatpush3.bf16.msra.mxu1 %v12082_v55  ;;  %v1829_v55 = vld [vmem:[%s19327_s0 + $0x108] sm:$0xff]  ;;  %v2222_v48 = vshrl.u32 %v2179_v29, 16 }
 0x2a1   :  { %4415 = vmatmul.mubr.bf16.gmra.mrb[48].mxu0 %v1872_v3  ;;  %10949 = vmatprep.subr.bf16.mxu1 %v12083_v45  ;;  %v12088_v3 = vld [vmem:[%s19326_s1 + $0x230] sm:$0xff]   ;;  %v1876_v35 = vpack.c.bf16 %v1829_v55, %v1828_v14  ;;  %v2225_v14 = vshll.u32 %v2179_v29, 16 }
 0x2a2   :  { %4422 = vmatprep.mubr.bf16.mxu0 %v14147_v21  ;;  %v1873_v21 = vpack.c.bf16 %v1823_v8, %v1822_v32  ;;  %v2211_v32 = vshll.u32 %v2177_v1, 16  ;;  %v2210_v8 = vrot.slane %v2208_v54, 7  ;;  %v536_v1 = vsel %vm12954_vm8, 0, %v535_v61 }
 0x2a3   :  { %537 = vst [vmem:[#allocation2 + $0x118] sm:$0x80] %v536_v1  ;;  %v2224_v55 = vrot.slane %v2222_v48, 7  ;;  %v1836_v1 = vld [vmem:[%s19327_s0 + $0x140] sm:$0xff] }
 0x2a4   :  { %10950 = vmatpush3.bf16.msra.mxu1 %v12083_v45  ;;  %v429_v45 = vld [vmem:[#allocation2 + $0x78] sm:$0x1] }
 0x2a5   :  { %10951 = vmatprep.subr.bf16.mxu1 %v12084_v17  ;;  %v430_v60 = vsel %vm12268_vm2, 0, %v429_v45  ;;  %v14692_v45 = vld [vmem:[%s19327_s0 + $0x40] sm:$0xff] }
 0x2a6   :  { %431 = vst [vmem:[#allocation2 + $0x78] sm:$0x1] %v430_v60  ;;  %v10546_v60 = vld [vmem:[%s19327_s0 + $0x48] sm:$0x7f] }
 0x2a7   :  { %v2180_v49 = vpack.c.bf16 %v10546_v60, %v14692_v45  ;;  %v10550_v60 = vld [vmem:[%s19327_s0 + $0x68] sm:$0x7f] }
 0x2a8   :  { %10952 = vmatpush3.bf16.msra.mxu1 %v12084_v17 }
 0x2a9   :  { %4423 = vmatmul.mubr.bf16.gmra.mrb[52].mxu0 %v1873_v21  ;;  %10953 = vmatprep.subr.bf16.mxu1 %v12086_v15  ;;  %v2213_v21 = vor.u32 %v2211_v32, %v2210_v8  ;;  %v10663_v32 = vld [vmem:[%s19327_s0 + $0x31] sm:$0xff]  ;;  %v2227_v8 = vor.u32 %v2225_v14, %v2224_v55 }
 0x2aa   :  { %4430 = vmatprep.mubr.bf16.mxu0 %v14162_v20  ;;  %v14552_v20 = vsel %vm12992_vm10, %v2018_v42, %v2110_v19  ;;  %v2750_v19 = vld [vmem:[#allocation2 + $0x88] sm:$0xff] }
 0x2ab   :  { %2112 = vst [vmem:[#allocation2 + $0x898] sm:$0xff] %v14552_v20 }
 0x2ac   :  { %10954 = vmatpush3.bf16.msra.mxu1 %v12086_v15  ;;  %v1830_v15 = vld [vmem:[%s19327_s0 + $0x110] sm:$0xff] }
 0x2ad   :  { %10955 = vmatprep.subr.bf16.mxu1 %v12087_v34  ;;  %v1877_v37 = vpack.c.bf16 %v1831_v16, %v1830_v15  ;;  %v2229_v16 = vshrl.u32 %v2180_v49, 16 }
 0x2b0   :  { %10956 = vmatpush3.bf16.msra.mxu1 %v12087_v34  ;;  %v2215_v34 = vshrl.u32 %v2178_v4, 16  ;;  %v1835_v4 = vld [vmem:[%s19327_s0 + $0x138] sm:$0xff] }
 0x2b1   :  { %4431 = vmatmul.mubr.bf16.gmra.mrb[56].mxu0 %v1874_v41  ;;  %10957 = vmatprep.subr.bf16.mxu1 %v12088_v3 }
 0x2b2   :  { %4438 = vmatprep.mubr.bf16.mxu0 %v14177_v10  ;;  %v426_v10 = vld [vmem:[#allocation2 + $0x30] sm:$0x1]  ;;  %v2217_v12 = vrot.slane %v2215_v34, 7 }
 0x2b3   :  { %v427_v33 = vsel %vm12268_vm2, 0, %v426_v10  ;;  %v433_v10 = vsel %vm12268_vm2, 0, %v432_v56 }
 0x2b4   :  { %428 = vst [vmem:[#allocation2 + $0x30] sm:$0x1] %v427_v33  ;;  %10958 = vmatpush3.bf16.msra.mxu1 %v12088_v3  ;;  %v533_v33 = vsel %vm12954_vm8, 0, %v532_v38  ;;  %434 = vst [vmem:[#allocation2 + $0xc0] sm:$0x1] %v433_v10  ;;  %v14719_v38 = vld [vmem:[%s19327_s0 + $0x50] sm:$0xff] }
 0x2b5   :  { %10959 = vmatprep.subr.bf16.mxu1 %v12089_v27  ;;  %534 = vst [vmem:[#allocation2 + $0xd0] sm:$0x80] %v533_v33  ;;  %v541_v33 = vld [vmem:[#allocation2 + $0x1a8] sm:$0x80] }
 0x2b6   :  { %v542_v61 = vsel %vm12954_vm8, 0, %v541_v33  ;;  %v547_v33 = vld [vmem:[#allocation2 + $0x238] sm:$0x80] }
 0x2b7   :  { %543 = vst [vmem:[#allocation2 + $0x1a8] sm:$0x80] %v542_v61 }
 0x2b8   :  { %10960 = vmatpush3.bf16.msra.mxu1 %v12089_v27  ;;  %v1833_v27 = vld [vmem:[%s19327_s0 + $0x128] sm:$0xff] }
 0x2b9   :  { %4439 = vmatmul.mubr.bf16.gmra.mrb[60].mxu0 %v1875_v2  ;;  %8898 = vmatprep.subr.bf16.mxu1 %v14220_v22  ;;  %v2751_v22 = vsel %vm12992_vm10, %v2718_v39, %v2750_v19  ;;  %v2450_v2 = vld [vmem:[#allocation2 + $0x78] sm:$0xff]  ;;  %v1878_v54 = vpack.c.bf16 %v1833_v27, %v1832_v43  ;;  %v1834_v19 = vld [vmem:[%s19327_s0 + $0x130] sm:$0xff]  ;;  %v1837_v43 = vld [vmem:[%s19327_s0 + $0x148] sm:$0xff] }
 0x2ba   :  { %4446 = vmatprep.mubr.bf16.mxu0 %v14201_v25  ;;  %v10659_v25 = vld [vmem:[%s19327_s0 + $0x11] sm:$0xff]  ;;  %2752 = vst [vmem:[#allocation2 + $0x88] sm:$0xff] %v2751_v22  ;;  %v1879_v34 = vpack.c.bf16 %v1835_v4, %v1834_v19  ;;  %v1880_v55 = vpack.c.bf16 %v1837_v43, %v1836_v1  ;;  %v548_v1 = vsel %vm12954_vm8, 0, %v547_v33  ;;  %v1840_v43 = vld [vmem:[%s19327_s0 + $0x160] sm:$0xff] }
 0x2bb   :  { %v2717_v18 = vpack.c.bf16 %v10660_v59, %v10659_v25  ;;  %v2447_v17 = vld [vmem:[#allocation2 + $0x30] sm:$0xff]  ;;  %v10665_v25 = vld [vmem:[%s19327_s0 + $0x41] sm:$0xff]  ;;  %v10666_v59 = vld [vmem:[%s19327_s0 + $0x49] sm:$0x7f]  ;;  %549 = vst [vmem:[#allocation2 + $0x238] sm:$0x80] %v548_v1 }
 0x2bc   :  { %v14631_v42 = vsel %vm12319_vm5, %v2213_v21, %v2447_v17  ;;  %v435_v21 = vld [vmem:[#allocation2 + $0x108] sm:$0x1]  ;;  %v2753_v36 = vld [vmem:[#allocation2 + $0xd0] sm:$0xff]  ;;  %v2720_v58 = vpack.c.bf16 %v10666_v59, %v10665_v25  ;;  %v441_v25 = vld [vmem:[#allocation2 + $0x198] sm:$0x1] }
 0x2bd   :  { %v2748_v41 = vsel %vm12992_vm10, %v2717_v18, %v2747_v0  ;;  %2449 = vst [vmem:[#allocation2 + $0x30] sm:$0xff] %v14631_v42  ;;  %v2453_v18 = vld [vmem:[#allocation2 + $0xc0] sm:$0xff]  ;;  %v436_v17 = vsel %vm12268_vm2, 0, %v435_v21  ;;  %v1838_v19 = vld [vmem:[%s19327_s0 + $0x150] sm:$0xff]  ;;  %v1839_v4 = vld [vmem:[%s19327_s0 + $0x158] sm:$0xff] }
 0x2be   :  { %2749 = vst [vmem:[#allocation2 + $0x40] sm:$0xff] %v2748_v41  ;;  %10961 = vmatprep.mubr.bf16.mxu1 %v2748_v41  ;;  %v14698_v0 = vsel %vm12319_vm5, %v2227_v8, %v2453_v18  ;;  %437 = vst [vmem:[#allocation2 + $0x108] sm:$0x1] %v436_v17  ;;  %v2756_v41 = vld [vmem:[#allocation2 + $0x118] sm:$0xff]  ;;  %v10669_v8 = vld [vmem:[%s19327_s0 + $0x61] sm:$0xff] }
 0x2bf   :  { %10962 = vmatmul.mubr.bf16.vlgmr.msra.gmra.mrb[0].mxu1 %v2751_v22  ;;  %2455 = vst [vmem:[#allocation2 + $0xc0] sm:$0xff] %v14698_v0  ;;  %v2757_v15 = vsel %vm12992_vm10, %v2720_v58, %v2756_v41  ;;  %v2232_v22 = vshll.u32 %v2180_v49, 16  ;;  %v442_v58 = vsel %vm12268_vm2, 0, %v441_v25  ;;  %v2762_v41 = vld [vmem:[#allocation2 + $0x1a8] sm:$0xff] }
 0x2c0   :  { %2758 = vst [vmem:[#allocation2 + $0x118] sm:$0xff] %v2757_v15  ;;  %443 = vst [vmem:[#allocation2 + $0x198] sm:$0x1] %v442_v58  ;;  %v447_v25 = vld [vmem:[#allocation2 + $0x228] sm:$0x1]  ;;  %v14824_v58 = vld [vmem:[%s19327_s0 + $0x80] sm:$0xff] }
 0x2c1   :  { %4447 = vmatmul.mubr.bf16.gmra.mrb[64].mxu0 %v1876_v35 }
 0x2c2   :  { %4454 = vmatprep.mubr.bf16.mxu0 %v14231_v51  ;;  %v2220_v51 = vor.u32 %v2218_v13, %v2217_v12  ;;  %v2231_v13 = vrot.slane %v2229_v16, 7  ;;  %v538_v12 = vld [vmem:[#allocation2 + $0x160] sm:$0x80] }
 0x2c3   :  { %v539_v10 = vsel %vm12954_vm8, 0, %v538_v12  ;;  %v544_v12 = vld [vmem:[#allocation2 + $0x1f0] sm:$0x80] }
 0x2c4   :  { %v14665_v3 = vsel %vm12319_vm5, %v2220_v51, %v2450_v2  ;;  %v10548_v2 = vld [vmem:[%s19327_s0 + $0x58] sm:$0x7f]  ;;  %540 = vst [vmem:[#allocation2 + $0x160] sm:$0x80] %v539_v10  ;;  %v545_v10 = vsel %vm12954_vm8, 0, %v544_v12 }
 0x2c5   :  { %2452 = vst [vmem:[#allocation2 + $0x78] sm:$0xff] %v14665_v3  ;;  %v2456_v56 = vld [vmem:[#allocation2 + $0x108] sm:$0xff]  ;;  %v2181_v62 = vpack.c.bf16 %v10548_v2, %v14719_v38  ;;  %v10552_v2 = vld [vmem:[%s19327_s0 + $0x78] sm:$0x7f]  ;;  %546 = vst [vmem:[#allocation2 + $0x1f0] sm:$0x80] %v545_v10 }
 0x2c7   :  { %v2236_v27 = vshrl.u32 %v2181_v62, 16  ;;  %v2239_v48 = vshll.u32 %v2181_v62, 16 }
 0x2c9   :  { %4455 = vmatmul.mubr.bf16.gmra.mrb[68].mxu0 %v1877_v37  ;;  %v438_v37 = vld [vmem:[#allocation2 + $0x150] sm:$0x1]  ;;  %v2238_v14 = vrot.slane %v2236_v27, 7  ;;  %v1841_v27 = vld [vmem:[%s19327_s0 + $0x168] sm:$0xff] }
 0x2ca   :  { %4462 = vmatprep.mubr.bf16.mxu0 %v14259_v23  ;;  %v10664_v23 = vld [vmem:[%s19327_s0 + $0x39] sm:$0x7f]  ;;  %v439_v51 = vsel %vm12268_vm2, 0, %v438_v37  ;;  %v444_v37 = vld [vmem:[#allocation2 + $0x1e0] sm:$0x1] }
 0x2cb   :  { %v2719_v35 = vpack.c.bf16 %v10664_v23, %v10663_v32  ;;  %440 = vst [vmem:[#allocation2 + $0x150] sm:$0x1] %v439_v51  ;;  %v2241_v32 = vor.u32 %v2239_v48, %v2238_v14  ;;  %v2759_v21 = vld [vmem:[#allocation2 + $0x160] sm:$0xff]  ;;  %v445_v51 = vsel %vm12268_vm2, 0, %v444_v37 }
 0x2cc   :  { %446 = vst [vmem:[#allocation2 + $0x1e0] sm:$0x1] %v445_v51 }
 0x2cd   :  { %v2754_v39 = vsel %vm12992_vm10, %v2719_v35, %v2753_v36  ;;  %v10670_v35 = vld [vmem:[%s19327_s0 + $0x69] sm:$0x7f]  ;;  %v14758_v36 = vld [vmem:[%s19327_s0 + $0x60] sm:$0xff] }
 0x2ce   :  { %2755 = vst [vmem:[#allocation2 + $0xd0] sm:$0xff] %v2754_v39  ;;  %10965 = vmatprep.mubr.bf16.mxu1 %v2754_v39  ;;  %v2722_v18 = vpack.c.bf16 %v10670_v35, %v10669_v8  ;;  %v2182_v49 = vpack.c.bf16 %v10550_v60, %v14758_v36  ;;  %v10673_v8 = vld [vmem:[%s19327_s0 + $0x81] sm:$0xff]  ;;  %v10674_v35 = vld [vmem:[%s19327_s0 + $0x89] sm:$0x7f] }
 0x2cf   :  { %10966 = vmatmul.mubr.bf16.gmra.mrb[4].mxu1 %v2757_v15 }
 0x2d0   :  { %v2763_v15 = vsel %vm12992_vm10, %v2722_v18, %v2762_v41  ;;  %v2243_v16 = vshrl.u32 %v2182_v49, 16  ;;  %v2724_v18 = vpack.c.bf16 %v10674_v35, %v10673_v8 }
 0x2d1   :  { %4463 = vmatmul.mubr.bf16.gmra.mrb[72].mxu0 %v1878_v54  ;;  %v10667_v54 = vld [vmem:[%s19327_s0 + $0x51] sm:$0xff]  ;;  %2764 = vst [vmem:[#allocation2 + $0x1a8] sm:$0xff] %v2763_v15 }
 0x2d2   :  { %4470 = vmatprep.mubr.bf16.mxu0 %v14287_v46  ;;  %v2234_v46 = vor.u32 %v2232_v22, %v2231_v13  ;;  %v2459_v59 = vld [vmem:[#allocation2 + $0x150] sm:$0xff]  ;;  %v2246_v22 = vshll.u32 %v2182_v49, 16  ;;  %v2245_v13 = vrot.slane %v2243_v16, 7  ;;  %v10554_v49 = vld [vmem:[%s19327_s0 + $0x88] sm:$0x7f]  ;;  %v1843_v16 = vld [vmem:[%s19327_s0 + $0x178] sm:$0xff] }
 0x2d3   :  { %v14764_v17 = vsel %vm12319_vm5, %v2241_v32, %v2459_v59  ;;  %v2465_v59 = vld [vmem:[#allocation2 + $0x1e0] sm:$0xff] }
 0x2d4   :  { %v14731_v29 = vsel %vm12319_vm5, %v2234_v46, %v2456_v56  ;;  %2461 = vst [vmem:[#allocation2 + $0x150] sm:$0xff] %v14764_v17  ;;  %v2462_v46 = vld [vmem:[#allocation2 + $0x198] sm:$0xff]  ;;  %v14785_v56 = vld [vmem:[%s19327_s0 + $0x70] sm:$0xff] }
 0x2d5   :  { %2458 = vst [vmem:[#allocation2 + $0x108] sm:$0xff] %v14731_v29  ;;  %v2183_v62 = vpack.c.bf16 %v10552_v2, %v14785_v56  ;;  %v14851_v2 = vld [vmem:[%s19327_s0 + $0x90] sm:$0xff] }
 0x2d7   :  { %v2250_v48 = vshrl.u32 %v2183_v62, 16  ;;  %v2253_v14 = vshll.u32 %v2183_v62, 16  ;;  %v10556_v62 = vld [vmem:[%s19327_s0 + $0x98] sm:$0x7f] }
 0x2d8   :  { %v2185_v1 = vpack.c.bf16 %v10556_v62, %v14851_v2  ;;  %v556_v62 = vld [vmem:[#allocation2 + $0x310] sm:$0x80] }
 0x2d9   :  { %4471 = vmatmul.mubr.bf16.gmra.mrb[76].mxu0 %v1879_v34  ;;  %v1881_v34 = vpack.c.bf16 %v1839_v4, %v1838_v19  ;;  %v2768_v19 = vld [vmem:[#allocation2 + $0x238] sm:$0xff]  ;;  %v2184_v4 = vpack.c.bf16 %v10554_v49, %v14824_v58  ;;  %v14890_v49 = vld [vmem:[%s19327_s0 + $0xa0] sm:$0xff] }
 0x2da   :  { %4478 = vmatprep.mubr.bf16.mxu0 %v14315_v11  ;;  %v10668_v11 = vld [vmem:[%s19327_s0 + $0x59] sm:$0x7f] }
 0x2db   :  { %v2721_v23 = vpack.c.bf16 %v10668_v11, %v10667_v54  ;;  %v1882_v54 = vpack.c.bf16 %v1841_v27, %v1840_v43  ;;  %v10671_v11 = vld [vmem:[%s19327_s0 + $0x71] sm:$0xff]  ;;  %v553_v43 = vld [vmem:[#allocation2 + $0x2c8] sm:$0x80] }
 0x2dd   :  { %v2760_v39 = vsel %vm12992_vm10, %v2721_v23, %v2759_v21  ;;  %v2765_v21 = vld [vmem:[#allocation2 + $0x1f0] sm:$0xff] }
 0x2de   :  { %2761 = vst [vmem:[#allocation2 + $0x160] sm:$0xff] %v2760_v39  ;;  %10969 = vmatprep.mubr.bf16.mxu1 %v2760_v39  ;;  %v448_v39 = vsel %vm12268_vm2, 0, %v447_v25  ;;  %v10677_v25 = vld [vmem:[%s19327_s0 + $0xa1] sm:$0xff] }
 0x2df   :  { %10970 = vmatmul.mubr.bf16.gmra.mrb[8].mxu1 %v2763_v15  ;;  %449 = vst [vmem:[#allocation2 + $0x228] sm:$0x1] %v448_v39  ;;  %v1842_v15 = vld [vmem:[%s19327_s0 + $0x170] sm:$0xff] }
 0x2e0   :  { %v1883_v37 = vpack.c.bf16 %v1843_v16, %v1842_v15  ;;  %v10558_v16 = vld [vmem:[%s19327_s0 + $0xa8] sm:$0x7f] }
 0x2e1   :  { %4479 = vmatmul.mubr.bf16.gmra.mrb[80].mxu0 %v1880_v55  ;;  %v2252_v55 = vrot.slane %v2250_v48, 7  ;;  %v554_v48 = vsel %vm12954_vm8, 0, %v553_v43 }
 0x2e2   :  { %4486 = vmatprep.mubr.bf16.mxu0 %v14343_v57  ;;  %v2248_v57 = vor.u32 %v2246_v22, %v2245_v13  ;;  %v2769_v22 = vsel %vm12992_vm10, %v2724_v18, %v2768_v19  ;;  %v2260_v13 = vshll.u32 %v2184_v4, 16  ;;  %555 = vst [vmem:[#allocation2 + $0x2c8] sm:$0x80] %v554_v48  ;;  %v10560_v48 = vld [vmem:[%s19327_s0 + $0xb8] sm:$0x7f] }
 0x2e3   :  { %v2255_v32 = vor.u32 %v2253_v14, %v2252_v55  ;;  %2770 = vst [vmem:[#allocation2 + $0x238] sm:$0xff] %v2769_v22  ;;  %v1844_v14 = vld [vmem:[%s19327_s0 + $0x180] sm:$0xff]  ;;  %v1845_v55 = vld [vmem:[%s19327_s0 + $0x188] sm:$0xff] }
 0x2e4   :  { %v14797_v61 = vsel %vm12319_vm5, %v2248_v57, %v2462_v46  ;;  %v450_v57 = vld [vmem:[#allocation2 + $0x270] sm:$0x1]  ;;  %v550_v46 = vld [vmem:[#allocation2 + $0x280] sm:$0x80] }
 0x2e5   :  { %2464 = vst [vmem:[#allocation2 + $0x198] sm:$0xff] %v14797_v61  ;;  %v14830_v60 = vsel %vm12319_vm5, %v2255_v32, %v2465_v59  ;;  %v451_v10 = vsel %vm12268_vm2, 0, %v450_v57  ;;  %v551_v33 = vsel %vm12954_vm8, 0, %v550_v46  ;;  %v1884_v32 = vpack.c.bf16 %v1845_v55, %v1844_v14  ;;  %v10678_v59 = vld [vmem:[%s19327_s0 + $0xa9] sm:$0x7f] }
 0x2e6   :  { %2467 = vst [vmem:[#allocation2 + $0x1e0] sm:$0xff] %v14830_v60  ;;  %v2468_v51 = vld [vmem:[#allocation2 + $0x228] sm:$0xff]  ;;  %452 = vst [vmem:[#allocation2 + $0x270] sm:$0x1] %v451_v10  ;;  %v456_v10 = vld [vmem:[#allocation2 + $0x300] sm:$0x1] }
 0x2e7   :  { %552 = vst [vmem:[#allocation2 + $0x280] sm:$0x80] %v551_v33  ;;  %v457_v43 = vsel %vm12268_vm2, 0, %v456_v10  ;;  %v557_v14 = vsel %vm12954_vm8, 0, %v556_v62  ;;  %v1851_v10 = vld [vmem:[%s19327_s0 + $0x1b8] sm:$0xff] }
 0x2e8   :  { %458 = vst [vmem:[#allocation2 + $0x300] sm:$0x1] %v457_v43  ;;  %558 = vst [vmem:[#allocation2 + $0x310] sm:$0x80] %v557_v14  ;;  %v462_v14 = vld [vmem:[#allocation2 + $0x390] sm:$0x1] }
 0x2e9   :  { %4487 = vmatmul.mubr.bf16.gmra.mrb[84].mxu0 %v1881_v34  ;;  %v2257_v34 = vshrl.u32 %v2184_v4, 16 }
 0x2ea   :  { %4494 = vmatprep.mubr.bf16.mxu0 %v14364_v50  ;;  %v10672_v50 = vld [vmem:[%s19327_s0 + $0x79] sm:$0x7f] }
 0x2eb   :  { %v2723_v23 = vpack.c.bf16 %v10672_v50, %v10671_v11  ;;  %v2259_v12 = vrot.slane %v2257_v34, 7  ;;  %v2267_v11 = vshll.u32 %v2185_v1, 16  ;;  %v2186_v34 = vpack.c.bf16 %v10558_v16, %v14890_v49 }
 0x2ed   :  { %v2766_v41 = vsel %vm12992_vm10, %v2723_v23, %v2765_v21  ;;  %v10675_v23 = vld [vmem:[%s19327_s0 + $0x91] sm:$0xff]  ;;  %v2271_v57 = vshrl.u32 %v2186_v34, 16  ;;  %v2274_v46 = vshll.u32 %v2186_v34, 16  ;;  %v14956_v34 = vld [vmem:[%s19327_s0 + $0xc0] sm:$0xff] }
 0x2ee   :  { %2767 = vst [vmem:[#allocation2 + $0x1f0] sm:$0xff] %v2766_v41  ;;  %10973 = vmatprep.mubr.bf16.mxu1 %v2766_v41  ;;  %v453_v21 = vld [vmem:[#allocation2 + $0x2b8] sm:$0x1]  ;;  %v2471_v18 = vld [vmem:[#allocation2 + $0x270] sm:$0xff]  ;;  %v2771_v39 = vld [vmem:[#allocation2 + $0x280] sm:$0xff]  ;;  %v2726_v41 = vpack.c.bf16 %v10678_v59, %v10677_v25 }
 0x2ef   :  { %10974 = vmatmul.mubr.bf16.gmra.mrb[12].mxu1 %v2769_v22  ;;  %v454_v19 = vsel %vm12268_vm2, 0, %v453_v21  ;;  %v2774_v22 = vld [vmem:[#allocation2 + $0x2c8] sm:$0xff]  ;;  %v10679_v59 = vld [vmem:[%s19327_s0 + $0xb1] sm:$0xff] }
 0x2f0   :  { %455 = vst [vmem:[#allocation2 + $0x2b8] sm:$0x1] %v454_v19  ;;  %v459_v19 = vld [vmem:[#allocation2 + $0x348] sm:$0x1]  ;;  %v2777_v16 = vld [vmem:[#allocation2 + $0x310] sm:$0xff] }
 0x2f1   :  { %4495 = vmatmul.mubr.bf16.gmra.mrb[88].mxu0 %v1882_v54  ;;  %v2264_v54 = vshrl.u32 %v2185_v1, 16  ;;  %v14917_v1 = vld [vmem:[%s19327_s0 + $0xb0] sm:$0xff] }
 0x2f2   :  { %4502 = vmatprep.mubr.bf16.mxu0 %v14388_v52  ;;  %v2262_v52 = vor.u32 %v2260_v13, %v2259_v12  ;;  %v1846_v13 = vld [vmem:[%s19327_s0 + $0x190] sm:$0xff]  ;;  %v2775_v12 = vsel %vm12992_vm10, %v2726_v41, %v2774_v22  ;;  %v2187_v55 = vpack.c.bf16 %v10560_v48, %v14917_v1  ;;  %v10682_v41 = vld [vmem:[%s19327_s0 + $0xc9] sm:$0x7f] }
 0x2f3   :  { %v2266_v50 = vrot.slane %v2264_v54, 7  ;;  %2776 = vst [vmem:[#allocation2 + $0x2c8] sm:$0xff] %v2775_v12  ;;  %v559_v54 = vld [vmem:[#allocation2 + $0x358] sm:$0x80] }
 0x2f4   :  { %v14863_v27 = vsel %vm12319_vm5, %v2262_v52, %v2468_v51  ;;  %v2273_v51 = vrot.slane %v2271_v57, 7  ;;  %v10562_v57 = vld [vmem:[%s19327_s0 + $0xc8] sm:$0x7f] }
 0x2f5   :  { %2470 = vst [vmem:[#allocation2 + $0x228] sm:$0xff] %v14863_v27  ;;  %v2269_v8 = vor.u32 %v2267_v11, %v2266_v50  ;;  %v560_v50 = vsel %vm12954_vm8, 0, %v559_v54 }
 0x2f6   :  { %561 = vst [vmem:[#allocation2 + $0x358] sm:$0x80] %v560_v50  ;;  %v14983_v50 = vld [vmem:[%s19327_s0 + $0xd0] sm:$0xff] }
 0x2f7   :  { %v14896_v4 = vsel %vm12319_vm5, %v2269_v8, %v2471_v18  ;;  %v2474_v33 = vld [vmem:[#allocation2 + $0x2b8] sm:$0xff]  ;;  %v2281_v8 = vshll.u32 %v2187_v55, 16 }
 0x2f8   :  { %2473 = vst [vmem:[#allocation2 + $0x270] sm:$0xff] %v14896_v4 }
 0x2f9   :  { %4503 = vmatmul.mubr.bf16.gmra.mrb[92].mxu0 %v1883_v37  ;;  %v1847_v37 = vld [vmem:[%s19327_s0 + $0x198] sm:$0xff] }
 0x2fa   :  { %4510 = vmatprep.mubr.bf16.mxu0 %v14408_v53  ;;  %v10676_v53 = vld [vmem:[%s19327_s0 + $0x99] sm:$0x7f]  ;;  %v1885_v52 = vpack.c.bf16 %v1847_v37, %v1846_v13  ;;  %v460_v13 = vsel %vm12268_vm2, 0, %v459_v19 }
 0x2fb   :  { %v2725_v35 = vpack.c.bf16 %v10676_v53, %v10675_v23  ;;  %v1849_v23 = vld [vmem:[%s19327_s0 + $0x1a8] sm:$0xff]  ;;  %v2278_v53 = vshrl.u32 %v2187_v55, 16  ;;  %461 = vst [vmem:[#allocation2 + $0x348] sm:$0x1] %v460_v13  ;;  %v562_v55 = vld [vmem:[#allocation2 + $0x3a0] sm:$0x80] }
 0x2fc   :  { %v10685_v13 = vld [vmem:[%s19327_s0 + $0xe1] sm:$0xff] }
 0x2fd   :  { %v2772_v15 = vsel %vm12992_vm10, %v2725_v35, %v2771_v39  ;;  %v2280_v35 = vrot.slane %v2278_v53, 7  ;;  %v10681_v39 = vld [vmem:[%s19327_s0 + $0xc1] sm:$0xff]  ;;  %v563_v53 = vsel %vm12954_vm8, 0, %v562_v55  ;;  %v1854_v55 = vld [vmem:[%s19327_s0 + $0x1d0] sm:$0xff] }
 0x2fe   :  { %2773 = vst [vmem:[#allocation2 + $0x280] sm:$0xff] %v2772_v15  ;;  %10977 = vmatprep.mubr.bf16.mxu1 %v2772_v15  ;;  %v2477_v15 = vld [vmem:[#allocation2 + $0x300] sm:$0xff]  ;;  %v2728_v22 = vpack.c.bf16 %v10682_v41, %v10681_v39  ;;  %564 = vst [vmem:[#allocation2 + $0x3a0] sm:$0x80] %v563_v53 }
 0x2ff   :  { %10978 = vmatmul.mubr.bf16.gmra.mrb[16].mxu1 %v2775_v12  ;;  %v2283_v21 = vor.u32 %v2281_v8, %v2280_v35  ;;  %v565_v35 = vld [vmem:[#allocation2 + $0x3e8] sm:$0x80] }
 0x301   :  { %4511 = vmatmul.mubr.bf16.gmra.mrb[96].mxu0 %v1884_v32  ;;  %v1848_v32 = vld [vmem:[%s19327_s0 + $0x1a0] sm:$0xff]  ;;  %v14962_v37 = vsel %vm12319_vm5, %v2283_v21, %v2477_v15  ;;  %v1853_v21 = vld [vmem:[%s19327_s0 + $0x1c8] sm:$0xff]  ;;  %v10683_v15 = vld [vmem:[%s19327_s0 + $0xd1] sm:$0xff] }
 0x302   :  { %4518 = vmatprep.mubr.bf16.mxu0 %v14432_v9  ;;  %v2276_v9 = vor.u32 %v2274_v46, %v2273_v51  ;;  %v1886_v25 = vpack.c.bf16 %v1849_v23, %v1848_v32  ;;  %2479 = vst [vmem:[#allocation2 + $0x300] sm:$0xff] %v14962_v37  ;;  %v2780_v46 = vld [vmem:[#allocation2 + $0x358] sm:$0xff]  ;;  %v1850_v51 = vld [vmem:[%s19327_s0 + $0x1b0] sm:$0xff]  ;;  %v2480_v54 = vld [vmem:[#allocation2 + $0x348] sm:$0xff]  ;;  %v463_v32 = vsel %vm12268_vm2, 0, %v462_v14 }
 0x303   :  { %v2781_v62 = vsel %vm12992_vm10, %v2728_v22, %v2780_v46  ;;  %v1887_v43 = vpack.c.bf16 %v1851_v10, %v1850_v51  ;;  %v10564_v23 = vld [vmem:[%s19327_s0 + $0xd8] sm:$0x7f]  ;;  %464 = vst [vmem:[#allocation2 + $0x390] sm:$0x1] %v463_v32  ;;  %v15022_v10 = vld [vmem:[%s19327_s0 + $0xe0] sm:$0xff] }
 0x304   :  { %v14929_v11 = vsel %vm12319_vm5, %v2276_v9, %v2474_v33  ;;  %2782 = vst [vmem:[#allocation2 + $0x358] sm:$0xff] %v2781_v62  ;;  %v2189_v8 = vpack.c.bf16 %v10564_v23, %v14983_v50 }
 0x305   :  { %2476 = vst [vmem:[#allocation2 + $0x2b8] sm:$0xff] %v14929_v11 }
 0x306   :  { %v2295_v39 = vshll.u32 %v2189_v8, 16 }
 0x309   :  { %4519 = vmatmul.mubr.bf16.gmra.mrb[100].mxu0 %v1885_v52  ;;  %v2188_v52 = vpack.c.bf16 %v10562_v57, %v14956_v34  ;;  %v465_v57 = vld [vmem:[#allocation2 + $0x3d8] sm:$0x1] }
 0x30a   :  { %4526 = vmatprep.mubr.bf16.mxu0 %v14452_v47  ;;  %v10680_v47 = vld [vmem:[%s19327_s0 + $0xb9] sm:$0x7f]  ;;  %v2483_v46 = vld [vmem:[#allocation2 + $0x390] sm:$0xff] }
 0x30b   :  { %v2727_v18 = vpack.c.bf16 %v10680_v47, %v10679_v59  ;;  %v2285_v9 = vshrl.u32 %v2188_v52, 16  ;;  %v2288_v33 = vshll.u32 %v2188_v52, 16  ;;  %v566_v59 = vsel %vm12954_vm8, 0, %v565_v35  ;;  %v1852_v47 = vld [vmem:[%s19327_s0 + $0x1c0] sm:$0xff] }
 0x30c   :  { %567 = vst [vmem:[#allocation2 + $0x3e8] sm:$0x80] %v566_v59  ;;  %v1888_v19 = vpack.c.bf16 %v1853_v21, %v1852_v47  ;;  %v2783_v52 = vld [vmem:[#allocation2 + $0x3a0] sm:$0xff]  ;;  %v568_v59 = vld [vmem:[#allocation2 + $0x430] sm:$0x80] }
 0x30d   :  { %v2778_v12 = vsel %vm12992_vm10, %v2727_v18, %v2777_v16  ;;  %v2287_v48 = vrot.slane %v2285_v9, 7  ;;  %v2292_v18 = vshrl.u32 %v2189_v8, 16  ;;  %v468_v35 = vld [vmem:[#allocation2 + $0x420] sm:$0x1]  ;;  %v15049_v21 = vld [vmem:[%s19327_s0 + $0xf0] sm:$0xff] }
 0x30e   :  { %2779 = vst [vmem:[#allocation2 + $0x310] sm:$0xff] %v2778_v12  ;;  %10981 = vmatprep.mubr.bf16.mxu1 %v2778_v12  ;;  %v10686_v12 = vld [vmem:[%s19327_s0 + $0xe9] sm:$0x7f] }
 0x30f   :  { %10982 = vmatmul.mubr.bf16.gmra.mrb[20].mxu1 %v2781_v62  ;;  %v2294_v41 = vrot.slane %v2292_v18, 7  ;;  %v2730_v51 = vpack.c.bf16 %v10686_v12, %v10685_v13  ;;  %v466_v62 = vsel %vm12268_vm2, 0, %v465_v57  ;;  %v469_v18 = vsel %vm12268_vm2, 0, %v468_v35  ;;  %v1857_v13 = vld [vmem:[%s19327_s0 + $0x1e8] sm:$0xff] }
 0x310   :  { %467 = vst [vmem:[#allocation2 + $0x3d8] sm:$0x1] %v466_v62  ;;  %470 = vst [vmem:[#allocation2 + $0x420] sm:$0x1] %v469_v18 }
 0x311   :  { %4527 = vmatmul.mubr.bf16.gmra.mrb[104].mxu0 %v1886_v25  ;;  %v2297_v16 = vor.u32 %v2295_v39, %v2294_v41  ;;  %v10568_v39 = vld [vmem:[%s19327_s0 + $0xf8] sm:$0x7f]  ;;  %v569_v41 = vsel %vm12954_vm8, 0, %v568_v59 }
 0x312   :  { %4534 = vmatprep.mubr.bf16.mxu0 %v14476_v24  ;;  %v2290_v24 = vor.u32 %v2288_v33, %v2287_v48  ;;  %570 = vst [vmem:[#allocation2 + $0x430] sm:$0x80] %v569_v41 }
 0x313   :  { %v15028_v9 = vsel %vm12319_vm5, %v2297_v16, %v2483_v46  ;;  %v2786_v48 = vld [vmem:[#allocation2 + $0x3e8] sm:$0xff] }
 0x314   :  { %v14995_v25 = vsel %vm12319_vm5, %v2290_v24, %v2480_v54  ;;  %2485 = vst [vmem:[#allocation2 + $0x390] sm:$0xff] %v15028_v9  ;;  %v1855_v24 = vld [vmem:[%s19327_s0 + $0x1d8] sm:$0xff]  ;;  %v2787_v54 = vsel %vm12992_vm10, %v2730_v51, %v2786_v48 }
 0x315   :  { %2482 = vst [vmem:[#allocation2 + $0x348] sm:$0xff] %v14995_v25  ;;  %2788 = vst [vmem:[#allocation2 + $0x3e8] sm:$0xff] %v2787_v54  ;;  %v1889_v53 = vpack.c.bf16 %v1855_v24, %v1854_v55  ;;  %v10687_v51 = vld [vmem:[%s19327_s0 + $0xf1] sm:$0xff] }
 0x317   :  { %v2486_v47 = vld [vmem:[#allocation2 + $0x3d8] sm:$0xff] }
 0x319   :  { %4535 = vmatmul.mubr.bf16.gmra.mrb[108].mxu0 %v1887_v43  ;;  %v10566_v43 = vld [vmem:[%s19327_s0 + $0xe8] sm:$0x7f]  ;;  %v2789_v48 = vld [vmem:[#allocation2 + $0x430] sm:$0xff] }
 0x31a   :  { %4542 = vmatprep.mubr.bf16.mxu0 %v14496_v40  ;;  %v10684_v40 = vld [vmem:[%s19327_s0 + $0xd9] sm:$0x7f]  ;;  %v2190_v14 = vpack.c.bf16 %v10566_v43, %v15022_v10  ;;  %v2489_v43 = vld [vmem:[#allocation2 + $0x420] sm:$0xff] }
 0x31b   :  { %v2729_v22 = vpack.c.bf16 %v10684_v40, %v10683_v15  ;;  %v571_v15 = vld [vmem:[#allocation2 + $0x478] sm:$0x80] }
 0x31c   :  { %v2299_v32 = vshrl.u32 %v2190_v14, 16  ;;  %v2302_v23 = vshll.u32 %v2190_v14, 16  ;;  %v572_v16 = vsel %vm12954_vm8, 0, %v571_v15  ;;  %v471_v14 = vld [vmem:[#allocation2 + $0x468] sm:$0x1] }
 0x31d   :  { %v2784_v33 = vsel %vm12992_vm10, %v2729_v22, %v2783_v52  ;;  %v1856_v22 = vld [vmem:[%s19327_s0 + $0x1e0] sm:$0xff]  ;;  %573 = vst [vmem:[#allocation2 + $0x478] sm:$0x80] %v572_v16 }
 0x31e   :  { %2785 = vst [vmem:[#allocation2 + $0x3a0] sm:$0xff] %v2784_v33  ;;  %10985 = vmatprep.mubr.bf16.mxu1 %v2784_v33  ;;  %v2301_v8 = vrot.slane %v2299_v32, 7  ;;  %v1890_v52 = vpack.c.bf16 %v1857_v13, %v1856_v22  ;;  %v10602_v13 = vld [vmem:[%s19327_s0 + $0x28] sm:$0xff] }
 0x31f   :  { %10986 = vmatmul.mubr.bf16.gmra.mrb[24].mxu1 %v2787_v54  ;;  %v472_v54 = vsel %vm12268_vm2, 0, %v471_v14 }
 0x320   :  { %473 = vst [vmem:[#allocation2 + $0x468] sm:$0x1] %v472_v54  ;;  %v15133_v54 = vld [vmem:[%s19327_s0 + $0x120] sm:$0xff] }
 0x321   :  { %4543 = vmatmul.mubr.bf16.gmra.mrb[112].mxu0 %v1888_v19  ;;  %v2191_v19 = vpack.c.bf16 %v10568_v39, %v15049_v21  ;;  %v10570_v39 = vld [vmem:[%s19327_s0 + $0x118] sm:$0x7f] }
 0x322   :  { %4550 = vmatprep.mubr.bf16.mxu0 %v14526_v30  ;;  %v2304_v30 = vor.u32 %v2302_v23, %v2301_v8  ;;  %v1858_v23 = vld [vmem:[%s19327_s0 + $0x1f0] sm:$0xff]  ;;  %v10600_v8 = vld [vmem:[%s19327_s0 + $0x18] sm:$0xff] }
 0x323   :  { %v2306_v12 = vshrl.u32 %v2191_v19, 16  ;;  %v2309_v57 = vshll.u32 %v2191_v19, 16  ;;  %v2597_v59 = vpack.c.bf16 %v10600_v8, %v14584_v26  ;;  %v577_v19 = vld [vmem:[#allocation2 + $0x508] sm:$0x80] }
 0x324   :  { %v15061_v40 = vsel %vm12319_vm5, %v2304_v30, %v2486_v47  ;;  %v2980_v32 = vld [vmem:[#allocation2 + $0x478] sm:$0xff]  ;;  %v474_v30 = vld [vmem:[#allocation2 + $0x4b0] sm:$0x1]  ;;  %v574_v47 = vld [vmem:[#allocation2 + $0x4c0] sm:$0x80]  ;;  %v578_v15 = vsel %vm12954_vm8, 0, %v577_v19 }
 0x325   :  { %2488 = vst [vmem:[#allocation2 + $0x3d8] sm:$0xff] %v15061_v40  ;;  %v2308_v46 = vrot.slane %v2306_v12, 7  ;;  %v475_v18 = vsel %vm12268_vm2, 0, %v474_v30  ;;  %v575_v41 = vsel %vm12954_vm8, 0, %v574_v47  ;;  %579 = vst [vmem:[#allocation2 + $0x508] sm:$0x80] %v578_v15 }
 0x326   :  { %476 = vst [vmem:[#allocation2 + $0x4b0] sm:$0x1] %v475_v18  ;;  %576 = vst [vmem:[#allocation2 + $0x4c0] sm:$0x80] %v575_v41  ;;  %v10604_v30 = vld [vmem:[%s19327_s0 + $0x38] sm:$0xff] }
 0x327   :  { %v2311_v62 = vor.u32 %v2309_v57, %v2308_v46  ;;  %v10689_v57 = vld [vmem:[%s19327_s0 + $0x111] sm:$0xff]  ;;  %v10690_v46 = vld [vmem:[%s19327_s0 + $0x119] sm:$0x7f]  ;;  %v480_v41 = vld [vmem:[#allocation2 + $0x540] sm:$0x1] }
 0x329   :  { %4551 = vmatmul.mubr.bf16.gmra.mrb[116].mxu0 %v1889_v53  ;;  %v15081_v55 = vsel %vm12319_vm5, %v2311_v62, %v2489_v43  ;;  %v1859_v53 = vld [vmem:[%s19327_s0 + $0x1f8] sm:$0xff]  ;;  %v10691_v62 = vld [vmem:[%s19327_s0 + $0x121] sm:$0xff] }
 0x32a   :  { %4558 = vmatprep.mubr.bf16.mxu0 %v14552_v20  ;;  %v10688_v20 = vld [vmem:[%s19327_s0 + $0xf9] sm:$0x7f]  ;;  %2491 = vst [vmem:[#allocation2 + $0x420] sm:$0xff] %v15081_v55  ;;  %v1891_v35 = vpack.c.bf16 %v1859_v53, %v1858_v23  ;;  %v477_v43 = vld [vmem:[#allocation2 + $0x4f8] sm:$0x1] }
 0x32b   :  { %v2731_v33 = vpack.c.bf16 %v10688_v20, %v10687_v51  ;;  %v2732_v20 = vpack.c.bf16 %v10690_v46, %v10689_v57  ;;  %v10572_v53 = vld [vmem:[%s19327_s0 + $0x128] sm:$0x7f]  ;;  %v583_v57 = vld [vmem:[#allocation2 + $0x598] sm:$0x80] }
 0x32c   :  { %v2795_v8 = vld [vmem:[#allocation2 + $0x508] sm:$0xff] }
 0x32d   :  { %v2790_v24 = vsel %vm12992_vm10, %v2731_v33, %v2789_v48  ;;  %v10692_v33 = vld [vmem:[%s19327_s0 + $0x129] sm:$0x7f]  ;;  %v2492_v48 = vld [vmem:[#allocation2 + $0x4b0] sm:$0xff]  ;;  %v2792_v14 = vld [vmem:[#allocation2 + $0x4c0] sm:$0xff] }
 0x32e   :  { %2791 = vst [vmem:[#allocation2 + $0x430] sm:$0xff] %v2790_v24  ;;  %10989 = vmatprep.mubr.bf16.mxu1 %v2790_v24  ;;  %v2733_v24 = vpack.c.bf16 %v10692_v33, %v10691_v62  ;;  %v2793_v23 = vsel %vm12992_vm10, %v2732_v20, %v2792_v14  ;;  %v10606_v62 = vld [vmem:[%s19327_s0 + $0x48] sm:$0xff] }
 0x32f   :  { %10990 = vmatmul.mubr.bf16.gmra.mrb[28].mxu1 %v2980_v32  ;;  %2794 = vst [vmem:[#allocation2 + $0x4c0] sm:$0xff] %v2793_v23 }
 0x330   :  { %10993 = vmatprep.mubr.bf16.mxu1 %v2793_v23  ;;  %v10696_v23 = vld [vmem:[%s19327_s0 + $0x149] sm:$0x7f] }
 0x331   :  { %4559 = vmatmul.mubr.bf16.gmra.mrb[120].mxu0 %v1890_v52  ;;  %v2598_v52 = vpack.c.bf16 %v10602_v13, %v14625_v31  ;;  %v478_v31 = vsel %vm12268_vm2, 0, %v477_v43  ;;  %v10574_v13 = vld [vmem:[%s19327_s0 + $0x138] sm:$0x7f] }
 0x332   :  { %4566 = vmatprep.mubr.bf16.mxu0 %v14579_v5  ;;  %v15102_v5 = vld [vmem:[%s19327_s0 + $0x110] sm:$0xff]  ;;  %479 = vst [vmem:[#allocation2 + $0x4f8] sm:$0x1] %v478_v31  ;;  %v10694_v43 = vld [vmem:[%s19327_s0 + $0x139] sm:$0x7f]  ;;  %v10695_v31 = vld [vmem:[%s19327_s0 + $0x141] sm:$0xff] }
 0x333   :  { %v2192_v26 = vpack.c.bf16 %v10570_v39, %v15102_v5  ;;  %v2599_v39 = vpack.c.bf16 %v10604_v30, %v14653_v6  ;;  %v15195_v30 = vld [vmem:[%s19327_s0 + $0x140] sm:$0xff] }
 0x335   :  { %v2313_v16 = vshrl.u32 %v2192_v26, 16  ;;  %v2316_v22 = vshll.u32 %v2192_v26, 16  ;;  %v580_v26 = vld [vmem:[#allocation2 + $0x550] sm:$0x80] }
 0x337   :  { %v2315_v12 = vrot.slane %v2313_v16, 7  ;;  %v15158_v16 = vld [vmem:[%s19327_s0 + $0x130] sm:$0xff] }
 0x338   :  { %v2194_v6 = vpack.c.bf16 %v10574_v13, %v15158_v16 }
 0x339   :  { %4567 = vmatmul.mubr.bf16.gmra.mrb[124].mxu0 %v1891_v35  ;;  %v2318_v51 = vor.u32 %v2316_v22, %v2315_v12  ;;  %v2193_v35 = vpack.c.bf16 %v10572_v53, %v15133_v54  ;;  %v2495_v15 = vld [vmem:[#allocation2 + $0x4f8] sm:$0xff]  ;;  %v481_v22 = vsel %vm12268_vm2, 0, %v480_v41  ;;  %v581_v12 = vsel %vm12954_vm8, 0, %v580_v26  ;;  %v483_v53 = vld [vmem:[#allocation2 + $0x588] sm:$0x1] }
 0x33a   :  { %4607 = vmatprep.mubr.bf16.mxu0 %v2597_v59  ;;  %v2796_v59 = vsel %vm12992_vm10, %v2733_v24, %v2795_v8  ;;  %482 = vst [vmem:[#allocation2 + $0x540] sm:$0x1] %v481_v22  ;;  %582 = vst [vmem:[#allocation2 + $0x550] sm:$0x80] %v581_v12  ;;  %v2330_v20 = vshll.u32 %v2194_v6, 16 }
 0x33b   :  { %v15139_v32 = vsel %vm12319_vm5, %v2318_v51, %v2492_v48  ;;  %2797 = vst [vmem:[#allocation2 + $0x508] sm:$0xff] %v2796_v59  ;;  %10994 = vmatmul.mubr.bf16.gmra.mrb[32].mxu1 %v2796_v59  ;;  %v2320_v47 = vshrl.u32 %v2193_v35, 16  ;;  %v2323_v18 = vshll.u32 %v2193_v35, 16  ;;  %v2327_v51 = vshrl.u32 %v2194_v6, 16  ;;  %v486_v12 = vld [vmem:[#allocation2 + $0x5d0] sm:$0x1] }
 0x33c   :  { %2494 = vst [vmem:[#allocation2 + $0x4b0] sm:$0xff] %v15139_v32  ;;  %v2600_v48 = vpack.c.bf16 %v10606_v62, %v14692_v45  ;;  %v2735_v59 = vpack.c.bf16 %v10696_v23, %v10695_v31  ;;  %v484_v45 = vsel %vm12268_vm2, 0, %v483_v53  ;;  %v586_v6 = vld [vmem:[#allocation2 + $0x5e0] sm:$0x80]  ;;  %v10578_v62 = vld [vmem:[%s19327_s0 + $0x158] sm:$0x7f] }
 0x33d   :  { %v2329_v33 = vrot.slane %v2327_v51, 7  ;;  %485 = vst [vmem:[#allocation2 + $0x588] sm:$0x1] %v484_v45  ;;  %v15220_v51 = vld [vmem:[%s19327_s0 + $0x150] sm:$0xff]  ;;  %v10610_v31 = vld [vmem:[%s19327_s0 + $0x68] sm:$0xff] }
 0x33e   :  { %v10698_v53 = vld [vmem:[%s19327_s0 + $0x159] sm:$0x7f]  ;;  %v10699_v45 = vld [vmem:[%s19327_s0 + $0x161] sm:$0xff] }
 0x33f   :  { %v2332_v14 = vor.u32 %v2330_v20, %v2329_v33  ;;  %v487_v20 = vsel %vm12268_vm2, 0, %v486_v12  ;;  %v587_v33 = vsel %vm12954_vm8, 0, %v586_v6 }
 0x340   :  { %488 = vst [vmem:[#allocation2 + $0x5d0] sm:$0x1] %v487_v20  ;;  %588 = vst [vmem:[#allocation2 + $0x5e0] sm:$0x80] %v587_v33  ;;  %v492_v33 = vld [vmem:[#allocation2 + $0x660] sm:$0x1] }
 0x341   :  { %4608 = vmatmul.mubr.bf16.vlgmr.msra.gmra.mrb[0].mxu0 %v14631_v42  ;;  %v2322_v42 = vrot.slane %v2320_v47, 7  ;;  %v2498_v8 = vld [vmem:[#allocation2 + $0x540] sm:$0xff]  ;;  %v2798_v35 = vld [vmem:[#allocation2 + $0x550] sm:$0xff] }
 0x342   :  { %4615 = vmatprep.mubr.bf16.mxu0 %v2598_v52  ;;  %v584_v52 = vsel %vm12954_vm8, 0, %v583_v57  ;;  %v15201_v47 = vsel %vm12319_vm5, %v2332_v14, %v2498_v8  ;;  %v2602_v8 = vpack.c.bf16 %v10610_v31, %v14758_v36  ;;  %v10582_v31 = vld [vmem:[%s19327_s0 + $0x178] sm:$0x7f] }
 0x343   :  { %v2325_v19 = vor.u32 %v2323_v18, %v2322_v42  ;;  %585 = vst [vmem:[#allocation2 + $0x598] sm:$0x80] %v584_v52  ;;  %v10576_v42 = vld [vmem:[%s19327_s0 + $0x148] sm:$0x7f]  ;;  %2500 = vst [vmem:[#allocation2 + $0x540] sm:$0xff] %v15201_v47 }
 0x344   :  { %v2195_v41 = vpack.c.bf16 %v10576_v42, %v15195_v30  ;;  %v2501_v52 = vld [vmem:[#allocation2 + $0x588] sm:$0xff]  ;;  %v489_v42 = vld [vmem:[#allocation2 + $0x618] sm:$0x1] }
 0x345   :  { %v15171_v46 = vsel %vm12319_vm5, %v2325_v19, %v2495_v15  ;;  %v10608_v19 = vld [vmem:[%s19327_s0 + $0x58] sm:$0xff]  ;;  %v490_v36 = vsel %vm12268_vm2, 0, %v489_v42 }
 0x346   :  { %2497 = vst [vmem:[#allocation2 + $0x4f8] sm:$0xff] %v15171_v46  ;;  %v2334_v15 = vshrl.u32 %v2195_v41, 16  ;;  %v2337_v22 = vshll.u32 %v2195_v41, 16  ;;  %v2601_v13 = vpack.c.bf16 %v10608_v19, %v14719_v38  ;;  %v2196_v38 = vpack.c.bf16 %v10578_v62, %v15220_v51  ;;  %v15257_v19 = vld [vmem:[%s19327_s0 + $0x160] sm:$0xff]  ;;  %491 = vst [vmem:[#allocation2 + $0x618] sm:$0x1] %v490_v36 }
 0x347   :  { %v2804_v41 = vld [vmem:[#allocation2 + $0x5e0] sm:$0xff]  ;;  %v10702_v42 = vld [vmem:[%s19327_s0 + $0x179] sm:$0x7f] }
 0x348   :  { %v2341_v14 = vshrl.u32 %v2196_v38, 16  ;;  %v10703_v36 = vld [vmem:[%s19327_s0 + $0x181] sm:$0xff] }
 0x349   :  { %4616 = vmatmul.mubr.bf16.gmra.mrb[4].mxu0 %v14665_v3  ;;  %v10693_v3 = vld [vmem:[%s19327_s0 + $0x131] sm:$0xff] }
 0x34a   :  { %4623 = vmatprep.mubr.bf16.mxu0 %v2599_v39  ;;  %v2734_v24 = vpack.c.bf16 %v10694_v43, %v10693_v3  ;;  %v2801_v39 = vld [vmem:[#allocation2 + $0x598] sm:$0xff]  ;;  %v589_v3 = vld [vmem:[#allocation2 + $0x628] sm:$0x80]  ;;  %v2343_v23 = vrot.slane %v2341_v14, 7  ;;  %v15282_v14 = vld [vmem:[%s19327_s0 + $0x170] sm:$0xff] }
 0x34b   :  { %v2802_v26 = vsel %vm12992_vm10, %v2735_v59, %v2801_v39  ;;  %v2504_v39 = vld [vmem:[#allocation2 + $0x5d0] sm:$0xff] }
 0x34c   :  { %v2799_v18 = vsel %vm12992_vm10, %v2734_v24, %v2798_v35  ;;  %2803 = vst [vmem:[#allocation2 + $0x598] sm:$0xff] %v2802_v26  ;;  %v2344_v24 = vshll.u32 %v2196_v38, 16  ;;  %v592_v38 = vld [vmem:[#allocation2 + $0x670] sm:$0x80] }
 0x34d   :  { %2800 = vst [vmem:[#allocation2 + $0x550] sm:$0xff] %v2799_v18  ;;  %10997 = vmatprep.mubr.bf16.mxu1 %v2799_v18  ;;  %v10700_v18 = vld [vmem:[%s19327_s0 + $0x169] sm:$0x7f] }
 0x34e   :  { %10998 = vmatmul.mubr.bf16.gmra.mrb[36].mxu1 %v2802_v26  ;;  %v2346_v35 = vor.u32 %v2344_v24, %v2343_v23  ;;  %v2737_v26 = vpack.c.bf16 %v10700_v18, %v10699_v45  ;;  %v493_v24 = vsel %vm12268_vm2, 0, %v492_v33  ;;  %v593_v23 = vsel %vm12954_vm8, 0, %v592_v38  ;;  %v10614_v45 = vld [vmem:[%s19327_s0 + $0x88] sm:$0xff] }
 0x34f   :  { %494 = vst [vmem:[#allocation2 + $0x660] sm:$0x1] %v493_v24  ;;  %594 = vst [vmem:[#allocation2 + $0x670] sm:$0x80] %v593_v23  ;;  %v498_v23 = vld [vmem:[#allocation2 + $0x6f0] sm:$0x1] }
 0x351   :  { %4624 = vmatmul.mubr.bf16.gmra.mrb[8].mxu0 %v14698_v0  ;;  %v2336_v0 = vrot.slane %v2334_v15, 7  ;;  %v15263_v15 = vsel %vm12319_vm5, %v2346_v35, %v2504_v39  ;;  %v2604_v39 = vpack.c.bf16 %v10614_v45, %v14824_v58  ;;  %v10586_v45 = vld [vmem:[%s19327_s0 + $0x198] sm:$0x7f] }
 0x352   :  { %4631 = vmatprep.mubr.bf16.mxu0 %v2600_v48  ;;  %v590_v48 = vsel %vm12954_vm8, 0, %v589_v3  ;;  %2506 = vst [vmem:[#allocation2 + $0x5d0] sm:$0xff] %v15263_v15 }
 0x353   :  { %v2339_v57 = vor.u32 %v2337_v22, %v2336_v0  ;;  %591 = vst [vmem:[#allocation2 + $0x628] sm:$0x80] %v590_v48  ;;  %v10580_v0 = vld [vmem:[%s19327_s0 + $0x168] sm:$0x7f]  ;;  %v2507_v48 = vld [vmem:[#allocation2 + $0x618] sm:$0xff] }
 0x354   :  { %v2197_v12 = vpack.c.bf16 %v10580_v0, %v15257_v19  ;;  %v495_v0 = vld [vmem:[#allocation2 + $0x6a8] sm:$0x1] }
 0x355   :  { %v15233_v43 = vsel %vm12319_vm5, %v2339_v57, %v2501_v52  ;;  %v10612_v57 = vld [vmem:[%s19327_s0 + $0x78] sm:$0xff]  ;;  %v496_v58 = vsel %vm12268_vm2, 0, %v495_v0 }
 0x356   :  { %2503 = vst [vmem:[#allocation2 + $0x588] sm:$0xff] %v15233_v43  ;;  %v2348_v52 = vshrl.u32 %v2197_v12, 16  ;;  %v2351_v20 = vshll.u32 %v2197_v12, 16  ;;  %v2603_v62 = vpack.c.bf16 %v10612_v57, %v14785_v56  ;;  %v2198_v56 = vpack.c.bf16 %v10582_v31, %v15282_v14  ;;  %v2810_v12 = vld [vmem:[#allocation2 + $0x670] sm:$0xff]  ;;  %v15319_v57 = vld [vmem:[%s19327_s0 + $0x180] sm:$0xff] }
 0x357   :  { %497 = vst [vmem:[#allocation2 + $0x6a8] sm:$0x1] %v496_v58  ;;  %v10706_v0 = vld [vmem:[%s19327_s0 + $0x199] sm:$0x7f]  ;;  %v10707_v58 = vld [vmem:[%s19327_s0 + $0x1a1] sm:$0xff] }
 0x358   :  { %v2355_v35 = vshrl.u32 %v2198_v56, 16 }
 0x359   :  { %4632 = vmatmul.mubr.bf16.gmra.mrb[12].mxu0 %v14731_v29  ;;  %v10697_v29 = vld [vmem:[%s19327_s0 + $0x151] sm:$0xff] }
 0x35a   :  { %4639 = vmatprep.mubr.bf16.mxu0 %v2601_v13  ;;  %v2736_v59 = vpack.c.bf16 %v10698_v53, %v10697_v29  ;;  %v2807_v13 = vld [vmem:[#allocation2 + $0x628] sm:$0xff]  ;;  %v595_v29 = vld [vmem:[#allocation2 + $0x6b8] sm:$0x80]  ;;  %v2357_v18 = vrot.slane %v2355_v35, 7  ;;  %v15344_v35 = vld [vmem:[%s19327_s0 + $0x190] sm:$0xff] }
 0x35b   :  { %v2808_v6 = vsel %vm12992_vm10, %v2737_v26, %v2807_v13  ;;  %v2510_v13 = vld [vmem:[#allocation2 + $0x660] sm:$0xff] }
 0x35c   :  { %v2805_v22 = vsel %vm12992_vm10, %v2736_v59, %v2804_v41  ;;  %2809 = vst [vmem:[#allocation2 + $0x628] sm:$0xff] %v2808_v6  ;;  %v2358_v59 = vshll.u32 %v2198_v56, 16  ;;  %v598_v56 = vld [vmem:[#allocation2 + $0x700] sm:$0x80] }
 0x35d   :  { %2806 = vst [vmem:[#allocation2 + $0x5e0] sm:$0xff] %v2805_v22  ;;  %11001 = vmatprep.mubr.bf16.mxu1 %v2805_v22  ;;  %v10704_v22 = vld [vmem:[%s19327_s0 + $0x189] sm:$0x7f] }
 0x35e   :  { %11002 = vmatmul.mubr.bf16.gmra.mrb[40].mxu1 %v2808_v6  ;;  %v2360_v41 = vor.u32 %v2358_v59, %v2357_v18  ;;  %v2739_v6 = vpack.c.bf16 %v10704_v22, %v10703_v36  ;;  %v499_v59 = vsel %vm12268_vm2, 0, %v498_v23  ;;  %v599_v18 = vsel %vm12954_vm8, 0, %v598_v56  ;;  %v10618_v36 = vld [vmem:[%s19327_s0 + $0xa8] sm:$0xff] }
 0x35f   :  { %500 = vst [vmem:[#allocation2 + $0x6f0] sm:$0x1] %v499_v59  ;;  %600 = vst [vmem:[#allocation2 + $0x700] sm:$0x80] %v599_v18  ;;  %v504_v18 = vld [vmem:[#allocation2 + $0x780] sm:$0x1] }
 0x361   :  { %4640 = vmatmul.mubr.bf16.gmra.mrb[16].mxu0 %v14764_v17  ;;  %v2350_v17 = vrot.slane %v2348_v52, 7  ;;  %v15325_v52 = vsel %vm12319_vm5, %v2360_v41, %v2510_v13  ;;  %v2606_v13 = vpack.c.bf16 %v10618_v36, %v14890_v49  ;;  %v10590_v36 = vld [vmem:[%s19327_s0 + $0x1b8] sm:$0x7f] }
 0x362   :  { %4647 = vmatprep.mubr.bf16.mxu0 %v2602_v8  ;;  %v596_v8 = vsel %vm12954_vm8, 0, %v595_v29  ;;  %2512 = vst [vmem:[#allocation2 + $0x660] sm:$0xff] %v15325_v52 }
 0x363   :  { %v2353_v3 = vor.u32 %v2351_v20, %v2350_v17  ;;  %597 = vst [vmem:[#allocation2 + $0x6b8] sm:$0x80] %v596_v8  ;;  %v10584_v17 = vld [vmem:[%s19327_s0 + $0x188] sm:$0x7f] }
 0x364   :  { %v2199_v33 = vpack.c.bf16 %v10584_v17, %v15319_v57  ;;  %v2513_v8 = vld [vmem:[#allocation2 + $0x6a8] sm:$0xff]  ;;  %v501_v17 = vld [vmem:[#allocation2 + $0x738] sm:$0x1] }
 0x365   :  { %v15295_v53 = vsel %vm12319_vm5, %v2353_v3, %v2507_v48  ;;  %v10616_v3 = vld [vmem:[%s19327_s0 + $0x98] sm:$0xff]  ;;  %v502_v49 = vsel %vm12268_vm2, 0, %v501_v17 }
 0x366   :  { %2509 = vst [vmem:[#allocation2 + $0x618] sm:$0xff] %v15295_v53  ;;  %v2362_v48 = vshrl.u32 %v2199_v33, 16  ;;  %v2365_v24 = vshll.u32 %v2199_v33, 16  ;;  %v2605_v31 = vpack.c.bf16 %v10616_v3, %v14851_v2  ;;  %v2200_v2 = vpack.c.bf16 %v10586_v45, %v15344_v35  ;;  %v2816_v33 = vld [vmem:[#allocation2 + $0x700] sm:$0xff]  ;;  %503 = vst [vmem:[#allocation2 + $0x738] sm:$0x1] %v502_v49 }
 0x367   :  { %v15381_v3 = vld [vmem:[%s19327_s0 + $0x1a0] sm:$0xff]  ;;  %v10710_v17 = vld [vmem:[%s19327_s0 + $0x1b9] sm:$0x7f] }
 0x368   :  { %v2369_v41 = vshrl.u32 %v2200_v2, 16  ;;  %v10711_v49 = vld [vmem:[%s19327_s0 + $0x1c1] sm:$0xff] }
 0x369   :  { %4648 = vmatmul.mubr.bf16.gmra.mrb[20].mxu0 %v14797_v61  ;;  %v10701_v61 = vld [vmem:[%s19327_s0 + $0x171] sm:$0xff] }
 0x36a   :  { %4655 = vmatprep.mubr.bf16.mxu0 %v2603_v62  ;;  %v2738_v26 = vpack.c.bf16 %v10702_v42, %v10701_v61  ;;  %v2813_v62 = vld [vmem:[#allocation2 + $0x6b8] sm:$0xff]  ;;  %v601_v61 = vld [vmem:[#allocation2 + $0x748] sm:$0x80]  ;;  %v2371_v22 = vrot.slane %v2369_v41, 7  ;;  %v15406_v41 = vld [vmem:[%s19327_s0 + $0x1b0] sm:$0xff] }
 0x36b   :  { %v2814_v38 = vsel %vm12992_vm10, %v2739_v6, %v2813_v62  ;;  %v2516_v62 = vld [vmem:[#allocation2 + $0x6f0] sm:$0xff] }
 0x36c   :  { %v2811_v20 = vsel %vm12992_vm10, %v2738_v26, %v2810_v12  ;;  %2815 = vst [vmem:[#allocation2 + $0x6b8] sm:$0xff] %v2814_v38  ;;  %v2372_v26 = vshll.u32 %v2200_v2, 16  ;;  %v604_v2 = vld [vmem:[#allocation2 + $0x790] sm:$0x80] }
 0x36d   :  { %2812 = vst [vmem:[#allocation2 + $0x670] sm:$0xff] %v2811_v20  ;;  %11005 = vmatprep.mubr.bf16.mxu1 %v2811_v20  ;;  %v10708_v20 = vld [vmem:[%s19327_s0 + $0x1a9] sm:$0x7f] }
 0x36e   :  { %11006 = vmatmul.mubr.bf16.gmra.mrb[44].mxu1 %v2814_v38  ;;  %v2374_v12 = vor.u32 %v2372_v26, %v2371_v22  ;;  %v2741_v38 = vpack.c.bf16 %v10708_v20, %v10707_v58  ;;  %v505_v26 = vsel %vm12268_vm2, 0, %v504_v18  ;;  %v605_v22 = vsel %vm12954_vm8, 0, %v604_v2  ;;  %v10622_v58 = vld [vmem:[%s19327_s0 + $0xc8] sm:$0xff] }
 0x36f   :  { %506 = vst [vmem:[#allocation2 + $0x780] sm:$0x1] %v505_v26  ;;  %606 = vst [vmem:[#allocation2 + $0x790] sm:$0x80] %v605_v22 }
 0x371   :  { %4656 = vmatmul.mubr.bf16.gmra.mrb[24].mxu0 %v14830_v60  ;;  %v2364_v60 = vrot.slane %v2362_v48, 7  ;;  %v15387_v48 = vsel %vm12319_vm5, %v2374_v12, %v2516_v62  ;;  %v2608_v62 = vpack.c.bf16 %v10622_v58, %v14956_v34  ;;  %v15472_v58 = vld [vmem:[%s19327_s0 + $0x1d0] sm:$0xff] }
 0x372   :  { %4663 = vmatprep.mubr.bf16.mxu0 %v2604_v39  ;;  %v602_v39 = vsel %vm12954_vm8, 0, %v601_v61  ;;  %2518 = vst [vmem:[#allocation2 + $0x6f0] sm:$0xff] %v15387_v48 }
 0x373   :  { %v2367_v29 = vor.u32 %v2365_v24, %v2364_v60  ;;  %603 = vst [vmem:[#allocation2 + $0x748] sm:$0x80] %v602_v39  ;;  %v10588_v60 = vld [vmem:[%s19327_s0 + $0x1a8] sm:$0x7f]  ;;  %v2519_v39 = vld [vmem:[#allocation2 + $0x738] sm:$0xff] }
 0x374   :  { %v2201_v23 = vpack.c.bf16 %v10588_v60, %v15381_v3  ;;  %v507_v60 = vld [vmem:[#allocation2 + $0x7c8] sm:$0x1] }
 0x375   :  { %v15357_v42 = vsel %vm12319_vm5, %v2367_v29, %v2513_v8  ;;  %v10620_v29 = vld [vmem:[%s19327_s0 + $0xb8] sm:$0xff]  ;;  %v508_v34 = vsel %vm12268_vm2, 0, %v507_v60 }
 0x376   :  { %2515 = vst [vmem:[#allocation2 + $0x6a8] sm:$0xff] %v15357_v42  ;;  %v2376_v8 = vshrl.u32 %v2201_v23, 16  ;;  %v2379_v59 = vshll.u32 %v2201_v23, 16  ;;  %v2607_v45 = vpack.c.bf16 %v10620_v29, %v14917_v1  ;;  %v2202_v1 = vpack.c.bf16 %v10590_v36, %v15406_v41  ;;  %v2822_v23 = vld [vmem:[#allocation2 + $0x790] sm:$0xff]  ;;  %v15443_v29 = vld [vmem:[%s19327_s0 + $0x1c0] sm:$0xff] }
 0x377   :  { %509 = vst [vmem:[#allocation2 + $0x7c8] sm:$0x1] %v508_v34  ;;  %v10714_v34 = vld [vmem:[%s19327_s0 + $0x1d9] sm:$0x7f] }
 0x378   :  { %v2383_v12 = vshrl.u32 %v2202_v1, 16 }
 0x379   :  { %4664 = vmatmul.mubr.bf16.gmra.mrb[28].mxu0 %v14863_v27  ;;  %v10705_v27 = vld [vmem:[%s19327_s0 + $0x191] sm:$0xff] }
 0x37a   :  { %4671 = vmatprep.mubr.bf16.mxu0 %v2605_v31  ;;  %v2740_v6 = vpack.c.bf16 %v10706_v0, %v10705_v27  ;;  %v2819_v31 = vld [vmem:[#allocation2 + $0x748] sm:$0xff]  ;;  %v607_v27 = vld [vmem:[#allocation2 + $0x7d8] sm:$0x80]  ;;  %v2385_v20 = vrot.slane %v2383_v12, 7 }
 0x37b   :  { %v2820_v56 = vsel %vm12992_vm10, %v2741_v38, %v2819_v31  ;;  %v2522_v31 = vld [vmem:[#allocation2 + $0x780] sm:$0xff] }
 0x37c   :  { %v2817_v24 = vsel %vm12992_vm10, %v2740_v6, %v2816_v33  ;;  %2821 = vst [vmem:[#allocation2 + $0x748] sm:$0xff] %v2820_v56  ;;  %v2386_v6 = vshll.u32 %v2202_v1, 16  ;;  %v510_v1 = vld [vmem:[#allocation2 + $0x810] sm:$0x1] }
 0x37d   :  { %2818 = vst [vmem:[#allocation2 + $0x700] sm:$0xff] %v2817_v24  ;;  %11009 = vmatprep.mubr.bf16.mxu1 %v2817_v24  ;;  %v10712_v24 = vld [vmem:[%s19327_s0 + $0x1c9] sm:$0x7f] }
 0x37e   :  { %11010 = vmatmul.mubr.bf16.gmra.mrb[48].mxu1 %v2820_v56  ;;  %v2388_v33 = vor.u32 %v2386_v6, %v2385_v20  ;;  %v2743_v56 = vpack.c.bf16 %v10712_v24, %v10711_v49  ;;  %v2525_v6 = vld [vmem:[#allocation2 + $0x7c8] sm:$0xff]  ;;  %v511_v20 = vsel %vm12268_vm2, 0, %v510_v1 }
 0x37f   :  { %512 = vst [vmem:[#allocation2 + $0x810] sm:$0x1] %v511_v20 }
 0x381   :  { %4672 = vmatmul.mubr.bf16.gmra.mrb[32].mxu0 %v14896_v4  ;;  %v2378_v4 = vrot.slane %v2376_v8, 7  ;;  %v15449_v8 = vsel %vm12319_vm5, %v2388_v33, %v2522_v31  ;;  %v613_v33 = vld [vmem:[#allocation2 + $0x868] sm:$0x80] }
 0x382   :  { %4679 = vmatprep.mubr.bf16.mxu0 %v2606_v13  ;;  %v608_v13 = vsel %vm12954_vm8, 0, %v607_v27  ;;  %2524 = vst [vmem:[#allocation2 + $0x780] sm:$0xff] %v15449_v8  ;;  %v610_v27 = vld [vmem:[#allocation2 + $0x820] sm:$0x80]  ;;  %v614_v24 = vsel %vm12954_vm8, 0, %v613_v33  ;;  %v10626_v31 = vld [vmem:[%s19327_s0 + $0xe8] sm:$0xff] }
 0x383   :  { %v2381_v61 = vor.u32 %v2379_v59, %v2378_v4  ;;  %609 = vst [vmem:[#allocation2 + $0x7d8] sm:$0x80] %v608_v13  ;;  %v10592_v4 = vld [vmem:[%s19327_s0 + $0x1c8] sm:$0x7f]  ;;  %615 = vst [vmem:[#allocation2 + $0x868] sm:$0x80] %v614_v24 }
 0x384   :  { %v2203_v18 = vpack.c.bf16 %v10592_v4, %v15443_v29 }
 0x385   :  { %v15419_v0 = vsel %vm12319_vm5, %v2381_v61, %v2519_v39  ;;  %v10624_v61 = vld [vmem:[%s19327_s0 + $0xd8] sm:$0xff] }
 0x386   :  { %2521 = vst [vmem:[#allocation2 + $0x738] sm:$0xff] %v15419_v0  ;;  %v2390_v39 = vshrl.u32 %v2203_v18, 16  ;;  %v2393_v26 = vshll.u32 %v2203_v18, 16  ;;  %v2609_v36 = vpack.c.bf16 %v10624_v61, %v14983_v50  ;;  %v10594_v50 = vld [vmem:[%s19327_s0 + $0x1d8] sm:$0x7f]  ;;  %v10715_v18 = vld [vmem:[%s19327_s0 + $0x1e1] sm:$0xff] }
 0x387   :  { %v513_v61 = vld [vmem:[#allocation2 + $0x858] sm:$0x1] }
 0x389   :  { %4680 = vmatmul.mubr.bf16.gmra.mrb[36].mxu0 %v14929_v11  ;;  %v10709_v11 = vld [vmem:[%s19327_s0 + $0x1b1] sm:$0xff] }
 0x38a   :  { %4687 = vmatprep.mubr.bf16.mxu0 %v2607_v45  ;;  %v2742_v38 = vpack.c.bf16 %v10710_v17, %v10709_v11  ;;  %v2825_v45 = vld [vmem:[#allocation2 + $0x7d8] sm:$0xff]  ;;  %v2204_v17 = vpack.c.bf16 %v10594_v50, %v15472_v58 }
 0x38b   :  { %v2826_v2 = vsel %vm12992_vm10, %v2743_v56, %v2825_v45  ;;  %v10713_v56 = vld [vmem:[%s19327_s0 + $0x1d1] sm:$0xff] }
 0x38c   :  { %v2823_v59 = vsel %vm12992_vm10, %v2742_v38, %v2822_v23  ;;  %2827 = vst [vmem:[#allocation2 + $0x7d8] sm:$0xff] %v2826_v2  ;;  %v2397_v60 = vshrl.u32 %v2204_v17, 16  ;;  %v2400_v23 = vshll.u32 %v2204_v17, 16  ;;  %v2744_v45 = vpack.c.bf16 %v10714_v34, %v10713_v56  ;;  %v10628_v50 = vld [vmem:[%s19327_s0 + $0xf8] sm:$0xff] }
 0x38d   :  { %2824 = vst [vmem:[#allocation2 + $0x790] sm:$0xff] %v2823_v59  ;;  %11013 = vmatprep.mubr.bf16.mxu1 %v2823_v59  ;;  %v2610_v59 = vpack.c.bf16 %v10626_v31, %v15022_v10  ;;  %v2611_v33 = vpack.c.bf16 %v10628_v50, %v15049_v21  ;;  %v516_v31 = vld [vmem:[#allocation2 + $0x8a0] sm:$0x1] }
 0x38e   :  { %11014 = vmatmul.mubr.bf16.gmra.mrb[52].mxu1 %v2826_v2  ;;  %v10716_v2 = vld [vmem:[%s19327_s0 + $0x1e9] sm:$0x7f]  ;;  %v517_v56 = vsel %vm12268_vm2, 0, %v516_v31  ;;  %v520_v31 = vsel %vm12268_vm2, 0, %v519_v63 }
 0x38f   :  { %518 = vst [vmem:[#allocation2 + $0x8a0] sm:$0x1] %v517_v56  ;;  %521 = vst [vmem:[#allocation2 + $0x8e8] sm:$0x1] %v520_v31  ;;  %v2978_v56 = vld [vmem:[#allocation2 + $0x468] sm:$0xff] }
 0x391   :  { %4688 = vmatmul.mubr.bf16.gmra.mrb[40].mxu0 %v14962_v37  ;;  %v2392_v37 = vrot.slane %v2390_v39, 7  ;;  %v2745_v39 = vpack.c.bf16 %v10716_v2, %v10715_v18  ;;  %v15551_v18 = vld [vmem:[%s19327_s0 + $0x1f0] sm:$0xff]  ;;  %v10598_v2 = vld [vmem:[%s19327_s0 + $0x1f8] sm:$0x7f] }
 0x392   :  { %4695 = vmatprep.mubr.bf16.mxu0 %v2608_v62  ;;  %v15465_v22 = vpop.f32.mrb[0].mxu1  ;;  %v611_v62 = vsel %vm12954_vm8, 0, %v610_v27  ;;  %v2831_v27 = vld [vmem:[#allocation2 + $0x868] sm:$0xff] }
 0x393   :  { %v15467_v13 = vpop.f32.mrb[1].mxu1  ;;  %v2395_v12 = vor.u32 %v2393_v26, %v2392_v37  ;;  %612 = vst [vmem:[#allocation2 + $0x820] sm:$0x80] %v611_v62  ;;  %v514_v26 = vsel %vm12268_vm2, 0, %v513_v61  ;;  %v2528_v37 = vld [vmem:[#allocation2 + $0x810] sm:$0xff] }
 0x394   :  { %v15479_v11 = vpop.f32.mrb[2].mxu1  ;;  %515 = vst [vmem:[#allocation2 + $0x858] sm:$0x1] %v514_v26 }
 0x395   :  { %v15485_v38 = vpop.f32.mrb[3].mxu1  ;;  %v15489_v49 = vsel %vm12319_vm5, %v2395_v12, %v2525_v6  ;;  %v15522_v12 = vld [vmem:[%s19327_s0 + $0x1e0] sm:$0xff]  ;;  %v10596_v6 = vld [vmem:[%s19327_s0 + $0x1e8] sm:$0x7f] }
 0x396   :  { %2527 = vst [vmem:[#allocation2 + $0x7c8] sm:$0xff] %v15489_v49  ;;  %v2205_v20 = vpack.c.bf16 %v10596_v6, %v15522_v12  ;;  %v2534_v50 = vld [vmem:[#allocation2 + $0x8a0] sm:$0xff] }
 0x398   :  { %v2404_v17 = vshrl.u32 %v2205_v20, 16  ;;  %v2407_v62 = vshll.u32 %v2205_v20, 16 }
 0x399   :  { %4696 = vmatmul.mubr.bf16.gmra.mrb[44].mxu0 %v14995_v25  ;;  %v2399_v25 = vrot.slane %v2397_v60, 7 }
 0x39a   :  { %4703 = vmatprep.mubr.bf16.mxu0 %v2609_v36  ;;  %v2828_v36 = vld [vmem:[#allocation2 + $0x820] sm:$0xff]  ;;  %v2406_v60 = vrot.slane %v2404_v17, 7 }
 0x39b   :  { %v2402_v4 = vor.u32 %v2400_v23, %v2399_v25  ;;  %v2829_v1 = vsel %vm12992_vm10, %v2744_v45, %v2828_v36  ;;  %v616_v25 = vld [vmem:[#allocation2 + $0x8b0] sm:$0x80]  ;;  %v2531_v45 = vld [vmem:[#allocation2 + $0x858] sm:$0xff] }
 0x39c   :  { %2830 = vst [vmem:[#allocation2 + $0x820] sm:$0xff] %v2829_v1  ;;  %11017 = vmatprep.mubr.bf16.mxu1 %v2829_v1  ;;  %v617_v34 = vsel %vm12954_vm8, 0, %v616_v25  ;;  %v10717_v1 = vld [vmem:[%s19327_s0 + $0x1f1] sm:$0xff] }
 0x39d   :  { %v15515_v10 = vsel %vm12319_vm5, %v2402_v4, %v2528_v37  ;;  %v2409_v4 = vor.u32 %v2407_v62, %v2406_v60  ;;  %618 = vst [vmem:[#allocation2 + $0x8b0] sm:$0x80] %v617_v34  ;;  %v15571_v62 = vld [vmem:[#allocation2 + $0x8] sm:$0xff] }
 0x39e   :  { %2530 = vst [vmem:[#allocation2 + $0x810] sm:$0xff] %v15515_v10 }
 0x39f   :  { %v15558_v61 = vsel %vm12319_vm5, %v2409_v4, %v2531_v45 }
 0x3a0   :  { %2533 = vst [vmem:[#allocation2 + $0x858] sm:$0xff] %v15558_v61 }
 0x3a1   :  { %4704 = vmatmul.mubr.bf16.gmra.mrb[48].mxu0 %v15028_v9  ;;  %v2832_v9 = vsel %vm12992_vm10, %v2745_v39, %v2831_v27  ;;  %v2206_v39 = vpack.c.bf16 %v10598_v2, %v15551_v18  ;;  %v10718_v27 = vld [vmem:[%s19327_s0 + $0x1f9] sm:$0x7f] }
 0x3a2   :  { %4711 = vmatprep.mubr.bf16.mxu0 %v2610_v59  ;;  %2833 = vst [vmem:[#allocation2 + $0x868] sm:$0xff] %v2832_v9  ;;  %11018 = vmatmul.mubr.bf16.gmra.mrb[56].mxu1 %v2832_v9  ;;  %v15535_v24 = vpop.f32.mrb[4].mxu1  ;;  %v2746_v9 = vpack.c.bf16 %v10718_v27, %v10717_v1 }
 0x3a3   :  { %v15537_v23 = vpop.f32.mrb[5].mxu1  ;;  %v2411_v37 = vshrl.u32 %v2206_v39, 16  ;;  %v2414_v36 = vshll.u32 %v2206_v39, 16  ;;  %v10632_v39 = vld [vmem:[%s19327_s0 + $0x128] sm:$0xff] }
 0x3a4   :  { %v15543_v59 = vpop.f32.mrb[6].mxu1  ;;  %v2834_v17 = vld [vmem:[#allocation2 + $0x8b0] sm:$0xff] }
 0x3a5   :  { %v15546_v21 = vpop.f32.mrb[7].mxu1  ;;  %v2413_v6 = vrot.slane %v2411_v37, 7  ;;  %v2835_v60 = vsel %vm12992_vm10, %v2746_v9, %v2834_v17 }
 0x3a6   :  { %2836 = vst [vmem:[#allocation2 + $0x8b0] sm:$0xff] %v2835_v60  ;;  %11021 = vmatprep.mubr.bf16.mxu1 %v2835_v60 }
 0x3a7   :  { %v2416_v20 = vor.u32 %v2414_v36, %v2413_v6 }
 0x3a9   :  { %4712 = vmatmul.mubr.bf16.gmra.mrb[52].mxu0 %v15061_v40  ;;  %v619_v40 = vld [vmem:[#allocation2 + $0x8f8] sm:$0x80] }
 0x3aa   :  { %4719 = vmatprep.mubr.bf16.mxu0 %v2611_v33  ;;  %v620_v26 = vsel %vm12954_vm8, 0, %v619_v40  ;;  %v15576_v33 = vsel %vm12319_vm5, %v2416_v20, %v2534_v50  ;;  %v2613_v40 = vpack.c.bf16 %v10632_v39, %v15133_v54  ;;  %v10636_v54 = vld [vmem:[%s19327_s0 + $0x148] sm:$0xff] }
 0x3ab   :  { %621 = vst [vmem:[#allocation2 + $0x8f8] sm:$0x80] %v620_v26  ;;  %2536 = vst [vmem:[#allocation2 + $0x8a0] sm:$0xff] %v15576_v33 }
 0x3b1   :  { %4720 = vmatmul.mubr.bf16.gmra.mrb[56].mxu0 %v15081_v55  ;;  %v10630_v55 = vld [vmem:[%s19327_s0 + $0x118] sm:$0xff] }
 0x3b2   :  { %4727 = vmatprep.mubr.bf16.mxu0 %v15571_v62  ;;  %v3124_v25 = vld [vmem:[#allocation2 + $0x8f8] sm:$0xff]  ;;  %v2612_v34 = vpack.c.bf16 %v10630_v55, %v15102_v5  ;;  %v15588_v4 = vpop.f32.mrb[8].mxu1 }
 0x3b3   :  { %11022 = vmatmul.mubr.bf16.gmra.mrb[60].mxu1 %v3124_v25  ;;  %v15590_v7 = vpop.f32.mrb[9].mxu1  ;;  %v10634_v5 = vld [vmem:[%s19327_s0 + $0x138] sm:$0xff] }
 0x3b4   :  { %8930 = vmatprep.mubr.bf16.mxu1 %v15571_v62  ;;  %v15592_v45 = vpop.f32.mrb[10].mxu1  ;;  %v2614_v26 = vpack.c.bf16 %v10634_v5, %v15158_v16  ;;  %v10638_v16 = vld [vmem:[%s19327_s0 + $0x158] sm:$0xff] }
 0x3b5   :  { %v15594_v2 = vpop.f32.mrb[11].mxu1  ;;  %v2616_v6 = vpack.c.bf16 %v10638_v16, %v15220_v51  ;;  %v10642_v51 = vld [vmem:[%s19327_s0 + $0x178] sm:$0xff] }
 0x3b6   :  { %v2618_v17 = vpack.c.bf16 %v10642_v51, %v15282_v14  ;;  %v10646_v14 = vld [vmem:[%s19327_s0 + $0x198] sm:$0xff] }
 0x3b7   :  { %v2620_v55 = vpack.c.bf16 %v10646_v14, %v15344_v35  ;;  %v10650_v35 = vld [vmem:[%s19327_s0 + $0x1b8] sm:$0xff] }
 0x3b9   :  { %4728 = vmatmul.mubr.bf16.gmra.mrb[60].mxu0 %v2978_v56 }
 0x3ba   :  { %4735 = vmatprep.mubr.bf16.mxu0 %v2612_v34 }
 0x3c1   :  { %4736 = vmatmul.mubr.bf16.gmra.mrb[64].mxu0 %v15139_v32  ;;  %v2615_v32 = vpack.c.bf16 %v10636_v54, %v15195_v30  ;;  %v10640_v30 = vld [vmem:[%s19327_s0 + $0x168] sm:$0xff]  ;;  %v10654_v54 = vld [vmem:[%s19327_s0 + $0x1d8] sm:$0xff] }
 0x3c2   :  { %4743 = vmatprep.mubr.bf16.mxu0 %v2613_v40  ;;  %v15605_v37 = vpop.f32.mrb[12].mxu1 }
 0x3c3   :  { %v15607_v36 = vpop.f32.mrb[13].mxu1 }
 0x3c4   :  { %v15609_v1 = vpop.f32.mrb[14].mxu1 }
 0x3c5   :  { %v15612_v27 = vpop.f32.mrb[15].mxu1 }
 0x3c9   :  { %4744 = vmatmul.mubr.bf16.gmra.mrb[68].mxu0 %v15171_v46 }
 0x3ca   :  { %4751 = vmatprep.mubr.bf16.mxu0 %v2614_v26 }
 0x3d1   :  { %4752 = vmatmul.mubr.bf16.gmra.mrb[72].mxu0 %v15201_v47  ;;  %v2617_v47 = vpack.c.bf16 %v10640_v30, %v15257_v19  ;;  %v10644_v19 = vld [vmem:[%s19327_s0 + $0x188] sm:$0xff]  ;;  %v2624_v30 = vpack.c.bf16 %v10654_v54, %v15472_v58 }
 0x3d2   :  { %4759 = vmatprep.mubr.bf16.mxu0 %v2615_v32  ;;  %v15623_v9 = vpop.f32.mrb[16].mxu1  ;;  %v10656_v58 = vld [vmem:[%s19327_s0 + $0x1e8] sm:$0xff] }
 0x3d3   :  { %v15625_v46 = vpop.f32.mrb[17].mxu1 }
 0x3d4   :  { %v15627_v20 = vpop.f32.mrb[18].mxu1 }
 0x3d5   :  { %v15630_v50 = vpop.f32.mrb[19].mxu1 }
 0x3d9   :  { %4760 = vmatmul.mubr.bf16.gmra.mrb[76].mxu0 %v15233_v43 }
 0x3da   :  { %4767 = vmatprep.mubr.bf16.mxu0 %v2616_v6 }
 0x3e1   :  { %4768 = vmatmul.mubr.bf16.gmra.mrb[80].mxu0 %v15263_v15  ;;  %v2619_v15 = vpack.c.bf16 %v10644_v19, %v15319_v57  ;;  %v10648_v57 = vld [vmem:[%s19327_s0 + $0x1a8] sm:$0xff] }
 0x3e2   :  { %4775 = vmatprep.mubr.bf16.mxu0 %v2617_v47  ;;  %v15641_v63 = vpop.f32.mrb[20].mxu1 }
 0x3e3   :  { %v15643_v43 = vpop.f32.mrb[21].mxu1 }
 0x3e4   :  { %v15645_v60 = vpop.f32.mrb[22].mxu1 }
 0x3e5   :  { %v15648_v31 = vpop.f32.mrb[23].mxu1 }
 0x3e9   :  { %4776 = vmatmul.mubr.bf16.gmra.mrb[84].mxu0 %v15295_v53 }
 0x3ea   :  { %4783 = vmatprep.mubr.bf16.mxu0 %v2618_v17 }
 0x3f1   :  { %4784 = vmatmul.mubr.bf16.gmra.mrb[88].mxu0 %v15325_v52  ;;  %v2621_v52 = vpack.c.bf16 %v10648_v57, %v15381_v3  ;;  %v10652_v3 = vld [vmem:[%s19327_s0 + $0x1c8] sm:$0xff] }
 0x3f2   :  { %4791 = vmatprep.mubr.bf16.mxu0 %v2619_v15  ;;  %v15659_v25 = vpop.f32.mrb[24].mxu1 }
 0x3f3   :  { %v15661_v53 = vpop.f32.mrb[25].mxu1 }
 0x3f4   :  { %v15663_v56 = vpop.f32.mrb[26].mxu1 }
 0x3f5   :  { %v15666_v34 = vpop.f32.mrb[27].mxu1 }
 0x3f9   :  { %4792 = vmatmul.mubr.bf16.gmra.mrb[92].mxu0 %v15357_v42  ;;  %v2622_v42 = vpack.c.bf16 %v10650_v35, %v15406_v41  ;;  %v15694_v41 = vld [vmem:[%s19328_s2] ss:$0 sm:$0xff]  ;;  %v2625_v35 = vpack.c.bf16 %v10656_v58, %v15522_v12 }
 0x3fa   :  { %4799 = vmatprep.mubr.bf16.mxu0 %v2620_v55 }
 0x401   :  { %4800 = vmatmul.mubr.bf16.gmra.mrb[96].mxu0 %v15387_v48  ;;  %v2623_v48 = vpack.c.bf16 %v10652_v3, %v15443_v29 }
 0x402   :  { %4807 = vmatprep.mubr.bf16.mxu0 %v2621_v52  ;;  %v15676_v39 = vpop.f32.mrb[28].mxu1 }
 0x403   :  { %v15679_v40 = vpop.f32.mrb[29].mxu1 }
 0x404   :  { %v15681_v5 = vpop.f32.mrb[30].mxu1 }
 0x405   :  { %v15683_v26 = vpop.f32.mrb[31].mxu1 }
 0x409   :  { %4808 = vmatmul.mubr.bf16.gmra.mrb[100].mxu0 %v15419_v0 }
 0x40a   :  { %4815 = vmatprep.mubr.bf16.mxu0 %v2622_v42 }
 0x40e   :  { %v15701_v29 = vpop.f32.mrb[32].mxu1 }
 0x40f   :  { %v15707_v17 = vpop.f32.mrb[33].mxu1 }
 0x410   :  { %v15709_v19 = vpop.f32.mrb[34].mxu1 }
 0x411   :  { %4816 = vmatmul.mubr.bf16.gmra.mrb[104].mxu0 %v15449_v8  ;;  %v15715_v14 = vpop.f32.mrb[35].mxu1 }
 0x412   :  { %4823 = vmatprep.mubr.bf16.mxu0 %v2623_v48  ;;  %v10658_v48 = vld [vmem:[%s19327_s0 + $0x1f8] sm:$0xff] }
 0x414   :  { %v4609_v0 = vpop.f32.mrb[0].mxu0 }
 0x415   :  { %v11121_v32 = vadd.f32 %v15694_v41, %v4609_v0  ;;  %v4611_v16 = vpop.f32.mrb[1].mxu0 }
 0x416   :  { %v4612_v6 = vpop.f32.mrb[2].mxu0 }
 0x417   :  { %v11122_v8 = vadd.f32 %v15694_v41, %v4612_v6  ;;  %v15705_v47 = vadd.f32 %v11121_v32, %v15467_v13  ;;  %v4614_v51 = vpop.f32.mrb[3].mxu0 }
 0x419   :  { %v15712_v15 = vadd.f32 %v11122_v8, %v15485_v38  ;;  %4824 = vmatmul.mubr.bf16.gmra.mrb[108].mxu0 %v15489_v49 }
 0x41a   :  { %4831 = vmatprep.mubr.bf16.mxu0 %v2624_v30 }
 0x41c   :  { %v4617_v55 = vpop.f32.mrb[4].mxu0 }
 0x41d   :  { %v11123_v13 = vadd.f32 %v15694_v41, %v4617_v55  ;;  %v4619_v57 = vpop.f32.mrb[5].mxu0 }
 0x41e   :  { %v4620_v52 = vpop.f32.mrb[6].mxu0 }
 0x41f   :  { %v15723_v42 = vadd.f32 %v11123_v13, %v15465_v22  ;;  %v11124_v38 = vadd.f32 %v15694_v41, %v4620_v52  ;;  %v4622_v49 = vpop.f32.mrb[7].mxu0  ;;  %v2626_v22 = vpack.c.bf16 %v10658_v48, %v15551_v18 }
 0x421   :  { %v15727_v3 = vadd.f32 %v11124_v38, %v15479_v11  ;;  %4832 = vmatmul.mubr.bf16.gmra.mrb[112].mxu0 %v15515_v10  ;;  %v15735_v16 = vpop.f32.mrb[36].mxu1 }
 0x422   :  { %4839 = vmatprep.mubr.bf16.mxu0 %v2625_v35  ;;  %v15741_v30 = vpop.f32.mrb[37].mxu1 }
 0x423   :  { %v15743_v8 = vpop.f32.mrb[38].mxu1 }
 0x424   :  { %v4625_v54 = vpop.f32.mrb[8].mxu0  ;;  %v15749_v58 = vpop.f32.mrb[39].mxu1 }
 0x425   :  { %v11125_v0 = vadd.f32 %v15694_v41, %v4625_v54  ;;  %v4627_v12 = vpop.f32.mrb[9].mxu0  ;;  %v3122_v54 = vld [vmem:[#allocation2 + $0x8e8] sm:$0xff] }
 0x426   :  { %v4628_v32 = vpop.f32.mrb[10].mxu0 }
 0x427   :  { %v11126_v6 = vadd.f32 %v15694_v41, %v4628_v32  ;;  %v15739_v11 = vadd.f32 %v11125_v0, %v15537_v23  ;;  %v4630_v10 = vpop.f32.mrb[11].mxu0 }
 0x429   :  { %v15746_v51 = vadd.f32 %v11126_v6, %v15546_v21  ;;  %4840 = vmatmul.mubr.bf16.gmra.mrb[116].mxu0 %v15558_v61 }
 0x42a   :  { %4847 = vmatprep.mubr.bf16.mxu0 %v2626_v22 }
 0x42c   :  { %v4633_v18 = vpop.f32.mrb[12].mxu0 }
 0x42d   :  { %v11127_v55 = vadd.f32 %v15694_v41, %v4633_v18  ;;  %v4635_v13 = vpop.f32.mrb[13].mxu0 }
 0x42e   :  { %v4636_v57 = vpop.f32.mrb[14].mxu0 }
 0x42f   :  { %v15753_v23 = vadd.f32 %v11127_v55, %v15535_v24  ;;  %v11128_v52 = vadd.f32 %v15694_v41, %v4636_v57  ;;  %v4638_v35 = vpop.f32.mrb[15].mxu0 }
 0x431   :  { %v15757_v38 = vadd.f32 %v11128_v52, %v15543_v59  ;;  %4848 = vmatmul.mubr.bf16.gmra.mrb[120].mxu0 %v15576_v33  ;;  %v15762_v0 = vpop.f32.mrb[40].mxu1 }
 0x432   :  { %4855 = vmatprep.mubr.bf16.mxu0 %v15571_v62  ;;  %v15768_v59 = vpop.f32.mrb[41].mxu1 }
 0x433   :  { %v15770_v22 = vpop.f32.mrb[42].mxu1 }
 0x434   :  { %v4641_v21 = vpop.f32.mrb[16].mxu0  ;;  %v15775_v6 = vpop.f32.mrb[43].mxu1 }
 0x435   :  { %v11129_v61 = vadd.f32 %v15694_v41, %v4641_v21  ;;  %v4643_v49 = vpop.f32.mrb[17].mxu0 }
 0x436   :  { %v4644_v48 = vpop.f32.mrb[18].mxu0 }
 0x437   :  { %v11130_v24 = vadd.f32 %v15694_v41, %v4644_v48  ;;  %v15766_v12 = vadd.f32 %v11129_v61, %v15590_v7  ;;  %v4646_v32 = vpop.f32.mrb[19].mxu0 }
 0x439   :  { %v15773_v33 = vadd.f32 %v11130_v24, %v15594_v2  ;;  %4856 = vmatmul.mubr.bf16.gmra.mrb[124].mxu0 %v3122_v54 }
 0x43c   :  { %v4649_v10 = vpop.f32.mrb[20].mxu0 }
 0x43d   :  { %v11131_v18 = vadd.f32 %v15694_v41, %v4649_v10  ;;  %v4651_v55 = vpop.f32.mrb[21].mxu0 }
 0x43e   :  { %v4652_v13 = vpop.f32.mrb[22].mxu0 }
 0x43f   :  { %v15779_v57 = vadd.f32 %v11131_v18, %v15588_v4  ;;  %v11132_v7 = vadd.f32 %v15694_v41, %v4652_v13  ;;  %v4654_v52 = vpop.f32.mrb[23].mxu0 }
 0x441   :  { %v15783_v35 = vadd.f32 %v11132_v7, %v15592_v45  ;;  %v15786_v48 = vpop.f32.mrb[44].mxu1 }
 0x442   :  { %v15792_v32 = vpop.f32.mrb[45].mxu1 }
 0x443   :  { %v15794_v10 = vpop.f32.mrb[46].mxu1 }
 0x444   :  { %v4657_v21 = vpop.f32.mrb[24].mxu0  ;;  %v15799_v18 = vpop.f32.mrb[47].mxu1 }
 0x445   :  { %v11133_v2 = vadd.f32 %v15694_v41, %v4657_v21  ;;  %v4659_v61 = vpop.f32.mrb[25].mxu0 }
 0x446   :  { %v4660_v49 = vpop.f32.mrb[26].mxu0 }
 0x447   :  { %v11134_v54 = vadd.f32 %v15694_v41, %v4660_v49  ;;  %v15790_v24 = vadd.f32 %v11133_v2, %v15607_v36  ;;  %v4662_v4 = vpop.f32.mrb[27].mxu0 }
 0x449   :  { %v15797_v45 = vadd.f32 %v11134_v54, %v15612_v27  ;;  %v12090_v27 = vld [vmem:[%s19329_s5] sm:$0xff]  }
 0x44a   :  { %8899 = vmatpush1.bf16.msra.mxu1 %v12090_v27  ;;  %v15829_v27 = vmax.f32 %v15705_v47, 0.0 }
 0x44b   :  { %8900 = vmatprep.subr.bf16.mxu1 %v15571_v62 }
 0x44c   :  { %v4665_v55 = vpop.f32.mrb[28].mxu0  ;;  %19540 = vst [vmem:[#allocation9_spill] sm:$0xff] %v15829_v27 }
 0x44d   :  { %v11135_v13 = vadd.f32 %v15694_v41, %v4665_v55  ;;  %v4667_v7 = vpop.f32.mrb[29].mxu0 }
 0x44e   :  { %v4668_v52 = vpop.f32.mrb[30].mxu0 }
 0x44f   :  { %v15803_v21 = vadd.f32 %v11135_v13, %v15605_v37  ;;  %v11136_v36 = vadd.f32 %v15694_v41, %v4668_v52  ;;  %v4670_v2 = vpop.f32.mrb[31].mxu0  ;;  %v15817_v13 = vmax.f32 %v15712_v15, 0.0  ;;  %v15834_v15 = vmax.f32 %v15723_v42, 0.0 }
 0x451   :  { %v15807_v61 = vadd.f32 %v11136_v36, %v15609_v1  ;;  %v15814_v37 = vpop.f32.mrb[48].mxu1  ;;  %19538 = vst [vmem:[#allocation7_spill] sm:$0xff] %v15817_v13  ;;  %v12091_v36 = vld [vmem:[%s19329_s5 + $0x8] sm:$0xff]   ;;  %v5217_v47 = vadd.f32 %v15817_v13, %v15829_v27  ;;  %v5289_v42 = vmul.f32 %v15834_v15, %v15834_v15 }
 0x452   :  { %19537 = vst [vmem:[#allocation6_spill] sm:$0xff] %v15814_v37  ;;  %v15826_v2 = vpop.f32.mrb[49].mxu1  ;;  %8901 = vmatpush1.bf16.msra.mxu1 %v12091_v36  ;;  %v15856_v37 = vmax.f32 %v15739_v11, 0.0 }
 0x453   :  { %19539 = vst [vmem:[#allocation8_spill] sm:$0xff] %v15826_v2  ;;  %8902 = vmatprep.subr.bf16.mxu1 %v15571_v62  ;;  %v5218_v44 = vadd.f32 %v5217_v47, %v15834_v15  ;;  %v15874_v47 = vmax.f32 %v15746_v51, 0.0 }
 0x454   :  { %v4673_v49 = vpop.f32.mrb[32].mxu0  ;;  %19543 = vst [vmem:[#allocation12_spill] sm:$0xff] %v15856_v37 }
 0x455   :  { %v11137_v54 = vadd.f32 %v15694_v41, %v4673_v49  ;;  %v4675_v4 = vpop.f32.mrb[33].mxu0  ;;  %v15831_v49 = vpop.f32.mrb[50].mxu1  ;;  %19544 = vst [vmem:[#allocation13_spill] sm:$0xff] %v15874_v47  ;;  %v5292_v51 = vmul.f32 %v15874_v47, %v15874_v47 }
 0x456   :  { %v4676_v55 = vpop.f32.mrb[34].mxu0  ;;  %19541 = vst [vmem:[#allocation10_spill] sm:$0xff] %v15831_v49 }
 0x457   :  { %v11138_v1 = vadd.f32 %v15694_v41, %v4676_v55  ;;  %v15821_v7 = vadd.f32 %v11137_v54, %v15625_v46  ;;  %v4678_v52 = vpop.f32.mrb[35].mxu0  ;;  %v15839_v46 = vpop.f32.mrb[51].mxu1  ;;  %v5288_v54 = vmul.f32 %v15817_v13, %v15817_v13 }
 0x458   :  { %19542 = vst [vmem:[#allocation11_spill] sm:$0xff] %v15839_v46  ;;  %v5287_v52 = vmul.f32 %v15829_v27, %v15829_v27 }
 0x459   :  { %v15837_v4 = vadd.f32 %v11138_v1, %v15630_v50  ;;  %v15851_v50 = vmax.f32 %v15727_v3, 0.0 }
 0x45a   :  { %v5351_v49 = vadd.f32 %v5288_v54, %v5287_v52  ;;  %v12092_v54 = vld [vmem:[%s19329_s5 + $0x10] sm:$0xff]  }
 0x45b   :  { %v5290_v3 = vmul.f32 %v15851_v50, %v15851_v50  ;;  %v5219_v11 = vadd.f32 %v5218_v44, %v15851_v50  ;;  %8903 = vmatpush1.bf16.msra.mxu1 %v12092_v54 }
 0x45c   :  { %v4681_v55 = vpop.f32.mrb[36].mxu0  ;;  %v5352_v2 = vadd.f32 %v5351_v49, %v5289_v42  ;;  %8904 = vmatprep.subr.bf16.mxu1 %v15571_v62 }
 0x45d   :  { %v11139_v1 = vadd.f32 %v15694_v41, %v4681_v55  ;;  %v4683_v36 = vpop.f32.mrb[37].mxu0 }
 0x45e   :  { %v4684_v28 = vpop.f32.mrb[38].mxu0 }
 0x45f   :  { %v15859_v13 = vadd.f32 %v11139_v1, %v15623_v9  ;;  %v11140_v27 = vadd.f32 %v15694_v41, %v4684_v28  ;;  %v4686_v46 = vpop.f32.mrb[39].mxu0  ;;  %v5291_v9 = vmul.f32 %v15856_v37, %v15856_v37  ;;  %v5220_v28 = vadd.f32 %v5219_v11, %v15856_v37 }
 0x461   :  { %v15865_v55 = vadd.f32 %v11140_v27, %v15627_v20  ;;  %v5353_v20 = vadd.f32 %v5352_v2, %v5290_v3  ;;  %v15879_v27 = vmax.f32 %v15753_v23, 0.0  ;;  %v15882_v42 = vpop.f32.mrb[52].mxu1  ;;  %v12093_v23 = vld [vmem:[%s19329_s5 + $0x18] sm:$0xff]   ;;  %v5221_v3 = vadd.f32 %v5220_v28, %v15874_v47 }
 0x462   :  { %v15893_v2 = vpop.f32.mrb[53].mxu1  ;;  %8905 = vmatpush1.bf16.msra.mxu1 %v12093_v23  ;;  %v15911_v28 = vmax.f32 %v15766_v12, 0.0 }
 0x463   :  { %19545 = vst [vmem:[#allocation14_spill] sm:$0xff] %v15879_v27  ;;  %v5354_v1 = vadd.f32 %v5353_v20, %v5291_v9  ;;  %v5293_v9 = vmul.f32 %v15879_v27, %v15879_v27  ;;  %v15901_v20 = vmax.f32 %v15757_v38, 0.0  ;;  %8906 = vmatprep.subr.bf16.mxu1 %v15571_v62 }
 0x464   :  { %v4689_v49 = vpop.f32.mrb[40].mxu0  ;;  %19547 = vst [vmem:[#allocation16_spill] sm:$0xff] %v15911_v28 }
 0x465   :  { %v11141_v46 = vadd.f32 %v15694_v41, %v4689_v49  ;;  %v4691_v52 = vpop.f32.mrb[41].mxu0  ;;  %v15896_v49 = vpop.f32.mrb[54].mxu1  ;;  %19546 = vst [vmem:[#allocation15_spill] sm:$0xff] %v15901_v20  ;;  %v5294_v38 = vmul.f32 %v15901_v20, %v15901_v20 }
 0x466   :  { %v4692_v44 = vpop.f32.mrb[42].mxu0  ;;  %v5222_v52 = vadd.f32 %v5221_v3, %v15879_v27  ;;  %v5295_v3 = vmul.f32 %v15911_v28, %v15911_v28  ;;  %v15920_v27 = vmax.f32 %v15773_v33, 0.0  ;;  %v12094_v33 = vld [vmem:[%s19329_s5 + $0x20] sm:$0xff]  }
 0x467   :  { %v11142_v36 = vadd.f32 %v15694_v41, %v4692_v44  ;;  %v15888_v54 = vadd.f32 %v11141_v46, %v15643_v43  ;;  %v4694_v11 = vpop.f32.mrb[43].mxu0  ;;  %v15906_v46 = vpop.f32.mrb[55].mxu1  ;;  %v5355_v44 = vadd.f32 %v5354_v1, %v5292_v51  ;;  %8907 = vmatpush1.bf16.msra.mxu1 %v12094_v33 }
 0x468   :  { %19548 = vst [vmem:[#allocation17_spill] sm:$0xff] %v15920_v27  ;;  %8908 = vmatprep.subr.bf16.mxu1 %v15571_v62 }
 0x469   :  { %v15904_v43 = vadd.f32 %v11142_v36, %v15648_v31  ;;  %v5356_v47 = vadd.f32 %v5355_v44, %v5293_v9  ;;  %v5223_v36 = vadd.f32 %v5222_v52, %v15901_v20 }
 0x46b   :  { %v5224_v9 = vadd.f32 %v5223_v36, %v15911_v28  ;;  %v5357_v44 = vadd.f32 %v5356_v47, %v5294_v38 }
 0x46c   :  { %v4697_v11 = vpop.f32.mrb[44].mxu0 }
 0x46d   :  { %v11143_v37 = vadd.f32 %v15694_v41, %v4697_v11  ;;  %v4699_v31 = vpop.f32.mrb[45].mxu0  ;;  %v15928_v11 = vmax.f32 %v15779_v57, 0.0 }
 0x46e   :  { %v4700_v23 = vpop.f32.mrb[46].mxu0  ;;  %v5358_v31 = vadd.f32 %v5357_v44, %v5295_v3 }
 0x46f   :  { %v15923_v12 = vadd.f32 %v11143_v37, %v15641_v63  ;;  %v11144_v1 = vadd.f32 %v15694_v41, %v4700_v23  ;;  %v4702_v51 = vpop.f32.mrb[47].mxu0  ;;  %19549 = vst [vmem:[#allocation18_spill] sm:$0xff] %v15928_v11  ;;  %v5296_v63 = vmul.f32 %v15920_v27, %v15920_v27  ;;  %v5225_v37 = vadd.f32 %v5224_v9, %v15920_v27 }
 0x470   :  { %v5297_v57 = vmul.f32 %v15928_v11, %v15928_v11  ;;  %v15950_v9 = vmax.f32 %v15790_v24, 0.0 }
 0x471   :  { %v15931_v52 = vadd.f32 %v11144_v1, %v15645_v60  ;;  %v15943_v60 = vmax.f32 %v15783_v35, 0.0  ;;  %v5226_v36 = vadd.f32 %v5225_v37, %v15928_v11  ;;  %v5359_v51 = vadd.f32 %v5358_v31, %v5296_v63  ;;  %v12095_v35 = vld [vmem:[%s19329_s5 + $0x28] sm:$0xff]  }
 0x472   :  { %8909 = vmatpush1.bf16.msra.mxu1 %v12095_v35 }
 0x473   :  { %19550 = vst [vmem:[#allocation19_spill] sm:$0xff] %v15943_v60  ;;  %v5298_v31 = vmul.f32 %v15943_v60, %v15943_v60  ;;  %8910 = vmatprep.subr.bf16.mxu1 %v15571_v62 }
 0x474   :  { %v4705_v23 = vpop.f32.mrb[48].mxu0 }
 0x475   :  { %v11145_v47 = vadd.f32 %v15694_v41, %v4705_v23  ;;  %v4707_v38 = vpop.f32.mrb[49].mxu0  ;;  %v15947_v1 = vpop.f32.mrb[56].mxu1 }
 0x476   :  { %v4708_v3 = vpop.f32.mrb[50].mxu0  ;;  %v15959_v23 = vpop.f32.mrb[57].mxu1  ;;  %v5360_v38 = vadd.f32 %v5359_v51, %v5297_v57 }
 0x477   :  { %v11146_v44 = vadd.f32 %v15694_v41, %v4708_v3  ;;  %v15954_v33 = vadd.f32 %v11145_v47, %v15661_v53  ;;  %v4710_v27 = vpop.f32.mrb[51].mxu0  ;;  %v15961_v37 = vpop.f32.mrb[58].mxu1  ;;  %v5227_v53 = vadd.f32 %v5226_v36, %v15943_v60  ;;  %v15975_v47 = vmax.f32 %v15797_v45, 0.0 }
 0x478   :  { %v15968_v63 = vpop.f32.mrb[59].mxu1  ;;  %v5299_v27 = vmul.f32 %v15950_v9, %v15950_v9  ;;  %v5361_v51 = vadd.f32 %v5360_v38, %v5298_v31  ;;  %v15992_v38 = vmax.f32 %v15807_v61, 0.0 }
 0x479   :  { %v15966_v24 = vadd.f32 %v11146_v44, %v15666_v34  ;;  %v5228_v57 = vadd.f32 %v5227_v53, %v15950_v9  ;;  %v15979_v34 = vmax.f32 %v15803_v21, 0.0  ;;  %v5300_v60 = vmul.f32 %v15975_v47, %v15975_v47 }
 0x47a   :  { %v5362_v36 = vadd.f32 %v5361_v51, %v5299_v27  ;;  %19552 = vst [vmem:[#allocation21_spill] sm:$0xff] %v15992_v38  ;;  %v12096_v27 = vld [vmem:[%s19329_s5 + $0x30] sm:$0xff]   ;;  %v5302_v61 = vmul.f32 %v15992_v38, %v15992_v38 }
 0x47b   :  { %19551 = vst [vmem:[#allocation20_spill] sm:$0xff] %v15979_v34  ;;  %v5229_v53 = vadd.f32 %v5228_v57, %v15975_v47  ;;  %v5301_v21 = vmul.f32 %v15979_v34, %v15979_v34  ;;  %8911 = vmatpush1.bf16.msra.mxu1 %v12096_v27 }
 0x47c   :  { %v4713_v3 = vpop.f32.mrb[52].mxu0  ;;  %8912 = vmatprep.subr.bf16.mxu1 %v15571_v62 }
 0x47d   :  { %v11147_v44 = vadd.f32 %v15694_v41, %v4713_v3  ;;  %v4715_v35 = vpop.f32.mrb[53].mxu0  ;;  %v5363_v3 = vadd.f32 %v5362_v36, %v5300_v60 }
 0x47e   :  { %v4716_v11 = vpop.f32.mrb[54].mxu0 }
 0x47f   :  { %v15985_v28 = vadd.f32 %v11147_v44, %v15659_v25  ;;  %v11148_v45 = vadd.f32 %v15694_v41, %v4716_v11  ;;  %v4718_v20 = vpop.f32.mrb[55].mxu0  ;;  %v5230_v25 = vadd.f32 %v5229_v53, %v15979_v34  ;;  %v5364_v57 = vadd.f32 %v5363_v3, %v5301_v21  ;;  %v12097_v21 = vld [vmem:[%s19329_s5 + $0x38] sm:$0xff]  }
 0x480   :  { %v16002_v20 = vmax.f32 %v15821_v7, 0.0  ;;  %v16012_v7 = vmax.f32 %v15837_v4, 0.0  ;;  %v16027_v4 = vmax.f32 %v15859_v13, 0.0  ;;  %8913 = vmatpush1.bf16.msra.mxu1 %v12097_v21 }
 0x481   :  { %v15995_v31 = vadd.f32 %v11148_v45, %v15663_v56  ;;  %v5231_v44 = vadd.f32 %v5230_v25, %v15992_v38  ;;  %8914 = vmatprep.subr.bf16.mxu1 %v15571_v62 }
 0x482   :  { %19553 = vst [vmem:[#allocation22_spill] sm:$0xff] %v16002_v20  ;;  %v5303_v60 = vmul.f32 %v16002_v20, %v16002_v20  ;;  %19554 = vst [vmem:[#allocation23_spill] sm:$0xff] %v16012_v7  ;;  %v5305_v13 = vmul.f32 %v16027_v4, %v16027_v4 }
 0x483   :  { %v5232_v25 = vadd.f32 %v5231_v44, %v16002_v20  ;;  %v5304_v44 = vmul.f32 %v16012_v7, %v16012_v7 }
 0x484   :  { %v4721_v11 = vpop.f32.mrb[56].mxu0 }
 0x485   :  { %v11149_v56 = vadd.f32 %v15694_v41, %v4721_v11  ;;  %v4723_v51 = vpop.f32.mrb[57].mxu0  ;;  %v5365_v11 = vadd.f32 %v5364_v57, %v5302_v61 }
 0x486   :  { %v4724_v35 = vpop.f32.mrb[58].mxu0  ;;  %v16021_v27 = vpop.f32.mrb[60].mxu1 }
 0x487   :  { %v11150_v36 = vadd.f32 %v15694_v41, %v4724_v35  ;;  %v16016_v45 = vadd.f32 %v11149_v56, %v15679_v40  ;;  %v4726_v53 = vpop.f32.mrb[59].mxu0  ;;  %v16024_v3 = vpop.f32.mrb[61].mxu1  ;;  %v5366_v35 = vadd.f32 %v5365_v11, %v5303_v60  ;;  %v16048_v60 = vmax.f32 %v15888_v54, 0.0 }
 0x488   :  { %v16032_v40 = vpop.f32.mrb[62].mxu1  ;;  %v5233_v53 = vadd.f32 %v5232_v25, %v16012_v7 }
 0x489   :  { %v16030_v51 = vadd.f32 %v11150_v36, %v15683_v26  ;;  %v16034_v56 = vpop.f32.mrb[63].mxu1  ;;  %v16043_v26 = vmax.f32 %v15865_v55, 0.0  ;;  %v5367_v38 = vadd.f32 %v5366_v35, %v5304_v44  ;;  %v12098_v35 = vld [vmem:[%s19329_s5 + $0x40] sm:$0xff]   ;;  %v16066_v44 = vmax.f32 %v15904_v43, 0.0 }
 0x48a   :  { %v5234_v21 = vadd.f32 %v5233_v53, %v16027_v4  ;;  %8915 = vmatpush1.bf16.msra.mxu1 %v12098_v35 }
 0x48b   :  { %v5368_v34 = vadd.f32 %v5367_v38, %v5305_v13  ;;  %v5306_v55 = vmul.f32 %v16043_v26, %v16043_v26  ;;  %8916 = vmatprep.subr.bf16.mxu1 %v15571_v62 }
 0x48c   :  { %v4729_v57 = vpop.f32.mrb[60].mxu0  ;;  %v5235_v54 = vadd.f32 %v5234_v21, %v16043_v26  ;;  %v5308_v21 = vmul.f32 %v16066_v44, %v16066_v44 }
 0x48d   :  { %v11151_v61 = vadd.f32 %v15694_v41, %v4729_v57  ;;  %v4731_v36 = vpop.f32.mrb[61].mxu0 }
 0x48e   :  { %v4732_v20 = vpop.f32.mrb[62].mxu0  ;;  %v5236_v38 = vadd.f32 %v5235_v54, %v16048_v60 }
 0x48f   :  { %v16051_v11 = vadd.f32 %v11151_v61, %v15676_v39  ;;  %v11152_v25 = vadd.f32 %v15694_v41, %v4732_v20  ;;  %v4734_v7 = vpop.f32.mrb[63].mxu0  ;;  %v5307_v39 = vmul.f32 %v16048_v60, %v16048_v60 }
 0x490   :  { %v16071_v7 = vmax.f32 %v15923_v12, 0.0  ;;  %v5237_v62 = vadd.f32 %v5236_v38, %v16066_v44 }
 0x491   :  { %v16057_v57 = vadd.f32 %v11152_v25, %v15681_v5  ;;  %v5369_v5 = vadd.f32 %v5368_v34, %v5306_v55  ;;  %v16084_v34 = vmax.f32 %v15931_v52, 0.0 }
 0x492   :  { %v5309_v12 = vmul.f32 %v16071_v7, %v16071_v7  ;;  %v5238_v54 = vadd.f32 %v5237_v62, %v16071_v7 }
 0x493   :  { %v5370_v36 = vadd.f32 %v5369_v5, %v5307_v39  ;;  %v5310_v38 = vmul.f32 %v16084_v34, %v16084_v34 }
 0x494   :  { %v4737_v20 = vpop.f32.mrb[64].mxu0  ;;  %v5239_v52 = vadd.f32 %v5238_v54, %v16084_v34 }
 0x495   :  { %v11153_v53 = vadd.f32 %v15694_v41, %v4737_v20  ;;  %v4739_v13 = vpop.f32.mrb[65].mxu0  ;;  %v5371_v39 = vadd.f32 %v5370_v36, %v5308_v21  ;;  %v16091_v20 = vmax.f32 %v15954_v33, 0.0 }
 0x496   :  { %v4740_v61 = vpop.f32.mrb[66].mxu0 }
 0x497   :  { %v11154_v43 = vadd.f32 %v15694_v41, %v4740_v61  ;;  %v16078_v25 = vadd.f32 %v11153_v53, %v15707_v17  ;;  %v4742_v35 = vpop.f32.mrb[67].mxu0  ;;  %v5372_v5 = vadd.f32 %v5371_v39, %v5309_v12  ;;  %v16106_v12 = vmax.f32 %v15985_v28, 0.0 }
 0x498   :  { %v5240_v35 = vadd.f32 %v5239_v52, %v16091_v20 }
 0x499   :  { %v16087_v55 = vadd.f32 %v11154_v43, %v15715_v14  ;;  %v5311_v14 = vmul.f32 %v16091_v20, %v16091_v20  ;;  %v16100_v43 = vmax.f32 %v15966_v24, 0.0  ;;  %v5373_v62 = vadd.f32 %v5372_v5, %v5310_v38 }
 0x49b   :  { %v5374_v39 = vadd.f32 %v5373_v62, %v5311_v14  ;;  %v5241_v24 = vadd.f32 %v5240_v35, %v16100_v43 }
 0x49c   :  { %v4745_v17 = vpop.f32.mrb[68].mxu0 }
 0x49d   :  { %v11155_v53 = vadd.f32 %v15694_v41, %v4745_v17  ;;  %v4747_v13 = vpop.f32.mrb[69].mxu0  ;;  %v5312_v17 = vmul.f32 %v16100_v43, %v16100_v43  ;;  %v5242_v38 = vadd.f32 %v5241_v24, %v16106_v12 }
 0x49e   :  { %v4748_v61 = vpop.f32.mrb[70].mxu0 }
 0x49f   :  { %v5035_v33 = vadd.f32 %v11155_v53, %v15701_v29  ;;  %v11156_v36 = vadd.f32 %v15694_v41, %v4748_v61  ;;  %v4750_v21 = vpop.f32.mrb[71].mxu0  ;;  %v5313_v29 = vmul.f32 %v16106_v12, %v16106_v12  ;;  %v16117_v53 = vmax.f32 %v15995_v31, 0.0 }
 0x4a0   :  { %v5375_v52 = vadd.f32 %v5374_v39, %v5312_v17  ;;  %v16122_v61 = vmax.f32 %v16016_v45, 0.0  ;;  %v16133_v39 = vmax.f32 %v16030_v51, 0.0 }
 0x4a1   :  { %v16109_v54 = vadd.f32 %v11156_v36, %v15709_v19  ;;  %v5314_v31 = vmul.f32 %v16117_v53, %v16117_v53 }
 0x4a2   :  { %v5376_v35 = vadd.f32 %v5375_v52, %v5313_v29  ;;  %v5315_v24 = vmul.f32 %v16122_v61, %v16122_v61 }
 0x4a4   :  { %v4753_v13 = vpop.f32.mrb[72].mxu0 }
 0x4a5   :  { %v11157_v5 = vadd.f32 %v15694_v41, %v4753_v13  ;;  %v4755_v28 = vpop.f32.mrb[73].mxu0  ;;  %v5243_v13 = vadd.f32 %v5242_v38, %v16117_v53  ;;  %v5316_v38 = vmul.f32 %v16133_v39, %v16133_v39 }
 0x4a6   :  { %v4756_v19 = vpop.f32.mrb[74].mxu0  ;;  %v5377_v28 = vadd.f32 %v5376_v35, %v5314_v31 }
 0x4a7   :  { %v11158_v14 = vadd.f32 %v15694_v41, %v4756_v19  ;;  %v5043_v36 = vadd.f32 %v11157_v5, %v15741_v30  ;;  %v4758_v21 = vpop.f32.mrb[75].mxu0  ;;  %v5244_v45 = vadd.f32 %v5243_v13, %v16122_v61  ;;  %v16137_v30 = vmax.f32 %v16051_v11, 0.0 }
 0x4a8   :  { %v16148_v11 = vmax.f32 %v16057_v57, 0.0 }
 0x4a9   :  { %v5046_v62 = vadd.f32 %v11158_v14, %v15749_v58  ;;  %v5378_v58 = vadd.f32 %v5377_v28, %v5315_v24  ;;  %v5245_v21 = vadd.f32 %v5244_v45, %v16133_v39  ;;  %v5317_v35 = vmul.f32 %v16137_v30, %v16137_v30 }
 0x4ab   :  { %v5246_v13 = vadd.f32 %v5245_v21, %v16137_v30  ;;  %v5379_v24 = vadd.f32 %v5378_v58, %v5316_v38 }
 0x4ac   :  { %v4761_v17 = vpop.f32.mrb[76].mxu0 }
 0x4ad   :  { %v11159_v29 = vadd.f32 %v15694_v41, %v4761_v17  ;;  %v4763_v5 = vpop.f32.mrb[77].mxu0  ;;  %v16153_v17 = vmax.f32 %v16078_v25, 0.0  ;;  %v5380_v28 = vadd.f32 %v5379_v24, %v5317_v35  ;;  %v16167_v25 = vld [vmem:[%s19328_s2] ss:$0 sm:$0xff]  ;;  %v16172_v35 = vmax.f32 %v5035_v33, 0.0 }
 0x4ae   :  { %v4764_v19 = vpop.f32.mrb[78].mxu0 }
 0x4af   :  { %v5051_v52 = vadd.f32 %v11159_v29, %v15735_v16  ;;  %v11160_v51 = vadd.f32 %v15694_v41, %v4764_v19  ;;  %v4766_v14 = vpop.f32.mrb[79].mxu0  ;;  %v5318_v29 = vmul.f32 %v16148_v11, %v16148_v11  ;;  %v5247_v19 = vadd.f32 %v5246_v13, %v16148_v11 }
 0x4b1   :  { %v5054_v31 = vadd.f32 %v11160_v51, %v15743_v8  ;;  %v5319_v8 = vmul.f32 %v16153_v17, %v16153_v17  ;;  %v16162_v51 = vmax.f32 %v16087_v55, 0.0  ;;  %v5248_v14 = vadd.f32 %v5247_v19, %v16153_v17 }
 0x4b2   :  { %v5381_v21 = vadd.f32 %v5380_v28, %v5318_v29  ;;  %v16185_v19 = vmax.f32 %v5043_v36, 0.0 }
 0x4b3   :  { %v5320_v55 = vmul.f32 %v16162_v51, %v16162_v51 }
 0x4b4   :  { %v4769_v16 = vpop.f32.mrb[80].mxu0  ;;  %v5382_v24 = vadd.f32 %v5381_v21, %v5319_v8 }
 0x4b5   :  { %v11161_v45 = vadd.f32 %v15694_v41, %v4769_v16  ;;  %v4771_v5 = vpop.f32.mrb[81].mxu0  ;;  %v5249_v16 = vadd.f32 %v5248_v14, %v16162_v51 }
 0x4b6   :  { %v4772_v57 = vpop.f32.mrb[82].mxu0 }
 0x4b7   :  { %v11162_v58 = vadd.f32 %v16167_v25, %v4772_v57  ;;  %v5059_v38 = vadd.f32 %v11161_v45, %v15768_v59  ;;  %v4774_v41 = vpop.f32.mrb[83].mxu0  ;;  %v5321_v57 = vmul.f32 %v16172_v35, %v16172_v35  ;;  %v16181_v59 = vmax.f32 %v16109_v54, 0.0 }
 0x4b8   :  { %v5250_v33 = vadd.f32 %v5249_v16, %v16172_v35  ;;  %v5323_v16 = vmul.f32 %v16185_v19, %v16185_v19 }
 0x4b9   :  { %v5062_v13 = vadd.f32 %v11162_v58, %v15775_v6  ;;  %v5383_v6 = vadd.f32 %v5382_v24, %v5320_v55  ;;  %v5322_v21 = vmul.f32 %v16181_v59, %v16181_v59  ;;  %v16198_v55 = vmax.f32 %v5051_v52, 0.0 }
 0x4ba   :  { %v16208_v52 = vmax.f32 %v5054_v31, 0.0 }
 0x4bb   :  { %v5384_v14 = vadd.f32 %v5383_v6, %v5321_v57 }
 0x4bc   :  { %v4777_v5 = vpop.f32.mrb[84].mxu0 }
 0x4bd   :  { %v11163_v45 = vadd.f32 %v16167_v25, %v4777_v5  ;;  %v4779_v28 = vpop.f32.mrb[85].mxu0  ;;  %v5251_v5 = vadd.f32 %v5250_v33, %v16181_v59 }
 0x4be   :  { %v4780_v29 = vpop.f32.mrb[86].mxu0  ;;  %v16195_v28 = vmax.f32 %v5046_v62, 0.0 }
 0x4bf   :  { %v5067_v8 = vadd.f32 %v11163_v45, %v15762_v0  ;;  %v11164_v58 = vadd.f32 %v16167_v25, %v4780_v29  ;;  %v4782_v41 = vpop.f32.mrb[87].mxu0  ;;  %v5252_v36 = vadd.f32 %v5251_v5, %v16185_v19  ;;  %v5385_v0 = vadd.f32 %v5384_v14, %v5322_v21 }
 0x4c0   :  { %v5325_v14 = vmul.f32 %v16198_v55, %v16198_v55 }
 0x4c1   :  { %v5070_v54 = vadd.f32 %v11164_v58, %v15770_v22  ;;  %v5386_v6 = vadd.f32 %v5385_v0, %v5323_v16  ;;  %v5324_v22 = vmul.f32 %v16195_v28, %v16195_v28  ;;  %v5253_v41 = vadd.f32 %v5252_v36, %v16195_v28 }
 0x4c3   :  { %v5254_v5 = vadd.f32 %v5253_v41, %v16198_v55  ;;  %v5387_v16 = vadd.f32 %v5386_v6, %v5324_v22 }
 0x4c4   :  { %v4785_v24 = vpop.f32.mrb[88].mxu0 }
 0x4c5   :  { %v11165_v57 = vadd.f32 %v16167_v25, %v4785_v24  ;;  %v4787_v45 = vpop.f32.mrb[89].mxu0  ;;  %v16212_v24 = vmax.f32 %v5059_v38, 0.0 }
 0x4c6   :  { %v4788_v29 = vpop.f32.mrb[90].mxu0  ;;  %v5388_v45 = vadd.f32 %v5387_v16, %v5325_v14  ;;  %v16225_v14 = vmax.f32 %v5067_v8, 0.0 }
 0x4c7   :  { %v11166_v33 = vadd.f32 %v16167_v25, %v4788_v29  ;;  %v5075_v58 = vadd.f32 %v11165_v57, %v15792_v32  ;;  %v4790_v62 = vpop.f32.mrb[91].mxu0  ;;  %19555 = vst [vmem:[#allocation24_spill] sm:$0xff] %v16212_v24  ;;  %v5326_v32 = vmul.f32 %v16208_v52, %v16208_v52  ;;  %v5255_v29 = vadd.f32 %v5254_v5, %v16208_v52 }
 0x4c8   :  { %v5327_v31 = vmul.f32 %v16212_v24, %v16212_v24 }
 0x4c9   :  { %v5078_v21 = vadd.f32 %v11166_v33, %v15799_v18  ;;  %v16220_v18 = vmax.f32 %v5062_v13, 0.0  ;;  %v5256_v33 = vadd.f32 %v5255_v29, %v16212_v24  ;;  %v5389_v41 = vadd.f32 %v5388_v45, %v5326_v32 }
 0x4cb   :  { %19556 = vst [vmem:[#allocation25_spill] sm:$0xff] %v16220_v18  ;;  %v5328_v5 = vmul.f32 %v16220_v18, %v16220_v18 }
 0x4cc   :  { %v4793_v0 = vpop.f32.mrb[92].mxu0 }
 0x4cd   :  { %v11167_v57 = vadd.f32 %v16167_v25, %v4793_v0  ;;  %v4795_v36 = vpop.f32.mrb[93].mxu0  ;;  %v5390_v0 = vadd.f32 %v5389_v41, %v5327_v31 }
 0x4ce   :  { %v4796_v62 = vpop.f32.mrb[94].mxu0  ;;  %v5257_v36 = vadd.f32 %v5256_v33, %v16220_v18 }
 0x4cf   :  { %v5083_v6 = vadd.f32 %v11167_v57, %v15786_v48  ;;  %v11168_v38 = vadd.f32 %v16167_v25, %v4796_v62  ;;  %v4798_v22 = vpop.f32.mrb[95].mxu0  ;;  %v5329_v48 = vmul.f32 %v16225_v14, %v16225_v14  ;;  %v16233_v57 = vmax.f32 %v5070_v54, 0.0  ;;  %v19560_v54 = vld [vmem:[#allocation11_spill] sm:$0xff] }
 0x4d0   :  { %v5258_v8 = vadd.f32 %v5257_v36, %v16225_v14  ;;  %v5391_v32 = vadd.f32 %v5390_v0, %v5328_v5 }
 0x4d1   :  { %v5086_v16 = vadd.f32 %v11168_v38, %v15794_v10  ;;  %19557 = vst [vmem:[#allocation26_spill] sm:$0xff] %v16233_v57  ;;  %v16237_v10 = vmax.f32 %v5075_v58, 0.0  ;;  %v19559_v38 = vld [vmem:[#allocation8_spill] sm:$0xff]  ;;  %v5330_v18 = vmul.f32 %v16233_v57, %v16233_v57 }
 0x4d2   :  { %v5392_v41 = vadd.f32 %v5391_v32, %v5329_v48 }
 0x4d3   :  { %19558 = vst [vmem:[#allocation27_spill] sm:$0xff] %v16237_v10  ;;  %v5331_v36 = vmul.f32 %v16237_v10, %v16237_v10 }
 0x4d4   :  { %v4801_v13 = vpop.f32.mrb[96].mxu0  ;;  %v5393_v5 = vadd.f32 %v5392_v41, %v5330_v18  ;;  %v19563_v41 = vld [vmem:[#allocation10_spill] sm:$0xff] }
 0x4d5   :  { %v11169_v62 = vadd.f32 %v16167_v25, %v4801_v13  ;;  %v4803_v29 = vpop.f32.mrb[97].mxu0  ;;  %v5259_v13 = vadd.f32 %v5258_v8, %v16233_v57  ;;  %v19561_v8 = vld [vmem:[#allocation6_spill] sm:$0xff] }
 0x4d6   :  { %v4804_v45 = vpop.f32.mrb[98].mxu0  ;;  %v16247_v29 = vmax.f32 %v5078_v21, 0.0 }
 0x4d7   :  { %v11170_v31 = vadd.f32 %v16167_v25, %v4804_v45  ;;  %v5091_v22 = vadd.f32 %v11169_v62, %v19559_v38  ;;  %v4806_v33 = vpop.f32.mrb[99].mxu0  ;;  %v5260_v58 = vadd.f32 %v5259_v13, %v16237_v10  ;;  %v16250_v45 = vmax.f32 %v5083_v6, 0.0 }
 0x4d8   :  { %v5394_v38 = vadd.f32 %v5393_v5, %v5331_v36  ;;  %v16260_v6 = vmax.f32 %v5086_v16, 0.0 }
 0x4d9   :  { %v5094_v24 = vadd.f32 %v11170_v31, %v19560_v54  ;;  %v5332_v31 = vmul.f32 %v16247_v29, %v16247_v29  ;;  %v5261_v57 = vadd.f32 %v5260_v58, %v16247_v29  ;;  %v5333_v18 = vmul.f32 %v16250_v45, %v16250_v45 }
 0x4da   :  { %19562 = vst [vmem:[#allocation8_spill] sm:$0xff] %v16260_v6  ;;  %v16264_v5 = vmax.f32 %v5091_v22, 0.0 }
 0x4db   :  { %v5395_v36 = vadd.f32 %v5394_v38, %v5332_v31 }
 0x4dc   :  { %v4809_v0 = vpop.f32.mrb[100].mxu0  ;;  %v5335_v16 = vmul.f32 %v16264_v5, %v16264_v5 }
 0x4dd   :  { %v11171_v48 = vadd.f32 %v16167_v25, %v4809_v0  ;;  %v4811_v62 = vpop.f32.mrb[101].mxu0  ;;  %v5262_v0 = vadd.f32 %v5261_v57, %v16250_v45  ;;  %v5396_v10 = vadd.f32 %v5395_v36, %v5333_v18 }
 0x4de   :  { %v4812_v32 = vpop.f32.mrb[102].mxu0 }
 0x4df   :  { %v5099_v33 = vadd.f32 %v11171_v48, %v19561_v8  ;;  %v11172_v54 = vadd.f32 %v16167_v25, %v4812_v32  ;;  %v4814_v21 = vpop.f32.mrb[103].mxu0  ;;  %v5334_v48 = vmul.f32 %v16260_v6, %v16260_v6  ;;  %v5263_v8 = vadd.f32 %v5262_v0, %v16260_v6 }
 0x4e1   :  { %v5102_v13 = vadd.f32 %v11172_v54, %v19563_v41  ;;  %v16272_v54 = vmax.f32 %v5094_v24, 0.0  ;;  %v5264_v31 = vadd.f32 %v5263_v8, %v16264_v5  ;;  %v5397_v18 = vadd.f32 %v5396_v10, %v5334_v48 }
 0x4e2   :  { %v16277_v41 = vmax.f32 %v5099_v33, 0.0 }
 0x4e3   :  { %v5336_v0 = vmul.f32 %v16272_v54, %v16272_v54  ;;  %v16285_v6 = vmax.f32 %v5102_v13, 0.0 }
 0x4e4   :  { %v4817_v62 = vpop.f32.mrb[104].mxu0 }
 0x4e5   :  { %v11173_v32 = vadd.f32 %v16167_v25, %v4817_v62  ;;  %v4819_v58 = vpop.f32.mrb[105].mxu0  ;;  %v5398_v62 = vadd.f32 %v5397_v18, %v5335_v16 }
 0x4e6   :  { %v4820_v21 = vpop.f32.mrb[106].mxu0  ;;  %v5265_v58 = vadd.f32 %v5264_v31, %v16272_v54  ;;  %v5338_v31 = vmul.f32 %v16285_v6, %v16285_v6 }
 0x4e7   :  { %v11174_v57 = vadd.f32 %v16167_v25, %v4820_v21  ;;  %v5107_v22 = vadd.f32 %v11173_v32, %v15893_v2  ;;  %v4822_v38 = vpop.f32.mrb[107].mxu0  ;;  %v5337_v21 = vmul.f32 %v16277_v41, %v16277_v41  ;;  %v5399_v48 = vadd.f32 %v5398_v62, %v5336_v0 }
 0x4e8   :  { %v5266_v10 = vadd.f32 %v5265_v58, %v16277_v41 }
 0x4e9   :  { %v5110_v36 = vadd.f32 %v11174_v57, %v15906_v46  ;;  %v16289_v46 = vmax.f32 %v5107_v22, 0.0  ;;  %v5400_v38 = vadd.f32 %v5399_v48, %v5337_v21 }
 0x4ea   :  { %v5267_v18 = vadd.f32 %v5266_v10, %v16285_v6 }
 0x4eb   :  { %v5339_v58 = vmul.f32 %v16289_v46, %v16289_v46 }
 0x4ec   :  { %v4825_v24 = vpop.f32.mrb[108].mxu0  ;;  %v5268_v22 = vadd.f32 %v5267_v18, %v16289_v46 }
 0x4ed   :  { %v11175_v2 = vadd.f32 %v16167_v25, %v4825_v24  ;;  %v4827_v32 = vpop.f32.mrb[109].mxu0  ;;  %v16299_v24 = vmax.f32 %v5110_v36, 0.0 }
 0x4ee   :  { %v4828_v33 = vpop.f32.mrb[110].mxu0 }
 0x4ef   :  { %v5115_v8 = vadd.f32 %v11175_v2, %v15882_v42  ;;  %v11176_v16 = vadd.f32 %v16167_v25, %v4828_v33  ;;  %v4830_v57 = vpop.f32.mrb[111].mxu0  ;;  %v5401_v42 = vadd.f32 %v5400_v38, %v5338_v31 }
 0x4f1   :  { %v5118_v13 = vadd.f32 %v11176_v16, %v15896_v49  ;;  %v16302_v0 = vmax.f32 %v5115_v8, 0.0  ;;  %v5402_v33 = vadd.f32 %v5401_v42, %v5339_v58  ;;  %v5340_v49 = vmul.f32 %v16299_v24, %v16299_v24 }
 0x4f2   :  { %v5269_v16 = vadd.f32 %v5268_v22, %v16299_v24 }
 0x4f3   :  { %v5341_v57 = vmul.f32 %v16302_v0, %v16302_v0  ;;  %v16312_v8 = vmax.f32 %v5118_v13, 0.0  ;;  %v5403_v18 = vadd.f32 %v5402_v33, %v5340_v49 }
 0x4f4   :  { %v4833_v62 = vpop.f32.mrb[112].mxu0  ;;  %v5270_v31 = vadd.f32 %v5269_v16, %v16302_v0 }
 0x4f5   :  { %v11177_v21 = vadd.f32 %v16167_v25, %v4833_v62  ;;  %v4835_v2 = vpop.f32.mrb[113].mxu0  ;;  %v5404_v42 = vadd.f32 %v5403_v18, %v5341_v57 }
 0x4f6   :  { %v4836_v32 = vpop.f32.mrb[114].mxu0  ;;  %v5271_v2 = vadd.f32 %v5270_v31, %v16312_v8 }
 0x4f7   :  { %v11178_v10 = vadd.f32 %v16167_v25, %v4836_v32  ;;  %v5123_v48 = vadd.f32 %v11177_v21, %v15959_v23  ;;  %v4838_v36 = vpop.f32.mrb[115].mxu0  ;;  %v5342_v23 = vmul.f32 %v16312_v8, %v16312_v8 }
 0x4f9   :  { %v5126_v38 = vadd.f32 %v11178_v10, %v15968_v63  ;;  %v16316_v58 = vmax.f32 %v5123_v48, 0.0  ;;  %v5405_v36 = vadd.f32 %v5404_v42, %v5342_v23 }
 0x4fb   :  { %v5343_v13 = vmul.f32 %v16316_v58, %v16316_v58  ;;  %v16324_v63 = vmax.f32 %v5126_v38, 0.0  ;;  %v5272_v48 = vadd.f32 %v5271_v2, %v16316_v58 }
 0x4fc   :  { %v4841_v62 = vpop.f32.mrb[116].mxu0 }
 0x4fd   :  { %v11179_v21 = vadd.f32 %v16167_v25, %v4841_v62  ;;  %v4843_v22 = vpop.f32.mrb[117].mxu0  ;;  %v5406_v18 = vadd.f32 %v5405_v36, %v5343_v13  ;;  %v5344_v31 = vmul.f32 %v16324_v63, %v16324_v63  ;;  %v5273_v38 = vadd.f32 %v5272_v48, %v16324_v63 }
 0x4fe   :  { %v4844_v32 = vpop.f32.mrb[118].mxu0 }
 0x4ff   :  { %v5131_v33 = vadd.f32 %v11179_v21, %v15947_v1  ;;  %v11180_v49 = vadd.f32 %v16167_v25, %v4844_v32  ;;  %v4846_v10 = vpop.f32.mrb[119].mxu0  ;;  %v5407_v23 = vadd.f32 %v5406_v18, %v5344_v31 }
 0x501   :  { %v16329_v16 = vmax.f32 %v5131_v33, 0.0  ;;  %v5134_v57 = vadd.f32 %v11180_v49, %v15961_v37 }
 0x503   :  { %v5345_v1 = vmul.f32 %v16329_v16, %v16329_v16  ;;  %v16337_v21 = vmax.f32 %v5134_v57, 0.0  ;;  %v5274_v32 = vadd.f32 %v5273_v38, %v16329_v16 }
 0x504   :  { %v4849_v62 = vpop.f32.mrb[120].mxu0 }
 0x505   :  { %v11181_v22 = vadd.f32 %v16167_v25, %v4849_v62  ;;  %v4851_v2 = vpop.f32.mrb[121].mxu0  ;;  %v5408_v49 = vadd.f32 %v5407_v23, %v5345_v1  ;;  %v5346_v10 = vmul.f32 %v16337_v21, %v16337_v21  ;;  %v5275_v57 = vadd.f32 %v5274_v32, %v16337_v21 }
 0x506   :  { %v4852_v42 = vpop.f32.mrb[122].mxu0 }
 0x507   :  { %v11182_v37 = vadd.f32 %v16167_v25, %v4852_v42  ;;  %v5139_v13 = vadd.f32 %v11181_v22, %v16024_v3  ;;  %v4854_v33 = vpop.f32.mrb[123].mxu0  ;;  %v5409_v3 = vadd.f32 %v5408_v49, %v5346_v10 }
 0x509   :  { %v16345_v48 = vmax.f32 %v5139_v13, 0.0  ;;  %v5142_v36 = vadd.f32 %v11182_v37, %v16034_v56 }
 0x50b   :  { %v5347_v18 = vmul.f32 %v16345_v48, %v16345_v48  ;;  %v16351_v31 = vmax.f32 %v5142_v36, 0.0  ;;  %v5276_v38 = vadd.f32 %v5275_v57, %v16345_v48 }
 0x50c   :  { %v4857_v62 = vpop.f32.mrb[124].mxu0 }
 0x50d   :  { %v11183_v1 = vadd.f32 %v16167_v25, %v4857_v62  ;;  %v4859_v22 = vpop.f32.mrb[125].mxu0  ;;  %v5410_v42 = vadd.f32 %v5409_v3, %v5347_v18  ;;  %v5348_v23 = vmul.f32 %v16351_v31, %v16351_v31  ;;  %v5277_v13 = vadd.f32 %v5276_v38, %v16351_v31 }
 0x50e   :  { %v4860_v2 = vpop.f32.mrb[126].mxu0 }
 0x50f   :  { %v5147_v56 = vadd.f32 %v11183_v1, %v16021_v27  ;;  %v11184_v32 = vadd.f32 %v16167_v25, %v4860_v2  ;;  %v4862_v37 = vpop.f32.mrb[127].mxu0  ;;  %v5411_v49 = vadd.f32 %v5410_v42, %v5348_v23 }
 0x510   :  { %v12104_v37 = vld [vmem:[%s19329_s5 + $0x200] sm:$0xff]  }
 0x511   :  { %v16360_v33 = vmax.f32 %v5147_v56, 0.0  ;;  %v5150_v36 = vadd.f32 %v11184_v32, %v16032_v40  ;;  %11025 = vmatprep.subr.bf16.mxu0 %v12104_v37 }
 0x512   :  { %11026 = vmatpush3.bf16.msra.mxu0 %v12104_v37  ;;  %v12110_v37 = vld [vmem:[%s19329_s5 + $0x220] sm:$0xff]  }
 0x513   :  { %v5278_v10 = vadd.f32 %v5277_v13, %v16360_v33  ;;  %v5349_v57 = vmul.f32 %v16360_v33, %v16360_v33  ;;  %v16366_v18 = vmax.f32 %v5150_v36, 0.0 }
 0x515   :  { %v5412_v62 = vadd.f32 %v5411_v49, %v5349_v57  ;;  %v5279_v27 = vadd.f32 %v5278_v10, %v16366_v18  ;;  %v5350_v25 = vmul.f32 %v16366_v18, %v16366_v18  ;;  %v12099_v57 = vld [vmem:[%s19329_s5 + $0x48] sm:$0xff]  }
 0x516   :  { %8917 = vmatpush1.bf16.msra.mxu1 %v12099_v57  ;;  %v12111_v57 = vld [vmem:[%s19329_s5 + $0x228] sm:$0xff]  }
 0x517   :  { %v5280_v3 = vrot.slane %v5279_v27, 4  ;;  %v5413_v38 = vadd.f32 %v5412_v62, %v5350_v25  ;;  %v12105_v62 = vld [vmem:[%s19329_s5 + $0x208] sm:$0xff]  }
 0x518   :  { %11027 = vmatprep.subr.bf16.mxu0 %v12105_v62 }
 0x519   :  { %v5281_v1 = vadd.f32 %v5280_v3, %v5279_v27  ;;  %v5414_v22 = vrot.slane %v5413_v38, 4  ;;  %11028 = vmatpush3.bf16.msra.mxu0 %v12105_v62 }
 0x51b   :  { %v5282_v2 = vrot.slane %v5281_v1, 2  ;;  %v5415_v40 = vadd.f32 %v5414_v22, %v5413_v38  ;;  %v16380_v38 = vld [vmem:[#allocation2 + $0x8] sm:$0xff]  ;;  %v12107_v22 = vld [vmem:[%s19329_s5 + $0x210] sm:$0xff]  }
 0x51c   :  { %19564 = vst [vmem:[#allocation11_spill] sm:$0xff] %v16380_v38  ;;  %8918 = vmatprep.subr.bf16.mxu1 %v16380_v38  ;;  %11029 = vmatprep.subr.bf16.mxu0 %v12107_v22 }
 0x51d   :  { %v5283_v42 = vadd.f32 %v5282_v2, %v5281_v1  ;;  %v5416_v23 = vrot.slane %v5415_v40, 2  ;;  %v12100_v1 = vld [vmem:[%s19329_s5 + $0x50] sm:$0xff]   ;;  %11030 = vmatpush3.bf16.msra.mxu0 %v12107_v22 }
 0x51e   :  { %8919 = vmatpush1.bf16.msra.mxu1 %v12100_v1  ;;  %v12106_v22 = vld [vmem:[%s19329_s5 + $0x70] sm:$0xff]  }
 0x51f   :  { %v5284_v56 = vrot.slane %v5283_v42, 1  ;;  %v5417_v32 = vadd.f32 %v5416_v23, %v5415_v40  ;;  %8920 = vmatprep.subr.bf16.mxu1 %v16380_v38  ;;  %v5431_v40 = vlaneseq  ;;  %v12108_v23 = vld [vmem:[%s19329_s5 + $0x218] sm:$0xff]  }
 0x520   :  { %11031 = vmatprep.subr.bf16.mxu0 %v12108_v23 }
 0x521   :  { %v5285_v13 = vadd.f32 %v5284_v56, %v5283_v42  ;;  %v5418_v36 = vrot.slane %v5417_v32, 1  ;;  %v12101_v42 = vld [vmem:[%s19329_s5 + $0x58] sm:$0xff]   ;;  %11032 = vmatpush3.bf16.msra.mxu0 %v12108_v23  ;;  %v5432_v56 = vshrl.u32 %v5431_v40, 7 }
 0x522   :  { %8921 = vmatpush1.bf16.msra.mxu1 %v12101_v42  ;;  %11033 = vmatprep.subr.bf16.mxu0 %v12110_v37 }
 0x523   :  { %v5286_v49 = vmul.f32 0.001953125, %v5285_v13  ;;  %v5419_v10 = vadd.f32 %v5418_v36, %v5417_v32  ;;  %8922 = vmatprep.subr.bf16.mxu1 %v16380_v38  ;;  %v12102_v32 = vld [vmem:[%s19329_s5 + $0x60] sm:$0xff]   ;;  %v5433_v36 = vsub.s32 0, %v5432_v56  ;;  %v19565_v56 = vld [vmem:[#allocation9_spill] sm:$0xff] }
 0x524   :  { %v5423_v13 = vld [vmem:[%s19330_s3] sm:$0x1] }
 0x525   :  { %v5420_v27 = vmul.f32 0.001953125, %v5419_v10  ;;  %v5421_v25 = vmul.f32 %v5286_v49, %v5286_v49  ;;  %11034 = vmatpush3.bf16.msra.mxu0 %v12110_v37  ;;  %v12103_v10 = vld [vmem:[%s19329_s5 + $0x68] sm:$0xff]  }
 0x526   :  { %8923 = vmatpush1.bf16.msra.mxu1 %v12102_v32  ;;  %11035 = vmatprep.subr.bf16.mxu0 %v12111_v57  ;;  %v19566_v32 = vld [vmem:[#allocation7_spill] sm:$0xff] }
 0x527   :  { %v5422_v3 = vsub.f32 %v5420_v27, %v5421_v25  ;;  %8924 = vmatprep.subr.bf16.mxu1 %v16380_v38  ;;  %v5427_v25 = vld [vmem:[%s19331_s4] sm:$0x1] }
 0x529   :  { %v5424_v2 = vadd.f32 1e-05, %v5422_v3  ;;  %11036 = vmatpush3.bf16.msra.mxu0 %v12111_v57 }
 0x52a   :  { %8925 = vmatpush1.bf16.msra.mxu1 %v12103_v10 }
 0x52b   :  { %12162 = vrsqrt.f32 %v5424_v2  ;;  %8926 = vmatprep.subr.bf16.mxu1 %v16380_v38  ;;  %v12113_v2 = vld [vmem:[%s19329_s5 + $0x230] sm:$0xff]  }
 0x52c   :  { %11037 = vmatprep.subr.bf16.mxu0 %v12113_v2 }
 0x52d   :  { %11038 = vmatpush3.bf16.msra.mxu0 %v12113_v2 }
 0x52e   :  { %8927 = vmatpush1.bf16.msra.mxu1 %v12106_v22  ;;  %v12109_v22 = vld [vmem:[%s19329_s5 + $0x78] sm:$0xff]  }
 0x52f   :  { %8928 = vmatprep.subr.bf16.mxu1 %v16380_v38 }
 0x532   :  { %8929 = vmatpush1.bf16.msra.mxu1 %v12109_v22 }
 0x533   :  { %9187 = vmatprep.subr.bf16.mxu1 %v16380_v38 }
 0x535   :  { %v12163_v62 = vpop.eup %12162 }
 0x536   :  { %v5426_v27 = vmul.f32 %v12163_v62, %v5423_v13  ;;  %v19568_v62 = vld [vmem:[#allocation13_spill] sm:$0xff] }
 0x538   :  { %v5428_v3 = vmul.f32 %v5426_v27, %v5286_v49  ;;  %v16417_v1 = vrot.slane %v5426_v27, %v5433_v36 }
 0x53a   :  { %v5429_v40 = vsub.f32 %v5427_v25, %v5428_v3  ;;  %v5498_v42 = vmul.f32 %v16417_v1, %v16360_v33  ;;  %v5499_v23 = vmul.f32 %v16417_v1, %v16366_v18  ;;  %v16431_v49 = vmul.f32 %v16417_v1, %v19565_v56  ;;  %v19567_v33 = vld [vmem:[#allocation12_spill] sm:$0xff]  ;;  %v19570_v25 = vld [vmem:[#allocation14_spill] sm:$0xff]  ;;  %v19572_v3 = vld [vmem:[#allocation15_spill] sm:$0xff] }
 0x53b   :  { %v16435_v37 = vmul.f32 %v16417_v1, %v19566_v32  ;;  %v16439_v13 = vmul.f32 %v16417_v1, %v15834_v15  ;;  %v16443_v10 = vmul.f32 %v16417_v1, %v15851_v50  ;;  %v16447_v18 = vmul.f32 %v16417_v1, %v19567_v33  ;;  %v19575_v32 = vld [vmem:[#allocation17_spill] sm:$0xff] }
 0x53c   :  { %v16450_v57 = vrot.slane %v5429_v40, %v5433_v36  ;;  %v16454_v27 = vmul.f32 %v16417_v1, %v19568_v62  ;;  %v16458_v15 = vmul.f32 %v16417_v1, %v19570_v25  ;;  %v16462_v50 = vmul.f32 %v16417_v1, %v19572_v3  ;;  %v12114_v36 = vld [vmem:[%s19329_s5 + $0x238] sm:$0xff]   ;;  %v19574_v40 = vld [vmem:[#allocation16_spill] sm:$0xff]  ;;  %v19576_v62 = vld [vmem:[#allocation18_spill] sm:$0xff] }
 0x53d   :  { %v16472_v56 = vmul.f32 %v16417_v1, %v19574_v40  ;;  %v16476_v33 = vmul.f32 %v16417_v1, %v19575_v32  ;;  %v16480_v25 = vmul.f32 %v16417_v1, %v19576_v62  ;;  %v19578_v3 = vld [vmem:[#allocation19_spill] sm:$0xff]  ;;  %v16490_v40 = vmul.f32 %v16417_v1, %v15950_v9  ;;  %v19580_v62 = vld [vmem:[#allocation20_spill] sm:$0xff]  ;;  %11039 = vmatprep.subr.bf16.mxu0 %v12114_v36 }
 0x53e   :  { %19569 = vst [vmem:[#allocation6_spill] sm:$0xff] %v16454_v27  ;;  %19571 = vst [vmem:[#allocation10_spill] sm:$0xff] %v16458_v15  ;;  %v5568_v15 = vadd.f32 %v16450_v57, %v5498_v42  ;;  %v5569_v27 = vadd.f32 %v16450_v57, %v5499_v23  ;;  %v16494_v32 = vmul.f32 %v16417_v1, %v15975_v47  ;;  %v19582_v42 = vld [vmem:[#allocation22_spill] sm:$0xff]  ;;  %11040 = vmatpush3.bf16.msra.mxu0 %v12114_v36 }
 0x53f   :  { %19573 = vst [vmem:[#allocation9_spill] sm:$0xff] %v16462_v50  ;;  %19577 = vst [vmem:[#allocation7_spill] sm:$0xff] %v16480_v25  ;;  %v16484_v50 = vmul.f32 %v16417_v1, %v19578_v3  ;;  %v16498_v25 = vmul.f32 %v16417_v1, %v19580_v62  ;;  %v19581_v3 = vld [vmem:[#allocation21_spill] sm:$0xff]  ;;  %v16506_v23 = vmul.f32 %v16417_v1, %v19582_v42  ;;  %v8027_v42 = vld [vmem:[#allocation2] sm:$0xff] }
 0x540   :  { %v16502_v2 = vmul.f32 %v16417_v1, %v19581_v3  ;;  %v5601_v47 = vpack.c.bf16 %v5569_v27, %v5568_v15  ;;  %v16515_v22 = vmul.f32 %v16417_v1, %v16027_v4  ;;  %v16519_v62 = vmul.f32 %v16417_v1, %v16043_v26  ;;  %8931 = vmatmul.mubr.bf16.vlgmr.msra.gmra.mrb[64].mxu1 %v8027_v42 }
 0x541   :  { %19579 = vst [vmem:[#allocation12_spill] sm:$0xff] %v16484_v50  ;;  %v19583_v50 = vld [vmem:[#allocation23_spill] sm:$0xff]  ;;  %v16523_v3 = vmul.f32 %v16417_v1, %v16048_v60  ;;  %v16531_v27 = vmul.f32 %v16417_v1, %v16071_v7  ;;  %v16535_v4 = vmul.f32 %v16417_v1, %v16084_v34  ;;  %v16539_v26 = vmul.f32 %v16417_v1, %v16091_v20  ;;  %v12112_v60 = vld [vmem:[%s19329_s5 + $0x80] sm:$0xff]  }
 0x542   :  { %v16510_v9 = vmul.f32 %v16417_v1, %v19583_v50  ;;  %v16527_v50 = vmul.f32 %v16417_v1, %v16066_v44  ;;  %v6664_v15 = vshrl.u32 %v5601_v47, 16  ;;  %v6667_v44 = vshll.u32 %v5601_v47, 16  ;;  %6861 = vst [vmem:[#allocation2 + $0x8d8] sm:$0xff] %v5601_v47  ;;  %7666 = vst [vmem:[#allocation2 + $0x8a8] sm:$0xff] %v5601_v47  ;;  %9188 = vmatpush1.bf16.msra.mxu1 %v12112_v60  ;;  %v8024_v60 = vld [vmem:[#allocation2 + $0x8b0] sm:$0xff] }
 0x543   :  { %v16546_v7 = vmul.f32 %v16417_v1, %v16100_v43  ;;  %v16550_v34 = vmul.f32 %v16417_v1, %v16106_v12  ;;  %v16554_v20 = vmul.f32 %v16417_v1, %v16117_v53  ;;  %v16558_v42 = vmul.f32 %v16417_v1, %v16122_v61  ;;  %v12115_v12 = vld [vmem:[%s19329_s5 + $0x88] sm:$0xff]   ;;  %v6795_v53 = vld [vmem:[#allocation2 + $0x8d0] sm:$0xff]  ;;  %9189 = vmatprep.subr.bf16.mxu1 %v16380_v38 }
 0x544   :  { %v16562_v47 = vmul.f32 %v16417_v1, %v16133_v39  ;;  %v16566_v43 = vmul.f32 %v16417_v1, %v16137_v30  ;;  %v6666_v36 = vrot.slane %v6664_v15, 7  ;;  %v16573_v61 = vmul.f32 %v16417_v1, %v16148_v11  ;;  %v7243_v30 = vld [vmem:[#allocation2 + $0x8e0] sm:$0xff] }
 0x545   :  { %19584 = vst [vmem:[#allocation13_spill] sm:$0xff] %v16550_v34  ;;  %19585 = vst [vmem:[#allocation14_spill] sm:$0xff] %v16554_v20  ;;  %v7116_v20 = vrot.slane %v6667_v44, 1  ;;  %v16577_v39 = vmul.f32 %v16417_v1, %v16153_v17  ;;  %v16590_v11 = vmul.f32 %v16417_v1, %v16181_v59  ;;  %v16594_v17 = vmul.f32 %v16417_v1, %v16185_v19  ;;  %v19592_v59 = vld [vmem:[#allocation24_spill] sm:$0xff]  ;;  %v19593_v19 = vld [vmem:[#allocation25_spill] sm:$0xff] }
 0x546   :  { %19586 = vst [vmem:[#allocation15_spill] sm:$0xff] %v16558_v42  ;;  %19587 = vst [vmem:[#allocation16_spill] sm:$0xff] %v16562_v47  ;;  %v16582_v47 = vmul.f32 %v16417_v1, %v16162_v51  ;;  %v16586_v42 = vmul.f32 %v16417_v1, %v16172_v35  ;;  %v16598_v34 = vmul.f32 %v16417_v1, %v16195_v28  ;;  %9190 = vmatpush1.bf16.msra.mxu1 %v12115_v12 }
 0x547   :  { %19588 = vst [vmem:[#allocation17_spill] sm:$0xff] %v16566_v43  ;;  %19589 = vst [vmem:[#allocation18_spill] sm:$0xff] %v16573_v61  ;;  %v7604_v43 = vld [vmem:[#allocation2 + $0x8a0] sm:$0xff]  ;;  %v7117_v61 = vor.u32 %v7116_v20, %v6664_v15  ;;  %v16602_v51 = vmul.f32 %v16417_v1, %v16198_v55  ;;  %v16606_v35 = vmul.f32 %v16417_v1, %v16208_v52  ;;  %9191 = vmatprep.subr.bf16.mxu1 %v16380_v38 }
 0x548   :  { %19590 = vst [vmem:[#allocation19_spill] sm:$0xff] %v16577_v39  ;;  %19591 = vst [vmem:[#allocation20_spill] sm:$0xff] %v16590_v11  ;;  %v6669_v39 = vor.u32 %v6667_v44, %v6666_v36  ;;  %v16610_v11 = vmul.f32 %v16417_v1, %v19592_v59  ;;  %v16614_v44 = vmul.f32 %v16417_v1, %v19593_v19 }
 0x549   :  { %v16618_v28 = vmul.f32 %v16417_v1, %v16225_v14  ;;  %v7244_v52 = vsel %vm12992_vm10, %v7117_v61, %v7243_v30  ;;  %v8025_v59 = vsel %vm12992_vm10, %v7117_v61, %v8024_v60  ;;  %v19596_v14 = vld [vmem:[#allocation26_spill] sm:$0xff]  ;;  %v16643_v61 = vmul.f32 %v16417_v1, %v16250_v45 }
 0x54a   :  { %v6796_v55 = vsel %vm12319_vm5, %v6669_v39, %v6795_v53  ;;  %v7605_v36 = vsel %vm12319_vm5, %v6669_v39, %v7604_v43  ;;  %7245 = vst [vmem:[#allocation2 + $0x8e0] sm:$0xff] %v7244_v52  ;;  %8026 = vst [vmem:[#allocation2 + $0x8b0] sm:$0xff] %v8025_v59  ;;  %v16631_v12 = vmul.f32 %v16417_v1, %v19596_v14  ;;  %v19597_v53 = vld [vmem:[#allocation27_spill] sm:$0xff]  ;;  %v19598_v39 = vld [vmem:[#allocation8_spill] sm:$0xff] }
 0x54b   :  { %6797 = vst [vmem:[#allocation2 + $0x8d0] sm:$0xff] %v6796_v55  ;;  %7606 = vst [vmem:[#allocation2 + $0x8a0] sm:$0xff] %v7605_v36  ;;  %v16635_v19 = vmul.f32 %v16417_v1, %v19597_v53  ;;  %v16639_v43 = vmul.f32 %v16417_v1, %v16247_v29  ;;  %v16647_v30 = vmul.f32 %v16417_v1, %v19598_v39  ;;  %v19604_v59 = vld [vmem:[#allocation10_spill] sm:$0xff]  ;;  %v19605_v14 = vld [vmem:[#allocation9_spill] sm:$0xff] }
 0x54c   :  { %v16651_v60 = vmul.f32 %v16417_v1, %v16264_v5  ;;  %v16655_v55 = vmul.f32 %v16417_v1, %v16272_v54  ;;  %v16659_v29 = vmul.f32 %v16417_v1, %v16277_v41  ;;  %v16663_v45 = vmul.f32 %v16417_v1, %v16285_v6  ;;  %v19608_v15 = vld [vmem:[#allocation13_spill] sm:$0xff] }
 0x54d   :  { %v16667_v52 = vmul.f32 %v16417_v1, %v16289_v46  ;;  %v16671_v5 = vmul.f32 %v16417_v1, %v16299_v24  ;;  %v16675_v54 = vmul.f32 %v16417_v1, %v16302_v0  ;;  %v16679_v41 = vmul.f32 %v16417_v1, %v16312_v8  ;;  %v12116_v0 = vld [vmem:[%s19329_s5 + $0x90] sm:$0xff]  }
 0x54e   :  { %v16683_v6 = vmul.f32 %v16417_v1, %v16316_v58  ;;  %v16687_v46 = vmul.f32 %v16417_v1, %v16324_v63  ;;  %v16691_v24 = vmul.f32 %v16417_v1, %v16329_v16  ;;  %v16698_v8 = vmul.f32 %v16417_v1, %v16337_v21  ;;  %9192 = vmatpush1.bf16.msra.mxu1 %v12116_v0  ;;  %v19607_v0 = vld [vmem:[#allocation12_spill] sm:$0xff] }
 0x54f   :  { %v16702_v58 = vmul.f32 %v16417_v1, %v16345_v48  ;;  %v16706_v63 = vmul.f32 %v16417_v1, %v16351_v31  ;;  %v16710_v16 = vadd.f32 %v16450_v57, %v16431_v49  ;;  %v16714_v36 = vadd.f32 %v16450_v57, %v16435_v37  ;;  %v19603_v1 = vld [vmem:[#allocation6_spill] sm:$0xff]  ;;  %9193 = vmatprep.subr.bf16.mxu1 %v16380_v38 }
 0x550   :  { %v16718_v21 = vadd.f32 %v16450_v57, %v16439_v13  ;;  %v16722_v48 = vadd.f32 %v16450_v57, %v16443_v10  ;;  %v16726_v31 = vadd.f32 %v16450_v57, %v16447_v18  ;;  %v5511_v49 = vadd.f32 %v16450_v57, %v19603_v1  ;;  %v19606_v18 = vld [vmem:[#allocation7_spill] sm:$0xff]  ;;  %v19609_v38 = vld [vmem:[#allocation14_spill] sm:$0xff] }
 0x551   :  { %19599 = vst [vmem:[#allocation21_spill] sm:$0xff] %v16714_v36  ;;  %v5512_v37 = vadd.f32 %v16450_v57, %v19604_v59  ;;  %v5513_v53 = vadd.f32 %v16450_v57, %v19605_v14  ;;  %v5514_v13 = vadd.f32 %v16450_v57, %v16472_v56  ;;  %v5515_v10 = vadd.f32 %v16450_v57, %v16476_v33 }
 0x552   :  { %19600 = vst [vmem:[#allocation22_spill] sm:$0xff] %v16718_v21  ;;  %19601 = vst [vmem:[#allocation23_spill] sm:$0xff] %v16722_v48  ;;  %v5516_v39 = vadd.f32 %v16450_v57, %v19606_v18  ;;  %v5517_v1 = vadd.f32 %v16450_v57, %v19607_v0  ;;  %v5518_v59 = vadd.f32 %v16450_v57, %v16490_v40  ;;  %v19611_v48 = vld [vmem:[#allocation16_spill] sm:$0xff]  ;;  %v19612_v21 = vld [vmem:[#allocation17_spill] sm:$0xff] }
 0x553   :  { %19602 = vst [vmem:[#allocation24_spill] sm:$0xff] %v16726_v31  ;;  %v5519_v14 = vadd.f32 %v16450_v57, %v16494_v32  ;;  %v5520_v56 = vadd.f32 %v16450_v57, %v16498_v25  ;;  %v5521_v20 = vadd.f32 %v16450_v57, %v16502_v2  ;;  %v5522_v33 = vadd.f32 %v16450_v57, %v16506_v23  ;;  %v19610_v31 = vld [vmem:[#allocation15_spill] sm:$0xff] }
 0x554   :  { %v5523_v18 = vadd.f32 %v16450_v57, %v16510_v9  ;;  %v5524_v0 = vadd.f32 %v16450_v57, %v16515_v22  ;;  %v5525_v40 = vadd.f32 %v16450_v57, %v16519_v62  ;;  %v5526_v32 = vadd.f32 %v16450_v57, %v16523_v3 }
 0x555   :  { %v5527_v25 = vadd.f32 %v16450_v57, %v16527_v50  ;;  %v5528_v2 = vadd.f32 %v16450_v57, %v16531_v27  ;;  %v5529_v23 = vadd.f32 %v16450_v57, %v16535_v4  ;;  %v5530_v9 = vadd.f32 %v16450_v57, %v16539_v26  ;;  %v19613_v26 = vld [vmem:[#allocation18_spill] sm:$0xff] }
 0x556   :  { %v5531_v22 = vadd.f32 %v16450_v57, %v16546_v7  ;;  %v5532_v62 = vadd.f32 %v16450_v57, %v19608_v15  ;;  %v5533_v3 = vadd.f32 %v16450_v57, %v19609_v38  ;;  %v5534_v50 = vadd.f32 %v16450_v57, %v19610_v31  ;;  %v19614_v7 = vld [vmem:[#allocation19_spill] sm:$0xff] }
 0x557   :  { %v5535_v27 = vadd.f32 %v16450_v57, %v19611_v48  ;;  %v16781_v4 = vadd.f32 %v16450_v57, %v19612_v21  ;;  %v16785_v36 = vadd.f32 %v16450_v57, %v19613_v26  ;;  %v16789_v15 = vadd.f32 %v16450_v57, %v19614_v7  ;;  %v19615_v48 = vld [vmem:[#allocation20_spill] sm:$0xff] }
 0x558   :  { %v16793_v38 = vadd.f32 %v16450_v57, %v16582_v47  ;;  %v16797_v31 = vadd.f32 %v16450_v57, %v16586_v42  ;;  %v16801_v21 = vadd.f32 %v16450_v57, %v19615_v48  ;;  %v16805_v26 = vadd.f32 %v16450_v57, %v16594_v17 }
 0x559   :  { %v16809_v7 = vadd.f32 %v16450_v57, %v16598_v34  ;;  %v16813_v47 = vadd.f32 %v16450_v57, %v16602_v51  ;;  %v16817_v42 = vadd.f32 %v16450_v57, %v16606_v35  ;;  %v16821_v48 = vadd.f32 %v16450_v57, %v16610_v11 }
 0x55a   :  { %v16825_v17 = vadd.f32 %v16450_v57, %v16614_v44  ;;  %v16829_v34 = vadd.f32 %v16450_v57, %v16618_v28  ;;  %v16833_v51 = vadd.f32 %v16450_v57, %v16631_v12  ;;  %v16837_v35 = vadd.f32 %v16450_v57, %v16635_v19 }
 0x55b   :  { %v16841_v11 = vadd.f32 %v16450_v57, %v16639_v43  ;;  %v16845_v44 = vadd.f32 %v16450_v57, %v16643_v61  ;;  %v16849_v28 = vadd.f32 %v16450_v57, %v16647_v30  ;;  %v16853_v12 = vadd.f32 %v16450_v57, %v16651_v60 }
 0x55c   :  { %v16857_v19 = vadd.f32 %v16450_v57, %v16655_v55  ;;  %v16861_v43 = vadd.f32 %v16450_v57, %v16659_v29  ;;  %v16865_v61 = vadd.f32 %v16450_v57, %v16663_v45  ;;  %v16869_v30 = vadd.f32 %v16450_v57, %v16667_v52 }
 0x55d   :  { %v16873_v60 = vadd.f32 %v16450_v57, %v16671_v5  ;;  %v16877_v55 = vadd.f32 %v16450_v57, %v16675_v54  ;;  %v16881_v29 = vadd.f32 %v16450_v57, %v16679_v41  ;;  %v16885_v45 = vadd.f32 %v16450_v57, %v16683_v6  ;;  %v12117_v6 = vld [vmem:[%s19329_s5 + $0x98] sm:$0xff]  }
 0x55e   :  { %v16889_v52 = vadd.f32 %v16450_v57, %v16687_v46  ;;  %v16893_v5 = vadd.f32 %v16450_v57, %v16691_v24  ;;  %v16897_v54 = vadd.f32 %v16450_v57, %v16698_v8  ;;  %v16901_v41 = vadd.f32 %v16450_v57, %v16702_v58  ;;  %9194 = vmatpush1.bf16.msra.mxu1 %v12117_v6 }
 0x55f   :  { %19616 = vst [vmem:[#allocation25_spill] sm:$0xff] %v16873_v60  ;;  %19617 = vst [vmem:[#allocation26_spill] sm:$0xff] %v16877_v55  ;;  %v16908_v46 = vadd.f32 %v16450_v57, %v16706_v63  ;;  %v16921_v58 = vpack.c.bf16 %v5513_v53, %v5512_v37  ;;  %v16925_v55 = vpack.c.bf16 %v5517_v1, %v5516_v39 }
 0x560   :  { %19618 = vst [vmem:[#allocation27_spill] sm:$0xff] %v16881_v29  ;;  %19619 = vst [vmem:[#allocation8_spill] sm:$0xff] %v16885_v45  ;;  %v19626_v45 = vld [vmem:[#allocation23_spill] sm:$0xff]  ;;  %v16927_v60 = vpack.c.bf16 %v5519_v14, %v5518_v59  ;;  %v16929_v57 = vpack.c.bf16 %v5521_v20, %v5520_v56  ;;  %v16931_v63 = vpack.c.bf16 %v5523_v18, %v5522_v33 }
 0x561   :  { %19620 = vst [vmem:[#allocation6_spill] sm:$0xff] %v16889_v52  ;;  %19621 = vst [vmem:[#allocation10_spill] sm:$0xff] %v16893_v5  ;;  %v19624_v52 = vld [vmem:[#allocation21_spill] sm:$0xff]  ;;  %v19625_v5 = vld [vmem:[#allocation22_spill] sm:$0xff]  ;;  %v16948_v37 = vpack.c.bf16 %v5531_v22, %v5530_v9  ;;  %v16950_v53 = vpack.c.bf16 %v5533_v3, %v5532_v62  ;;  %v16972_v39 = vpack.c.bf16 %v16793_v38, %v16789_v15 }
 0x562   :  { %19622 = vst [vmem:[#allocation9_spill] sm:$0xff] %v16897_v54  ;;  %19623 = vst [vmem:[#allocation7_spill] sm:$0xff] %v16901_v41  ;;  %v16912_v24 = vpack.c.bf16 %v19624_v52, %v16710_v16  ;;  %v16916_v8 = vpack.c.bf16 %v19626_v45, %v19625_v5  ;;  %v19627_v54 = vld [vmem:[#allocation24_spill] sm:$0xff]  ;;  %v16923_v41 = vpack.c.bf16 %v5515_v10, %v5514_v13  ;;  %v19634_v20 = vld [vmem:[#allocation11_spill] sm:$0xff]  ;;  %v19361_v5 = vshrl.u32 %v16927_v60, 16 }
 0x563   :  { %v16919_v29 = vpack.c.bf16 %v5511_v49, %v19627_v54  ;;  %19628 = vst [vmem:[#allocation12_spill] sm:$0xff] %v16925_v55  ;;  %19629 = vst [vmem:[#allocation13_spill] sm:$0xff] %v16927_v60  ;;  %v16933_v16 = vpack.c.bf16 %v5525_v40, %v5524_v0  ;;  %v16935_v45 = vpack.c.bf16 %v5527_v25, %v5526_v32  ;;  %9195 = vmatprep.subr.bf16.mxu1 %v19634_v20 }
 0x564   :  { %19630 = vst [vmem:[#allocation14_spill] sm:$0xff] %v16929_v57  ;;  %19631 = vst [vmem:[#allocation15_spill] sm:$0xff] %v16931_v63  ;;  %v16946_v49 = vpack.c.bf16 %v5529_v23, %v5528_v2  ;;  %v16952_v13 = vpack.c.bf16 %v5535_v27, %v5534_v50  ;;  %v16968_v10 = vpack.c.bf16 %v16785_v36, %v16781_v4 }
 0x565   :  { %19632 = vst [vmem:[#allocation16_spill] sm:$0xff] %v16933_v16  ;;  %19633 = vst [vmem:[#allocation17_spill] sm:$0xff] %v16935_v45  ;;  %v16976_v1 = vpack.c.bf16 %v16801_v21, %v16797_v31  ;;  %v16980_v59 = vpack.c.bf16 %v16809_v7, %v16805_v26  ;;  %v16996_v36 = vpack.c.bf16 %v16817_v42, %v16813_v47  ;;  %v19379_v31 = vshrl.u32 %v16912_v24, 16 }
 0x566   :  { %6024 = vst [vmem:[#allocation2 + $0x50] sm:$0xff] %v16912_v24  ;;  %6025 = vst [vmem:[#allocation2 + $0x98] sm:$0xff] %v16916_v8  ;;  %v17000_v14 = vpack.c.bf16 %v16825_v17, %v16821_v48  ;;  %v17004_v56 = vpack.c.bf16 %v16833_v51, %v16829_v34  ;;  %v17008_v33 = vpack.c.bf16 %v16841_v11, %v16837_v35  ;;  %v19650_v32 = vld [vmem:[#allocation25_spill] sm:$0xff]  ;;  %v19652_v2 = vld [vmem:[#allocation26_spill] sm:$0xff]  ;;  %v19397_v21 = vshll.u32 %v16912_v24, 16 }
 0x567   :  { %6026 = vst [vmem:[#allocation2 + $0xe0] sm:$0xff] %v16919_v29  ;;  %6830 = vst [vmem:[#allocation2 + $0x20] sm:$0xff] %v16912_v24  ;;  %v17024_v18 = vpack.c.bf16 %v16849_v28, %v16845_v44  ;;  %v17028_v0 = vpack.c.bf16 %v16857_v19, %v16853_v12  ;;  %v17032_v40 = vpack.c.bf16 %v16865_v61, %v16861_v43  ;;  %v19653_v23 = vld [vmem:[#allocation27_spill] sm:$0xff]  ;;  %v19655_v22 = vld [vmem:[#allocation8_spill] sm:$0xff]  ;;  %v19377_v26 = vshrl.u32 %v16916_v8, 16 }
 0x568   :  { %6831 = vst [vmem:[#allocation2 + $0x68] sm:$0xff] %v16916_v8  ;;  %6832 = vst [vmem:[#allocation2 + $0xb0] sm:$0xff] %v16919_v29  ;;  %v17036_v25 = vpack.c.bf16 %v19650_v32, %v16869_v30  ;;  %v17050_v9 = vpack.c.bf16 %v19653_v23, %v19652_v2  ;;  %v19656_v62 = vld [vmem:[#allocation6_spill] sm:$0xff]  ;;  %v19395_v7 = vshll.u32 %v16916_v8, 16  ;;  %v19366_v47 = vshrl.u32 %v16919_v29, 16 }
 0x569   :  { %7637 = vst [vmem:[#allocation2 + $0x38] sm:$0xff] %v16916_v8  ;;  %7638 = vst [vmem:[#allocation2 + $0x80] sm:$0xff] %v16919_v29  ;;  %v17054_v3 = vpack.c.bf16 %v19656_v62, %v19655_v22  ;;  %v19657_v50 = vld [vmem:[#allocation10_spill] sm:$0xff]  ;;  %v19658_v27 = vld [vmem:[#allocation9_spill] sm:$0xff]  ;;  %v19389_v42 = vshll.u32 %v16919_v29, 16  ;;  %v19365_v48 = vshrl.u32 %v16921_v58, 16 }
 0x56a   :  { %19635 = vst [vmem:[#allocation18_spill] sm:$0xff] %v16946_v49  ;;  %19636 = vst [vmem:[#allocation19_spill] sm:$0xff] %v16948_v37  ;;  %v17058_v4 = vpack.c.bf16 %v19658_v27, %v19657_v50  ;;  %v19659_v15 = vld [vmem:[#allocation7_spill] sm:$0xff]  ;;  %v19386_v17 = vshll.u32 %v16921_v58, 16  ;;  %v5667_v51 = vrot.slane %v19379_v31, 7  ;;  %v5674_v35 = vrot.slane %v19377_v26, 7 }
 0x56b   :  { %19637 = vst [vmem:[#allocation20_spill] sm:$0xff] %v16950_v53  ;;  %19638 = vst [vmem:[#allocation21_spill] sm:$0xff] %v16952_v13  ;;  %v17062_v38 = vpack.c.bf16 %v16908_v46, %v19659_v15  ;;  %v19363_v11 = vshrl.u32 %v16923_v41, 16  ;;  %v19383_v44 = vshll.u32 %v16923_v41, 16  ;;  %v5681_v28 = vrot.slane %v19366_v47, 7 }
 0x56c   :  { %6027 = vst [vmem:[#allocation2 + $0x128] sm:$0xff] %v16921_v58  ;;  %6028 = vst [vmem:[#allocation2 + $0x170] sm:$0xff] %v16923_v41  ;;  %v5688_v12 = vrot.slane %v19365_v48, 7  ;;  %v19362_v19 = vshrl.u32 %v16925_v55, 16  ;;  %v19380_v43 = vshll.u32 %v16925_v55, 16  ;;  %v17122_v61 = vor.u32 %v19397_v21, %v5667_v51  ;;  %v12118_v51 = vld [vmem:[%s19329_s5 + $0xa0] sm:$0xff]  }
 0x56d   :  { %6029 = vst [vmem:[#allocation2 + $0x1b8] sm:$0xff] %v16925_v55  ;;  %6030 = vst [vmem:[#allocation2 + $0x200] sm:$0xff] %v16927_v60  ;;  %v8037_v34 = vld [vmem:[#allocation2 + $0x50] sm:$0xff]  ;;  %v17126_v30 = vor.u32 %v19395_v7, %v5674_v35  ;;  %v5695_v52 = vrot.slane %v19363_v11, 7  ;;  %v17133_v54 = vor.u32 %v19389_v42, %v5681_v28  ;;  %v19371_v32 = vshll.u32 %v16927_v60, 16  ;;  %9196 = vmatpush1.bf16.msra.mxu1 %v12118_v51 }
 0x56e   :  { %6833 = vst [vmem:[#allocation2 + $0xf8] sm:$0xff] %v16921_v58  ;;  %6834 = vst [vmem:[#allocation2 + $0x140] sm:$0xff] %v16923_v41  ;;  %8938 = vmatprep.mubr.bf16.mxu1 %v8037_v34  ;;  %v17137_v6 = vor.u32 %v19386_v17, %v5688_v12  ;;  %v5702_v46 = vrot.slane %v19362_v19, 7  ;;  %v5709_v23 = vrot.slane %v19361_v5, 7  ;;  %v19364_v22 = vshrl.u32 %v16929_v57, 16  ;;  %9197 = vmatprep.subr.bf16.mxu1 %v19634_v20 }
 0x56f   :  { %6835 = vst [vmem:[#allocation2 + $0x188] sm:$0xff] %v16925_v55  ;;  %6836 = vst [vmem:[#allocation2 + $0x1d0] sm:$0xff] %v16927_v60  ;;  %v17144_v2 = vor.u32 %v19383_v44, %v5695_v52  ;;  %v19370_v62 = vshll.u32 %v16929_v57, 16  ;;  %v19368_v27 = vshrl.u32 %v16931_v63, 16  ;;  %v19374_v15 = vshll.u32 %v16931_v63, 16 }
 0x570   :  { %7639 = vst [vmem:[#allocation2 + $0xc8] sm:$0xff] %v16921_v58  ;;  %7640 = vst [vmem:[#allocation2 + $0x110] sm:$0xff] %v16923_v41  ;;  %v17152_v50 = vor.u32 %v19380_v43, %v5702_v46  ;;  %v19367_v34 = vshrl.u32 %v16933_v16, 16  ;;  %v17162_v35 = vor.u32 %v19371_v32, %v5709_v23  ;;  %v5716_v28 = vrot.slane %v19364_v22, 7 }
 0x571   :  { %7641 = vst [vmem:[#allocation2 + $0x158] sm:$0xff] %v16925_v55  ;;  %7642 = vst [vmem:[#allocation2 + $0x1a0] sm:$0xff] %v16927_v60  ;;  %v19372_v12 = vshll.u32 %v16933_v16, 16  ;;  %v19369_v52 = vshrl.u32 %v16935_v45, 16  ;;  %v5723_v46 = vrot.slane %v19368_v27, 7  ;;  %v19376_v19 = vshll.u32 %v16935_v45, 16 }
 0x572   :  { %19639 = vst [vmem:[#allocation22_spill] sm:$0xff] %v16968_v10  ;;  %19640 = vst [vmem:[#allocation23_spill] sm:$0xff] %v16972_v39  ;;  %v5730_v5 = vrot.slane %v19367_v34, 7  ;;  %v19373_v11 = vshrl.u32 %v16946_v49, 16  ;;  %v17176_v23 = vor.u32 %v19370_v62, %v5716_v28  ;;  %v19378_v48 = vshll.u32 %v16946_v49, 16  ;;  %v5958_v55 = vld [vmem:[#allocation2 + $0x5a0] sm:$0xff] }
 0x573   :  { %19641 = vst [vmem:[#allocation24_spill] sm:$0xff] %v16976_v1  ;;  %19642 = vst [vmem:[#allocation11_spill] sm:$0xff] %v16980_v59  ;;  %v5737_v22 = vrot.slane %v19369_v52, 7  ;;  %v19375_v47 = vshrl.u32 %v16948_v37, 16  ;;  %v17185_v34 = vor.u32 %v19374_v15, %v5723_v46  ;;  %v19382_v27 = vshll.u32 %v16948_v37, 16 }
 0x574   :  { %6031 = vst [vmem:[#allocation2 + $0x248] sm:$0xff] %v16929_v57  ;;  %6032 = vst [vmem:[#allocation2 + $0x290] sm:$0xff] %v16931_v63  ;;  %v17189_v51 = vor.u32 %v19372_v12, %v5730_v5  ;;  %v5744_v28 = vrot.slane %v19373_v11, 7  ;;  %v19381_v32 = vshrl.u32 %v16950_v53, 16  ;;  %v19388_v46 = vshll.u32 %v16950_v53, 16 }
 0x575   :  { %6033 = vst [vmem:[#allocation2 + $0x2d8] sm:$0xff] %v16933_v16  ;;  %6034 = vst [vmem:[#allocation2 + $0x320] sm:$0xff] %v16935_v45  ;;  %v17196_v52 = vor.u32 %v19376_v19, %v5737_v22  ;;  %v5751_v62 = vrot.slane %v19375_v47, 7  ;;  %v19384_v12 = vshrl.u32 %v16952_v13, 16  ;;  %v19392_v11 = vshll.u32 %v16952_v13, 16 }
 0x576   :  { %6837 = vst [vmem:[#allocation2 + $0x218] sm:$0xff] %v16929_v57  ;;  %6838 = vst [vmem:[#allocation2 + $0x260] sm:$0xff] %v16931_v63  ;;  %v17204_v5 = vor.u32 %v19378_v48, %v5744_v28  ;;  %v19385_v15 = vshrl.u32 %v16972_v39, 16  ;;  %v5758_v47 = vrot.slane %v19381_v32, 7  ;;  %v19390_v19 = vshll.u32 %v16972_v39, 16 }
 0x577   :  { %6839 = vst [vmem:[#allocation2 + $0x2a8] sm:$0xff] %v16933_v16  ;;  %6840 = vst [vmem:[#allocation2 + $0x2f0] sm:$0xff] %v16935_v45  ;;  %v17211_v22 = vor.u32 %v19382_v27, %v5751_v62  ;;  %v19387_v26 = vshrl.u32 %v16976_v1, 16  ;;  %v5765_v28 = vrot.slane %v19384_v12, 7  ;;  %v19394_v31 = vshll.u32 %v16976_v1, 16 }
 0x578   :  { %7643 = vst [vmem:[#allocation2 + $0x1e8] sm:$0xff] %v16929_v57  ;;  %7644 = vst [vmem:[#allocation2 + $0x230] sm:$0xff] %v16931_v63  ;;  %v5772_v48 = vrot.slane %v19385_v15, 7  ;;  %v19391_v43 = vshrl.u32 %v16980_v59, 16  ;;  %v17225_v62 = vor.u32 %v19388_v46, %v5758_v47  ;;  %v19396_v27 = vshll.u32 %v16980_v59, 16  ;;  %v5943_v63 = vld [vmem:[#allocation2 + $0x3f0] sm:$0xff] }
 0x579   :  { %7645 = vst [vmem:[#allocation2 + $0x278] sm:$0xff] %v16933_v16  ;;  %7646 = vst [vmem:[#allocation2 + $0x2c0] sm:$0xff] %v16935_v45  ;;  %v5779_v32 = vrot.slane %v19387_v26, 7  ;;  %v19393_v44 = vshrl.u32 %v16996_v36, 16  ;;  %v17233_v12 = vor.u32 %v19392_v11, %v5765_v28  ;;  %v19399_v47 = vshll.u32 %v16996_v36, 16  ;;  %v5949_v57 = vld [vmem:[#allocation2 + $0x4c8] sm:$0xff] }
 0x57a   :  { %19643 = vst [vmem:[#allocation28_spill] sm:$0xff] %v16996_v36  ;;  %19644 = vst [vmem:[#allocation29_spill] sm:$0xff] %v17000_v14  ;;  %v17237_v15 = vor.u32 %v19390_v19, %v5772_v48  ;;  %v5786_v17 = vrot.slane %v19391_v43, 7  ;;  %v19398_v42 = vshrl.u32 %v17000_v14, 16  ;;  %v19407_v28 = vshll.u32 %v17000_v14, 16 }
 0x57b   :  { %19645 = vst [vmem:[#allocation30_spill] sm:$0xff] %v17004_v56  ;;  %19646 = vst [vmem:[#allocation31_spill] sm:$0xff] %v17008_v33  ;;  %v17244_v26 = vor.u32 %v19394_v31, %v5779_v32  ;;  %v5793_v46 = vrot.slane %v19393_v44, 7  ;;  %v19400_v19 = vshrl.u32 %v17004_v56, 16  ;;  %v19403_v11 = vshrl.u32 %v17008_v33, 16 }
 0x57c   :  { %6035 = vst [vmem:[#allocation2 + $0x368] sm:$0xff] %v16946_v49  ;;  %6036 = vst [vmem:[#allocation2 + $0x3b0] sm:$0xff] %v16948_v37  ;;  %v17252_v48 = vor.u32 %v19396_v27, %v5786_v17  ;;  %v5800_v44 = vrot.slane %v19398_v42, 7  ;;  %v19406_v7 = vshrl.u32 %v17024_v18, 16  ;;  %v19410_v43 = vshrl.u32 %v17028_v0, 16 }
 0x57d   :  { %6037 = vst [vmem:[#allocation2 + $0x3f8] sm:$0xff] %v16950_v53  ;;  %6038 = vst [vmem:[#allocation2 + $0x440] sm:$0xff] %v16952_v13  ;;  %v17259_v32 = vor.u32 %v19399_v47, %v5793_v46  ;;  %v5807_v17 = vrot.slane %v19400_v19, 7  ;;  %v5814_v27 = vrot.slane %v19403_v11, 7  ;;  %v19680_v19 = vshll.u32 %v17004_v56, 16  ;;  %v5907_v47 = vld [vmem:[#allocation2 + $0x90] sm:$0xff] }
 0x57e   :  { %6841 = vst [vmem:[#allocation2 + $0x338] sm:$0xff] %v16946_v49  ;;  %6842 = vst [vmem:[#allocation2 + $0x380] sm:$0xff] %v16948_v37  ;;  %v17273_v46 = vor.u32 %v19407_v28, %v5800_v44  ;;  %v5821_v42 = vrot.slane %v19406_v7, 7  ;;  %v19682_v11 = vshll.u32 %v17008_v33, 16  ;;  %v12119_v7 = vld [vmem:[%s19329_s5 + $0xa8] sm:$0xff]   ;;  %v19684_v31 = vshll.u32 %v17024_v18, 16 }
 0x57f   :  { %6843 = vst [vmem:[#allocation2 + $0x3c8] sm:$0xff] %v16950_v53  ;;  %6844 = vst [vmem:[#allocation2 + $0x410] sm:$0xff] %v16952_v13  ;;  %v5904_v28 = vld [vmem:[#allocation2 + $0x48] sm:$0xff]  ;;  %9198 = vmatpush1.bf16.msra.mxu1 %v12119_v7  ;;  %v19692_v7 = vshrl.u32 %v17050_v9, 16  ;;  %v17346_v16 = vsel %vm12319_vm5, %v17126_v30, %v5907_v47 }
 0x580   :  { %7647 = vst [vmem:[#allocation2 + $0x308] sm:$0xff] %v16946_v49  ;;  %7648 = vst [vmem:[#allocation2 + $0x350] sm:$0xff] %v16948_v37  ;;  %v17285_v21 = vor.u32 %v19682_v11, %v5814_v27  ;;  %v5916_v44 = vld [vmem:[#allocation2 + $0x168] sm:$0xff]  ;;  %v19689_v11 = vshll.u32 %v17032_v40, 16  ;;  %9199 = vmatprep.subr.bf16.mxu1 %v19634_v20  ;;  %v19696_v20 = vshrl.u32 %v17058_v4, 16 }
 0x581   :  { %7649 = vst [vmem:[#allocation2 + $0x398] sm:$0xff] %v16950_v53  ;;  %7650 = vst [vmem:[#allocation2 + $0x3e0] sm:$0xff] %v16952_v13  ;;  %v19691_v13 = vshrl.u32 %v17036_v25, 16  ;;  %v5940_v49 = vld [vmem:[#allocation2 + $0x3a8] sm:$0xff]  ;;  %v5917_v47 = vsel %vm12319_vm5, %v17144_v2, %v5916_v44 }
 0x582   :  { %19647 = vst [vmem:[#allocation32_spill] sm:$0xff] %v17024_v18  ;;  %19648 = vst [vmem:[#allocation33_spill] sm:$0xff] %v17028_v0  ;;  %v5863_v45 = vrot.slane %v19696_v20, 7 }
 0x583   :  { %19649 = vst [vmem:[#allocation34_spill] sm:$0xff] %v17032_v40  ;;  %19651 = vst [vmem:[#allocation25_spill] sm:$0xff] %v17036_v25  ;;  %v5842_v53 = vrot.slane %v19691_v13, 7  ;;  %v5937_v13 = vld [vmem:[#allocation2 + $0x360] sm:$0xff] }
 0x584   :  { %6039 = vst [vmem:[#allocation2 + $0x4d0] sm:$0xff] %v16972_v39  ;;  %6040 = vst [vmem:[#allocation2 + $0x518] sm:$0xff] %v16976_v1 }
 0x585   :  { %6041 = vst [vmem:[#allocation2 + $0x560] sm:$0xff] %v16980_v59  ;;  %6845 = vst [vmem:[#allocation2 + $0x458] sm:$0xff] %v16968_v10 }
 0x586   :  { %6846 = vst [vmem:[#allocation2 + $0x4a0] sm:$0xff] %v16972_v39  ;;  %6847 = vst [vmem:[#allocation2 + $0x4e8] sm:$0xff] %v16976_v1  ;;  %v5925_v39 = vld [vmem:[#allocation2 + $0x240] sm:$0xff] }
 0x587   :  { %6848 = vst [vmem:[#allocation2 + $0x530] sm:$0xff] %v16980_v59  ;;  %7651 = vst [vmem:[#allocation2 + $0x428] sm:$0xff] %v16968_v10  ;;  %v17281_v10 = vor.u32 %v19680_v19, %v5807_v17  ;;  %v19686_v19 = vshrl.u32 %v17032_v40, 16  ;;  %v5926_v44 = vsel %vm12319_vm5, %v17176_v23, %v5925_v39  ;;  %v5938_v39 = vsel %vm12319_vm5, %v17204_v5, %v5937_v13 }
 0x588   :  { %7652 = vst [vmem:[#allocation2 + $0x4b8] sm:$0xff] %v16976_v1  ;;  %7653 = vst [vmem:[#allocation2 + $0x500] sm:$0xff] %v16980_v59  ;;  %v5931_v1 = vld [vmem:[#allocation2 + $0x2d0] sm:$0xff]  ;;  %v5950_v13 = vsel %vm12319_vm5, %v17237_v15, %v5949_v57 }
 0x589   :  { %19654 = vst [vmem:[#allocation26_spill] sm:$0xff] %v17050_v9  ;;  %6042 = vst [vmem:[#allocation2 + $0x5a8] sm:$0xff] %v16996_v36  ;;  %v5835_v17 = vrot.slane %v19686_v19, 7  ;;  %v5922_v19 = vld [vmem:[#allocation2 + $0x1f8] sm:$0xff] }
 0x58a   :  { %6043 = vst [vmem:[#allocation2 + $0x5f0] sm:$0xff] %v17000_v14  ;;  %6044 = vst [vmem:[#allocation2 + $0x638] sm:$0xff] %v17004_v56 }
 0x58b   :  { %6045 = vst [vmem:[#allocation2 + $0x680] sm:$0xff] %v17008_v33  ;;  %6849 = vst [vmem:[#allocation2 + $0x578] sm:$0xff] %v16996_v36  ;;  %v17310_v27 = vor.u32 %v19689_v11, %v5835_v17  ;;  %v5946_v17 = vld [vmem:[#allocation2 + $0x438] sm:$0xff]  ;;  %v19698_v11 = vshll.u32 %v17050_v9, 16 }
 0x58c   :  { %6850 = vst [vmem:[#allocation2 + $0x5c0] sm:$0xff] %v17000_v14  ;;  %6851 = vst [vmem:[#allocation2 + $0x608] sm:$0xff] %v17004_v56 }
 0x58d   :  { %6852 = vst [vmem:[#allocation2 + $0x650] sm:$0xff] %v17008_v33  ;;  %7654 = vst [vmem:[#allocation2 + $0x548] sm:$0xff] %v16996_v36  ;;  %v19687_v36 = vshll.u32 %v17028_v0, 16 }
 0x58e   :  { %7655 = vst [vmem:[#allocation2 + $0x590] sm:$0xff] %v17000_v14  ;;  %7656 = vst [vmem:[#allocation2 + $0x5d8] sm:$0xff] %v17004_v56  ;;  %v5828_v14 = vrot.slane %v19410_v43, 7  ;;  %v17295_v56 = vor.u32 %v19684_v31, %v5821_v42  ;;  %v5910_v43 = vld [vmem:[#allocation2 + $0xd8] sm:$0xff]  ;;  %v5919_v42 = vld [vmem:[#allocation2 + $0x1b0] sm:$0xff]  ;;  %v5849_v31 = vrot.slane %v19692_v7, 7 }
 0x58f   :  { %7657 = vst [vmem:[#allocation2 + $0x620] sm:$0xff] %v17008_v33  ;;  %6046 = vst [vmem:[#allocation2 + $0x6c8] sm:$0xff] %v17024_v18  ;;  %v5913_v33 = vld [vmem:[#allocation2 + $0x120] sm:$0xff]  ;;  %v17642_v7 = vld [vmem:[#allocation2 + $0x5f8] sm:$0xff] }
 0x590   :  { %6047 = vst [vmem:[#allocation2 + $0x710] sm:$0xff] %v17028_v0  ;;  %6048 = vst [vmem:[#allocation2 + $0x758] sm:$0xff] %v17032_v40  ;;  %v17303_v59 = vor.u32 %v19687_v36, %v5828_v14  ;;  %v19694_v36 = vshll.u32 %v17036_v25, 16  ;;  %v17335_v60 = vor.u32 %v19698_v11, %v5849_v31  ;;  %v5961_v11 = vld [vmem:[#allocation2 + $0x5e8] sm:$0xff] }
 0x591   :  { %6049 = vst [vmem:[#allocation2 + $0x7a0] sm:$0xff] %v17036_v25  ;;  %6853 = vst [vmem:[#allocation2 + $0x698] sm:$0xff] %v17024_v18  ;;  %v5962_v57 = vsel %vm12319_vm5, %v17273_v46, %v5961_v11 }
 0x592   :  { %6854 = vst [vmem:[#allocation2 + $0x6e0] sm:$0xff] %v17028_v0  ;;  %6855 = vst [vmem:[#allocation2 + $0x728] sm:$0xff] %v17032_v40  ;;  %v17325_v14 = vor.u32 %v19694_v36, %v5842_v53  ;;  %v19702_v36 = vshrl.u32 %v17062_v38, 16 }
 0x593   :  { %6856 = vst [vmem:[#allocation2 + $0x770] sm:$0xff] %v17036_v25  ;;  %7658 = vst [vmem:[#allocation2 + $0x668] sm:$0xff] %v17024_v18  ;;  %v5928_v18 = vld [vmem:[#allocation2 + $0x288] sm:$0xff] }
 0x594   :  { %7659 = vst [vmem:[#allocation2 + $0x6b0] sm:$0xff] %v17028_v0  ;;  %7660 = vst [vmem:[#allocation2 + $0x6f8] sm:$0xff] %v17032_v40  ;;  %v19693_v0 = vshrl.u32 %v17054_v3, 16  ;;  %v5934_v40 = vld [vmem:[#allocation2 + $0x318] sm:$0xff]  ;;  %v5870_v20 = vrot.slane %v19702_v36, 7 }
 0x595   :  { %7661 = vst [vmem:[#allocation2 + $0x740] sm:$0xff] %v17036_v25  ;;  %6050 = vst [vmem:[#allocation2 + $0x7e8] sm:$0xff] %v17050_v9  ;;  %v19700_v25 = vshll.u32 %v17054_v3, 16  ;;  %v5967_v36 = vld [vmem:[#allocation2 + $0x678] sm:$0xff] }
 0x596   :  { %6051 = vst [vmem:[#allocation2 + $0x830] sm:$0xff] %v17054_v3  ;;  %6052 = vst [vmem:[#allocation2 + $0x878] sm:$0xff] %v17058_v4  ;;  %v5856_v37 = vrot.slane %v19693_v0, 7  ;;  %v5905_v0 = vsel %vm12319_vm5, %v17122_v61, %v5904_v28  ;;  %v5952_v28 = vld [vmem:[#allocation2 + $0x510] sm:$0xff] }
 0x597   :  { %6053 = vst [vmem:[#allocation2 + $0x8c0] sm:$0xff] %v17062_v38  ;;  %6857 = vst [vmem:[#allocation2 + $0x7b8] sm:$0xff] %v17050_v9 }
 0x598   :  { %6858 = vst [vmem:[#allocation2 + $0x800] sm:$0xff] %v17054_v3  ;;  %6859 = vst [vmem:[#allocation2 + $0x848] sm:$0xff] %v17058_v4  ;;  %v17339_v53 = vor.u32 %v19700_v25, %v5856_v37  ;;  %v5911_v37 = vsel %vm12319_vm5, %v17133_v54, %v5910_v43  ;;  %v17358_v25 = vsel %vm12319_vm5, %v17137_v6, %v5913_v33 }
 0x599   :  { %6860 = vst [vmem:[#allocation2 + $0x890] sm:$0xff] %v17062_v38  ;;  %7662 = vst [vmem:[#allocation2 + $0x788] sm:$0xff] %v17050_v9  ;;  %v19703_v9 = vshll.u32 %v17058_v4, 16  ;;  %v17371_v33 = vsel %vm12319_vm5, %v17152_v50, %v5919_v42  ;;  %v5923_v43 = vsel %vm12319_vm5, %v17162_v35, %v5922_v19  ;;  %v5932_v42 = vsel %vm12319_vm5, %v17189_v51, %v5931_v1 }
 0x59a   :  { %7663 = vst [vmem:[#allocation2 + $0x7d0] sm:$0xff] %v17054_v3  ;;  %7664 = vst [vmem:[#allocation2 + $0x818] sm:$0xff] %v17058_v4  ;;  %v5935_v19 = vsel %vm12319_vm5, %v17196_v52, %v5934_v40  ;;  %v5941_v1 = vsel %vm12319_vm5, %v17211_v22, %v5940_v49  ;;  %v5947_v40 = vsel %vm12319_vm5, %v17233_v12, %v5946_v17 }
 0x59b   :  { %7665 = vst [vmem:[#allocation2 + $0x860] sm:$0xff] %v17062_v38  ;;  %19660 = vst [vmem:[#allocation27_spill] sm:$0xff] %v17122_v61  ;;  %v5955_v61 = vld [vmem:[#allocation2 + $0x558] sm:$0xff]  ;;  %v17350_v31 = vor.u32 %v19703_v9, %v5863_v45  ;;  %v19706_v45 = vshll.u32 %v17062_v38, 16  ;;  %v5953_v49 = vsel %vm12319_vm5, %v17244_v26, %v5952_v28  ;;  %v5959_v17 = vsel %vm12319_vm5, %v17259_v32, %v5958_v55 }
 0x59c   :  { %19661 = vst [vmem:[#allocation8_spill] sm:$0xff] %v17126_v30  ;;  %19662 = vst [vmem:[#allocation6_spill] sm:$0xff] %v17133_v54  ;;  %v5968_v28 = vsel %vm12319_vm5, %v17285_v21, %v5967_v36  ;;  %v17640_v30 = vld [vmem:[#allocation2 + $0x5b0] sm:$0xff] }
 0x59d   :  { %19663 = vst [vmem:[#allocation10_spill] sm:$0xff] %v17137_v6  ;;  %19664 = vst [vmem:[#allocation9_spill] sm:$0xff] %v17144_v2  ;;  %v17366_v9 = vor.u32 %v19706_v45, %v5870_v20  ;;  %v5970_v2 = vld [vmem:[#allocation2 + $0x6c0] sm:$0xff]  ;;  %v5973_v20 = vld [vmem:[#allocation2 + $0x708] sm:$0xff] }
 0x59e   :  { %19665 = vst [vmem:[#allocation7_spill] sm:$0xff] %v17152_v50  ;;  %19666 = vst [vmem:[#allocation35_spill] sm:$0xff] %v17162_v35  ;;  %v5976_v45 = vld [vmem:[#allocation2 + $0x750] sm:$0xff]  ;;  %v5974_v55 = vsel %vm12319_vm5, %v17303_v59, %v5973_v20  ;;  %v17622_v35 = vld [vmem:[#allocation2 + $0x520] sm:$0xff] }
 0x59f   :  { %19667 = vst [vmem:[#allocation36_spill] sm:$0xff] %v17176_v23  ;;  %19668 = vst [vmem:[#allocation37_spill] sm:$0xff] %v17185_v34  ;;  %v5985_v23 = vld [vmem:[#allocation2 + $0x828] sm:$0xff]  ;;  %v5977_v11 = vsel %vm12319_vm5, %v17310_v27, %v5976_v45 }
 0x5a0   :  { %19669 = vst [vmem:[#allocation38_spill] sm:$0xff] %v17189_v51  ;;  %19670 = vst [vmem:[#allocation39_spill] sm:$0xff] %v17196_v52  ;;  %v5986_v36 = vsel %vm12319_vm5, %v17339_v53, %v5985_v23  ;;  %v8046_v23 = vld [vmem:[#allocation2 + $0x98] sm:$0xff]  ;;  %v19789_v52 = vshll.u32 %v17062_v38, 16  ;;  %v17618_v51 = vld [vmem:[#allocation2 + $0x448] sm:$0xff] }
 0x5a1   :  { %19671 = vst [vmem:[#allocation40_spill] sm:$0xff] %v17204_v5  ;;  %19672 = vst [vmem:[#allocation41_spill] sm:$0xff] %v17211_v22  ;;  %v17606_v22 = vld [vmem:[#allocation2 + $0x3b8] sm:$0xff]  ;;  %v17608_v5 = vld [vmem:[#allocation2 + $0x400] sm:$0xff] }
 0x5a2   :  { %19673 = vst [vmem:[#allocation42_spill] sm:$0xff] %v17225_v62  ;;  %19674 = vst [vmem:[#allocation43_spill] sm:$0xff] %v17233_v12  ;;  %v6348_v12 = vld [vmem:[#allocation2 + $0x298] sm:$0xff] }
 0x5a3   :  { %19675 = vst [vmem:[#allocation44_spill] sm:$0xff] %v17237_v15  ;;  %19676 = vst [vmem:[#allocation45_spill] sm:$0xff] %v17244_v26 }
 0x5a4   :  { %19677 = vst [vmem:[#allocation46_spill] sm:$0xff] %v17252_v48  ;;  %19678 = vst [vmem:[#allocation47_spill] sm:$0xff] %v17259_v32  ;;  %v6330_v32 = vld [vmem:[#allocation2 + $0xe8] sm:$0xff] }
 0x5a5   :  { %19679 = vst [vmem:[#allocation48_spill] sm:$0xff] %v17273_v46  ;;  %19681 = vst [vmem:[#allocation49_spill] sm:$0xff] %v17281_v10 }
 0x5a6   :  { %19683 = vst [vmem:[#allocation50_spill] sm:$0xff] %v17285_v21  ;;  %19685 = vst [vmem:[#allocation51_spill] sm:$0xff] %v17295_v56 }
 0x5a7   :  { %19688 = vst [vmem:[#allocation52_spill] sm:$0xff] %v17303_v59  ;;  %19690 = vst [vmem:[#allocation53_spill] sm:$0xff] %v17310_v27  ;;  %v6327_v27 = vld [vmem:[#allocation2 + $0xa0] sm:$0xff] }
 0x5a8   :  { %19695 = vst [vmem:[#allocation54_spill] sm:$0xff] %v17325_v14  ;;  %19699 = vst [vmem:[#allocation55_spill] sm:$0xff] %v17335_v60 }
 0x5a9   :  { %19701 = vst [vmem:[#allocation56_spill] sm:$0xff] %v17339_v53  ;;  %5906 = vst [vmem:[#allocation2 + $0x48] sm:$0xff] %v5905_v0  ;;  %v5964_v0 = vld [vmem:[#allocation2 + $0x630] sm:$0xff] }
 0x5aa   :  { %19704 = vst [vmem:[#allocation57_spill] sm:$0xff] %v17350_v31  ;;  %19705 = vst [vmem:[#allocation58_spill] sm:$0xff] %v17358_v25 }
 0x5ab   :  { %5909 = vst [vmem:[#allocation2 + $0x90] sm:$0xff] %v17346_v16  ;;  %19707 = vst [vmem:[#allocation59_spill] sm:$0xff] %v17366_v9 }
 0x5ac   :  { %5912 = vst [vmem:[#allocation2 + $0xd8] sm:$0xff] %v5911_v37  ;;  %5918 = vst [vmem:[#allocation2 + $0x168] sm:$0xff] %v5917_v47  ;;  %v5929_v37 = vsel %vm12319_vm5, %v17185_v34, %v5928_v18  ;;  %v5979_v47 = vld [vmem:[#allocation2 + $0x798] sm:$0xff]  ;;  %v5944_v18 = vsel %vm12319_vm5, %v17225_v62, %v5943_v63  ;;  %v5956_v63 = vsel %vm12319_vm5, %v17252_v48, %v5955_v61  ;;  %v6333_v48 = vld [vmem:[#allocation2 + $0x130] sm:$0xff] }
 0x5ad   :  { %19708 = vst [vmem:[#allocation60_spill] sm:$0xff] %v17371_v33  ;;  %5915 = vst [vmem:[#allocation2 + $0x120] sm:$0xff] %v17358_v25  ;;  %v5971_v61 = vsel %vm12319_vm5, %v17295_v56, %v5970_v2  ;;  %v6351_v62 = vld [vmem:[#allocation2 + $0x2e0] sm:$0xff]  ;;  %v17620_v34 = vld [vmem:[#allocation2 + $0x4d8] sm:$0xff] }
 0x5ae   :  { %5924 = vst [vmem:[#allocation2 + $0x1f8] sm:$0xff] %v5923_v43  ;;  %5921 = vst [vmem:[#allocation2 + $0x1b0] sm:$0xff] %v17371_v33  ;;  %v5982_v43 = vld [vmem:[#allocation2 + $0x7e0] sm:$0xff]  ;;  %v19746_v33 = vld [vmem:[#allocation23_spill] sm:$0xff] }
 0x5af   :  { %5927 = vst [vmem:[#allocation2 + $0x240] sm:$0xff] %v5926_v44  ;;  %5930 = vst [vmem:[#allocation2 + $0x288] sm:$0xff] %v5929_v37  ;;  %v5988_v44 = vld [vmem:[#allocation2 + $0x870] sm:$0xff]  ;;  %v5991_v37 = vld [vmem:[#allocation2 + $0x8b8] sm:$0xff]  ;;  %v5983_v2 = vsel %vm12319_vm5, %v17335_v60, %v5982_v43  ;;  %v19710_v43 = vshll.u32 %v16916_v8, 16 }
 0x5b0   :  { %5936 = vst [vmem:[#allocation2 + $0x318] sm:$0xff] %v5935_v19  ;;  %5933 = vst [vmem:[#allocation2 + $0x2d0] sm:$0xff] %v5932_v42  ;;  %v5965_v42 = vsel %vm12319_vm5, %v17281_v10, %v5964_v0  ;;  %v5980_v0 = vsel %vm12319_vm5, %v17325_v14, %v5979_v47  ;;  %v8036_v20 = vld [vmem:[#allocation2 + $0x48] sm:$0xff]  ;;  %v5989_v45 = vsel %vm12319_vm5, %v17350_v31, %v5988_v44 }
 0x5b1   :  { %5939 = vst [vmem:[#allocation2 + $0x360] sm:$0xff] %v5938_v39  ;;  %5942 = vst [vmem:[#allocation2 + $0x3a8] sm:$0xff] %v5941_v1  ;;  %v5992_v19 = vsel %vm12319_vm5, %v17366_v9, %v5991_v37  ;;  %v19709_v39 = vshll.u32 %v16912_v24, 16  ;;  %v6096_v1 = vrot.slane %v19710_v43, 1  ;;  %8939 = vmatmul.mubr.bf16.gmra.mrb[68].mxu1 %v8036_v20  ;;  %v19773_v10 = vld [vmem:[#allocation33_spill] sm:$0xff] }
 0x5b2   :  { %5948 = vst [vmem:[#allocation2 + $0x438] sm:$0xff] %v5947_v40  ;;  %5951 = vst [vmem:[#allocation2 + $0x4c8] sm:$0xff] %v5950_v13  ;;  %v19712_v13 = vshll.u32 %v16921_v58, 16  ;;  %8946 = vmatprep.mubr.bf16.mxu1 %v8046_v23  ;;  %v19774_v46 = vshll.u32 %v19773_v10, 16  ;;  %v17624_v25 = vld [vmem:[#allocation2 + $0x568] sm:$0xff] }
 0x5b3   :  { %5945 = vst [vmem:[#allocation2 + $0x3f0] sm:$0xff] %v5944_v18  ;;  %5957 = vst [vmem:[#allocation2 + $0x558] sm:$0xff] %v5956_v63  ;;  %v6089_v47 = vrot.slane %v19709_v39, 1  ;;  %v19711_v18 = vshll.u32 %v16919_v29, 16  ;;  %v19714_v63 = vld [vmem:[#allocation12_spill] sm:$0xff]  ;;  %v12120_v39 = vld [vmem:[%s19329_s5 + $0xb0] sm:$0xff]  }
 0x5b4   :  { %5963 = vst [vmem:[#allocation2 + $0x5e8] sm:$0xff] %v5962_v57  ;;  %5954 = vst [vmem:[#allocation2 + $0x510] sm:$0xff] %v5953_v49  ;;  %v6110_v44 = vrot.slane %v19712_v13, 1  ;;  %v19713_v49 = vshll.u32 %v16923_v41, 16  ;;  %v19727_v23 = vshrl.u32 %v19714_v63, 16  ;;  %9200 = vmatpush1.bf16.msra.mxu1 %v12120_v39 }
 0x5b5   :  { %5960 = vst [vmem:[#allocation2 + $0x5a0] sm:$0xff] %v5959_v17  ;;  %5969 = vst [vmem:[#allocation2 + $0x678] sm:$0xff] %v5968_v28  ;;  %v6103_v40 = vrot.slane %v19711_v18, 1  ;;  %v19715_v17 = vshll.u32 %v19714_v63, 16 }
 0x5b6   :  { %5975 = vst [vmem:[#allocation2 + $0x708] sm:$0xff] %v5974_v55  ;;  %5966 = vst [vmem:[#allocation2 + $0x630] sm:$0xff] %v5965_v42  ;;  %v6117_v37 = vrot.slane %v19713_v49, 1  ;;  %v19716_v42 = vshrl.u32 %v16912_v24, 16  ;;  %v19725_v24 = vshrl.u32 %v16921_v58, 16 }
 0x5b7   :  { %5972 = vst [vmem:[#allocation2 + $0x6c0] sm:$0xff] %v5971_v61  ;;  %5981 = vst [vmem:[#allocation2 + $0x798] sm:$0xff] %v5980_v0  ;;  %v6124_v57 = vrot.slane %v19715_v17, 1  ;;  %v19718_v61 = vshrl.u32 %v16916_v8, 16  ;;  %v19726_v8 = vshrl.u32 %v16923_v41, 16  ;;  %v19730_v17 = vld [vmem:[#allocation15_spill] sm:$0xff] }
 0x5b8   :  { %5987 = vst [vmem:[#allocation2 + $0x828] sm:$0xff] %v5986_v36  ;;  %5978 = vst [vmem:[#allocation2 + $0x750] sm:$0xff] %v5977_v11  ;;  %v17461_v28 = vor.u32 %v6089_v47, %v19716_v42  ;;  %v19720_v11 = vld [vmem:[#allocation13_spill] sm:$0xff]  ;;  %v19722_v36 = vld [vmem:[#allocation14_spill] sm:$0xff]  ;;  %v17480_v47 = vor.u32 %v6110_v44, %v19725_v24  ;;  %v19731_v58 = vshll.u32 %v19730_v17, 16 }
 0x5b9   :  { %5984 = vst [vmem:[#allocation2 + $0x7e0] sm:$0xff] %v5983_v2  ;;  %5993 = vst [vmem:[#allocation2 + $0x8b8] sm:$0xff] %v5992_v19  ;;  %v17465_v55 = vor.u32 %v6096_v1, %v19718_v61  ;;  %v19721_v0 = vshll.u32 %v19720_v11, 16  ;;  %v19723_v20 = vshll.u32 %v19722_v36, 16  ;;  %v17484_v1 = vor.u32 %v6117_v37, %v19726_v8  ;;  %v19732_v42 = vld [vmem:[#allocation16_spill] sm:$0xff]  ;;  %v19734_v37 = vld [vmem:[#allocation17_spill] sm:$0xff]  ;;  %8947 = vmatmul.mubr.bf16.gmra.mrb[72].mxu1 %v17346_v16 }
 0x5ba   :  { %5990 = vst [vmem:[#allocation2 + $0x870] sm:$0xff] %v5989_v45  ;;  %19717 = vst [vmem:[#allocation12_spill] sm:$0xff] %v17461_v28  ;;  %v19724_v45 = vshrl.u32 %v16919_v29, 16  ;;  %v17488_v18 = vor.u32 %v6124_v57, %v19727_v23  ;;  %v19728_v13 = vshrl.u32 %v19720_v11, 16  ;;  %v19729_v29 = vshrl.u32 %v19722_v36, 16  ;;  %v19736_v57 = vld [vmem:[#allocation18_spill] sm:$0xff] }
 0x5bb   :  { %19719 = vst [vmem:[#allocation61_spill] sm:$0xff] %v17465_v55  ;;  %v6131_v2 = vrot.slane %v19721_v0, 1  ;;  %v6138_v19 = vrot.slane %v19723_v20, 1  ;;  %v6145_v44 = vrot.slane %v19731_v58, 1  ;;  %v19733_v61 = vshll.u32 %v19732_v42, 16  ;;  %v19738_v11 = vld [vmem:[#allocation19_spill] sm:$0xff] }
 0x5bc   :  { %v17476_v43 = vor.u32 %v6103_v40, %v19724_v45  ;;  %v19735_v0 = vshll.u32 %v19734_v37, 16  ;;  %v19737_v20 = vshll.u32 %v19736_v57, 16  ;;  %v19740_v8 = vld [vmem:[#allocation20_spill] sm:$0xff]  ;;  %v17510_v23 = vld [vmem:[#allocation2 + $0x8] sm:$0xff]  ;;  %v19743_v39 = vshrl.u32 %v19732_v42, 16 }
 0x5bd   :  { %v17492_v49 = vor.u32 %v6131_v2, %v19728_v13  ;;  %v17496_v40 = vor.u32 %v6138_v19, %v19729_v29  ;;  %v6152_v41 = vrot.slane %v19733_v61, 1  ;;  %v19739_v2 = vshll.u32 %v19738_v11, 16  ;;  %9201 = vmatprep.subr.bf16.mxu1 %v17510_v23  ;;  %v19744_v61 = vld [vmem:[#allocation21_spill] sm:$0xff] }
 0x5be   :  { %v6159_v63 = vrot.slane %v19735_v0, 1  ;;  %v6166_v45 = vrot.slane %v19737_v20, 1  ;;  %v19741_v36 = vshll.u32 %v19740_v8, 16  ;;  %v19742_v13 = vshrl.u32 %v19730_v17, 16 }
 0x5bf   :  { %v6173_v24 = vrot.slane %v19739_v2, 1  ;;  %v17519_v58 = vor.u32 %v6152_v41, %v19743_v39  ;;  %v19745_v0 = vshll.u32 %v19744_v61, 16  ;;  %v19747_v2 = vshll.u32 %v19746_v33, 16 }
 0x5c0   :  { %v6180_v19 = vrot.slane %v19741_v36, 1  ;;  %v17515_v29 = vor.u32 %v6145_v44, %v19742_v13  ;;  %v19748_v36 = vshrl.u32 %v19734_v37, 16  ;;  %v19749_v53 = vshrl.u32 %v19736_v57, 16 }
 0x5c1   :  { %v6187_v20 = vrot.slane %v19745_v0, 1  ;;  %v6194_v9 = vrot.slane %v19747_v2, 1  ;;  %v19751_v17 = vshrl.u32 %v19738_v11, 16  ;;  %v19753_v42 = vshrl.u32 %v19740_v8, 16  ;;  %v19757_v0 = vld [vmem:[#allocation24_spill] sm:$0xff] }
 0x5c2   :  { %v17527_v31 = vor.u32 %v6159_v63, %v19748_v36  ;;  %v17531_v60 = vor.u32 %v6166_v45, %v19749_v53  ;;  %v19755_v13 = vshrl.u32 %v19744_v61, 16  ;;  %v19756_v37 = vshrl.u32 %v19746_v33, 16  ;;  %v19759_v45 = vld [vmem:[#allocation11_spill] sm:$0xff]  ;;  %v19761_v8 = vld [vmem:[#allocation28_spill] sm:$0xff] }
 0x5c3   :  { %v17535_v44 = vor.u32 %v6173_v24, %v19751_v17  ;;  %v17539_v41 = vor.u32 %v6180_v19, %v19753_v42  ;;  %v19758_v57 = vshll.u32 %v19757_v0, 16  ;;  %v19760_v2 = vshll.u32 %v19759_v45, 16  ;;  %v8055_v24 = vld [vmem:[#allocation2 + $0xe0] sm:$0xff]  ;;  %v19763_v17 = vld [vmem:[#allocation29_spill] sm:$0xff]  ;;  %v19765_v42 = vld [vmem:[#allocation30_spill] sm:$0xff] }
 0x5c4   :  { %19750 = vst [vmem:[#allocation13_spill] sm:$0xff] %v17531_v60  ;;  %v17543_v39 = vor.u32 %v6187_v20, %v19755_v13  ;;  %v17547_v63 = vor.u32 %v6194_v9, %v19756_v37  ;;  %v19762_v19 = vshll.u32 %v19761_v8, 16  ;;  %v19764_v61 = vshll.u32 %v19763_v17, 16  ;;  %v19767_v9 = vld [vmem:[#allocation31_spill] sm:$0xff]  ;;  %8954 = vmatprep.mubr.bf16.mxu1 %v8055_v24  ;;  %v6339_v24 = vld [vmem:[#allocation2 + $0x1c0] sm:$0xff] }
 0x5c5   :  { %19752 = vst [vmem:[#allocation14_spill] sm:$0xff] %v17535_v44  ;;  %19754 = vst [vmem:[#allocation15_spill] sm:$0xff] %v17539_v41  ;;  %v6201_v53 = vrot.slane %v19758_v57, 1  ;;  %v6208_v11 = vrot.slane %v19760_v2, 1  ;;  %v19766_v13 = vshll.u32 %v19765_v42, 16  ;;  %v19768_v37 = vshll.u32 %v19767_v9, 16 }
 0x5c6   :  { %v6215_v36 = vrot.slane %v19762_v19, 1  ;;  %v6222_v20 = vrot.slane %v19764_v61, 1  ;;  %v6324_v57 = vld [vmem:[#allocation2 + $0x58] sm:$0xff]  ;;  %v19769_v2 = vshrl.u32 %v19757_v0, 16  ;;  %v19770_v16 = vshrl.u32 %v19759_v45, 16  ;;  %v19771_v19 = vld [vmem:[#allocation32_spill] sm:$0xff] }
 0x5c7   :  { %v6229_v33 = vrot.slane %v19766_v13, 1  ;;  %v6236_v14 = vrot.slane %v19768_v37, 1  ;;  %v19772_v21 = vshll.u32 %v19771_v19, 16  ;;  %v6250_v13 = vrot.slane %v19774_v46, 1  ;;  %v6336_v37 = vld [vmem:[#allocation2 + $0x178] sm:$0xff]  ;;  %v6342_v46 = vld [vmem:[#allocation2 + $0x208] sm:$0xff] }
 0x5c8   :  { %v17564_v59 = vor.u32 %v6201_v53, %v19769_v2  ;;  %v17568_v56 = vor.u32 %v6208_v11, %v19770_v16  ;;  %v19775_v26 = vshrl.u32 %v19761_v8, 16  ;;  %v19776_v0 = vshrl.u32 %v19763_v17, 16  ;;  %v6345_v16 = vld [vmem:[#allocation2 + $0x250] sm:$0xff] }
 0x5c9   :  { %v6243_v61 = vrot.slane %v19772_v21, 1  ;;  %v19777_v45 = vshrl.u32 %v19765_v42, 16  ;;  %v19778_v21 = vshrl.u32 %v19767_v9, 16  ;;  %v19779_v8 = vshrl.u32 %v19771_v19, 16  ;;  %v19785_v19 = vld [vmem:[#allocation26_spill] sm:$0xff] }
 0x5ca   :  { %v17576_v15 = vor.u32 %v6215_v36, %v19775_v26  ;;  %v17580_v53 = vor.u32 %v6222_v20, %v19776_v0  ;;  %v19780_v36 = vshrl.u32 %v19773_v10, 16  ;;  %v19781_v20 = vld [vmem:[#allocation34_spill] sm:$0xff]  ;;  %v19783_v0 = vld [vmem:[#allocation25_spill] sm:$0xff]  ;;  %v19787_v10 = vshll.u32 %v17054_v3, 16 }
 0x5cb   :  { %v17584_v11 = vor.u32 %v6229_v33, %v19777_v45  ;;  %v17588_v2 = vor.u32 %v6236_v14, %v19778_v21  ;;  %v17592_v26 = vor.u32 %v6243_v61, %v19779_v8  ;;  %v19782_v42 = vshll.u32 %v19781_v20, 16  ;;  %v17602_v14 = vld [vmem:[#allocation2 + $0x328] sm:$0xff]  ;;  %v17604_v21 = vld [vmem:[#allocation2 + $0x370] sm:$0xff] }
 0x5cc   :  { %v17596_v17 = vor.u32 %v6250_v13, %v19780_v36  ;;  %v19784_v45 = vshll.u32 %v19783_v0, 16  ;;  %v19786_v61 = vshll.u32 %v19785_v19, 16  ;;  %v6278_v13 = vrot.slane %v19787_v10, 1 }
 0x5cd   :  { %v6257_v33 = vrot.slane %v19782_v42, 1  ;;  %v19788_v36 = vshll.u32 %v17058_v4, 16  ;;  %v19790_v50 = vshrl.u32 %v19781_v20, 16  ;;  %v19791_v10 = vshrl.u32 %v19783_v0, 16 }
 0x5ce   :  { %v6264_v9 = vrot.slane %v19784_v45, 1  ;;  %v6271_v8 = vrot.slane %v19786_v61, 1  ;;  %v6292_v45 = vrot.slane %v19789_v52, 1  ;;  %v6325_v52 = vsel %vm12992_vm10, %v17461_v28, %v6324_v57 }
 0x5cf   :  { %v6285_v42 = vrot.slane %v19788_v36, 1  ;;  %v17628_v61 = vor.u32 %v6257_v33, %v19790_v50  ;;  %v6328_v54 = vsel %vm12992_vm10, %v17465_v55, %v6327_v27  ;;  %v19793_v20 = vshrl.u32 %v19785_v19, 16  ;;  %6326 = vst [vmem:[#allocation2 + $0x58] sm:$0xff] %v6325_v52  ;;  %v8054_v27 = vld [vmem:[#allocation2 + $0xd8] sm:$0xff]  ;;  %v17660_v55 = vld [vmem:[#allocation2 + $0x640] sm:$0xff]  ;;  %v17662_v19 = vld [vmem:[#allocation2 + $0x688] sm:$0xff] }
 0x5d0   :  { %v17632_v6 = vor.u32 %v6264_v9, %v19791_v10  ;;  %v19794_v33 = vshrl.u32 %v17054_v3, 16  ;;  %v19796_v9 = vshrl.u32 %v17058_v4, 16  ;;  %v19798_v57 = vshrl.u32 %v17062_v38, 16  ;;  %6329 = vst [vmem:[#allocation2 + $0xa0] sm:$0xff] %v6328_v54  ;;  %8955 = vmatmul.mubr.bf16.gmra.mrb[76].mxu1 %v8054_v27  ;;  %v17694_v52 = vld [vmem:[#allocation2 + $0x18] sm:$0xff]  ;;  %v12126_v36 = vld [vmem:[%s19329_s5 + $0xe0] sm:$0xff]  }
 0x5d1   :  { %v17646_v50 = vor.u32 %v6271_v8, %v19793_v20  ;;  %v6331_v3 = vsel %vm12992_vm10, %v17476_v43, %v6330_v32  ;;  %v6334_v4 = vsel %vm12992_vm10, %v17480_v47, %v6333_v48  ;;  %v6337_v38 = vsel %vm12992_vm10, %v17484_v1, %v6336_v37  ;;  %v8064_v8 = vld [vmem:[#allocation2 + $0x128] sm:$0xff]  ;;  %v17723_v27 = vld [vmem:[#allocation2 + $0x138] sm:$0xff] }
 0x5d2   :  { %v17650_v0 = vor.u32 %v6278_v13, %v19794_v33  ;;  %v17654_v10 = vor.u32 %v6285_v42, %v19796_v9  ;;  %v17658_v28 = vor.u32 %v6292_v45, %v19798_v57  ;;  %v6340_v54 = vsel %vm12992_vm10, %v17488_v18, %v6339_v24  ;;  %v17676_v13 = vld [vmem:[#allocation2 + $0x6d0] sm:$0xff]  ;;  %v17678_v42 = vld [vmem:[#allocation2 + $0x718] sm:$0xff]  ;;  %v17680_v45 = vld [vmem:[#allocation2 + $0x760] sm:$0xff]  ;;  %6332 = vst [vmem:[#allocation2 + $0xe8] sm:$0xff] %v6331_v3 }
 0x5d3   :  { %v6343_v48 = vsel %vm12992_vm10, %v17492_v49, %v6342_v46  ;;  %v6346_v32 = vsel %vm12992_vm10, %v17496_v40, %v6345_v16  ;;  %v6349_v37 = vsel %vm12992_vm10, %v17515_v29, %v6348_v12  ;;  %v6352_v24 = vsel %vm12992_vm10, %v17519_v58, %v6351_v62  ;;  %6335 = vst [vmem:[#allocation2 + $0x130] sm:$0xff] %v6334_v4  ;;  %v17696_v46 = vld [vmem:[#allocation2 + $0x60] sm:$0xff]  ;;  %v6399_v20 = vld [vmem:[#allocation2 + $0x7a8] sm:$0xff]  ;;  %v17698_v33 = vld [vmem:[#allocation2 + $0x7f0] sm:$0xff] }
 0x5d4   :  { %19795 = vst [vmem:[#allocation16_spill] sm:$0xff] %v17650_v0  ;;  %19797 = vst [vmem:[#allocation17_spill] sm:$0xff] %v17654_v10  ;;  %8962 = vmatprep.mubr.bf16.mxu1 %v8064_v8  ;;  %v6355_v12 = vsel %vm12992_vm10, %v17527_v31, %v17602_v14  ;;  %v6358_v62 = vsel %vm12992_vm10, %v17531_v60, %v17604_v21  ;;  %v6361_v16 = vsel %vm12992_vm10, %v17535_v44, %v17606_v22  ;;  %v12121_v14 = vld [vmem:[%s19329_s5 + $0xb8] sm:$0xff]   ;;  %v17719_v57 = vld [vmem:[#allocation2 + $0xa8] sm:$0xff] }
 0x5d5   :  { %19799 = vst [vmem:[#allocation18_spill] sm:$0xff] %v17658_v28  ;;  %6338 = vst [vmem:[#allocation2 + $0x178] sm:$0xff] %v6337_v38  ;;  %v6364_v9 = vsel %vm12992_vm10, %v17539_v41, %v17608_v5  ;;  %v17721_v21 = vld [vmem:[#allocation2 + $0xf0] sm:$0xff]  ;;  %v17725_v22 = vld [vmem:[#allocation2 + $0x180] sm:$0xff]  ;;  %v6367_v5 = vsel %vm12992_vm10, %v17543_v39, %v17618_v51  ;;  %v6373_v8 = vsel %vm12992_vm10, %v17564_v59, %v17622_v35  ;;  %9202 = vmatpush1.bf16.msra.mxu1 %v12121_v14 }
 0x5d6   :  { %6341 = vst [vmem:[#allocation2 + $0x1c0] sm:$0xff] %v6340_v54  ;;  %6344 = vst [vmem:[#allocation2 + $0x208] sm:$0xff] %v6343_v48  ;;  %v6405_v3 = vld [vmem:[#allocation2 + $0x838] sm:$0xff]  ;;  %v6408_v4 = vld [vmem:[#allocation2 + $0x880] sm:$0xff]  ;;  %v6370_v54 = vsel %vm12992_vm10, %v17547_v63, %v17620_v34  ;;  %v6376_v48 = vsel %vm12992_vm10, %v17568_v56, %v17624_v25  ;;  %v6379_v34 = vsel %vm12992_vm10, %v17576_v15, %v17640_v30  ;;  %9203 = vmatprep.subr.bf16.mxu1 %v17510_v23 }
 0x5d7   :  { %6347 = vst [vmem:[#allocation2 + $0x250] sm:$0xff] %v6346_v32  ;;  %6350 = vst [vmem:[#allocation2 + $0x298] sm:$0xff] %v6349_v37  ;;  %v6411_v38 = vld [vmem:[#allocation2 + $0x8c8] sm:$0xff]  ;;  %v17745_v32 = vld [vmem:[#allocation2 + $0x210] sm:$0xff]  ;;  %v6382_v35 = vsel %vm12992_vm10, %v17580_v53, %v17642_v7  ;;  %v6385_v25 = vsel %vm12992_vm10, %v17584_v11, %v17660_v55  ;;  %v6391_v7 = vsel %vm12992_vm10, %v17592_v26, %v17676_v13 }
 0x5d8   :  { %6353 = vst [vmem:[#allocation2 + $0x2e0] sm:$0xff] %v6352_v24  ;;  %6356 = vst [vmem:[#allocation2 + $0x328] sm:$0xff] %v6355_v12  ;;  %v17743_v51 = vld [vmem:[#allocation2 + $0x1c8] sm:$0xff]  ;;  %v17747_v37 = vld [vmem:[#allocation2 + $0x258] sm:$0xff]  ;;  %v6388_v24 = vsel %vm12992_vm10, %v17588_v2, %v17662_v19  ;;  %v6394_v55 = vsel %vm12992_vm10, %v17596_v17, %v17678_v42  ;;  %v6397_v19 = vsel %vm12992_vm10, %v17628_v61, %v17680_v45 }
 0x5d9   :  { %6359 = vst [vmem:[#allocation2 + $0x370] sm:$0xff] %v6358_v62  ;;  %6362 = vst [vmem:[#allocation2 + $0x3b8] sm:$0xff] %v6361_v16  ;;  %v17765_v30 = vld [vmem:[#allocation2 + $0x2a0] sm:$0xff]  ;;  %v17767_v12 = vld [vmem:[#allocation2 + $0x2e8] sm:$0xff]  ;;  %v6400_v16 = vsel %vm12992_vm10, %v17632_v6, %v6399_v20  ;;  %v6403_v45 = vsel %vm12992_vm10, %v17646_v50, %v17698_v33  ;;  %v6406_v20 = vsel %vm12992_vm10, %v17650_v0, %v6405_v3 }
 0x5da   :  { %6365 = vst [vmem:[#allocation2 + $0x400] sm:$0xff] %v6364_v9  ;;  %6371 = vst [vmem:[#allocation2 + $0x4d8] sm:$0xff] %v6370_v54  ;;  %v17769_v62 = vld [vmem:[#allocation2 + $0x330] sm:$0xff]  ;;  %v17787_v13 = vld [vmem:[#allocation2 + $0x378] sm:$0xff]  ;;  %v6409_v14 = vsel %vm12992_vm10, %v17654_v10, %v6408_v4 }
 0x5db   :  { %6368 = vst [vmem:[#allocation2 + $0x448] sm:$0xff] %v6367_v5  ;;  %6374 = vst [vmem:[#allocation2 + $0x520] sm:$0xff] %v6373_v8  ;;  %v17789_v9 = vld [vmem:[#allocation2 + $0x3c0] sm:$0xff]  ;;  %v17791_v42 = vld [vmem:[#allocation2 + $0x408] sm:$0xff]  ;;  %v6412_v5 = vsel %vm12992_vm10, %v17658_v28, %v6411_v38 }
 0x5dc   :  { %6377 = vst [vmem:[#allocation2 + $0x568] sm:$0xff] %v6376_v48  ;;  %6380 = vst [vmem:[#allocation2 + $0x5b0] sm:$0xff] %v6379_v34  ;;  %v17806_v54 = vld [vmem:[#allocation2 + $0x498] sm:$0xff]  ;;  %v17808_v8 = vld [vmem:[#allocation2 + $0x4e0] sm:$0xff] }
 0x5dd   :  { %6383 = vst [vmem:[#allocation2 + $0x5f8] sm:$0xff] %v6382_v35  ;;  %6386 = vst [vmem:[#allocation2 + $0x640] sm:$0xff] %v6385_v25  ;;  %v17810_v33 = vld [vmem:[#allocation2 + $0x528] sm:$0xff]  ;;  %v19800_v48 = vld [vmem:[#allocation22_spill] sm:$0xff] }
 0x5de   :  { %6389 = vst [vmem:[#allocation2 + $0x688] sm:$0xff] %v6388_v24  ;;  %6392 = vst [vmem:[#allocation2 + $0x6d0] sm:$0xff] %v6391_v7  ;;  %v19801_v4 = vld [vmem:[#allocation27_spill] sm:$0xff]  ;;  %v19803_v38 = vld [vmem:[#allocation8_spill] sm:$0xff] }
 0x5df   :  { %6395 = vst [vmem:[#allocation2 + $0x718] sm:$0xff] %v6394_v55  ;;  %6398 = vst [vmem:[#allocation2 + $0x760] sm:$0xff] %v6397_v19  ;;  %v6703_v25 = vsel %vm12319_vm5, %v19801_v4, %v17694_v52  ;;  %v17822_v24 = vsel %vm12319_vm5, %v19803_v38, %v17696_v46  ;;  %v17824_v7 = vld [vmem:[#allocation2 + $0x450] sm:$0xff]  ;;  %v17828_v19 = vld [vmem:[#allocation2 + $0x5b8] sm:$0xff] }
 0x5e0   :  { %6401 = vst [vmem:[#allocation2 + $0x7a8] sm:$0xff] %v6400_v16  ;;  %19804 = vst [vmem:[#allocation19_spill] sm:$0xff] %v17822_v24  ;;  %v17826_v55 = vld [vmem:[#allocation2 + $0x570] sm:$0xff]  ;;  %v17850_v34 = vld [vmem:[#allocation2 + $0x600] sm:$0xff] }
 0x5e1   :  { %6404 = vst [vmem:[#allocation2 + $0x7f0] sm:$0xff] %v6403_v45  ;;  %6407 = vst [vmem:[#allocation2 + $0x838] sm:$0xff] %v6406_v20  ;;  %v19805_v16 = vld [vmem:[#allocation6_spill] sm:$0xff]  ;;  %v19808_v45 = vld [vmem:[#allocation9_spill] sm:$0xff] }
 0x5e2   :  { %6410 = vst [vmem:[#allocation2 + $0x880] sm:$0xff] %v6409_v14  ;;  %6413 = vst [vmem:[#allocation2 + $0x8c8] sm:$0xff] %v6412_v5  ;;  %v6709_v52 = vsel %vm12319_vm5, %v19805_v16, %v17719_v57  ;;  %v19806_v4 = vld [vmem:[#allocation10_spill] sm:$0xff]  ;;  %v6715_v20 = vsel %vm12319_vm5, %v19808_v45, %v17723_v27  ;;  %v19809_v14 = vld [vmem:[#allocation7_spill] sm:$0xff]  ;;  %v19819_v16 = vshll.u32 %v19800_v48, 16 }
 0x5e3   :  { %6704 = vst [vmem:[#allocation2 + $0x18] sm:$0xff] %v6703_v25  ;;  %v17838_v46 = vsel %vm12319_vm5, %v19806_v4, %v17721_v21  ;;  %v6718_v5 = vsel %vm12319_vm5, %v19809_v14, %v17725_v22  ;;  %6707 = vst [vmem:[#allocation2 + $0x60] sm:$0xff] %v17822_v24  ;;  %v19810_v25 = vld [vmem:[#allocation58_spill] sm:$0xff]  ;;  %v17852_v3 = vld [vmem:[#allocation2 + $0x648] sm:$0xff]  ;;  %v19811_v21 = vshrl.u32 %v19800_v48, 16 }
 0x5e4   :  { %19807 = vst [vmem:[#allocation20_spill] sm:$0xff] %v17838_v46  ;;  %8963 = vmatmul.mubr.bf16.gmra.mrb[80].mxu1 %v19810_v25  ;;  %v8073_v57 = vld [vmem:[#allocation2 + $0x170] sm:$0xff]  ;;  %6710 = vst [vmem:[#allocation2 + $0xa8] sm:$0xff] %v6709_v52  ;;  %v19812_v27 = vld [vmem:[#allocation35_spill] sm:$0xff] }
 0x5e5   :  { %v6554_v4 = vrot.slane %v19811_v21, 7  ;;  %6716 = vst [vmem:[#allocation2 + $0x138] sm:$0xff] %v6715_v20  ;;  %v6721_v45 = vsel %vm12319_vm5, %v19812_v27, %v17743_v51  ;;  %v19813_v22 = vld [vmem:[#allocation36_spill] sm:$0xff]  ;;  %v19814_v24 = vld [vmem:[#allocation37_spill] sm:$0xff]  ;;  %6713 = vst [vmem:[#allocation2 + $0xf0] sm:$0xff] %v17838_v46  ;;  %8970 = vmatprep.mubr.bf16.mxu1 %v8073_v57 }
 0x5e6   :  { %v6724_v25 = vsel %vm12319_vm5, %v19813_v22, %v17745_v32  ;;  %v6727_v14 = vsel %vm12319_vm5, %v19814_v24, %v17747_v37  ;;  %6719 = vst [vmem:[#allocation2 + $0x180] sm:$0xff] %v6718_v5  ;;  %v12122_v52 = vld [vmem:[%s19329_s5 + $0xc0] sm:$0xff]   ;;  %v17872_v20 = vld [vmem:[#allocation2 + $0x690] sm:$0xff]  ;;  %v17874_v51 = vld [vmem:[#allocation2 + $0x6d8] sm:$0xff] }
 0x5e7   :  { %v17876_v21 = vld [vmem:[#allocation2 + $0x720] sm:$0xff]  ;;  %6722 = vst [vmem:[#allocation2 + $0x1c8] sm:$0xff] %v6721_v45  ;;  %6728 = vst [vmem:[#allocation2 + $0x258] sm:$0xff] %v6727_v14  ;;  %v19815_v32 = vld [vmem:[#allocation38_spill] sm:$0xff]  ;;  %v17904_v38 = vor.u32 %v19819_v16, %v6554_v4  ;;  %9204 = vmatpush1.bf16.msra.mxu1 %v12122_v52 }
 0x5e8   :  { %v6730_v37 = vsel %vm12319_vm5, %v19815_v32, %v17765_v30  ;;  %v19816_v5 = vld [vmem:[#allocation39_spill] sm:$0xff]  ;;  %v19817_v46 = vld [vmem:[#allocation40_spill] sm:$0xff]  ;;  %v19818_v22 = vld [vmem:[#allocation41_spill] sm:$0xff]  ;;  %6725 = vst [vmem:[#allocation2 + $0x210] sm:$0xff] %v6724_v25  ;;  %9205 = vmatprep.subr.bf16.mxu1 %v17510_v23 }
 0x5e9   :  { %v6733_v57 = vsel %vm12319_vm5, %v19816_v5, %v17767_v12  ;;  %v6736_v24 = vsel %vm12319_vm5, %v19817_v46, %v17769_v62  ;;  %v6739_v45 = vsel %vm12319_vm5, %v19818_v22, %v17787_v13  ;;  %v17894_v14 = vld [vmem:[#allocation2 + $0x28] sm:$0xff]  ;;  %v17896_v27 = vld [vmem:[#allocation2 + $0x70] sm:$0xff]  ;;  %v17898_v30 = vld [vmem:[#allocation2 + $0xb8] sm:$0xff]  ;;  %19820 = vst [vmem:[#allocation21_spill] sm:$0xff] %v17904_v38 }
 0x5ea   :  { %v17900_v32 = vld [vmem:[#allocation2 + $0x100] sm:$0xff]  ;;  %v6780_v12 = vld [vmem:[#allocation2 + $0x768] sm:$0xff]  ;;  %v6783_v5 = vld [vmem:[#allocation2 + $0x7b0] sm:$0xff]  ;;  %6734 = vst [vmem:[#allocation2 + $0x2e8] sm:$0xff] %v6733_v57 }
 0x5eb   :  { %6740 = vst [vmem:[#allocation2 + $0x378] sm:$0xff] %v6739_v45  ;;  %v19821_v62 = vld [vmem:[#allocation42_spill] sm:$0xff]  ;;  %v19822_v25 = vld [vmem:[#allocation43_spill] sm:$0xff]  ;;  %v19823_v46 = vld [vmem:[#allocation44_spill] sm:$0xff] }
 0x5ec   :  { %v6742_v13 = vsel %vm12319_vm5, %v19821_v62, %v17789_v9  ;;  %v6745_v22 = vsel %vm12319_vm5, %v19822_v25, %v17791_v42  ;;  %v6751_v28 = vsel %vm12319_vm5, %v19823_v46, %v17806_v54  ;;  %6731 = vst [vmem:[#allocation2 + $0x2a0] sm:$0xff] %v6730_v37  ;;  %6737 = vst [vmem:[#allocation2 + $0x330] sm:$0xff] %v6736_v24  ;;  %v12123_v16 = vld [vmem:[%s19329_s5 + $0xc8] sm:$0xff]   ;;  %v17923_v9 = vld [vmem:[#allocation2 + $0x190] sm:$0xff] }
 0x5ed   :  { %v17921_v4 = vld [vmem:[#allocation2 + $0x148] sm:$0xff]  ;;  %v17925_v57 = vld [vmem:[#allocation2 + $0x1d8] sm:$0xff]  ;;  %v6789_v42 = vld [vmem:[#allocation2 + $0x840] sm:$0xff]  ;;  %6746 = vst [vmem:[#allocation2 + $0x408] sm:$0xff] %v6745_v22  ;;  %9206 = vmatpush1.bf16.msra.mxu1 %v12123_v16 }
 0x5ee   :  { %v6786_v45 = vld [vmem:[#allocation2 + $0x7f8] sm:$0xff]  ;;  %v6792_v25 = vld [vmem:[#allocation2 + $0x888] sm:$0xff]  ;;  %6752 = vst [vmem:[#allocation2 + $0x498] sm:$0xff] %v6751_v28  ;;  %v19825_v46 = vld [vmem:[#allocation46_spill] sm:$0xff]  ;;  %9207 = vmatprep.subr.bf16.mxu1 %v17510_v23 }
 0x5ef   :  { %v19824_v54 = vld [vmem:[#allocation45_spill] sm:$0xff]  ;;  %v6757_v52 = vsel %vm12319_vm5, %v19825_v46, %v17810_v33  ;;  %v19826_v37 = vld [vmem:[#allocation47_spill] sm:$0xff]  ;;  %v19827_v10 = vld [vmem:[#allocation48_spill] sm:$0xff]  ;;  %6743 = vst [vmem:[#allocation2 + $0x3c0] sm:$0xff] %v6742_v13 }
 0x5f0   :  { %v6754_v24 = vsel %vm12319_vm5, %v19824_v54, %v17808_v8  ;;  %v6760_v62 = vsel %vm12319_vm5, %v19826_v37, %v17826_v55  ;;  %v6763_v28 = vsel %vm12319_vm5, %v19827_v10, %v17828_v19  ;;  %v17944_v22 = vld [vmem:[#allocation2 + $0x220] sm:$0xff]  ;;  %v17946_v8 = vld [vmem:[#allocation2 + $0x268] sm:$0xff]  ;;  %v17948_v54 = vld [vmem:[#allocation2 + $0x2b0] sm:$0xff]  ;;  %v6748_v55 = vsel %vm12319_vm5, %v17904_v38, %v17824_v7  ;;  %6758 = vst [vmem:[#allocation2 + $0x528] sm:$0xff] %v6757_v52 }
 0x5f1   :  { %v17950_v33 = vld [vmem:[#allocation2 + $0x2f8] sm:$0xff]  ;;  %6764 = vst [vmem:[#allocation2 + $0x5b8] sm:$0xff] %v6763_v28  ;;  %v19828_v19 = vld [vmem:[#allocation49_spill] sm:$0xff]  ;;  %v19829_v10 = vld [vmem:[#allocation50_spill] sm:$0xff] }
 0x5f2   :  { %v6766_v13 = vsel %vm12319_vm5, %v19828_v19, %v17850_v34  ;;  %v6769_v37 = vsel %vm12319_vm5, %v19829_v10, %v17852_v3  ;;  %v19830_v46 = vld [vmem:[#allocation51_spill] sm:$0xff]  ;;  %6755 = vst [vmem:[#allocation2 + $0x4e0] sm:$0xff] %v6754_v24  ;;  %6761 = vst [vmem:[#allocation2 + $0x570] sm:$0xff] %v6760_v62  ;;  %v17968_v7 = vld [vmem:[#allocation2 + $0x340] sm:$0xff] }
 0x5f3   :  { %v6772_v0 = vsel %vm12319_vm5, %v19830_v46, %v17872_v20  ;;  %v17970_v52 = vld [vmem:[#allocation2 + $0x388] sm:$0xff]  ;;  %v17972_v28 = vld [vmem:[#allocation2 + $0x3d0] sm:$0xff]  ;;  %v17974_v38 = vld [vmem:[#allocation2 + $0x418] sm:$0xff]  ;;  %6749 = vst [vmem:[#allocation2 + $0x450] sm:$0xff] %v6748_v55 }
 0x5f4   :  { %6770 = vst [vmem:[#allocation2 + $0x648] sm:$0xff] %v6769_v37  ;;  %v19831_v34 = vld [vmem:[#allocation52_spill] sm:$0xff]  ;;  %v19832_v10 = vld [vmem:[#allocation53_spill] sm:$0xff]  ;;  %v19833_v62 = vld [vmem:[#allocation54_spill] sm:$0xff] }
 0x5f5   :  { %v6775_v3 = vsel %vm12319_vm5, %v19831_v34, %v17874_v51  ;;  %v6778_v20 = vsel %vm12319_vm5, %v19832_v10, %v17876_v21  ;;  %v6781_v24 = vsel %vm12319_vm5, %v19833_v62, %v6780_v12  ;;  %v19834_v46 = vld [vmem:[#allocation55_spill] sm:$0xff]  ;;  %6767 = vst [vmem:[#allocation2 + $0x600] sm:$0xff] %v6766_v13  ;;  %6773 = vst [vmem:[#allocation2 + $0x690] sm:$0xff] %v6772_v0  ;;  %v17990_v37 = vld [vmem:[#allocation2 + $0x460] sm:$0xff]  ;;  %v19838_v0 = vshll.u32 %v19800_v48, 16 }
 0x5f6   :  { %v6784_v19 = vsel %vm12319_vm5, %v19834_v46, %v6783_v5  ;;  %v17992_v55 = vld [vmem:[#allocation2 + $0x4a8] sm:$0xff]  ;;  %6776 = vst [vmem:[#allocation2 + $0x6d8] sm:$0xff] %v6775_v3  ;;  %6782 = vst [vmem:[#allocation2 + $0x768] sm:$0xff] %v6781_v24  ;;  %v19835_v51 = vld [vmem:[#allocation56_spill] sm:$0xff] }
 0x5f7   :  { %v6787_v21 = vsel %vm12319_vm5, %v19835_v51, %v6786_v45  ;;  %v19836_v10 = vld [vmem:[#allocation57_spill] sm:$0xff]  ;;  %v19837_v62 = vld [vmem:[#allocation59_spill] sm:$0xff]  ;;  %v7004_v13 = vrot.slane %v19838_v0, 1  ;;  %6779 = vst [vmem:[#allocation2 + $0x720] sm:$0xff] %v6778_v20  ;;  %6785 = vst [vmem:[#allocation2 + $0x7b0] sm:$0xff] %v6784_v19  ;;  %v7157_v19 = vsel %vm12992_vm10, %v17476_v43, %v17898_v30  ;;  %v7163_v30 = vsel %vm12992_vm10, %v17484_v1, %v17921_v4 }
 0x5f8   :  { %v6790_v12 = vsel %vm12319_vm5, %v19836_v10, %v6789_v42  ;;  %v6793_v5 = vsel %vm12319_vm5, %v19837_v62, %v6792_v25  ;;  %v8072_v46 = vld [vmem:[#allocation2 + $0x168] sm:$0xff]  ;;  %v12124_v3 = vld [vmem:[%s19329_s5 + $0xd0] sm:$0xff]   ;;  %v18010_v24 = vld [vmem:[#allocation2 + $0x538] sm:$0xff]  ;;  %6788 = vst [vmem:[#allocation2 + $0x7f8] sm:$0xff] %v6787_v21  ;;  %v7160_v21 = vsel %vm12992_vm10, %v17480_v47, %v17900_v32  ;;  %v7166_v32 = vsel %vm12992_vm10, %v17488_v18, %v17923_v9 }
 0x5f9   :  { %v18008_v45 = vld [vmem:[#allocation2 + $0x4f0] sm:$0xff]  ;;  %6794 = vst [vmem:[#allocation2 + $0x888] sm:$0xff] %v6793_v5  ;;  %v19839_v42 = vld [vmem:[#allocation12_spill] sm:$0xff]  ;;  %v19840_v20 = vld [vmem:[#allocation61_spill] sm:$0xff]  ;;  %8971 = vmatmul.mubr.bf16.gmra.mrb[84].mxu1 %v8072_v46  ;;  %v7169_v46 = vsel %vm12992_vm10, %v17492_v49, %v17925_v57  ;;  %v7172_v4 = vsel %vm12992_vm10, %v17496_v40, %v17944_v22  ;;  %v7175_v9 = vsel %vm12992_vm10, %v17515_v29, %v17946_v8 }
 0x5fa   :  { %v7151_v25 = vsel %vm12992_vm10, %v19839_v42, %v17894_v14  ;;  %v7154_v16 = vsel %vm12992_vm10, %v19840_v20, %v17896_v27  ;;  %6791 = vst [vmem:[#allocation2 + $0x840] sm:$0xff] %v6790_v12  ;;  %v8082_v5 = vld [vmem:[#allocation2 + $0x1b8] sm:$0xff]  ;;  %v18028_v0 = vld [vmem:[#allocation2 + $0x580] sm:$0xff]  ;;  %v18030_v14 = vld [vmem:[#allocation2 + $0x5c8] sm:$0xff]  ;;  %v19841_v27 = vshrl.u32 %v19800_v48, 16  ;;  %v7178_v57 = vsel %vm12992_vm10, %v17519_v58, %v17948_v54  ;;  %9208 = vmatpush1.bf16.msra.mxu1 %v12124_v3 }
 0x5fb   :  { %v18032_v42 = vld [vmem:[#allocation2 + $0x610] sm:$0xff]  ;;  %7152 = vst [vmem:[#allocation2 + $0x28] sm:$0xff] %v7151_v25  ;;  %7155 = vst [vmem:[#allocation2 + $0x70] sm:$0xff] %v7154_v16  ;;  %8978 = vmatprep.mubr.bf16.mxu1 %v8082_v5  ;;  %v18050_v48 = vld [vmem:[#allocation2 + $0x658] sm:$0xff]  ;;  %v7181_v25 = vsel %vm12992_vm10, %v17527_v31, %v17950_v33  ;;  %v7184_v33 = vsel %vm12992_vm10, %v17531_v60, %v17968_v7  ;;  %v7199_v3 = vsel %vm12992_vm10, %v17547_v63, %v17992_v55 }
 0x5fc   :  { %v18036_v20 = vor.u32 %v7004_v13, %v19841_v27  ;;  %7158 = vst [vmem:[#allocation2 + $0xb8] sm:$0xff] %v7157_v19  ;;  %7161 = vst [vmem:[#allocation2 + $0x100] sm:$0xff] %v7160_v21  ;;  %v18052_v12 = vld [vmem:[#allocation2 + $0x6a0] sm:$0xff]  ;;  %v18054_v13 = vld [vmem:[#allocation2 + $0x6e8] sm:$0xff]  ;;  %v7187_v27 = vsel %vm12992_vm10, %v17535_v44, %v17970_v52  ;;  %9209 = vmatprep.subr.bf16.mxu1 %v17510_v23  ;;  %v7208_v55 = vsel %vm12992_vm10, %v17576_v15, %v18028_v0 }
 0x5fd   :  { %7164 = vst [vmem:[#allocation2 + $0x148] sm:$0xff] %v7163_v30  ;;  %7167 = vst [vmem:[#allocation2 + $0x190] sm:$0xff] %v7166_v32  ;;  %v18073_v22 = vld [vmem:[#allocation2 + $0x30] sm:$0xff]  ;;  %v18075_v16 = vld [vmem:[#allocation2 + $0x78] sm:$0xff]  ;;  %v7190_v30 = vsel %vm12992_vm10, %v17539_v41, %v17972_v28  ;;  %v7193_v32 = vsel %vm12992_vm10, %v17543_v39, %v17974_v38 }
 0x5fe   :  { %7170 = vst [vmem:[#allocation2 + $0x1d8] sm:$0xff] %v7169_v46  ;;  %v18077_v8 = vld [vmem:[#allocation2 + $0xc0] sm:$0xff]  ;;  %v18079_v19 = vld [vmem:[#allocation2 + $0x108] sm:$0xff]  ;;  %v7225_v21 = vld [vmem:[#allocation2 + $0x730] sm:$0xff]  ;;  %v7196_v38 = vsel %vm12992_vm10, %v18036_v20, %v17990_v37 }
 0x5ff   :  { %v7228_v54 = vld [vmem:[#allocation2 + $0x778] sm:$0xff]  ;;  %v18081_v5 = vld [vmem:[#allocation2 + $0x7c0] sm:$0xff]  ;;  %7173 = vst [vmem:[#allocation2 + $0x220] sm:$0xff] %v7172_v4  ;;  %7176 = vst [vmem:[#allocation2 + $0x268] sm:$0xff] %v7175_v9  ;;  %v7202_v4 = vsel %vm12992_vm10, %v17564_v59, %v18008_v45  ;;  %v7205_v9 = vsel %vm12992_vm10, %v17568_v56, %v18010_v24  ;;  %v7211_v45 = vsel %vm12992_vm10, %v17580_v53, %v18030_v14 }
 0x600   :  { %7179 = vst [vmem:[#allocation2 + $0x2b0] sm:$0xff] %v7178_v57  ;;  %7182 = vst [vmem:[#allocation2 + $0x2f8] sm:$0xff] %v7181_v25  ;;  %v18099_v7 = vld [vmem:[#allocation2 + $0x150] sm:$0xff]  ;;  %v18101_v46 = vld [vmem:[#allocation2 + $0x198] sm:$0xff]  ;;  %v7214_v24 = vsel %vm12992_vm10, %v17584_v11, %v18032_v42  ;;  %v7217_v25 = vsel %vm12992_vm10, %v17588_v2, %v18050_v48  ;;  %v7220_v14 = vsel %vm12992_vm10, %v17592_v26, %v18052_v12 }
 0x601   :  { %v18103_v52 = vld [vmem:[#allocation2 + $0x1e0] sm:$0xff]  ;;  %v18105_v44 = vld [vmem:[#allocation2 + $0x228] sm:$0xff]  ;;  %v7237_v28 = vld [vmem:[#allocation2 + $0x850] sm:$0xff]  ;;  %7185 = vst [vmem:[#allocation2 + $0x340] sm:$0xff] %v7184_v33  ;;  %v7223_v42 = vsel %vm12992_vm10, %v17596_v17, %v18054_v13  ;;  %v7226_v48 = vsel %vm12992_vm10, %v17628_v61, %v7225_v21  ;;  %v7232_v13 = vsel %vm12992_vm10, %v17646_v50, %v18081_v5 }
 0x602   :  { %v7234_v60 = vld [vmem:[#allocation2 + $0x808] sm:$0xff]  ;;  %v7240_v41 = vld [vmem:[#allocation2 + $0x898] sm:$0xff]  ;;  %7188 = vst [vmem:[#allocation2 + $0x388] sm:$0xff] %v7187_v27  ;;  %7191 = vst [vmem:[#allocation2 + $0x3d0] sm:$0xff] %v7190_v30  ;;  %v7229_v30 = vsel %vm12992_vm10, %v17632_v6, %v7228_v54 }
 0x603   :  { %7194 = vst [vmem:[#allocation2 + $0x418] sm:$0xff] %v7193_v32  ;;  %v18124_v37 = vld [vmem:[#allocation2 + $0x270] sm:$0xff]  ;;  %v18126_v57 = vld [vmem:[#allocation2 + $0x2b8] sm:$0xff]  ;;  %v18128_v63 = vld [vmem:[#allocation2 + $0x300] sm:$0xff] }
 0x604   :  { %7197 = vst [vmem:[#allocation2 + $0x460] sm:$0xff] %v7196_v38  ;;  %7200 = vst [vmem:[#allocation2 + $0x4a8] sm:$0xff] %v7199_v3  ;;  %v18146_v33 = vld [vmem:[#allocation2 + $0x348] sm:$0xff]  ;;  %v18148_v0 = vld [vmem:[#allocation2 + $0x390] sm:$0xff] }
 0x605   :  { %7203 = vst [vmem:[#allocation2 + $0x4f0] sm:$0xff] %v7202_v4  ;;  %7206 = vst [vmem:[#allocation2 + $0x538] sm:$0xff] %v7205_v9  ;;  %v18150_v27 = vld [vmem:[#allocation2 + $0x3d8] sm:$0xff]  ;;  %v18166_v32 = vld [vmem:[#allocation2 + $0x420] sm:$0xff] }
 0x606   :  { %7209 = vst [vmem:[#allocation2 + $0x580] sm:$0xff] %v7208_v55  ;;  %7212 = vst [vmem:[#allocation2 + $0x5c8] sm:$0xff] %v7211_v45  ;;  %v18168_v12 = vld [vmem:[#allocation2 + $0x4b0] sm:$0xff]  ;;  %v18170_v38 = vld [vmem:[#allocation2 + $0x4f8] sm:$0xff] }
 0x607   :  { %7215 = vst [vmem:[#allocation2 + $0x610] sm:$0xff] %v7214_v24  ;;  %7218 = vst [vmem:[#allocation2 + $0x658] sm:$0xff] %v7217_v25  ;;  %v19842_v21 = vld [vmem:[#allocation16_spill] sm:$0xff]  ;;  %v19843_v54 = vld [vmem:[#allocation17_spill] sm:$0xff] }
 0x608   :  { %v7235_v3 = vsel %vm12992_vm10, %v19842_v21, %v7234_v60  ;;  %v7238_v4 = vsel %vm12992_vm10, %v19843_v54, %v7237_v28  ;;  %v19844_v9 = vld [vmem:[#allocation18_spill] sm:$0xff]  ;;  %7221 = vst [vmem:[#allocation2 + $0x6a0] sm:$0xff] %v7220_v14  ;;  %7224 = vst [vmem:[#allocation2 + $0x6e8] sm:$0xff] %v7223_v42  ;;  %v18185_v45 = vld [vmem:[#allocation2 + $0x540] sm:$0xff] }
 0x609   :  { %v7241_v55 = vsel %vm12992_vm10, %v19844_v9, %v7240_v41  ;;  %7227 = vst [vmem:[#allocation2 + $0x730] sm:$0xff] %v7226_v48  ;;  %7230 = vst [vmem:[#allocation2 + $0x778] sm:$0xff] %v7229_v30  ;;  %v18187_v24 = vld [vmem:[#allocation2 + $0x588] sm:$0xff]  ;;  %v19845_v5 = vld [vmem:[#allocation8_spill] sm:$0xff] }
 0x60a   :  { %v7518_v60 = vsel %vm12319_vm5, %v19845_v5, %v18073_v22  ;;  %v19846_v25 = vld [vmem:[#allocation6_spill] sm:$0xff]  ;;  %v19848_v42 = vld [vmem:[#allocation9_spill] sm:$0xff]  ;;  %7233 = vst [vmem:[#allocation2 + $0x7c0] sm:$0xff] %v7232_v13  ;;  %7236 = vst [vmem:[#allocation2 + $0x808] sm:$0xff] %v7235_v3 }
 0x60b   :  { %v7521_v28 = vsel %vm12319_vm5, %v19846_v25, %v18075_v16  ;;  %v19847_v41 = vld [vmem:[#allocation10_spill] sm:$0xff]  ;;  %v7527_v48 = vsel %vm12319_vm5, %v19848_v42, %v18079_v19  ;;  %7239 = vst [vmem:[#allocation2 + $0x850] sm:$0xff] %v7238_v4  ;;  %7242 = vst [vmem:[#allocation2 + $0x898] sm:$0xff] %v7241_v55  ;;  %v19849_v22 = vld [vmem:[#allocation60_spill] sm:$0xff] }
 0x60c   :  { %v7524_v14 = vsel %vm12319_vm5, %v19847_v41, %v18077_v8  ;;  %8979 = vmatmul.mubr.bf16.gmra.mrb[88].mxu1 %v19849_v22  ;;  %v8091_v30 = vld [vmem:[#allocation2 + $0x200] sm:$0xff]  ;;  %v18206_v5 = vld [vmem:[#allocation2 + $0x5d0] sm:$0xff]  ;;  %v18208_v16 = vld [vmem:[#allocation2 + $0x618] sm:$0xff]  ;;  %7519 = vst [vmem:[#allocation2 + $0x30] sm:$0xff] %v7518_v60 }
 0x60d   :  { %v18210_v25 = vld [vmem:[#allocation2 + $0x660] sm:$0xff]  ;;  %7522 = vst [vmem:[#allocation2 + $0x78] sm:$0xff] %v7521_v28  ;;  %7528 = vst [vmem:[#allocation2 + $0x108] sm:$0xff] %v7527_v48  ;;  %v19850_v8 = vld [vmem:[#allocation7_spill] sm:$0xff]  ;;  %8986 = vmatprep.mubr.bf16.mxu1 %v8091_v30 }
 0x60e   :  { %v7530_v19 = vsel %vm12319_vm5, %v19850_v8, %v18099_v7  ;;  %v19851_v13 = vld [vmem:[#allocation35_spill] sm:$0xff]  ;;  %v19852_v4 = vld [vmem:[#allocation36_spill] sm:$0xff]  ;;  %v19853_v41 = vld [vmem:[#allocation37_spill] sm:$0xff]  ;;  %7525 = vst [vmem:[#allocation2 + $0xc0] sm:$0xff] %v7524_v14 }
 0x60f   :  { %v7533_v3 = vsel %vm12319_vm5, %v19851_v13, %v18101_v46  ;;  %v7536_v55 = vsel %vm12319_vm5, %v19852_v4, %v18103_v52  ;;  %v7539_v60 = vsel %vm12319_vm5, %v19853_v41, %v18105_v44  ;;  %v18228_v28 = vld [vmem:[#allocation2 + $0x40] sm:$0xff]  ;;  %v18230_v7 = vld [vmem:[#allocation2 + $0x88] sm:$0xff]  ;;  %v18232_v42 = vld [vmem:[#allocation2 + $0xd0] sm:$0xff]  ;;  %7531 = vst [vmem:[#allocation2 + $0x150] sm:$0xff] %v7530_v19 }
 0x610   :  { %v7583_v48 = vld [vmem:[#allocation2 + $0x6a8] sm:$0xff]  ;;  %v7586_v46 = vld [vmem:[#allocation2 + $0x6f0] sm:$0xff]  ;;  %v18234_v22 = vld [vmem:[#allocation2 + $0x738] sm:$0xff]  ;;  %7534 = vst [vmem:[#allocation2 + $0x198] sm:$0xff] %v7533_v3 }
 0x611   :  { %7540 = vst [vmem:[#allocation2 + $0x228] sm:$0xff] %v7539_v60  ;;  %v19854_v52 = vld [vmem:[#allocation38_spill] sm:$0xff]  ;;  %v19855_v44 = vld [vmem:[#allocation39_spill] sm:$0xff]  ;;  %v19856_v30 = vld [vmem:[#allocation40_spill] sm:$0xff] }
 0x612   :  { %v7542_v8 = vsel %vm12319_vm5, %v19854_v52, %v18124_v37  ;;  %v7545_v14 = vsel %vm12319_vm5, %v19855_v44, %v18126_v57  ;;  %v7548_v13 = vsel %vm12319_vm5, %v19856_v30, %v18128_v63  ;;  %v19857_v4 = vld [vmem:[#allocation41_spill] sm:$0xff]  ;;  %7537 = vst [vmem:[#allocation2 + $0x1e0] sm:$0xff] %v7536_v55  ;;  %v18252_v41 = vld [vmem:[#allocation2 + $0x118] sm:$0xff]  ;;  %v18254_v37 = vld [vmem:[#allocation2 + $0x160] sm:$0xff] }
 0x613   :  { %v7551_v3 = vsel %vm12319_vm5, %v19857_v4, %v18146_v33  ;;  %v18256_v60 = vld [vmem:[#allocation2 + $0x1a8] sm:$0xff]  ;;  %v18258_v52 = vld [vmem:[#allocation2 + $0x1f0] sm:$0xff]  ;;  %v7592_v57 = vld [vmem:[#allocation2 + $0x780] sm:$0xff]  ;;  %7546 = vst [vmem:[#allocation2 + $0x2b8] sm:$0xff] %v7545_v14 }
 0x614   :  { %v7595_v44 = vld [vmem:[#allocation2 + $0x7c8] sm:$0xff]  ;;  %v7598_v9 = vld [vmem:[#allocation2 + $0x810] sm:$0xff]  ;;  %7552 = vst [vmem:[#allocation2 + $0x348] sm:$0xff] %v7551_v3  ;;  %v19859_v19 = vld [vmem:[#allocation43_spill] sm:$0xff] }
 0x615   :  { %v19858_v63 = vld [vmem:[#allocation42_spill] sm:$0xff]  ;;  %v7557_v55 = vsel %vm12319_vm5, %v19859_v19, %v18150_v27  ;;  %v19860_v30 = vld [vmem:[#allocation21_spill] sm:$0xff]  ;;  %7543 = vst [vmem:[#allocation2 + $0x270] sm:$0xff] %v7542_v8  ;;  %7549 = vst [vmem:[#allocation2 + $0x300] sm:$0xff] %v7548_v13 }
 0x616   :  { %v7554_v33 = vsel %vm12319_vm5, %v19858_v63, %v18148_v0  ;;  %v7560_v4 = vsel %vm12319_vm5, %v19860_v30, %v18166_v32  ;;  %v19861_v54 = vld [vmem:[#allocation45_spill] sm:$0xff]  ;;  %v18276_v3 = vld [vmem:[#allocation2 + $0x238] sm:$0xff]  ;;  %v18278_v0 = vld [vmem:[#allocation2 + $0x280] sm:$0xff]  ;;  %7558 = vst [vmem:[#allocation2 + $0x3d8] sm:$0xff] %v7557_v55 }
 0x617   :  { %v7563_v14 = vsel %vm12319_vm5, %v19861_v54, %v18168_v12  ;;  %v18280_v63 = vld [vmem:[#allocation2 + $0x2c8] sm:$0xff]  ;;  %v7601_v21 = vld [vmem:[#allocation2 + $0x858] sm:$0xff]  ;;  %7561 = vst [vmem:[#allocation2 + $0x420] sm:$0xff] %v7560_v4  ;;  %v19862_v27 = vld [vmem:[#allocation46_spill] sm:$0xff] }
 0x618   :  { %v7566_v32 = vsel %vm12319_vm5, %v19862_v27, %v18170_v38  ;;  %v19863_v19 = vld [vmem:[#allocation47_spill] sm:$0xff]  ;;  %v19864_v54 = vld [vmem:[#allocation48_spill] sm:$0xff]  ;;  %v19865_v13 = vld [vmem:[#allocation49_spill] sm:$0xff]  ;;  %7555 = vst [vmem:[#allocation2 + $0x390] sm:$0xff] %v7554_v33  ;;  %v7584_v33 = vsel %vm12319_vm5, %v19831_v34, %v7583_v48  ;;  %v7596_v48 = vsel %vm12319_vm5, %v19835_v51, %v7595_v44 }
 0x619   :  { %v7569_v12 = vsel %vm12319_vm5, %v19863_v19, %v18185_v45  ;;  %v7572_v8 = vsel %vm12319_vm5, %v19864_v54, %v18187_v24  ;;  %v7575_v55 = vsel %vm12319_vm5, %v19865_v13, %v18206_v5  ;;  %7564 = vst [vmem:[#allocation2 + $0x4b0] sm:$0xff] %v7563_v14  ;;  %v12125_v38 = vld [vmem:[%s19329_s5 + $0xd8] sm:$0xff]   ;;  %v7967_v30 = vld [vmem:[#allocation2 + $0x310] sm:$0xff]  ;;  %v7973_v27 = vld [vmem:[#allocation2 + $0x3a0] sm:$0xff] }
 0x61a   :  { %v7970_v4 = vld [vmem:[#allocation2 + $0x358] sm:$0xff]  ;;  %7567 = vst [vmem:[#allocation2 + $0x4f8] sm:$0xff] %v7566_v32  ;;  %7573 = vst [vmem:[#allocation2 + $0x588] sm:$0xff] %v7572_v8  ;;  %v19866_v45 = vld [vmem:[#allocation50_spill] sm:$0xff]  ;;  %9210 = vmatpush1.bf16.msra.mxu1 %v12125_v38 }
 0x61b   :  { %v7578_v24 = vsel %vm12319_vm5, %v19866_v45, %v18208_v16  ;;  %v19867_v19 = vld [vmem:[#allocation51_spill] sm:$0xff]  ;;  %v19868_v14 = vld [vmem:[#allocation53_spill] sm:$0xff]  ;;  %7570 = vst [vmem:[#allocation2 + $0x540] sm:$0xff] %v7569_v12  ;;  %7576 = vst [vmem:[#allocation2 + $0x5d0] sm:$0xff] %v7575_v55  ;;  %9211 = vmatprep.subr.bf16.mxu1 %v17510_v23  ;;  %v18366_v23 = vsel %vm12992_vm10, %v17496_v40, %v18258_v52  ;;  %v18384_v40 = vsel %vm12992_vm10, %v17527_v31, %v18280_v63 }
 0x61c   :  { %v7581_v5 = vsel %vm12319_vm5, %v19867_v19, %v18210_v25  ;;  %v7587_v54 = vsel %vm12319_vm5, %v19868_v14, %v7586_v46  ;;  %v7976_v32 = vld [vmem:[#allocation2 + $0x3e8] sm:$0xff]  ;;  %v7979_v8 = vld [vmem:[#allocation2 + $0x430] sm:$0xff]  ;;  %v7982_v13 = vld [vmem:[#allocation2 + $0x4c0] sm:$0xff]  ;;  %7579 = vst [vmem:[#allocation2 + $0x618] sm:$0xff] %v7578_v24  ;;  %v7599_v46 = vsel %vm12319_vm5, %v19836_v10, %v7598_v9  ;;  %v7941_v10 = vsel %vm12992_vm10, %v17476_v43, %v18230_v7 }
 0x61d   :  { %7585 = vst [vmem:[#allocation2 + $0x6a8] sm:$0xff] %v7584_v33  ;;  %v19869_v16 = vld [vmem:[#allocation54_spill] sm:$0xff]  ;;  %v19870_v45 = vld [vmem:[#allocation55_spill] sm:$0xff]  ;;  %7582 = vst [vmem:[#allocation2 + $0x660] sm:$0xff] %v7581_v5  ;;  %v7944_v9 = vsel %vm12992_vm10, %v17480_v47, %v18232_v42  ;;  %v18354_v43 = vsel %vm12992_vm10, %v17488_v18, %v18254_v37  ;;  %v18360_v47 = vsel %vm12992_vm10, %v17492_v49, %v18256_v60 }
 0x61e   :  { %v7590_v25 = vsel %vm12319_vm5, %v19869_v16, %v18234_v22  ;;  %v7593_v34 = vsel %vm12319_vm5, %v19870_v45, %v7592_v57  ;;  %7588 = vst [vmem:[#allocation2 + $0x6f0] sm:$0xff] %v7587_v54  ;;  %v7985_v12 = vld [vmem:[#allocation2 + $0x508] sm:$0xff]  ;;  %v7988_v55 = vld [vmem:[#allocation2 + $0x550] sm:$0xff]  ;;  %v7991_v24 = vld [vmem:[#allocation2 + $0x598] sm:$0xff]  ;;  %v7602_v22 = vsel %vm12319_vm5, %v19837_v62, %v7601_v21  ;;  %v18372_v18 = vsel %vm12992_vm10, %v17515_v29, %v18276_v3 }
 0x61f   :  { %7591 = vst [vmem:[#allocation2 + $0x738] sm:$0xff] %v7590_v25  ;;  %7597 = vst [vmem:[#allocation2 + $0x7c8] sm:$0xff] %v7596_v48  ;;  %v19871_v57 = vld [vmem:[#allocation61_spill] sm:$0xff]  ;;  %v7994_v35 = vld [vmem:[#allocation2 + $0x5e0] sm:$0xff]  ;;  %v18378_v49 = vsel %vm12992_vm10, %v17519_v58, %v18278_v0  ;;  %v18408_v3 = vsel %vm12992_vm10, %v17543_v39, %v7976_v32  ;;  %v18413_v0 = vsel %vm12992_vm10, %v18036_v20, %v7979_v8  ;;  %9212 = vmatpush1.bf16.msra.mxu1 %v12126_v36 }
 0x620   :  { %v7938_v51 = vsel %vm12992_vm10, %v19871_v57, %v18228_v28  ;;  %7594 = vst [vmem:[#allocation2 + $0x780] sm:$0xff] %v7593_v34  ;;  %7600 = vst [vmem:[#allocation2 + $0x810] sm:$0xff] %v7599_v46  ;;  %v7997_v62 = vld [vmem:[#allocation2 + $0x628] sm:$0xff]  ;;  %v8000_v21 = vld [vmem:[#allocation2 + $0x670] sm:$0xff]  ;;  %v18348_v28 = vsel %vm12992_vm10, %v17484_v1, %v18252_v41  ;;  %v18423_v39 = vsel %vm12992_vm10, %v17564_v59, %v7982_v13 }
 0x621   :  { %7603 = vst [vmem:[#allocation2 + $0x858] sm:$0xff] %v7602_v22  ;;  %7942 = vst [vmem:[#allocation2 + $0x88] sm:$0xff] %v7941_v10  ;;  %11041 = vmatprep.mubr.bf16.mxu0 %v7938_v51  ;;  %v8003_v1 = vld [vmem:[#allocation2 + $0x6b8] sm:$0xff]  ;;  %v8006_v7 = vld [vmem:[#allocation2 + $0x700] sm:$0xff]  ;;  %v18428_v20 = vsel %vm12992_vm10, %v17568_v56, %v7985_v12  ;;  %v18446_v56 = vsel %vm12992_vm10, %v17584_v11, %v7994_v35 }
 0x622   :  { %7939 = vst [vmem:[#allocation2 + $0x40] sm:$0xff] %v7938_v51  ;;  %7945 = vst [vmem:[#allocation2 + $0xd0] sm:$0xff] %v7944_v9  ;;  %v8009_v42 = vld [vmem:[#allocation2 + $0x748] sm:$0xff]  ;;  %11042 = vmatmul.mubr.bf16.vlgmr.msra.gmra.mrb[128].mxu0 %v7941_v10  ;;  %v8012_v29 = vld [vmem:[#allocation2 + $0x790] sm:$0xff]  ;;  %v18461_v19 = vsel %vm12992_vm10, %v17596_v17, %v8003_v1  ;;  %v18470_v11 = vsel %vm12992_vm10, %v17628_v61, %v8006_v7 }
 0x623   :  { %v19872_v41 = vld [vmem:[#allocation13_spill] sm:$0xff]  ;;  %7948 = vst [vmem:[#allocation2 + $0x118] sm:$0xff] %v18348_v28  ;;  %7951 = vst [vmem:[#allocation2 + $0x160] sm:$0xff] %v18354_v43  ;;  %v8015_v58 = vld [vmem:[#allocation2 + $0x7d8] sm:$0xff]  ;;  %11045 = vmatprep.mubr.bf16.mxu0 %v7944_v9 }
 0x624   :  { %v18389_v37 = vsel %vm12992_vm10, %v19872_v41, %v7967_v30  ;;  %7954 = vst [vmem:[#allocation2 + $0x1a8] sm:$0xff] %v18360_v47  ;;  %7957 = vst [vmem:[#allocation2 + $0x1f0] sm:$0xff] %v18366_v23  ;;  %v19873_v60 = vld [vmem:[#allocation14_spill] sm:$0xff]  ;;  %v19874_v52 = vld [vmem:[#allocation15_spill] sm:$0xff] }
 0x625   :  { %v18398_v31 = vsel %vm12992_vm10, %v19873_v60, %v7970_v4  ;;  %v18403_v44 = vsel %vm12992_vm10, %v19874_v52, %v7973_v27  ;;  %7960 = vst [vmem:[#allocation2 + $0x238] sm:$0xff] %v18372_v18  ;;  %7963 = vst [vmem:[#allocation2 + $0x280] sm:$0xff] %v18378_v49  ;;  %v8090_v63 = vld [vmem:[#allocation2 + $0x1f8] sm:$0xff]  ;;  %v8018_v38 = vld [vmem:[#allocation2 + $0x820] sm:$0xff]  ;;  %v18433_v4 = vsel %vm12992_vm10, %v17576_v15, %v7988_v55 }
 0x626   :  { %7966 = vst [vmem:[#allocation2 + $0x2c8] sm:$0xff] %v18384_v40  ;;  %7969 = vst [vmem:[#allocation2 + $0x310] sm:$0xff] %v18389_v37  ;;  %v8021_v30 = vld [vmem:[#allocation2 + $0x868] sm:$0xff]  ;;  %v18438_v27 = vsel %vm12992_vm10, %v17580_v53, %v7991_v24  ;;  %8987 = vmatmul.mubr.bf16.gmra.mrb[92].mxu1 %v8090_v63  ;;  %v18451_v15 = vsel %vm12992_vm10, %v17588_v2, %v7997_v62  ;;  %v18456_v53 = vsel %vm12992_vm10, %v17592_v26, %v8000_v21  ;;  %v19875_v17 = vld [vmem:[#allocation16_spill] sm:$0xff] }
 0x627   :  { %7981 = vst [vmem:[#allocation2 + $0x430] sm:$0xff] %v18413_v0  ;;  %7972 = vst [vmem:[#allocation2 + $0x358] sm:$0xff] %v18398_v31  ;;  %v8100_v59 = vld [vmem:[#allocation2 + $0x248] sm:$0xff]  ;;  %v18475_v2 = vsel %vm12992_vm10, %v17632_v6, %v8009_v42  ;;  %v18480_v26 = vsel %vm12992_vm10, %v17646_v50, %v8012_v29  ;;  %v18485_v5 = vsel %vm12992_vm10, %v19875_v17, %v8015_v58  ;;  %v19877_v33 = vld [vmem:[#allocation18_spill] sm:$0xff] }
 0x628   :  { %7975 = vst [vmem:[#allocation2 + $0x3a0] sm:$0xff] %v18403_v44  ;;  %7978 = vst [vmem:[#allocation2 + $0x3e8] sm:$0xff] %v18408_v3  ;;  %8994 = vmatprep.mubr.bf16.mxu1 %v8100_v59  ;;  %v19876_v6 = vld [vmem:[#allocation17_spill] sm:$0xff]  ;;  %v8022_v50 = vsel %vm12992_vm10, %v19877_v33, %v8021_v30  ;;  %v12171_v14 = vld [vmem:[#allocation2 + $0x240] sm:$0xff] }
 0x629   :  { %7984 = vst [vmem:[#allocation2 + $0x4c0] sm:$0xff] %v18423_v39  ;;  %7987 = vst [vmem:[#allocation2 + $0x508] sm:$0xff] %v18428_v20  ;;  %v8019_v61 = vsel %vm12992_vm10, %v19876_v6, %v8018_v38  ;;  %v8109_v54 = vld [vmem:[#allocation2 + $0x290] sm:$0xff]  ;;  %v18506_v32 = vld [vmem:[#allocation2 + $0x8] sm:$0xff] }
 0x62a   :  { %7990 = vst [vmem:[#allocation2 + $0x550] sm:$0xff] %v18433_v4  ;;  %7993 = vst [vmem:[#allocation2 + $0x598] sm:$0xff] %v18438_v27  ;;  %11046 = vmatmul.mubr.bf16.gmra.mrb[132].mxu0 %v18348_v28  ;;  %9213 = vmatprep.subr.bf16.mxu1 %v18506_v32  ;;  %v8108_v8 = vld [vmem:[#allocation2 + $0x288] sm:$0xff]  ;;  %v8118_v13 = vld [vmem:[#allocation2 + $0x2d8] sm:$0xff] }
 0x62b   :  { %7996 = vst [vmem:[#allocation2 + $0x5e0] sm:$0xff] %v18446_v56  ;;  %7999 = vst [vmem:[#allocation2 + $0x628] sm:$0xff] %v18451_v15  ;;  %11049 = vmatprep.mubr.bf16.mxu0 %v18354_v43  ;;  %v12173_v16 = vld [vmem:[#allocation2 + $0x2d0] sm:$0xff]  ;;  %v8127_v25 = vld [vmem:[#allocation2 + $0x320] sm:$0xff] }
 0x62c   :  { %8002 = vst [vmem:[#allocation2 + $0x670] sm:$0xff] %v18456_v53  ;;  %8005 = vst [vmem:[#allocation2 + $0x6b8] sm:$0xff] %v18461_v19  ;;  %v12127_v45 = vld [vmem:[%s19329_s5 + $0xe8] sm:$0xff]   ;;  %v8126_v34 = vld [vmem:[#allocation2 + $0x318] sm:$0xff] }
 0x62d   :  { %8008 = vst [vmem:[#allocation2 + $0x700] sm:$0xff] %v18470_v11  ;;  %8011 = vst [vmem:[#allocation2 + $0x748] sm:$0xff] %v18475_v2  ;;  %9214 = vmatpush1.bf16.msra.mxu1 %v12127_v45  ;;  %v8136_v48 = vld [vmem:[#allocation2 + $0x368] sm:$0xff]  ;;  %v12174_v46 = vld [vmem:[#allocation2 + $0x360] sm:$0xff] }
 0x62e   :  { %8014 = vst [vmem:[#allocation2 + $0x790] sm:$0xff] %v18480_v26  ;;  %8017 = vst [vmem:[#allocation2 + $0x7d8] sm:$0xff] %v18485_v5  ;;  %8995 = vmatmul.mubr.bf16.gmra.mrb[96].mxu1 %v12171_v14  ;;  %9215 = vmatprep.subr.bf16.mxu1 %v18506_v32  ;;  %v8145_v12 = vld [vmem:[#allocation2 + $0x3b0] sm:$0xff]  ;;  %v8144_v55 = vld [vmem:[#allocation2 + $0x3a8] sm:$0xff] }
 0x62f   :  { %8023 = vst [vmem:[#allocation2 + $0x868] sm:$0xff] %v8022_v50  ;;  %8020 = vst [vmem:[#allocation2 + $0x820] sm:$0xff] %v8019_v61  ;;  %9002 = vmatprep.mubr.bf16.mxu1 %v8109_v54  ;;  %v8154_v24 = vld [vmem:[#allocation2 + $0x3f8] sm:$0xff]  ;;  %v12175_v57 = vld [vmem:[#allocation2 + $0x3f0] sm:$0xff] }
 0x630   :  { %v8170_v22 = vld [vmem:[#allocation2 + $0x478] sm:$0xff]  ;;  %v8163_v51 = vld [vmem:[#allocation2 + $0x440] sm:$0xff]  ;;  %v8181_v35 = vld [vmem:[#allocation2 + $0x4d0] sm:$0xff] }
 0x631   :  { %v8162_v10 = vld [vmem:[#allocation2 + $0x438] sm:$0xff]  ;;  %v8171_v9 = vld [vmem:[#allocation2 + $0x480] sm:$0xff]  ;;  %v8180_v62 = vld [vmem:[#allocation2 + $0x4c8] sm:$0xff] }
 0x632   :  { %11050 = vmatmul.mubr.bf16.gmra.mrb[136].mxu0 %v18360_v47  ;;  %v8190_v21 = vld [vmem:[#allocation2 + $0x518] sm:$0xff]  ;;  %v12128_v28 = vld [vmem:[%s19329_s5 + $0xf0] sm:$0xff]   ;;  %v8199_v47 = vld [vmem:[#allocation2 + $0x560] sm:$0xff] }
 0x633   :  { %11053 = vmatprep.mubr.bf16.mxu0 %v18366_v23  ;;  %9216 = vmatpush1.bf16.msra.mxu1 %v12128_v28  ;;  %v12176_v43 = vld [vmem:[#allocation2 + $0x510] sm:$0xff]  ;;  %v8198_v23 = vld [vmem:[#allocation2 + $0x558] sm:$0xff]  ;;  %v8208_v1 = vld [vmem:[#allocation2 + $0x5a8] sm:$0xff] }
 0x634   :  { %9217 = vmatprep.subr.bf16.mxu1 %v18506_v32  ;;  %v12129_v7 = vld [vmem:[%s19329_s5 + $0xf8] sm:$0xff]   ;;  %v12177_v42 = vld [vmem:[#allocation2 + $0x5a0] sm:$0xff]  ;;  %v12178_v41 = vld [vmem:[#allocation2 + $0x630] sm:$0xff] }
 0x635   :  { %v8234_v29 = vld [vmem:[#allocation2 + $0x678] sm:$0xff]  ;;  %v8244_v58 = vld [vmem:[#allocation2 + $0x6c8] sm:$0xff]  ;;  %v12179_v60 = vld [vmem:[#allocation2 + $0x6c0] sm:$0xff] }
 0x636   :  { %9003 = vmatmul.mubr.bf16.gmra.mrb[100].mxu1 %v8108_v8  ;;  %v8252_v52 = vld [vmem:[#allocation2 + $0x708] sm:$0xff]  ;;  %v8270_v63 = vld [vmem:[#allocation2 + $0x798] sm:$0xff]  ;;  %v12181_v30 = vld [vmem:[#allocation2 + $0x7e0] sm:$0xff] }
 0x637   :  { %9010 = vmatprep.mubr.bf16.mxu1 %v8118_v13  ;;  %9218 = vmatpush1.bf16.msra.mxu1 %v12129_v7  ;;  %v8280_v38 = vld [vmem:[#allocation2 + $0x7e8] sm:$0xff]  ;;  %v8307_v59 = vld [vmem:[#allocation2 + $0x8c0] sm:$0xff]  ;;  %v8038_v17 = vld [vmem:[#allocation2 + $0x58] sm:$0xff] }
 0x638   :  { %9476 = vmatprep.subr.bf16.mxu1 %v18506_v32  ;;  %v12133_v61 = vld [vmem:[%s19329_s5 + $0x118] sm:$0xff]   ;;  %v12134_v54 = vld [vmem:[%s19329_s5 + $0x120] sm:$0xff]   ;;  %v8084_v7 = vld [vmem:[#allocation2 + $0x1c8] sm:$0xff] }
 0x639   :  { %v12183_v36 = vld [vmem:[#allocation2 + $0xa0] sm:$0xff] }
 0x63a   :  { %11054 = vmatmul.mubr.bf16.gmra.mrb[140].mxu0 %v18372_v18  ;;  %v8217_v18 = vld [vmem:[#allocation2 + $0x5f0] sm:$0xff]  ;;  %v19879_v13 = vld [vmem:[#allocation20_spill] sm:$0xff] }
 0x63b   :  { %11057 = vmatprep.mubr.bf16.mxu0 %v18378_v49  ;;  %v8216_v49 = vld [vmem:[#allocation2 + $0x5e8] sm:$0xff] }
 0x63e   :  { %9011 = vmatmul.mubr.bf16.gmra.mrb[104].mxu1 %v12173_v16  ;;  %v12135_v16 = vld [vmem:[%s19329_s5 + $0x128] sm:$0xff]  }
 0x63f   :  { %9018 = vmatprep.mubr.bf16.mxu1 %v8127_v25 }
 0x642   :  { %11058 = vmatmul.mubr.bf16.gmra.mrb[144].mxu0 %v18384_v40  ;;  %v8226_v40 = vld [vmem:[#allocation2 + $0x638] sm:$0xff] }
 0x643   :  { %11061 = vmatprep.mubr.bf16.mxu0 %v18389_v37  ;;  %v8235_v37 = vld [vmem:[#allocation2 + $0x680] sm:$0xff] }
 0x646   :  { %9019 = vmatmul.mubr.bf16.gmra.mrb[108].mxu1 %v8126_v34 }
 0x647   :  { %9026 = vmatprep.mubr.bf16.mxu1 %v8136_v48  ;;  %v12136_v48 = vld [vmem:[%s19329_s5 + $0x130] sm:$0xff]  }
 0x64a   :  { %11062 = vmatmul.mubr.bf16.gmra.mrb[148].mxu0 %v18398_v31  ;;  %v8253_v31 = vld [vmem:[#allocation2 + $0x710] sm:$0xff] }
 0x64b   :  { %11065 = vmatprep.mubr.bf16.mxu0 %v18403_v44  ;;  %v8262_v44 = vld [vmem:[#allocation2 + $0x758] sm:$0xff] }
 0x64e   :  { %9027 = vmatmul.mubr.bf16.gmra.mrb[112].mxu1 %v12174_v46  ;;  %v12184_v46 = vld [vmem:[#allocation2 + $0xe8] sm:$0xff] }
 0x64f   :  { %9034 = vmatprep.mubr.bf16.mxu1 %v8145_v12  ;;  %v8066_v12 = vld [vmem:[#allocation2 + $0x138] sm:$0xff] }
 0x652   :  { %11066 = vmatmul.mubr.bf16.gmra.mrb[152].mxu0 %v18408_v3  ;;  %v12180_v3 = vld [vmem:[#allocation2 + $0x750] sm:$0xff] }
 0x653   :  { %11069 = vmatprep.mubr.bf16.mxu0 %v18413_v0  ;;  %v8271_v0 = vld [vmem:[#allocation2 + $0x7a0] sm:$0xff] }
 0x656   :  { %9035 = vmatmul.mubr.bf16.gmra.mrb[116].mxu1 %v8144_v55 }
 0x657   :  { %9042 = vmatprep.mubr.bf16.mxu1 %v8154_v24  ;;  %v12137_v24 = vld [vmem:[%s19329_s5 + $0x138] sm:$0xff]  }
 0x65a   :  { %11070 = vmatmul.mubr.bf16.gmra.mrb[156].mxu0 %v8170_v22 }
 0x65b   :  { %11073 = vmatprep.mubr.bf16.mxu0 %v18423_v39  ;;  %v8289_v39 = vld [vmem:[#allocation2 + $0x830] sm:$0xff] }
 0x65e   :  { %9043 = vmatmul.mubr.bf16.gmra.mrb[120].mxu1 %v12175_v57 }
 0x65f   :  { %9050 = vmatprep.mubr.bf16.mxu1 %v8163_v51 }
 0x662   :  { %11074 = vmatmul.mubr.bf16.gmra.mrb[160].mxu0 %v18428_v20  ;;  %v8288_v20 = vld [vmem:[#allocation2 + $0x828] sm:$0xff] }
 0x663   :  { %11077 = vmatprep.mubr.bf16.mxu0 %v18433_v4  ;;  %v8298_v4 = vld [vmem:[#allocation2 + $0x878] sm:$0xff] }
 0x666   :  { %9051 = vmatmul.mubr.bf16.gmra.mrb[124].mxu1 %v8162_v10  ;;  %v12138_v10 = vld [vmem:[%s19329_s5 + $0x140] sm:$0xff]  }
 0x667   :  { %9058 = vmatprep.mubr.bf16.mxu1 %v18506_v32 }
 0x66a   :  { %11078 = vmatmul.mubr.bf16.gmra.mrb[164].mxu0 %v18438_v27  ;;  %v12182_v27 = vld [vmem:[#allocation2 + $0x870] sm:$0xff] }
 0x66b   :  { %11081 = vmatprep.mubr.bf16.mxu0 %v18446_v56  ;;  %v8306_v56 = vld [vmem:[#allocation2 + $0x8b8] sm:$0xff] }
 0x66e   :  { %9059 = vmatmul.mubr.bf16.gmra.mrb[128].mxu1 %v8171_v9  ;;  %v12185_v9 = vld [vmem:[#allocation2 + $0x130] sm:$0xff] }
 0x66f   :  { %9066 = vmatprep.mubr.bf16.mxu1 %v8181_v35 }
 0x672   :  { %11082 = vmatmul.mubr.bf16.gmra.mrb[168].mxu0 %v18451_v15  ;;  %v8030_v15 = vld [vmem:[#allocation2 + $0x18] sm:$0xff] }
 0x673   :  { %11085 = vmatprep.mubr.bf16.mxu0 %v18456_v53  ;;  %v8029_v53 = vld [vmem:[#allocation2 + $0x10] sm:$0xff] }
 0x676   :  { %9067 = vmatmul.mubr.bf16.gmra.mrb[132].mxu1 %v8180_v62  ;;  %v12186_v62 = vld [vmem:[#allocation2 + $0x180] sm:$0xff] }
 0x677   :  { %9074 = vmatprep.mubr.bf16.mxu1 %v8190_v21  ;;  %v12139_v21 = vld [vmem:[%s19329_s5 + $0x148] sm:$0xff]  }
 0x67a   :  { %11086 = vmatmul.mubr.bf16.gmra.mrb[172].mxu0 %v18461_v19  ;;  %v12130_v19 = vld [vmem:[%s19329_s5 + $0x100] sm:$0xff]  }
 0x67b   :  { %11089 = vmatprep.mubr.bf16.mxu0 %v18470_v11  ;;  %v19878_v11 = vld [vmem:[#allocation19_spill] sm:$0xff] }
 0x67e   :  { %9075 = vmatmul.mubr.bf16.gmra.mrb[136].mxu1 %v12176_v43 }
 0x67f   :  { %9082 = vmatprep.mubr.bf16.mxu1 %v8199_v47 }
 0x682   :  { %11090 = vmatmul.mubr.bf16.gmra.mrb[176].mxu0 %v18475_v2  ;;  %v12131_v2 = vld [vmem:[%s19329_s5 + $0x108] sm:$0xff]  }
 0x683   :  { %11093 = vmatprep.mubr.bf16.mxu0 %v18480_v26  ;;  %v12132_v26 = vld [vmem:[%s19329_s5 + $0x110] sm:$0xff]  }
 0x686   :  { %9083 = vmatmul.mubr.bf16.gmra.mrb[140].mxu1 %v8198_v23  ;;  %v12140_v23 = vld [vmem:[%s19329_s5 + $0x150] sm:$0xff]  }
 0x687   :  { %9090 = vmatprep.mubr.bf16.mxu1 %v8208_v1  ;;  %v8074_v1 = vld [vmem:[#allocation2 + $0x178] sm:$0xff] }
 0x68a   :  { %11094 = vmatmul.mubr.bf16.gmra.mrb[180].mxu0 %v18485_v5  ;;  %v8048_v5 = vld [vmem:[#allocation2 + $0xa8] sm:$0xff] }
 0x68e   :  { %9091 = vmatmul.mubr.bf16.gmra.mrb[144].mxu1 %v12177_v42 }
 0x68f   :  { %9098 = vmatprep.mubr.bf16.mxu1 %v8217_v18 }
 0x696   :  { %9099 = vmatmul.mubr.bf16.gmra.mrb[148].mxu1 %v8216_v49 }
 0x697   :  { %9106 = vmatprep.mubr.bf16.mxu1 %v8226_v40 }
 0x69e   :  { %9107 = vmatmul.mubr.bf16.gmra.mrb[152].mxu1 %v12178_v41  ;;  %v8083_v41 = vld [vmem:[#allocation2 + $0x1c0] sm:$0xff] }
 0x69f   :  { %9114 = vmatprep.mubr.bf16.mxu1 %v8235_v37 }
 0x6a6   :  { %9115 = vmatmul.mubr.bf16.gmra.mrb[156].mxu1 %v8234_v29  ;;  %v12187_v29 = vld [vmem:[#allocation2 + $0x210] sm:$0xff] }
 0x6a7   :  { %9122 = vmatprep.mubr.bf16.mxu1 %v8244_v58  ;;  %v12141_v58 = vld [vmem:[%s19329_s5 + $0x158] sm:$0xff]  }
 0x6ae   :  { %9123 = vmatmul.mubr.bf16.gmra.mrb[160].mxu1 %v12179_v60 }
 0x6af   :  { %9130 = vmatprep.mubr.bf16.mxu1 %v8253_v31 }
 0x6b6   :  { %9131 = vmatmul.mubr.bf16.gmra.mrb[164].mxu1 %v8252_v52 }
 0x6b7   :  { %9138 = vmatprep.mubr.bf16.mxu1 %v8262_v44  ;;  %v8092_v44 = vld [vmem:[#allocation2 + $0x208] sm:$0xff] }
 0x6be   :  { %9139 = vmatmul.mubr.bf16.gmra.mrb[168].mxu1 %v12180_v3  ;;  %v8102_v3 = vld [vmem:[#allocation2 + $0x258] sm:$0xff] }
 0x6bf   :  { %9146 = vmatprep.mubr.bf16.mxu1 %v8271_v0 }
 0x6c6   :  { %9147 = vmatmul.mubr.bf16.gmra.mrb[172].mxu1 %v8270_v63 }
 0x6c7   :  { %9154 = vmatprep.mubr.bf16.mxu1 %v8280_v38 }
 0x6ce   :  { %9155 = vmatmul.mubr.bf16.gmra.mrb[176].mxu1 %v12181_v30 }
 0x6cf   :  { %9162 = vmatprep.mubr.bf16.mxu1 %v8289_v39  ;;  %v8101_v39 = vld [vmem:[#allocation2 + $0x250] sm:$0xff] }
 0x6d6   :  { %9163 = vmatmul.mubr.bf16.gmra.mrb[180].mxu1 %v8288_v20  ;;  %v8111_v20 = vld [vmem:[#allocation2 + $0x2a0] sm:$0xff] }
 0x6d7   :  { %9170 = vmatprep.mubr.bf16.mxu1 %v8298_v4 }
 0x6de   :  { %9171 = vmatmul.mubr.bf16.gmra.mrb[184].mxu1 %v12182_v27  ;;  %v12142_v27 = vld [vmem:[%s19329_s5 + $0x160] sm:$0xff]  }
 0x6df   :  { %9178 = vmatprep.mubr.bf16.mxu1 %v8307_v59 }
 0x6e6   :  { %9179 = vmatmul.mubr.bf16.gmra.mrb[188].mxu1 %v8306_v56 }
 0x6e7   :  { %9219 = vmatprep.mubr.bf16.mxu1 %v8030_v15 }
 0x6ee   :  { %9220 = vmatmul.mubr.bf16.vlgmr.msra.gmra.mrb[64].mxu1 %v8029_v53  ;;  %v8110_v53 = vld [vmem:[#allocation2 + $0x298] sm:$0xff] }
 0x6ef   :  { %9227 = vmatprep.mubr.bf16.mxu1 %v19878_v11  ;;  %9477 = vmatpush1.bf16.msra.mxu1 %v12130_v19  ;;  %v8120_v19 = vld [vmem:[#allocation2 + $0x2e8] sm:$0xff] }
 0x6f0   :  { %9478 = vmatprep.subr.bf16.mxu1 %v18506_v32 }
 0x6f3   :  { %9479 = vmatpush1.bf16.msra.mxu1 %v12131_v2 }
 0x6f4   :  { %9480 = vmatprep.subr.bf16.mxu1 %v18506_v32 }
 0x6f5   :  { %v18556_v6 = vpop.f32.mrb[128].mxu0 }
 0x6f6   :  { %9228 = vmatmul.mubr.bf16.gmra.mrb[68].mxu1 %v8038_v17  ;;  %v18561_v33 = vpop.f32.mrb[129].mxu0 }
 0x6f7   :  { %9235 = vmatprep.mubr.bf16.mxu1 %v8048_v5  ;;  %9481 = vmatpush1.bf16.msra.mxu1 %v12132_v26  ;;  %v18564_v50 = vpop.f32.mrb[130].mxu0  ;;  %v8119_v5 = vld [vmem:[#allocation2 + $0x2e0] sm:$0xff] }
 0x6f8   :  { %9482 = vmatprep.subr.bf16.mxu1 %v18506_v32  ;;  %v18566_v14 = vpop.f32.mrb[131].mxu0 }
 0x6fb   :  { %9483 = vmatpush1.bf16.msra.mxu1 %v12133_v61  ;;  %v8129_v61 = vld [vmem:[#allocation2 + $0x330] sm:$0xff] }
 0x6fc   :  { %9484 = vmatprep.subr.bf16.mxu1 %v18506_v32 }
 0x6fd   :  { %v18572_v8 = vpop.f32.mrb[132].mxu0 }
 0x6fe   :  { %9236 = vmatmul.mubr.bf16.gmra.mrb[72].mxu1 %v12183_v36  ;;  %v18578_v25 = vpop.f32.mrb[133].mxu0  ;;  %v12143_v36 = vld [vmem:[%s19329_s5 + $0x168] sm:$0xff]  }
 0x6ff   :  { %9243 = vmatprep.mubr.bf16.mxu1 %v19879_v13  ;;  %9485 = vmatpush1.bf16.msra.mxu1 %v12134_v54  ;;  %v18581_v45 = vpop.f32.mrb[134].mxu0 }
 0x700   :  { %9486 = vmatprep.subr.bf16.mxu1 %v18506_v32  ;;  %v18583_v34 = vpop.f32.mrb[135].mxu0 }
 0x703   :  { %9487 = vmatpush1.bf16.msra.mxu1 %v12135_v16 }
 0x704   :  { %9488 = vmatprep.subr.bf16.mxu1 %v18506_v32 }
 0x705   :  { %v18589_v55 = vpop.f32.mrb[136].mxu0 }
 0x706   :  { %9244 = vmatmul.mubr.bf16.gmra.mrb[76].mxu1 %v12184_v46  ;;  %v18594_v22 = vpop.f32.mrb[137].mxu0  ;;  %v8128_v46 = vld [vmem:[#allocation2 + $0x328] sm:$0xff] }
 0x707   :  { %9251 = vmatprep.mubr.bf16.mxu1 %v8066_v12  ;;  %9489 = vmatpush1.bf16.msra.mxu1 %v12136_v48  ;;  %v18597_v57 = vpop.f32.mrb[138].mxu0  ;;  %v8138_v12 = vld [vmem:[#allocation2 + $0x378] sm:$0xff] }
 0x708   :  { %9490 = vmatprep.subr.bf16.mxu1 %v18506_v32  ;;  %v18599_v51 = vpop.f32.mrb[139].mxu0 }
 0x70b   :  { %9491 = vmatpush1.bf16.msra.mxu1 %v12137_v24 }
 0x70c   :  { %9492 = vmatprep.subr.bf16.mxu1 %v18506_v32 }
 0x70d   :  { %v18605_v35 = vpop.f32.mrb[140].mxu0 }
 0x70e   :  { %9252 = vmatmul.mubr.bf16.gmra.mrb[80].mxu1 %v12185_v9  ;;  %v18610_v28 = vpop.f32.mrb[141].mxu0 }
 0x70f   :  { %9259 = vmatprep.mubr.bf16.mxu1 %v12186_v62  ;;  %9493 = vmatpush1.bf16.msra.mxu1 %v12138_v10  ;;  %v18613_v43 = vpop.f32.mrb[142].mxu0 }
 0x710   :  { %9494 = vmatprep.subr.bf16.mxu1 %v18506_v32  ;;  %v18615_v47 = vpop.f32.mrb[143].mxu0 }
 0x713   :  { %9495 = vmatpush1.bf16.msra.mxu1 %v12139_v21  ;;  %v8137_v21 = vld [vmem:[#allocation2 + $0x370] sm:$0xff] }
 0x714   :  { %9496 = vmatprep.subr.bf16.mxu1 %v18506_v32 }
 0x715   :  { %v18621_v42 = vpop.f32.mrb[144].mxu0 }
 0x716   :  { %9260 = vmatmul.mubr.bf16.gmra.mrb[84].mxu1 %v8074_v1  ;;  %v18623_v18 = vpop.f32.mrb[145].mxu0 }
 0x717   :  { %9267 = vmatprep.mubr.bf16.mxu1 %v8084_v7  ;;  %9497 = vmatpush1.bf16.msra.mxu1 %v12140_v23  ;;  %v18626_v49 = vpop.f32.mrb[146].mxu0  ;;  %v8147_v23 = vld [vmem:[#allocation2 + $0x3c0] sm:$0xff]  ;;  %v12144_v7 = vld [vmem:[%s19329_s5 + $0x170] sm:$0xff]  }
 0x718   :  { %9498 = vmatprep.subr.bf16.mxu1 %v18506_v32  ;;  %v18628_v40 = vpop.f32.mrb[147].mxu0 }
 0x71b   :  { %9499 = vmatpush1.bf16.msra.mxu1 %v12141_v58 }
 0x71c   :  { %9500 = vmatprep.subr.bf16.mxu1 %v18506_v32 }
 0x71d   :  { %v18630_v37 = vpop.f32.mrb[148].mxu0 }
 0x71e   :  { %9268 = vmatmul.mubr.bf16.gmra.mrb[88].mxu1 %v8083_v41  ;;  %v18635_v60 = vpop.f32.mrb[149].mxu0 }
 0x71f   :  { %9275 = vmatprep.mubr.bf16.mxu1 %v12187_v29  ;;  %v18637_v31 = vpop.f32.mrb[150].mxu0  ;;  %9501 = vmatpush1.bf16.msra.mxu1 %v12142_v27 }
 0x720   :  { %v18639_v52 = vpop.f32.mrb[151].mxu0  ;;  %9502 = vmatprep.subr.bf16.mxu1 %v18506_v32 }
 0x723   :  { %9503 = vmatpush1.bf16.msra.mxu1 %v12143_v36  ;;  %v12145_v36 = vld [vmem:[%s19329_s5 + $0x178] sm:$0xff]  }
 0x724   :  { %9504 = vmatprep.subr.bf16.mxu1 %v18506_v32 }
 0x725   :  { %v18642_v0 = vpop.f32.mrb[152].mxu0 }
 0x726   :  { %9276 = vmatmul.mubr.bf16.gmra.mrb[92].mxu1 %v8092_v44  ;;  %v18644_v63 = vpop.f32.mrb[153].mxu0  ;;  %v8146_v44 = vld [vmem:[#allocation2 + $0x3b8] sm:$0xff] }
 0x727   :  { %9283 = vmatprep.mubr.bf16.mxu1 %v8102_v3  ;;  %v18646_v38 = vpop.f32.mrb[154].mxu0  ;;  %9505 = vmatpush1.bf16.msra.mxu1 %v12144_v7  ;;  %v8156_v3 = vld [vmem:[#allocation2 + $0x408] sm:$0xff]  ;;  %v8174_v7 = vld [vmem:[#allocation2 + $0x498] sm:$0xff] }
 0x728   :  { %v18648_v30 = vpop.f32.mrb[155].mxu0  ;;  %9506 = vmatprep.subr.bf16.mxu1 %v18506_v32 }
 0x72b   :  { %9507 = vmatpush1.bf16.msra.mxu1 %v12145_v36  ;;  %v8200_v36 = vld [vmem:[#allocation2 + $0x568] sm:$0xff] }
 0x72c   :  { %9765 = vmatprep.subr.bf16.mxu1 %v18506_v32 }
 0x72d   :  { %v18650_v4 = vpop.f32.mrb[156].mxu0 }
 0x72e   :  { %9284 = vmatmul.mubr.bf16.gmra.mrb[96].mxu1 %v8101_v39  ;;  %v18655_v59 = vpop.f32.mrb[157].mxu0 }
 0x72f   :  { %9291 = vmatprep.mubr.bf16.mxu1 %v8111_v20  ;;  %v18657_v56 = vpop.f32.mrb[158].mxu0 }
 0x730   :  { %v18659_v15 = vpop.f32.mrb[159].mxu0 }
 0x735   :  { %v18662_v11 = vpop.f32.mrb[160].mxu0 }
 0x736   :  { %9292 = vmatmul.mubr.bf16.gmra.mrb[100].mxu1 %v8110_v53  ;;  %v18664_v2 = vpop.f32.mrb[161].mxu0 }
 0x737   :  { %9299 = vmatprep.mubr.bf16.mxu1 %v8120_v19  ;;  %v18666_v26 = vpop.f32.mrb[162].mxu0  ;;  %v8155_v19 = vld [vmem:[#allocation2 + $0x400] sm:$0xff] }
 0x738   :  { %v18668_v17 = vpop.f32.mrb[163].mxu0 }
 0x73d   :  { %v18670_v54 = vpop.f32.mrb[164].mxu0 }
 0x73e   :  { %9300 = vmatmul.mubr.bf16.gmra.mrb[104].mxu1 %v8119_v5  ;;  %v18675_v13 = vpop.f32.mrb[165].mxu0  ;;  %v8165_v5 = vld [vmem:[#allocation2 + $0x450] sm:$0xff] }
 0x73f   :  { %9307 = vmatprep.mubr.bf16.mxu1 %v8129_v61  ;;  %v18677_v16 = vpop.f32.mrb[166].mxu0 }
 0x740   :  { %v18679_v48 = vpop.f32.mrb[167].mxu0 }
 0x745   :  { %v18682_v24 = vpop.f32.mrb[168].mxu0 }
 0x746   :  { %9308 = vmatmul.mubr.bf16.gmra.mrb[108].mxu1 %v8128_v46  ;;  %v18684_v10 = vpop.f32.mrb[169].mxu0 }
 0x747   :  { %9315 = vmatprep.mubr.bf16.mxu1 %v8138_v12  ;;  %v18686_v9 = vpop.f32.mrb[170].mxu0 }
 0x748   :  { %v18688_v62 = vpop.f32.mrb[171].mxu0 }
 0x74d   :  { %v18690_v1 = vpop.f32.mrb[172].mxu0 }
 0x74e   :  { %9316 = vmatmul.mubr.bf16.gmra.mrb[112].mxu1 %v8137_v21  ;;  %v18695_v41 = vpop.f32.mrb[173].mxu0 }
 0x74f   :  { %9323 = vmatprep.mubr.bf16.mxu1 %v8147_v23  ;;  %v18697_v29 = vpop.f32.mrb[174].mxu0  ;;  %v8164_v23 = vld [vmem:[#allocation2 + $0x448] sm:$0xff] }
 0x750   :  { %v18699_v58 = vpop.f32.mrb[175].mxu0 }
 0x755   :  { %v18702_v39 = vpop.f32.mrb[176].mxu0 }
 0x756   :  { %9324 = vmatmul.mubr.bf16.gmra.mrb[116].mxu1 %v8146_v44  ;;  %19880 = vst [vmem:[#allocation23_spill] sm:$0xff] %v18702_v39  ;;  %v18704_v20 = vpop.f32.mrb[177].mxu0  ;;  %v8173_v44 = vld [vmem:[#allocation2 + $0x490] sm:$0xff] }
 0x757   :  { %9331 = vmatprep.mubr.bf16.mxu1 %v8156_v3  ;;  %v18706_v27 = vpop.f32.mrb[178].mxu0  ;;  %v8183_v3 = vld [vmem:[#allocation2 + $0x4e0] sm:$0xff] }
 0x758   :  { %19881 = vst [vmem:[#allocation24_spill] sm:$0xff] %v18706_v27  ;;  %v18708_v53 = vpop.f32.mrb[179].mxu0 }
 0x75d   :  { %v18710_v61 = vpop.f32.mrb[180].mxu0 }
 0x75e   :  { %9332 = vmatmul.mubr.bf16.gmra.mrb[120].mxu1 %v8155_v19  ;;  %19882 = vst [vmem:[#allocation11_spill] sm:$0xff] %v18710_v61  ;;  %v18715_v46 = vpop.f32.mrb[181].mxu0  ;;  %v8182_v19 = vld [vmem:[#allocation2 + $0x4d8] sm:$0xff]  ;;  %v8191_v61 = vld [vmem:[#allocation2 + $0x520] sm:$0xff] }
 0x75f   :  { %9339 = vmatprep.mubr.bf16.mxu1 %v8165_v5  ;;  %19883 = vst [vmem:[#allocation28_spill] sm:$0xff] %v18715_v46  ;;  %v18717_v12 = vpop.f32.mrb[182].mxu0  ;;  %v8192_v5 = vld [vmem:[#allocation2 + $0x528] sm:$0xff]  ;;  %v8209_v46 = vld [vmem:[#allocation2 + $0x5b0] sm:$0xff] }
 0x760   :  { %19884 = vst [vmem:[#allocation29_spill] sm:$0xff] %v18717_v12  ;;  %v18719_v21 = vpop.f32.mrb[183].mxu0  ;;  %v8201_v12 = vld [vmem:[#allocation2 + $0x570] sm:$0xff] }
 0x761   :  { %19885 = vst [vmem:[#allocation30_spill] sm:$0xff] %v18719_v21  ;;  %v8210_v21 = vld [vmem:[#allocation2 + $0x5b8] sm:$0xff] }
 0x766   :  { %9340 = vmatmul.mubr.bf16.gmra.mrb[124].mxu1 %v8164_v23  ;;  %v8219_v23 = vld [vmem:[#allocation2 + $0x600] sm:$0xff] }
 0x767   :  { %9347 = vmatprep.mubr.bf16.mxu1 %v8174_v7  ;;  %v8218_v7 = vld [vmem:[#allocation2 + $0x5f8] sm:$0xff] }
 0x76e   :  { %9348 = vmatmul.mubr.bf16.gmra.mrb[128].mxu1 %v8173_v44  ;;  %v8228_v44 = vld [vmem:[#allocation2 + $0x648] sm:$0xff] }
 0x76f   :  { %9355 = vmatprep.mubr.bf16.mxu1 %v8183_v3  ;;  %v8227_v3 = vld [vmem:[#allocation2 + $0x640] sm:$0xff] }
 0x776   :  { %9356 = vmatmul.mubr.bf16.gmra.mrb[132].mxu1 %v8182_v19  ;;  %v8237_v19 = vld [vmem:[#allocation2 + $0x690] sm:$0xff] }
 0x777   :  { %9363 = vmatprep.mubr.bf16.mxu1 %v8192_v5  ;;  %v8236_v5 = vld [vmem:[#allocation2 + $0x688] sm:$0xff] }
 0x77e   :  { %9364 = vmatmul.mubr.bf16.gmra.mrb[136].mxu1 %v8191_v61  ;;  %v8246_v61 = vld [vmem:[#allocation2 + $0x6d8] sm:$0xff] }
 0x77f   :  { %9371 = vmatprep.mubr.bf16.mxu1 %v8201_v12  ;;  %v8245_v12 = vld [vmem:[#allocation2 + $0x6d0] sm:$0xff] }
 0x786   :  { %9372 = vmatmul.mubr.bf16.gmra.mrb[140].mxu1 %v8200_v36  ;;  %v8255_v36 = vld [vmem:[#allocation2 + $0x720] sm:$0xff] }
 0x787   :  { %9379 = vmatprep.mubr.bf16.mxu1 %v8210_v21  ;;  %v8254_v21 = vld [vmem:[#allocation2 + $0x718] sm:$0xff] }
 0x78e   :  { %9380 = vmatmul.mubr.bf16.gmra.mrb[144].mxu1 %v8209_v46  ;;  %v8264_v46 = vld [vmem:[#allocation2 + $0x768] sm:$0xff] }
 0x78f   :  { %9387 = vmatprep.mubr.bf16.mxu1 %v8219_v23  ;;  %v8263_v23 = vld [vmem:[#allocation2 + $0x760] sm:$0xff] }
 0x796   :  { %9388 = vmatmul.mubr.bf16.gmra.mrb[148].mxu1 %v8218_v7  ;;  %v8273_v7 = vld [vmem:[#allocation2 + $0x7b0] sm:$0xff] }
 0x797   :  { %9395 = vmatprep.mubr.bf16.mxu1 %v8228_v44  ;;  %v8272_v44 = vld [vmem:[#allocation2 + $0x7a8] sm:$0xff] }
 0x79e   :  { %9396 = vmatmul.mubr.bf16.gmra.mrb[152].mxu1 %v8227_v3  ;;  %v8282_v3 = vld [vmem:[#allocation2 + $0x7f8] sm:$0xff] }
 0x79f   :  { %9403 = vmatprep.mubr.bf16.mxu1 %v8237_v19  ;;  %v8281_v19 = vld [vmem:[#allocation2 + $0x7f0] sm:$0xff] }
 0x7a6   :  { %9404 = vmatmul.mubr.bf16.gmra.mrb[156].mxu1 %v8236_v5  ;;  %v8291_v5 = vld [vmem:[#allocation2 + $0x840] sm:$0xff] }
 0x7a7   :  { %9411 = vmatprep.mubr.bf16.mxu1 %v8246_v61  ;;  %v8290_v61 = vld [vmem:[#allocation2 + $0x838] sm:$0xff] }
 0x7ae   :  { %9412 = vmatmul.mubr.bf16.gmra.mrb[160].mxu1 %v8245_v12  ;;  %v8300_v12 = vld [vmem:[#allocation2 + $0x888] sm:$0xff] }
 0x7af   :  { %9419 = vmatprep.mubr.bf16.mxu1 %v8255_v36  ;;  %v8299_v36 = vld [vmem:[#allocation2 + $0x880] sm:$0xff] }
 0x7b6   :  { %9420 = vmatmul.mubr.bf16.gmra.mrb[164].mxu1 %v8254_v21  ;;  %v8309_v21 = vld [vmem:[#allocation2 + $0x8d0] sm:$0xff] }
 0x7b7   :  { %9427 = vmatprep.mubr.bf16.mxu1 %v8264_v46  ;;  %v8308_v46 = vld [vmem:[#allocation2 + $0x8c8] sm:$0xff] }
 0x7be   :  { %9428 = vmatmul.mubr.bf16.gmra.mrb[168].mxu1 %v8263_v23  ;;  %v8032_v23 = vld [vmem:[#allocation2 + $0x28] sm:$0xff] }
 0x7bf   :  { %9435 = vmatprep.mubr.bf16.mxu1 %v8273_v7  ;;  %v12146_v7 = vld [vmem:[%s19329_s5 + $0x180] sm:$0xff]  }
 0x7c6   :  { %9436 = vmatmul.mubr.bf16.gmra.mrb[172].mxu1 %v8272_v44  ;;  %v8031_v44 = vld [vmem:[#allocation2 + $0x20] sm:$0xff] }
 0x7c7   :  { %9443 = vmatprep.mubr.bf16.mxu1 %v8282_v3  ;;  %v8041_v3 = vld [vmem:[#allocation2 + $0x70] sm:$0xff] }
 0x7ce   :  { %9444 = vmatmul.mubr.bf16.gmra.mrb[176].mxu1 %v8281_v19  ;;  %v12147_v19 = vld [vmem:[%s19329_s5 + $0x188] sm:$0xff]  }
 0x7cf   :  { %9451 = vmatprep.mubr.bf16.mxu1 %v8291_v5  ;;  %v12148_v5 = vld [vmem:[%s19329_s5 + $0x190] sm:$0xff]  }
 0x7d6   :  { %9452 = vmatmul.mubr.bf16.gmra.mrb[180].mxu1 %v8290_v61  ;;  %v8040_v61 = vld [vmem:[#allocation2 + $0x68] sm:$0xff] }
 0x7d7   :  { %9459 = vmatprep.mubr.bf16.mxu1 %v8300_v12  ;;  %v8050_v12 = vld [vmem:[#allocation2 + $0xb8] sm:$0xff] }
 0x7de   :  { %9460 = vmatmul.mubr.bf16.gmra.mrb[184].mxu1 %v8299_v36  ;;  %v12149_v36 = vld [vmem:[%s19329_s5 + $0x198] sm:$0xff]  }
 0x7df   :  { %9467 = vmatprep.mubr.bf16.mxu1 %v8309_v21  ;;  %v12150_v21 = vld [vmem:[%s19329_s5 + $0x1a0] sm:$0xff]  }
 0x7e6   :  { %9468 = vmatmul.mubr.bf16.gmra.mrb[188].mxu1 %v8308_v46  ;;  %v8049_v46 = vld [vmem:[#allocation2 + $0xb0] sm:$0xff] }
 0x7e7   :  { %9508 = vmatprep.mubr.bf16.mxu1 %v8032_v23  ;;  %v8059_v23 = vld [vmem:[#allocation2 + $0x100] sm:$0xff] }
 0x7ee   :  { %9509 = vmatmul.mubr.bf16.vlgmr.msra.gmra.mrb[64].mxu1 %v8031_v44  ;;  %v12152_v44 = vld [vmem:[%s19329_s5 + $0x1b0] sm:$0xff]  }
 0x7ef   :  { %9516 = vmatprep.mubr.bf16.mxu1 %v8041_v3  ;;  %9766 = vmatpush1.bf16.msra.mxu1 %v12146_v7  ;;  %v12151_v7 = vld [vmem:[%s19329_s5 + $0x1a8] sm:$0xff]   ;;  %v8058_v3 = vld [vmem:[#allocation2 + $0xf8] sm:$0xff] }
 0x7f0   :  { %9767 = vmatprep.subr.bf16.mxu1 %v18506_v32 }
 0x7f3   :  { %9768 = vmatpush1.bf16.msra.mxu1 %v12147_v19  ;;  %v8068_v19 = vld [vmem:[#allocation2 + $0x148] sm:$0xff] }
 0x7f4   :  { %9769 = vmatprep.subr.bf16.mxu1 %v18506_v32 }
 0x7f6   :  { %9517 = vmatmul.mubr.bf16.gmra.mrb[68].mxu1 %v8040_v61  ;;  %v12154_v61 = vld [vmem:[%s19329_s5 + $0x1c0] sm:$0xff]  }
 0x7f7   :  { %9524 = vmatprep.mubr.bf16.mxu1 %v8050_v12  ;;  %9770 = vmatpush1.bf16.msra.mxu1 %v12148_v5  ;;  %v12153_v5 = vld [vmem:[%s19329_s5 + $0x1b8] sm:$0xff]   ;;  %v8067_v12 = vld [vmem:[#allocation2 + $0x140] sm:$0xff] }
 0x7f8   :  { %9771 = vmatprep.subr.bf16.mxu1 %v18506_v32 }
 0x7fb   :  { %9772 = vmatpush1.bf16.msra.mxu1 %v12149_v36  ;;  %v8077_v36 = vld [vmem:[#allocation2 + $0x190] sm:$0xff] }
 0x7fc   :  { %9773 = vmatprep.subr.bf16.mxu1 %v18506_v32 }
 0x7fe   :  { %9525 = vmatmul.mubr.bf16.gmra.mrb[72].mxu1 %v8049_v46  ;;  %v12156_v46 = vld [vmem:[%s19329_s5 + $0x1d0] sm:$0xff]  }
 0x7ff   :  { %9532 = vmatprep.mubr.bf16.mxu1 %v8059_v23  ;;  %9774 = vmatpush1.bf16.msra.mxu1 %v12150_v21  ;;  %v12155_v21 = vld [vmem:[%s19329_s5 + $0x1c8] sm:$0xff]  }
 0x800   :  { %9775 = vmatprep.subr.bf16.mxu1 %v18506_v32  ;;  %v8076_v23 = vld [vmem:[#allocation2 + $0x188] sm:$0xff] }
 0x803   :  { %9776 = vmatpush1.bf16.msra.mxu1 %v12151_v7  ;;  %v8086_v7 = vld [vmem:[#allocation2 + $0x1d8] sm:$0xff] }
 0x804   :  { %9777 = vmatprep.subr.bf16.mxu1 %v18506_v32 }
 0x806   :  { %9533 = vmatmul.mubr.bf16.gmra.mrb[76].mxu1 %v8058_v3  ;;  %v8095_v3 = vld [vmem:[#allocation2 + $0x220] sm:$0xff] }
 0x807   :  { %9540 = vmatprep.mubr.bf16.mxu1 %v8068_v19  ;;  %9778 = vmatpush1.bf16.msra.mxu1 %v12152_v44  ;;  %v8085_v44 = vld [vmem:[#allocation2 + $0x1d0] sm:$0xff]  ;;  %v12157_v19 = vld [vmem:[%s19329_s5 + $0x1d8] sm:$0xff]  }
 0x808   :  { %9779 = vmatprep.subr.bf16.mxu1 %v18506_v32 }
 0x80b   :  { %9780 = vmatpush1.bf16.msra.mxu1 %v12153_v5  ;;  %v8094_v5 = vld [vmem:[#allocation2 + $0x218] sm:$0xff] }
 0x80c   :  { %9781 = vmatprep.subr.bf16.mxu1 %v18506_v32 }
 0x80e   :  { %9541 = vmatmul.mubr.bf16.gmra.mrb[80].mxu1 %v8067_v12  ;;  %v8103_v12 = vld [vmem:[#allocation2 + $0x260] sm:$0xff] }
 0x80f   :  { %9548 = vmatprep.mubr.bf16.mxu1 %v8077_v36  ;;  %9782 = vmatpush1.bf16.msra.mxu1 %v12154_v61  ;;  %v8104_v61 = vld [vmem:[#allocation2 + $0x268] sm:$0xff]  ;;  %v8113_v36 = vld [vmem:[#allocation2 + $0x2b0] sm:$0xff] }
 0x810   :  { %9783 = vmatprep.subr.bf16.mxu1 %v18506_v32 }
 0x813   :  { %9784 = vmatpush1.bf16.msra.mxu1 %v12155_v21  ;;  %v12158_v21 = vld [vmem:[%s19329_s5 + $0x1e0] sm:$0xff]  }
 0x814   :  { %9785 = vmatprep.subr.bf16.mxu1 %v18506_v32 }
 0x816   :  { %9549 = vmatmul.mubr.bf16.gmra.mrb[84].mxu1 %v8076_v23  ;;  %v8122_v23 = vld [vmem:[#allocation2 + $0x2f8] sm:$0xff] }
 0x817   :  { %9556 = vmatprep.mubr.bf16.mxu1 %v8086_v7  ;;  %9786 = vmatpush1.bf16.msra.mxu1 %v12156_v46  ;;  %v8112_v46 = vld [vmem:[#allocation2 + $0x2a8] sm:$0xff]  ;;  %v8121_v7 = vld [vmem:[#allocation2 + $0x2f0] sm:$0xff] }
 0x818   :  { %9787 = vmatprep.subr.bf16.mxu1 %v18506_v32 }
 0x81b   :  { %9788 = vmatpush1.bf16.msra.mxu1 %v12157_v19  ;;  %v8130_v19 = vld [vmem:[#allocation2 + $0x338] sm:$0xff] }
 0x81c   :  { %9789 = vmatprep.subr.bf16.mxu1 %v18506_v32 }
 0x81e   :  { %9557 = vmatmul.mubr.bf16.gmra.mrb[88].mxu1 %v8085_v44  ;;  %v8131_v44 = vld [vmem:[#allocation2 + $0x340] sm:$0xff] }
 0x81f   :  { %9564 = vmatprep.mubr.bf16.mxu1 %v8095_v3  ;;  %9790 = vmatpush1.bf16.msra.mxu1 %v12158_v21  ;;  %v12159_v3 = vld [vmem:[%s19329_s5 + $0x1e8] sm:$0xff]  }
 0x820   :  { %9791 = vmatprep.subr.bf16.mxu1 %v18506_v32  ;;  %v8148_v21 = vld [vmem:[#allocation2 + $0x3c8] sm:$0xff] }
 0x823   :  { %9792 = vmatpush1.bf16.msra.mxu1 %v12159_v3  ;;  %v18788_v3 = vld [vmem:[%s19329_s5 + $0x200] sm:$0xff]  }
 0x824   :  { %9793 = vmatprep.subr.bf16.mxu1 %v18506_v32 }
 0x826   :  { %9565 = vmatmul.mubr.bf16.gmra.mrb[92].mxu1 %v8094_v5  ;;  %v8140_v5 = vld [vmem:[#allocation2 + $0x388] sm:$0xff] }
 0x827   :  { %9572 = vmatprep.mubr.bf16.mxu1 %v8104_v61  ;;  %v8139_v61 = vld [vmem:[#allocation2 + $0x380] sm:$0xff] }
 0x82e   :  { %9573 = vmatmul.mubr.bf16.gmra.mrb[96].mxu1 %v8103_v12  ;;  %v8149_v12 = vld [vmem:[#allocation2 + $0x3d0] sm:$0xff] }
 0x82f   :  { %9580 = vmatprep.mubr.bf16.mxu1 %v8113_v36  ;;  %v12160_v36 = vld [vmem:[%s19329_s5 + $0x1f0] sm:$0xff]  }
 0x830   :  { %9794 = vmatpush1.bf16.msra.mxu1 %v12160_v36  ;;  %v8194_v36 = vld [vmem:[#allocation2 + $0x538] sm:$0xff] }
 0x831   :  { %9795 = vmatprep.subr.bf16.mxu1 %v18506_v32  ;;  %v8166_v32 = vld [vmem:[#allocation2 + $0x458] sm:$0xff] }
 0x836   :  { %9581 = vmatmul.mubr.bf16.gmra.mrb[100].mxu1 %v8112_v46  ;;  %v8158_v46 = vld [vmem:[#allocation2 + $0x418] sm:$0xff] }
 0x837   :  { %9588 = vmatprep.mubr.bf16.mxu1 %v8122_v23  ;;  %v8157_v23 = vld [vmem:[#allocation2 + $0x410] sm:$0xff] }
 0x83e   :  { %9589 = vmatmul.mubr.bf16.gmra.mrb[104].mxu1 %v8121_v7  ;;  %v8167_v7 = vld [vmem:[#allocation2 + $0x460] sm:$0xff] }
 0x83f   :  { %9596 = vmatprep.mubr.bf16.mxu1 %v8131_v44  ;;  %v12161_v44 = vld [vmem:[%s19329_s5 + $0x1f8] sm:$0xff]  }
 0x840   :  { %9796 = vmatpush1.bf16.msra.mxu1 %v12161_v44  ;;  %v8211_v44 = vld [vmem:[#allocation2 + $0x5c0] sm:$0xff] }
 0x841   :  { %11105 = vmatprep.subr.bf16.mxu1 %v18788_v3 }
 0x846   :  { %9597 = vmatmul.mubr.bf16.gmra.mrb[108].mxu1 %v8130_v19  ;;  %v8176_v19 = vld [vmem:[#allocation2 + $0x4a8] sm:$0xff] }
 0x847   :  { %9604 = vmatprep.mubr.bf16.mxu1 %v8140_v5  ;;  %v8175_v5 = vld [vmem:[#allocation2 + $0x4a0] sm:$0xff] }
 0x84e   :  { %9605 = vmatmul.mubr.bf16.gmra.mrb[112].mxu1 %v8139_v61  ;;  %v8185_v61 = vld [vmem:[#allocation2 + $0x4f0] sm:$0xff] }
 0x84f   :  { %9612 = vmatprep.mubr.bf16.mxu1 %v8149_v12  ;;  %v8184_v12 = vld [vmem:[#allocation2 + $0x4e8] sm:$0xff] }
 0x856   :  { %9613 = vmatmul.mubr.bf16.gmra.mrb[116].mxu1 %v8148_v21  ;;  %v8193_v21 = vld [vmem:[#allocation2 + $0x530] sm:$0xff] }
 0x857   :  { %9620 = vmatprep.mubr.bf16.mxu1 %v8158_v46  ;;  %v8203_v46 = vld [vmem:[#allocation2 + $0x580] sm:$0xff] }
 0x85e   :  { %9621 = vmatmul.mubr.bf16.gmra.mrb[120].mxu1 %v8157_v23  ;;  %v8202_v23 = vld [vmem:[#allocation2 + $0x578] sm:$0xff] }
 0x85f   :  { %9628 = vmatprep.mubr.bf16.mxu1 %v8167_v7  ;;  %v8212_v7 = vld [vmem:[#allocation2 + $0x5c8] sm:$0xff] }
 0x866   :  { %9629 = vmatmul.mubr.bf16.gmra.mrb[124].mxu1 %v8166_v32  ;;  %v8221_v32 = vld [vmem:[#allocation2 + $0x610] sm:$0xff] }
 0x867   :  { %9636 = vmatprep.mubr.bf16.mxu1 %v8176_v19  ;;  %v8220_v19 = vld [vmem:[#allocation2 + $0x608] sm:$0xff] }
 0x86e   :  { %9637 = vmatmul.mubr.bf16.gmra.mrb[128].mxu1 %v8175_v5  ;;  %v8230_v5 = vld [vmem:[#allocation2 + $0x658] sm:$0xff] }
 0x86f   :  { %9644 = vmatprep.mubr.bf16.mxu1 %v8185_v61  ;;  %v8229_v61 = vld [vmem:[#allocation2 + $0x650] sm:$0xff] }
 0x876   :  { %9645 = vmatmul.mubr.bf16.gmra.mrb[132].mxu1 %v8184_v12  ;;  %v8239_v12 = vld [vmem:[#allocation2 + $0x6a0] sm:$0xff] }
 0x877   :  { %9652 = vmatprep.mubr.bf16.mxu1 %v8194_v36  ;;  %v8238_v36 = vld [vmem:[#allocation2 + $0x698] sm:$0xff] }
 0x87e   :  { %9653 = vmatmul.mubr.bf16.gmra.mrb[136].mxu1 %v8193_v21  ;;  %v8248_v21 = vld [vmem:[#allocation2 + $0x6e8] sm:$0xff] }
 0x87f   :  { %9660 = vmatprep.mubr.bf16.mxu1 %v8203_v46  ;;  %v8247_v46 = vld [vmem:[#allocation2 + $0x6e0] sm:$0xff] }
 0x886   :  { %9661 = vmatmul.mubr.bf16.gmra.mrb[140].mxu1 %v8202_v23  ;;  %v8257_v23 = vld [vmem:[#allocation2 + $0x730] sm:$0xff] }
 0x887   :  { %9668 = vmatprep.mubr.bf16.mxu1 %v8212_v7  ;;  %v8256_v7 = vld [vmem:[#allocation2 + $0x728] sm:$0xff] }
 0x88e   :  { %9669 = vmatmul.mubr.bf16.gmra.mrb[144].mxu1 %v8211_v44  ;;  %v8266_v44 = vld [vmem:[#allocation2 + $0x778] sm:$0xff] }
 0x88f   :  { %9676 = vmatprep.mubr.bf16.mxu1 %v8221_v32  ;;  %v8265_v32 = vld [vmem:[#allocation2 + $0x770] sm:$0xff] }
 0x896   :  { %9677 = vmatmul.mubr.bf16.gmra.mrb[148].mxu1 %v8220_v19  ;;  %v8275_v19 = vld [vmem:[#allocation2 + $0x7c0] sm:$0xff] }
 0x897   :  { %9684 = vmatprep.mubr.bf16.mxu1 %v8230_v5  ;;  %v8274_v5 = vld [vmem:[#allocation2 + $0x7b8] sm:$0xff] }
 0x89e   :  { %9685 = vmatmul.mubr.bf16.gmra.mrb[152].mxu1 %v8229_v61  ;;  %v8284_v61 = vld [vmem:[#allocation2 + $0x808] sm:$0xff] }
 0x89f   :  { %9692 = vmatprep.mubr.bf16.mxu1 %v8239_v12  ;;  %v8283_v12 = vld [vmem:[#allocation2 + $0x800] sm:$0xff] }
 0x8a6   :  { %9693 = vmatmul.mubr.bf16.gmra.mrb[156].mxu1 %v8238_v36  ;;  %v8293_v36 = vld [vmem:[#allocation2 + $0x850] sm:$0xff] }
 0x8a7   :  { %9700 = vmatprep.mubr.bf16.mxu1 %v8248_v21  ;;  %v8292_v21 = vld [vmem:[#allocation2 + $0x848] sm:$0xff] }
 0x8ae   :  { %9701 = vmatmul.mubr.bf16.gmra.mrb[160].mxu1 %v8247_v46  ;;  %v8302_v46 = vld [vmem:[#allocation2 + $0x898] sm:$0xff] }
 0x8af   :  { %9708 = vmatprep.mubr.bf16.mxu1 %v8257_v23  ;;  %v8301_v23 = vld [vmem:[#allocation2 + $0x890] sm:$0xff] }
 0x8b6   :  { %9709 = vmatmul.mubr.bf16.gmra.mrb[164].mxu1 %v8256_v7  ;;  %v8311_v7 = vld [vmem:[#allocation2 + $0x8e0] sm:$0xff] }
 0x8b7   :  { %9716 = vmatprep.mubr.bf16.mxu1 %v8266_v44  ;;  %v8310_v44 = vld [vmem:[#allocation2 + $0x8d8] sm:$0xff] }
 0x8be   :  { %9717 = vmatmul.mubr.bf16.gmra.mrb[168].mxu1 %v8265_v32  ;;  %v8034_v32 = vld [vmem:[#allocation2 + $0x38] sm:$0xff] }
 0x8bf   :  { %9724 = vmatprep.mubr.bf16.mxu1 %v8275_v19  ;;  %v8033_v19 = vld [vmem:[#allocation2 + $0x30] sm:$0xff] }
 0x8c6   :  { %9725 = vmatmul.mubr.bf16.gmra.mrb[172].mxu1 %v8274_v5  ;;  %v8043_v5 = vld [vmem:[#allocation2 + $0x80] sm:$0xff] }
 0x8c7   :  { %9732 = vmatprep.mubr.bf16.mxu1 %v8284_v61  ;;  %v12189_v61 = vld [vmem:[%s19329_s5 + $0x208] sm:$0xff]  }
 0x8ce   :  { %9733 = vmatmul.mubr.bf16.gmra.mrb[176].mxu1 %v8283_v12  ;;  %v12190_v12 = vld [vmem:[%s19329_s5 + $0x210] sm:$0xff]  }
 0x8cf   :  { %9740 = vmatprep.mubr.bf16.mxu1 %v8293_v36  ;;  %v8042_v36 = vld [vmem:[#allocation2 + $0x78] sm:$0xff] }
 0x8d6   :  { %9741 = vmatmul.mubr.bf16.gmra.mrb[180].mxu1 %v8292_v21  ;;  %v8052_v21 = vld [vmem:[#allocation2 + $0xc8] sm:$0xff] }
 0x8d7   :  { %9748 = vmatprep.mubr.bf16.mxu1 %v8302_v46  ;;  %v12192_v46 = vld [vmem:[%s19329_s5 + $0x220] sm:$0xff]  }
 0x8de   :  { %9749 = vmatmul.mubr.bf16.gmra.mrb[184].mxu1 %v8301_v23  ;;  %v8051_v23 = vld [vmem:[#allocation2 + $0xc0] sm:$0xff] }
 0x8df   :  { %9756 = vmatprep.mubr.bf16.mxu1 %v8311_v7  ;;  %v8061_v7 = vld [vmem:[#allocation2 + $0x110] sm:$0xff] }
 0x8e6   :  { %9757 = vmatmul.mubr.bf16.gmra.mrb[188].mxu1 %v8310_v44  ;;  %v12193_v44 = vld [vmem:[%s19329_s5 + $0x228] sm:$0xff]  }
 0x8e7   :  { %9797 = vmatprep.mubr.bf16.mxu1 %v8034_v32  ;;  %v12194_v32 = vld [vmem:[%s19329_s5 + $0x230] sm:$0xff]  }
 0x8ee   :  { %9798 = vmatmul.mubr.bf16.vlgmr.msra.gmra.mrb[64].mxu1 %v8033_v19  ;;  %v8060_v19 = vld [vmem:[#allocation2 + $0x108] sm:$0xff] }
 0x8ef   :  { %9805 = vmatprep.mubr.bf16.mxu1 %v8043_v5  ;;  %11113 = vmatpush3.bf16.msra.mxu1 %v18788_v3  ;;  %v12191_v3 = vld [vmem:[%s19329_s5 + $0x218] sm:$0xff]  }
 0x8f0   :  { %11106 = vmatprep.subr.bf16.mxu1 %v12189_v61  ;;  %v8070_v5 = vld [vmem:[#allocation2 + $0x158] sm:$0xff] }
 0x8f3   :  { %11114 = vmatpush3.bf16.msra.mxu1 %v12189_v61  ;;  %v12195_v61 = vld [vmem:[%s19329_s5 + $0x238] sm:$0xff]  }
 0x8f4   :  { %11107 = vmatprep.subr.bf16.mxu1 %v12190_v12 }
 0x8f6   :  { %9806 = vmatmul.mubr.bf16.gmra.mrb[68].mxu1 %v8042_v36  ;;  %v8079_v36 = vld [vmem:[#allocation2 + $0x1a0] sm:$0xff] }
 0x8f7   :  { %9813 = vmatprep.mubr.bf16.mxu1 %v8052_v21  ;;  %11115 = vmatpush3.bf16.msra.mxu1 %v12190_v12  ;;  %v8069_v12 = vld [vmem:[#allocation2 + $0x150] sm:$0xff]  ;;  %v8078_v21 = vld [vmem:[#allocation2 + $0x198] sm:$0xff] }
 0x8f8   :  { %11108 = vmatprep.subr.bf16.mxu1 %v12191_v3 }
 0x8fb   :  { %11116 = vmatpush3.bf16.msra.mxu1 %v12191_v3  ;;  %v8088_v3 = vld [vmem:[#allocation2 + $0x1e8] sm:$0xff] }
 0x8fc   :  { %11109 = vmatprep.subr.bf16.mxu1 %v12192_v46 }
 0x8fe   :  { %9814 = vmatmul.mubr.bf16.gmra.mrb[72].mxu1 %v8051_v23  ;;  %v8097_v23 = vld [vmem:[#allocation2 + $0x230] sm:$0xff] }
 0x8ff   :  { %9821 = vmatprep.mubr.bf16.mxu1 %v8061_v7  ;;  %11117 = vmatpush3.bf16.msra.mxu1 %v12192_v46  ;;  %v8087_v46 = vld [vmem:[#allocation2 + $0x1e0] sm:$0xff]  ;;  %v8096_v7 = vld [vmem:[#allocation2 + $0x228] sm:$0xff] }
 0x900   :  { %11110 = vmatprep.subr.bf16.mxu1 %v12193_v44 }
 0x903   :  { %11118 = vmatpush3.bf16.msra.mxu1 %v12193_v44  ;;  %v8106_v44 = vld [vmem:[#allocation2 + $0x278] sm:$0xff] }
 0x904   :  { %11111 = vmatprep.subr.bf16.mxu1 %v12194_v32 }
 0x906   :  { %9822 = vmatmul.mubr.bf16.gmra.mrb[76].mxu1 %v8060_v19  ;;  %v8115_v19 = vld [vmem:[#allocation2 + $0x2c0] sm:$0xff] }
 0x907   :  { %9829 = vmatprep.mubr.bf16.mxu1 %v8070_v5  ;;  %11119 = vmatpush3.bf16.msra.mxu1 %v12194_v32  ;;  %v8105_v32 = vld [vmem:[#allocation2 + $0x270] sm:$0xff]  ;;  %v8114_v5 = vld [vmem:[#allocation2 + $0x2b8] sm:$0xff] }
 0x908   :  { %11112 = vmatprep.subr.bf16.mxu1 %v12195_v61 }
 0x90b   :  { %11120 = vmatpush3.bf16.msra.mxu1 %v12195_v61  ;;  %v8124_v61 = vld [vmem:[#allocation2 + $0x308] sm:$0xff] }
 0x90e   :  { %9830 = vmatmul.mubr.bf16.gmra.mrb[80].mxu1 %v8069_v12  ;;  %v8123_v12 = vld [vmem:[#allocation2 + $0x300] sm:$0xff] }
 0x90f   :  { %9837 = vmatprep.mubr.bf16.mxu1 %v8079_v36  ;;  %v8133_v36 = vld [vmem:[#allocation2 + $0x350] sm:$0xff] }
 0x916   :  { %9838 = vmatmul.mubr.bf16.gmra.mrb[84].mxu1 %v8078_v21  ;;  %v8132_v21 = vld [vmem:[#allocation2 + $0x348] sm:$0xff] }
 0x917   :  { %9845 = vmatprep.mubr.bf16.mxu1 %v8088_v3  ;;  %v8142_v3 = vld [vmem:[#allocation2 + $0x398] sm:$0xff] }
 0x91e   :  { %9846 = vmatmul.mubr.bf16.gmra.mrb[88].mxu1 %v8087_v46  ;;  %v8141_v46 = vld [vmem:[#allocation2 + $0x390] sm:$0xff] }
 0x91f   :  { %9853 = vmatprep.mubr.bf16.mxu1 %v8097_v23  ;;  %v8151_v23 = vld [vmem:[#allocation2 + $0x3e0] sm:$0xff] }
 0x926   :  { %9854 = vmatmul.mubr.bf16.gmra.mrb[92].mxu1 %v8096_v7  ;;  %v8150_v7 = vld [vmem:[#allocation2 + $0x3d8] sm:$0xff] }
 0x927   :  { %9861 = vmatprep.mubr.bf16.mxu1 %v8106_v44  ;;  %v8160_v44 = vld [vmem:[#allocation2 + $0x428] sm:$0xff] }
 0x92e   :  { %9862 = vmatmul.mubr.bf16.gmra.mrb[96].mxu1 %v8105_v32  ;;  %v8159_v32 = vld [vmem:[#allocation2 + $0x420] sm:$0xff] }
 0x92f   :  { %9869 = vmatprep.mubr.bf16.mxu1 %v8115_v19  ;;  %v18813_v19 = vld [vmem:[#allocation2 + $0x8] sm:$0xff] }
 0x936   :  { %9870 = vmatmul.mubr.bf16.gmra.mrb[100].mxu1 %v8114_v5  ;;  %v8168_v5 = vld [vmem:[#allocation2 + $0x468] sm:$0xff] }
 0x937   :  { %9877 = vmatprep.mubr.bf16.mxu1 %v8124_v61  ;;  %v8178_v61 = vld [vmem:[#allocation2 + $0x4b8] sm:$0xff] }
 0x93e   :  { %9878 = vmatmul.mubr.bf16.gmra.mrb[104].mxu1 %v8123_v12  ;;  %v8177_v12 = vld [vmem:[#allocation2 + $0x4b0] sm:$0xff] }
 0x93f   :  { %9885 = vmatprep.mubr.bf16.mxu1 %v8133_v36  ;;  %v8187_v36 = vld [vmem:[#allocation2 + $0x500] sm:$0xff] }
 0x946   :  { %9886 = vmatmul.mubr.bf16.gmra.mrb[108].mxu1 %v8132_v21  ;;  %v8186_v21 = vld [vmem:[#allocation2 + $0x4f8] sm:$0xff] }
 0x947   :  { %9893 = vmatprep.mubr.bf16.mxu1 %v8142_v3  ;;  %v8196_v3 = vld [vmem:[#allocation2 + $0x548] sm:$0xff] }
 0x94e   :  { %9894 = vmatmul.mubr.bf16.gmra.mrb[112].mxu1 %v8141_v46  ;;  %v8195_v46 = vld [vmem:[#allocation2 + $0x540] sm:$0xff] }
 0x94f   :  { %9901 = vmatprep.mubr.bf16.mxu1 %v8151_v23  ;;  %v8205_v23 = vld [vmem:[#allocation2 + $0x590] sm:$0xff] }
 0x956   :  { %9902 = vmatmul.mubr.bf16.gmra.mrb[116].mxu1 %v8150_v7  ;;  %v8204_v7 = vld [vmem:[#allocation2 + $0x588] sm:$0xff] }
 0x957   :  { %9909 = vmatprep.mubr.bf16.mxu1 %v8160_v44  ;;  %v8214_v44 = vld [vmem:[#allocation2 + $0x5d8] sm:$0xff] }
 0x95e   :  { %9910 = vmatmul.mubr.bf16.gmra.mrb[120].mxu1 %v8159_v32  ;;  %v8213_v32 = vld [vmem:[#allocation2 + $0x5d0] sm:$0xff] }
 0x95f   :  { %9917 = vmatprep.mubr.bf16.mxu1 %v18813_v19 }
 0x966   :  { %9918 = vmatmul.mubr.bf16.gmra.mrb[124].mxu1 %v8168_v5  ;;  %v8223_v5 = vld [vmem:[#allocation2 + $0x620] sm:$0xff] }
 0x967   :  { %9925 = vmatprep.mubr.bf16.mxu1 %v8178_v61  ;;  %v8222_v61 = vld [vmem:[#allocation2 + $0x618] sm:$0xff] }
 0x96e   :  { %9926 = vmatmul.mubr.bf16.gmra.mrb[128].mxu1 %v8177_v12  ;;  %v8232_v12 = vld [vmem:[#allocation2 + $0x668] sm:$0xff] }
 0x96f   :  { %9933 = vmatprep.mubr.bf16.mxu1 %v8187_v36  ;;  %v8231_v36 = vld [vmem:[#allocation2 + $0x660] sm:$0xff] }
 0x976   :  { %9934 = vmatmul.mubr.bf16.gmra.mrb[132].mxu1 %v8186_v21  ;;  %v8241_v21 = vld [vmem:[#allocation2 + $0x6b0] sm:$0xff] }
 0x977   :  { %9941 = vmatprep.mubr.bf16.mxu1 %v8196_v3  ;;  %v8240_v3 = vld [vmem:[#allocation2 + $0x6a8] sm:$0xff] }
 0x97e   :  { %9942 = vmatmul.mubr.bf16.gmra.mrb[136].mxu1 %v8195_v46  ;;  %v8250_v46 = vld [vmem:[#allocation2 + $0x6f8] sm:$0xff] }
 0x97f   :  { %9949 = vmatprep.mubr.bf16.mxu1 %v8205_v23  ;;  %v8249_v23 = vld [vmem:[#allocation2 + $0x6f0] sm:$0xff] }
 0x986   :  { %9950 = vmatmul.mubr.bf16.gmra.mrb[140].mxu1 %v8204_v7  ;;  %v8259_v7 = vld [vmem:[#allocation2 + $0x740] sm:$0xff] }
 0x987   :  { %9957 = vmatprep.mubr.bf16.mxu1 %v8214_v44  ;;  %v8258_v44 = vld [vmem:[#allocation2 + $0x738] sm:$0xff] }
 0x98e   :  { %9958 = vmatmul.mubr.bf16.gmra.mrb[144].mxu1 %v8213_v32  ;;  %v8268_v32 = vld [vmem:[#allocation2 + $0x788] sm:$0xff] }
 0x98f   :  { %9965 = vmatprep.mubr.bf16.mxu1 %v8223_v5  ;;  %v8267_v5 = vld [vmem:[#allocation2 + $0x780] sm:$0xff] }
 0x996   :  { %9966 = vmatmul.mubr.bf16.gmra.mrb[148].mxu1 %v8222_v61  ;;  %v8277_v61 = vld [vmem:[#allocation2 + $0x7d0] sm:$0xff] }
 0x997   :  { %9973 = vmatprep.mubr.bf16.mxu1 %v8232_v12  ;;  %v18819_v12 = vld [vmem:[%s19332_s6] ss:$0 sm:$0xff] }
 0x99e   :  { %9974 = vmatmul.mubr.bf16.gmra.mrb[152].mxu1 %v8231_v36 }
 0x99f   :  { %9981 = vmatprep.mubr.bf16.mxu1 %v8241_v21 }
 0x9a6   :  { %9982 = vmatmul.mubr.bf16.gmra.mrb[156].mxu1 %v8240_v3 }
 0x9a7   :  { %9989 = vmatprep.mubr.bf16.mxu1 %v8250_v46  ;;  %v10343_v46 = vld [vmem:[%s19327_s0] sm:$0xff] }
 0x9ae   :  { %9990 = vmatmul.mubr.bf16.gmra.mrb[160].mxu1 %v8249_v23 }
 0x9af   :  { %9997 = vmatprep.mubr.bf16.mxu1 %v8259_v7 }
 0x9b6   :  { %9998 = vmatmul.mubr.bf16.gmra.mrb[164].mxu1 %v8258_v44 }
 0x9b7   :  { %10005 = vmatprep.mubr.bf16.mxu1 %v8268_v32 }
 0x9be   :  { %10006 = vmatmul.mubr.bf16.gmra.mrb[168].mxu1 %v8267_v5  ;;  %v10344_v5 = vld [vmem:[%s19327_s0 + $0x8] sm:$0xff] }
 0x9bf   :  { %10013 = vmatprep.mubr.bf16.mxu1 %v8277_v61  ;;  %v8276_v61 = vld [vmem:[#allocation2 + $0x7c8] sm:$0xff] }
 0x9c1   :  { %v9799_v36 = vpop.f32.mrb[64].mxu1 }
 0x9c2   :  { %v11185_v21 = vadd.f32 %v18819_v12, %v9799_v36  ;;  %v9801_v3 = vpop.f32.mrb[65].mxu1  ;;  %v8286_v36 = vld [vmem:[#allocation2 + $0x818] sm:$0xff] }
 0x9c3   :  { %v9802_v23 = vpop.f32.mrb[66].mxu1 }
 0x9c4   :  { %v10089_v7 = vadd.f32 %v11185_v21, %v18561_v33  ;;  %v11186_v44 = vadd.f32 %v18819_v12, %v9802_v23  ;;  %v9804_v32 = vpop.f32.mrb[67].mxu1 }
 0x9c6   :  { %v10407_v27 = vadd.f32 %v10343_v46, %v10089_v7  ;;  %v10092_v39 = vadd.f32 %v11186_v44, %v18566_v14  ;;  %10014 = vmatmul.mubr.bf16.gmra.mrb[172].mxu1 %v8276_v61  ;;  %v10345_v14 = vld [vmem:[%s19327_s0 + $0x10] sm:$0xff] }
 0x9c7   :  { %10021 = vmatprep.mubr.bf16.mxu1 %v8286_v36  ;;  %v8295_v36 = vld [vmem:[#allocation2 + $0x860] sm:$0xff] }
 0x9c8   :  { %10471 = vst [vmem:[%s19333_s7] sm:$0xff] %v10407_v27  ;;  %v10408_v3 = vadd.f32 %v10344_v5, %v10092_v39  ;;  %v10346_v39 = vld [vmem:[%s19327_s0 + $0x18] sm:$0xff]  ;;  %v8285_v27 = vld [vmem:[#allocation2 + $0x810] sm:$0xff] }
 0x9c9   :  { %v9807_v33 = vpop.f32.mrb[68].mxu1 }
 0x9ca   :  { %10472 = vst [vmem:[%s19333_s7 + $0x8] sm:$0xff] %v10408_v3  ;;  %v11187_v21 = vadd.f32 %v18819_v12, %v9807_v33  ;;  %v9809_v23 = vpop.f32.mrb[69].mxu1 }
 0x9cb   :  { %v9810_v46 = vpop.f32.mrb[70].mxu1 }
 0x9cc   :  { %v10097_v7 = vadd.f32 %v11187_v21, %v18556_v6  ;;  %v11188_v44 = vadd.f32 %v18819_v12, %v9810_v46  ;;  %v9812_v32 = vpop.f32.mrb[71].mxu1 }
 0x9cd   :  { %v8294_v32 = vld [vmem:[#allocation2 + $0x858] sm:$0xff] }
 0x9ce   :  { %v10409_v5 = vadd.f32 %v10345_v14, %v10097_v7  ;;  %v10100_v61 = vadd.f32 %v11188_v44, %v18564_v50  ;;  %10022 = vmatmul.mubr.bf16.gmra.mrb[176].mxu1 %v8285_v27  ;;  %v10347_v50 = vld [vmem:[%s19327_s0 + $0x20] sm:$0xff]  ;;  %v10348_v44 = vld [vmem:[%s19327_s0 + $0x28] sm:$0xff] }
 0x9cf   :  { %10029 = vmatprep.mubr.bf16.mxu1 %v8295_v36 }
 0x9d0   :  { %10473 = vst [vmem:[%s19333_s7 + $0x10] sm:$0xff] %v10409_v5  ;;  %v10410_v3 = vadd.f32 %v10346_v39, %v10100_v61  ;;  %v8304_v5 = vld [vmem:[#allocation2 + $0x8a8] sm:$0xff] }
 0x9d1   :  { %v9815_v6 = vpop.f32.mrb[72].mxu1 }
 0x9d2   :  { %10474 = vst [vmem:[%s19333_s7 + $0x18] sm:$0xff] %v10410_v3  ;;  %v11189_v33 = vadd.f32 %v18819_v12, %v9815_v6  ;;  %v9817_v21 = vpop.f32.mrb[73].mxu1 }
 0x9d3   :  { %v9818_v23 = vpop.f32.mrb[74].mxu1 }
 0x9d4   :  { %v10105_v14 = vadd.f32 %v11189_v33, %v18578_v25  ;;  %v11190_v46 = vadd.f32 %v18819_v12, %v9818_v23  ;;  %v9820_v7 = vpop.f32.mrb[75].mxu1  ;;  %v10350_v23 = vld [vmem:[%s19327_s0 + $0x38] sm:$0xff] }
 0x9d6   :  { %v10411_v39 = vadd.f32 %v10347_v50, %v10105_v14  ;;  %v10108_v27 = vadd.f32 %v11190_v46, %v18583_v34  ;;  %10030 = vmatmul.mubr.bf16.gmra.mrb[180].mxu1 %v8294_v32  ;;  %v10349_v34 = vld [vmem:[%s19327_s0 + $0x30] sm:$0xff]  ;;  %v8303_v14 = vld [vmem:[#allocation2 + $0x8a0] sm:$0xff] }
 0x9d7   :  { %10037 = vmatprep.mubr.bf16.mxu1 %v8304_v5  ;;  %v8312_v5 = vld [vmem:[#allocation2 + $0x8e8] sm:$0xff] }
 0x9d8   :  { %10475 = vst [vmem:[%s19333_s7 + $0x20] sm:$0xff] %v10411_v39  ;;  %v10412_v61 = vadd.f32 %v10348_v44, %v10108_v27 }
 0x9d9   :  { %v9823_v25 = vpop.f32.mrb[76].mxu1 }
 0x9da   :  { %10476 = vst [vmem:[%s19333_s7 + $0x28] sm:$0xff] %v10412_v61  ;;  %v11191_v36 = vadd.f32 %v18819_v12, %v9823_v25  ;;  %v9825_v3 = vpop.f32.mrb[77].mxu1 }
 0x9db   :  { %v9826_v6 = vpop.f32.mrb[78].mxu1 }
 0x9dc   :  { %v10113_v33 = vadd.f32 %v11191_v36, %v18572_v8  ;;  %v11192_v21 = vadd.f32 %v18819_v12, %v9826_v6  ;;  %v9828_v50 = vpop.f32.mrb[79].mxu1  ;;  %v10352_v36 = vld [vmem:[%s19327_s0 + $0x48] sm:$0xff]  ;;  %v8287_v6 = vld [vmem:[#allocation2 + $0x820] sm:$0xff] }
 0x9de   :  { %v10413_v46 = vadd.f32 %v10349_v34, %v10113_v33  ;;  %v10116_v7 = vadd.f32 %v11192_v21, %v18581_v45  ;;  %10038 = vmatmul.mubr.bf16.gmra.mrb[184].mxu1 %v8303_v14  ;;  %v10351_v45 = vld [vmem:[%s19327_s0 + $0x40] sm:$0xff] }
 0x9df   :  { %10045 = vmatprep.mubr.bf16.mxu1 %v18813_v19 }
 0x9e0   :  { %10477 = vst [vmem:[%s19333_s7 + $0x30] sm:$0xff] %v10413_v46  ;;  %v10414_v44 = vadd.f32 %v10350_v23, %v10116_v7 }
 0x9e1   :  { %v9831_v8 = vpop.f32.mrb[80].mxu1 }
 0x9e2   :  { %10478 = vst [vmem:[%s19333_s7 + $0x38] sm:$0xff] %v10414_v44  ;;  %v11193_v32 = vadd.f32 %v18819_v12, %v9831_v8  ;;  %v9833_v39 = vpop.f32.mrb[81].mxu1  ;;  %v10354_v44 = vld [vmem:[%s19327_s0 + $0x58] sm:$0xff]  ;;  %v8296_v8 = vld [vmem:[#allocation2 + $0x868] sm:$0xff] }
 0x9e3   :  { %v9834_v27 = vpop.f32.mrb[82].mxu1 }
 0x9e4   :  { %v10121_v19 = vadd.f32 %v11193_v32, %v18594_v22  ;;  %v11194_v61 = vadd.f32 %v18819_v12, %v9834_v27  ;;  %v9836_v25 = vpop.f32.mrb[83].mxu1 }
 0x9e5   :  { %v8314_v25 = vld [vmem:[#allocation2 + $0x8f8] sm:$0xff] }
 0x9e6   :  { %v10415_v3 = vadd.f32 %v10351_v45, %v10121_v19  ;;  %v10124_v34 = vadd.f32 %v11194_v61, %v18599_v51  ;;  %10046 = vmatmul.mubr.bf16.gmra.mrb[188].mxu1 %v8312_v5  ;;  %v10353_v51 = vld [vmem:[%s19327_s0 + $0x50] sm:$0xff] }
 0x9e7   :  { %11097 = vmatprep.mubr.bf16.mxu1 %v8287_v6  ;;  %v8305_v45 = vld [vmem:[#allocation2 + $0x8b0] sm:$0xff]  ;;  %v10356_v6 = vld [vmem:[%s19327_s0 + $0x68] sm:$0xff] }
 0x9e8   :  { %10479 = vst [vmem:[%s19333_s7 + $0x40] sm:$0xff] %v10415_v3  ;;  %v10416_v33 = vadd.f32 %v10352_v36, %v10124_v34 }
 0x9e9   :  { %v9839_v21 = vpop.f32.mrb[84].mxu1 }
 0x9ea   :  { %10480 = vst [vmem:[%s19333_s7 + $0x48] sm:$0xff] %v10416_v33  ;;  %v11195_v22 = vadd.f32 %v18819_v12, %v9839_v21  ;;  %v9841_v50 = vpop.f32.mrb[85].mxu1 }
 0x9eb   :  { %v9842_v23 = vpop.f32.mrb[86].mxu1 }
 0x9ec   :  { %v10129_v14 = vadd.f32 %v11195_v22, %v18589_v55  ;;  %v11196_v46 = vadd.f32 %v18819_v12, %v9842_v23  ;;  %v9844_v7 = vpop.f32.mrb[87].mxu1  ;;  %v10357_v23 = vld [vmem:[%s19327_s0 + $0x70] sm:$0xff] }
 0x9ee   :  { %v10417_v32 = vadd.f32 %v10353_v51, %v10129_v14  ;;  %v10132_v39 = vadd.f32 %v11196_v46, %v18597_v57  ;;  %11098 = vmatmul.mubr.bf16.vlgmr.msra.gmra.mrb[192].mxu1 %v8296_v8  ;;  %v10355_v57 = vld [vmem:[%s19327_s0 + $0x60] sm:$0xff] }
 0x9ef   :  { %11101 = vmatprep.mubr.bf16.mxu1 %v8305_v45 }
 0x9f0   :  { %10481 = vst [vmem:[%s19333_s7 + $0x50] sm:$0xff] %v10417_v32  ;;  %v10418_v27 = vadd.f32 %v10354_v44, %v10132_v39  ;;  %v10358_v44 = vld [vmem:[%s19327_s0 + $0x78] sm:$0xff] }
 0x9f1   :  { %v9847_v55 = vpop.f32.mrb[88].mxu1 }
 0x9f2   :  { %10482 = vst [vmem:[%s19333_s7 + $0x58] sm:$0xff] %v10418_v27  ;;  %v11197_v5 = vadd.f32 %v18819_v12, %v9847_v55  ;;  %v9849_v19 = vpop.f32.mrb[89].mxu1  ;;  %v10359_v55 = vld [vmem:[%s19327_s0 + $0x80] sm:$0xff] }
 0x9f3   :  { %v9850_v61 = vpop.f32.mrb[90].mxu1 }
 0x9f4   :  { %v10137_v36 = vadd.f32 %v11197_v5, %v18610_v28  ;;  %v11198_v3 = vadd.f32 %v18819_v12, %v9850_v61  ;;  %v9852_v34 = vpop.f32.mrb[91].mxu1  ;;  %v10360_v61 = vld [vmem:[%s19327_s0 + $0x88] sm:$0xff] }
 0x9f6   :  { %v10419_v33 = vadd.f32 %v10355_v57, %v10137_v36  ;;  %v10140_v21 = vadd.f32 %v11198_v3, %v18615_v47  ;;  %11102 = vmatmul.mubr.bf16.gmra.mrb[196].mxu1 %v8314_v25 }
 0x9f8   :  { %10483 = vst [vmem:[%s19333_s7 + $0x60] sm:$0xff] %v10419_v33  ;;  %v10420_v22 = vadd.f32 %v10356_v6, %v10140_v21  ;;  %v10361_v33 = vld [vmem:[%s19327_s0 + $0x90] sm:$0xff] }
 0x9f9   :  { %v9855_v50 = vpop.f32.mrb[92].mxu1 }
 0x9fa   :  { %10484 = vst [vmem:[%s19333_s7 + $0x68] sm:$0xff] %v10420_v22  ;;  %v11199_v28 = vadd.f32 %v18819_v12, %v9855_v50  ;;  %v9857_v51 = vpop.f32.mrb[93].mxu1 }
 0x9fb   :  { %v9858_v14 = vpop.f32.mrb[94].mxu1 }
 0x9fc   :  { %v10145_v47 = vadd.f32 %v11199_v28, %v18605_v35  ;;  %v11200_v46 = vadd.f32 %v18819_v12, %v9858_v14  ;;  %v9860_v7 = vpop.f32.mrb[95].mxu1  ;;  %v10362_v28 = vld [vmem:[%s19327_s0 + $0x98] sm:$0xff] }
 0x9fd   :  { %v10363_v7 = vld [vmem:[%s19327_s0 + $0xa0] sm:$0xff] }
 0x9fe   :  { %v10421_v8 = vadd.f32 %v10357_v23, %v10145_v47  ;;  %v10148_v32 = vadd.f32 %v11200_v46, %v18613_v43 }
 0xa00   :  { %10485 = vst [vmem:[%s19333_s7 + $0x70] sm:$0xff] %v10421_v8  ;;  %v10422_v39 = vadd.f32 %v10358_v44, %v10148_v32 }
 0xa01   :  { %v9863_v45 = vpop.f32.mrb[96].mxu1 }
 0xa02   :  { %10486 = vst [vmem:[%s19333_s7 + $0x78] sm:$0xff] %v10422_v39  ;;  %v11201_v35 = vadd.f32 %v18819_v12, %v9863_v45  ;;  %v9865_v27 = vpop.f32.mrb[97].mxu1  ;;  %v10364_v39 = vld [vmem:[%s19327_s0 + $0xa8] sm:$0xff] }
 0xa03   :  { %v9866_v5 = vpop.f32.mrb[98].mxu1 }
 0xa04   :  { %v10153_v43 = vadd.f32 %v11201_v35, %v18623_v18  ;;  %v11202_v19 = vadd.f32 %v18819_v12, %v9866_v5  ;;  %v9868_v57 = vpop.f32.mrb[99].mxu1 }
 0xa06   :  { %v10423_v25 = vadd.f32 %v10359_v55, %v10153_v43  ;;  %v10156_v36 = vadd.f32 %v11202_v19, %v18628_v40  ;;  %v10365_v43 = vld [vmem:[%s19327_s0 + $0xb0] sm:$0xff] }
 0xa08   :  { %10487 = vst [vmem:[%s19333_s7 + $0x80] sm:$0xff] %v10423_v25  ;;  %v10424_v3 = vadd.f32 %v10360_v61, %v10156_v36  ;;  %v10366_v25 = vld [vmem:[%s19327_s0 + $0xb8] sm:$0xff] }
 0xa09   :  { %v9871_v34 = vpop.f32.mrb[100].mxu1 }
 0xa0a   :  { %10488 = vst [vmem:[%s19333_s7 + $0x88] sm:$0xff] %v10424_v3  ;;  %v11203_v18 = vadd.f32 %v18819_v12, %v9871_v34  ;;  %v9873_v6 = vpop.f32.mrb[101].mxu1 }
 0xa0b   :  { %v9874_v21 = vpop.f32.mrb[102].mxu1 }
 0xa0c   :  { %v10161_v40 = vadd.f32 %v11203_v18, %v18621_v42  ;;  %v11204_v22 = vadd.f32 %v18819_v12, %v9874_v21  ;;  %v9876_v50 = vpop.f32.mrb[103].mxu1 }
 0xa0d   :  { %v10368_v50 = vld [vmem:[%s19327_s0 + $0xc8] sm:$0xff] }
 0xa0e   :  { %v10425_v51 = vadd.f32 %v10361_v33, %v10161_v40  ;;  %v10164_v23 = vadd.f32 %v11204_v22, %v18626_v49  ;;  %v10367_v33 = vld [vmem:[%s19327_s0 + $0xc0] sm:$0xff] }
 0xa10   :  { %10489 = vst [vmem:[%s19333_s7 + $0x90] sm:$0xff] %v10425_v51  ;;  %v10426_v14 = vadd.f32 %v10362_v28, %v10164_v23 }
 0xa11   :  { %v9879_v47 = vpop.f32.mrb[104].mxu1 }
 0xa12   :  { %10490 = vst [vmem:[%s19333_s7 + $0x98] sm:$0xff] %v10426_v14  ;;  %v11205_v42 = vadd.f32 %v18819_v12, %v9879_v47  ;;  %v9881_v46 = vpop.f32.mrb[105].mxu1 }
 0xa13   :  { %v9882_v44 = vpop.f32.mrb[106].mxu1 }
 0xa14   :  { %v10169_v49 = vadd.f32 %v11205_v42, %v18635_v60  ;;  %v11206_v8 = vadd.f32 %v18819_v12, %v9882_v44  ;;  %v9884_v32 = vpop.f32.mrb[107].mxu1  ;;  %v10369_v42 = vld [vmem:[%s19327_s0 + $0xd0] sm:$0xff] }
 0xa16   :  { %v10427_v45 = vadd.f32 %v10363_v7, %v10169_v49  ;;  %v10172_v35 = vadd.f32 %v11206_v8, %v18639_v52  ;;  %v10370_v49 = vld [vmem:[%s19327_s0 + $0xd8] sm:$0xff] }
 0xa18   :  { %10491 = vst [vmem:[%s19333_s7 + $0xa0] sm:$0xff] %v10427_v45  ;;  %v10428_v27 = vadd.f32 %v10364_v39, %v10172_v35 }
 0xa19   :  { %v9887_v55 = vpop.f32.mrb[108].mxu1 }
 0xa1a   :  { %10492 = vst [vmem:[%s19333_s7 + $0xa8] sm:$0xff] %v10428_v27  ;;  %v11207_v60 = vadd.f32 %v18819_v12, %v9887_v55  ;;  %v9889_v5 = vpop.f32.mrb[109].mxu1  ;;  %v10371_v27 = vld [vmem:[%s19327_s0 + $0xe0] sm:$0xff] }
 0xa1b   :  { %v9890_v19 = vpop.f32.mrb[110].mxu1 }
 0xa1c   :  { %v10177_v52 = vadd.f32 %v11207_v60, %v18630_v37  ;;  %v11208_v57 = vadd.f32 %v18819_v12, %v9890_v19  ;;  %v9892_v61 = vpop.f32.mrb[111].mxu1 }
 0xa1e   :  { %v10429_v36 = vadd.f32 %v10365_v43, %v10177_v52  ;;  %v10180_v3 = vadd.f32 %v11208_v57, %v18637_v31  ;;  %v10372_v43 = vld [vmem:[%s19327_s0 + $0xe8] sm:$0xff] }
 0xa20   :  { %10493 = vst [vmem:[%s19333_s7 + $0xb0] sm:$0xff] %v10429_v36  ;;  %v10430_v34 = vadd.f32 %v10366_v25, %v10180_v3  ;;  %v10373_v36 = vld [vmem:[%s19327_s0 + $0xf0] sm:$0xff] }
 0xa21   :  { %v9895_v18 = vpop.f32.mrb[112].mxu1 }
 0xa22   :  { %10494 = vst [vmem:[%s19333_s7 + $0xb8] sm:$0xff] %v10430_v34  ;;  %v11209_v37 = vadd.f32 %v18819_v12, %v9895_v18  ;;  %v9897_v6 = vpop.f32.mrb[113].mxu1 }
 0xa23   :  { %v9898_v21 = vpop.f32.mrb[114].mxu1 }
 0xa24   :  { %v10185_v31 = vadd.f32 %v11209_v37, %v18644_v63  ;;  %v11210_v40 = vadd.f32 %v18819_v12, %v9898_v21  ;;  %v9900_v22 = vpop.f32.mrb[115].mxu1  ;;  %v10374_v37 = vld [vmem:[%s19327_s0 + $0xf8] sm:$0xff] }
 0xa25   :  { %v10375_v22 = vld [vmem:[%s19327_s0 + $0x100] sm:$0xff] }
 0xa26   :  { %v10431_v28 = vadd.f32 %v10367_v33, %v10185_v31  ;;  %v10188_v51 = vadd.f32 %v11210_v40, %v18648_v30 }
 0xa28   :  { %10495 = vst [vmem:[%s19333_s7 + $0xc0] sm:$0xff] %v10431_v28  ;;  %v10432_v23 = vadd.f32 %v10368_v50, %v10188_v51 }
 0xa29   :  { %v9903_v14 = vpop.f32.mrb[116].mxu1 }
 0xa2a   :  { %10496 = vst [vmem:[%s19333_s7 + $0xc8] sm:$0xff] %v10432_v23  ;;  %v11211_v63 = vadd.f32 %v18819_v12, %v9903_v14  ;;  %v9905_v47 = vpop.f32.mrb[117].mxu1  ;;  %v10376_v23 = vld [vmem:[%s19327_s0 + $0x108] sm:$0xff] }
 0xa2b   :  { %v9906_v46 = vpop.f32.mrb[118].mxu1 }
 0xa2c   :  { %v10193_v30 = vadd.f32 %v11211_v63, %v18642_v0  ;;  %v11212_v7 = vadd.f32 %v18819_v12, %v9906_v46  ;;  %v9908_v44 = vpop.f32.mrb[119].mxu1 }
 0xa2e   :  { %v10433_v8 = vadd.f32 %v10369_v42, %v10193_v30  ;;  %v10196_v32 = vadd.f32 %v11212_v7, %v18646_v38  ;;  %v10377_v30 = vld [vmem:[%s19327_s0 + $0x110] sm:$0xff] }
 0xa30   :  { %10497 = vst [vmem:[%s19333_s7 + $0xd0] sm:$0xff] %v10433_v8  ;;  %v10434_v39 = vadd.f32 %v10370_v49, %v10196_v32  ;;  %v10378_v8 = vld [vmem:[%s19327_s0 + $0x118] sm:$0xff] }
 0xa31   :  { %v9911_v45 = vpop.f32.mrb[120].mxu1 }
 0xa32   :  { %10498 = vst [vmem:[%s19333_s7 + $0xd8] sm:$0xff] %v10434_v39  ;;  %v11213_v0 = vadd.f32 %v18819_v12, %v9911_v45  ;;  %v9913_v35 = vpop.f32.mrb[121].mxu1 }
 0xa33   :  { %v9914_v55 = vpop.f32.mrb[122].mxu1 }
 0xa34   :  { %v10201_v38 = vadd.f32 %v11213_v0, %v18655_v59  ;;  %v11214_v60 = vadd.f32 %v18819_v12, %v9914_v55  ;;  %v9916_v5 = vpop.f32.mrb[123].mxu1 }
 0xa35   :  { %v10380_v5 = vld [vmem:[%s19327_s0 + $0x128] sm:$0xff] }
 0xa36   :  { %v10435_v19 = vadd.f32 %v10371_v27, %v10201_v38  ;;  %v10204_v52 = vadd.f32 %v11214_v60, %v18659_v15  ;;  %v10379_v27 = vld [vmem:[%s19327_s0 + $0x120] sm:$0xff] }
 0xa38   :  { %10499 = vst [vmem:[%s19333_s7 + $0xe0] sm:$0xff] %v10435_v19  ;;  %v10436_v57 = vadd.f32 %v10372_v43, %v10204_v52 }
 0xa39   :  { %v9919_v61 = vpop.f32.mrb[124].mxu1 }
 0xa3a   :  { %10500 = vst [vmem:[%s19333_s7 + $0xe8] sm:$0xff] %v10436_v57  ;;  %v11215_v59 = vadd.f32 %v18819_v12, %v9919_v61  ;;  %v9921_v25 = vpop.f32.mrb[125].mxu1 }
 0xa3b   :  { %v9922_v3 = vpop.f32.mrb[126].mxu1 }
 0xa3c   :  { %v10209_v15 = vadd.f32 %v11215_v59, %v18650_v4  ;;  %v11216_v34 = vadd.f32 %v18819_v12, %v9922_v3  ;;  %v9924_v18 = vpop.f32.mrb[127].mxu1  ;;  %v10381_v59 = vld [vmem:[%s19327_s0 + $0x130] sm:$0xff] }
 0xa3e   :  { %v10437_v6 = vadd.f32 %v10373_v36, %v10209_v15  ;;  %v10212_v33 = vadd.f32 %v11216_v34, %v18657_v56  ;;  %v10382_v15 = vld [vmem:[%s19327_s0 + $0x138] sm:$0xff] }
 0xa40   :  { %10501 = vst [vmem:[%s19333_s7 + $0xf0] sm:$0xff] %v10437_v6  ;;  %v10438_v21 = vadd.f32 %v10374_v37, %v10212_v33 }
 0xa41   :  { %v9927_v31 = vpop.f32.mrb[128].mxu1 }
 0xa42   :  { %10502 = vst [vmem:[%s19333_s7 + $0xf8] sm:$0xff] %v10438_v21  ;;  %v11217_v4 = vadd.f32 %v18819_v12, %v9927_v31  ;;  %v9929_v40 = vpop.f32.mrb[129].mxu1  ;;  %v10383_v21 = vld [vmem:[%s19327_s0 + $0x140] sm:$0xff] }
 0xa43   :  { %v9930_v50 = vpop.f32.mrb[130].mxu1 }
 0xa44   :  { %v10217_v56 = vadd.f32 %v11217_v4, %v18664_v2  ;;  %v11218_v28 = vadd.f32 %v18819_v12, %v9930_v50  ;;  %v9932_v51 = vpop.f32.mrb[131].mxu1 }
 0xa46   :  { %v10439_v14 = vadd.f32 %v10375_v22, %v10217_v56  ;;  %v10220_v63 = vadd.f32 %v11218_v28, %v18668_v17  ;;  %v10384_v22 = vld [vmem:[%s19327_s0 + $0x148] sm:$0xff] }
 0xa48   :  { %10503 = vst [vmem:[%s19333_s7 + $0x100] sm:$0xff] %v10439_v14  ;;  %v10440_v47 = vadd.f32 %v10376_v23, %v10220_v63  ;;  %v10385_v14 = vld [vmem:[%s19327_s0 + $0x150] sm:$0xff] }
 0xa49   :  { %v9935_v42 = vpop.f32.mrb[132].mxu1 }
 0xa4a   :  { %10504 = vst [vmem:[%s19333_s7 + $0x108] sm:$0xff] %v10440_v47  ;;  %v11219_v2 = vadd.f32 %v18819_v12, %v9935_v42  ;;  %v9937_v46 = vpop.f32.mrb[133].mxu1 }
 0xa4b   :  { %v9938_v7 = vpop.f32.mrb[134].mxu1 }
 0xa4c   :  { %v10225_v17 = vadd.f32 %v11219_v2, %v18662_v11  ;;  %v11220_v44 = vadd.f32 %v18819_v12, %v9938_v7  ;;  %v9940_v49 = vpop.f32.mrb[135].mxu1  ;;  %v10386_v2 = vld [vmem:[%s19327_s0 + $0x158] sm:$0xff] }
 0xa4d   :  { %v10387_v49 = vld [vmem:[%s19327_s0 + $0x160] sm:$0xff] }
 0xa4e   :  { %v10441_v32 = vadd.f32 %v10377_v30, %v10225_v17  ;;  %v10228_v39 = vadd.f32 %v11220_v44, %v18666_v26 }
 0xa50   :  { %10505 = vst [vmem:[%s19333_s7 + $0x110] sm:$0xff] %v10441_v32  ;;  %v10442_v45 = vadd.f32 %v10378_v8, %v10228_v39 }
 0xa51   :  { %v9943_v0 = vpop.f32.mrb[136].mxu1 }
 0xa52   :  { %10506 = vst [vmem:[%s19333_s7 + $0x118] sm:$0xff] %v10442_v45  ;;  %v11221_v11 = vadd.f32 %v18819_v12, %v9943_v0  ;;  %v9945_v35 = vpop.f32.mrb[137].mxu1  ;;  %v10388_v45 = vld [vmem:[%s19327_s0 + $0x168] sm:$0xff] }
 0xa53   :  { %v9946_v55 = vpop.f32.mrb[138].mxu1 }
 0xa54   :  { %v10233_v26 = vadd.f32 %v11221_v11, %v18675_v13  ;;  %v11222_v38 = vadd.f32 %v18819_v12, %v9946_v55  ;;  %v9948_v60 = vpop.f32.mrb[139].mxu1 }
 0xa56   :  { %v10443_v43 = vadd.f32 %v10379_v27, %v10233_v26  ;;  %v10236_v19 = vadd.f32 %v11222_v38, %v18679_v48  ;;  %v10389_v26 = vld [vmem:[%s19327_s0 + $0x170] sm:$0xff] }
 0xa58   :  { %10507 = vst [vmem:[%s19333_s7 + $0x120] sm:$0xff] %v10443_v43  ;;  %v10444_v52 = vadd.f32 %v10380_v5, %v10236_v19  ;;  %v10390_v43 = vld [vmem:[%s19327_s0 + $0x178] sm:$0xff] }
 0xa59   :  { %v9951_v57 = vpop.f32.mrb[140].mxu1 }
 0xa5a   :  { %10508 = vst [vmem:[%s19333_s7 + $0x128] sm:$0xff] %v10444_v52  ;;  %v11223_v13 = vadd.f32 %v18819_v12, %v9951_v57  ;;  %v9953_v61 = vpop.f32.mrb[141].mxu1 }
 0xa5b   :  { %v9954_v25 = vpop.f32.mrb[142].mxu1 }
 0xa5c   :  { %v10241_v48 = vadd.f32 %v11223_v13, %v18670_v54  ;;  %v11224_v36 = vadd.f32 %v18819_v12, %v9954_v25  ;;  %v9956_v3 = vpop.f32.mrb[143].mxu1 }
 0xa5d   :  { %v10392_v3 = vld [vmem:[%s19327_s0 + $0x188] sm:$0xff] }
 0xa5e   :  { %v10445_v34 = vadd.f32 %v10381_v59, %v10241_v48  ;;  %v10244_v18 = vadd.f32 %v11224_v36, %v18677_v16  ;;  %v10391_v59 = vld [vmem:[%s19327_s0 + $0x180] sm:$0xff] }
 0xa60   :  { %10509 = vst [vmem:[%s19333_s7 + $0x130] sm:$0xff] %v10445_v34  ;;  %v10446_v37 = vadd.f32 %v10382_v15, %v10244_v18 }
 0xa61   :  { %v9959_v6 = vpop.f32.mrb[144].mxu1 }
 0xa62   :  { %10510 = vst [vmem:[%s19333_s7 + $0x138] sm:$0xff] %v10446_v37  ;;  %v11225_v54 = vadd.f32 %v18819_v12, %v9959_v6  ;;  %v9961_v33 = vpop.f32.mrb[145].mxu1 }
 0xa63   :  { %v9962_v31 = vpop.f32.mrb[146].mxu1 }
 0xa64   :  { %v10249_v16 = vadd.f32 %v11225_v54, %v18684_v10  ;;  %v11226_v4 = vadd.f32 %v18819_v12, %v9962_v31  ;;  %v9964_v40 = vpop.f32.mrb[147].mxu1  ;;  %v10393_v54 = vld [vmem:[%s19327_s0 + $0x190] sm:$0xff] }
 0xa66   :  { %v10447_v50 = vadd.f32 %v10383_v21, %v10249_v16  ;;  %v10252_v56 = vadd.f32 %v11226_v4, %v18688_v62  ;;  %v19886_v21 = vld [vmem:[#allocation23_spill] sm:$0xff] }
 0xa67   :  { %v10394_v4 = vld [vmem:[%s19327_s0 + $0x198] sm:$0xff] }
 0xa68   :  { %10511 = vst [vmem:[%s19333_s7 + $0x140] sm:$0xff] %v10447_v50  ;;  %v10448_v28 = vadd.f32 %v10384_v22, %v10252_v56  ;;  %v19887_v22 = vld [vmem:[#allocation24_spill] sm:$0xff] }
 0xa69   :  { %v9967_v51 = vpop.f32.mrb[148].mxu1 }
 0xa6a   :  { %10512 = vst [vmem:[%s19333_s7 + $0x148] sm:$0xff] %v10448_v28  ;;  %v11227_v10 = vadd.f32 %v18819_v12, %v9967_v51  ;;  %v9969_v23 = vpop.f32.mrb[149].mxu1 }
 0xa6b   :  { %v9970_v63 = vpop.f32.mrb[150].mxu1  ;;  %v10395_v23 = vld [vmem:[%s19327_s0 + $0x1a0] sm:$0xff] }
 0xa6c   :  { %v10257_v62 = vadd.f32 %v11227_v10, %v18682_v24  ;;  %v11228_v47 = vadd.f32 %v18819_v12, %v9970_v63  ;;  %v9972_v42 = vpop.f32.mrb[151].mxu1  ;;  %v19888_v63 = vld [vmem:[#allocation28_spill] sm:$0xff] }
 0xa6e   :  { %v10449_v46 = vadd.f32 %v10385_v14, %v10257_v62  ;;  %v10260_v30 = vadd.f32 %v11228_v47, %v18686_v9 }
 0xa70   :  { %10513 = vst [vmem:[%s19333_s7 + $0x150] sm:$0xff] %v10449_v46  ;;  %v10450_v7 = vadd.f32 %v10386_v2, %v10260_v30  ;;  %v10396_v2 = vld [vmem:[%s19327_s0 + $0x1a8] sm:$0xff]  ;;  %v19889_v30 = vld [vmem:[#allocation30_spill] sm:$0xff] }
 0xa71   :  { %v9975_v17 = vpop.f32.mrb[152].mxu1 }
 0xa72   :  { %10514 = vst [vmem:[%s19333_s7 + $0x158] sm:$0xff] %v10450_v7  ;;  %v11229_v24 = vadd.f32 %v18819_v12, %v9975_v17  ;;  %v9977_v44 = vpop.f32.mrb[153].mxu1 }
 0xa73   :  { %v9978_v8 = vpop.f32.mrb[154].mxu1 }
 0xa74   :  { %v10265_v9 = vadd.f32 %v11229_v24, %v18695_v41  ;;  %v11230_v32 = vadd.f32 %v18819_v12, %v9978_v8  ;;  %v9980_v39 = vpop.f32.mrb[155].mxu1  ;;  %v10397_v8 = vld [vmem:[%s19327_s0 + $0x1b0] sm:$0xff] }
 0xa76   :  { %v10451_v0 = vadd.f32 %v10387_v49, %v10265_v9  ;;  %v10268_v11 = vadd.f32 %v11230_v32, %v18699_v58  ;;  %v19890_v32 = vld [vmem:[#allocation11_spill] sm:$0xff] }
 0xa78   :  { %10515 = vst [vmem:[%s19333_s7 + $0x160] sm:$0xff] %v10451_v0  ;;  %v10452_v35 = vadd.f32 %v10388_v45, %v10268_v11  ;;  %v10398_v11 = vld [vmem:[%s19327_s0 + $0x1b8] sm:$0xff] }
 0xa79   :  { %v9983_v27 = vpop.f32.mrb[156].mxu1 }
 0xa7a   :  { %10516 = vst [vmem:[%s19333_s7 + $0x168] sm:$0xff] %v10452_v35  ;;  %v11231_v41 = vadd.f32 %v18819_v12, %v9983_v27  ;;  %v9985_v55 = vpop.f32.mrb[157].mxu1  ;;  %v19891_v27 = vld [vmem:[#allocation29_spill] sm:$0xff] }
 0xa7b   :  { %v9986_v38 = vpop.f32.mrb[158].mxu1 }
 0xa7c   :  { %v10273_v58 = vadd.f32 %v11231_v41, %v18690_v1  ;;  %v11232_v60 = vadd.f32 %v18819_v12, %v9986_v38  ;;  %v9988_v5 = vpop.f32.mrb[159].mxu1 }
 0xa7e   :  { %v10453_v19 = vadd.f32 %v10389_v26, %v10273_v58  ;;  %v10276_v52 = vadd.f32 %v11232_v60, %v18697_v29 }
 0xa80   :  { %10517 = vst [vmem:[%s19333_s7 + $0x170] sm:$0xff] %v10453_v19  ;;  %v10454_v57 = vadd.f32 %v10390_v43, %v10276_v52 }
 0xa81   :  { %v9991_v13 = vpop.f32.mrb[160].mxu1 }
 0xa82   :  { %10518 = vst [vmem:[%s19333_s7 + $0x178] sm:$0xff] %v10454_v57  ;;  %v11233_v1 = vadd.f32 %v18819_v12, %v9991_v13  ;;  %v9993_v61 = vpop.f32.mrb[161].mxu1 }
 0xa83   :  { %v9994_v25 = vpop.f32.mrb[162].mxu1 }
 0xa84   :  { %v10281_v29 = vadd.f32 %v11233_v1, %v18704_v20  ;;  %v11234_v48 = vadd.f32 %v18819_v12, %v9994_v25  ;;  %v9996_v36 = vpop.f32.mrb[163].mxu1 }
 0xa86   :  { %v10455_v15 = vadd.f32 %v10391_v59, %v10281_v29  ;;  %v10284_v34 = vadd.f32 %v11234_v48, %v18708_v53 }
 0xa88   :  { %10519 = vst [vmem:[%s19333_s7 + $0x180] sm:$0xff] %v10455_v15  ;;  %v10456_v18 = vadd.f32 %v10392_v3, %v10284_v34  ;;  %v10401_v34 = vld [vmem:[%s19327_s0 + $0x1d0] sm:$0xff] }
 0xa89   :  { %v9999_v37 = vpop.f32.mrb[164].mxu1 }
 0xa8a   :  { %10520 = vst [vmem:[%s19333_s7 + $0x188] sm:$0xff] %v10456_v18  ;;  %v11235_v20 = vadd.f32 %v18819_v12, %v9999_v37  ;;  %v10001_v6 = vpop.f32.mrb[165].mxu1 }
 0xa8b   :  { %v10002_v33 = vpop.f32.mrb[166].mxu1  ;;  %v10399_v6 = vld [vmem:[%s19327_s0 + $0x1c0] sm:$0xff] }
 0xa8c   :  { %v10289_v53 = vadd.f32 %v11235_v20, %v19886_v21  ;;  %v11236_v31 = vadd.f32 %v18819_v12, %v10002_v33  ;;  %v10004_v16 = vpop.f32.mrb[167].mxu1 }
 0xa8e   :  { %v10457_v40 = vadd.f32 %v10393_v54, %v10289_v53  ;;  %v10292_v50 = vadd.f32 %v11236_v31, %v19887_v22  ;;  %v10402_v53 = vld [vmem:[%s19327_s0 + $0x1d8] sm:$0xff] }
 0xa90   :  { %10521 = vst [vmem:[%s19333_s7 + $0x190] sm:$0xff] %v10457_v40  ;;  %v10458_v56 = vadd.f32 %v10394_v4, %v10292_v50  ;;  %v10400_v40 = vld [vmem:[%s19327_s0 + $0x1c8] sm:$0xff] }
 0xa91   :  { %v10007_v28 = vpop.f32.mrb[168].mxu1 }
 0xa92   :  { %10522 = vst [vmem:[%s19333_s7 + $0x198] sm:$0xff] %v10458_v56  ;;  %v11237_v51 = vadd.f32 %v18819_v12, %v10007_v28  ;;  %v10009_v10 = vpop.f32.mrb[169].mxu1 }
 0xa93   :  { %v10010_v14 = vpop.f32.mrb[170].mxu1 }
 0xa94   :  { %v10297_v62 = vadd.f32 %v11237_v51, %v19888_v63  ;;  %v11238_v47 = vadd.f32 %v18819_v12, %v10010_v14  ;;  %v10012_v42 = vpop.f32.mrb[171].mxu1  ;;  %v10405_v14 = vld [vmem:[%s19327_s0 + $0x1f0] sm:$0xff] }
 0xa95   :  { %v10403_v42 = vld [vmem:[%s19327_s0 + $0x1e0] sm:$0xff] }
 0xa96   :  { %v10459_v46 = vadd.f32 %v10395_v23, %v10297_v62  ;;  %v10300_v7 = vadd.f32 %v11238_v47, %v19889_v30 }
 0xa98   :  { %10523 = vst [vmem:[%s19333_s7 + $0x1a0] sm:$0xff] %v10459_v46  ;;  %v10460_v17 = vadd.f32 %v10396_v2, %v10300_v7  ;;  %v10406_v7 = vld [vmem:[%s19327_s0 + $0x1f8] sm:$0xff] }
 0xa99   :  { %v10015_v24 = vpop.f32.mrb[172].mxu1 }
 0xa9a   :  { %10524 = vst [vmem:[%s19333_s7 + $0x1a8] sm:$0xff] %v10460_v17  ;;  %v11239_v44 = vadd.f32 %v18819_v12, %v10015_v24  ;;  %v10017_v49 = vpop.f32.mrb[173].mxu1 }
 0xa9b   :  { %v10018_v9 = vpop.f32.mrb[174].mxu1  ;;  %v10404_v49 = vld [vmem:[%s19327_s0 + $0x1e8] sm:$0xff] }
 0xa9c   :  { %v10305_v39 = vadd.f32 %v11239_v44, %v19890_v32  ;;  %v11240_v45 = vadd.f32 %v18819_v12, %v10018_v9  ;;  %v10020_v0 = vpop.f32.mrb[175].mxu1 }
 0xa9e   :  { %v10461_v35 = vadd.f32 %v10397_v8, %v10305_v39  ;;  %v10308_v41 = vadd.f32 %v11240_v45, %v19891_v27 }
 0xaa0   :  { %10525 = vst [vmem:[%s19333_s7 + $0x1b0] sm:$0xff] %v10461_v35  ;;  %v10462_v55 = vadd.f32 %v10398_v11, %v10308_v41 }
 0xaa1   :  { %v10023_v26 = vpop.f32.mrb[176].mxu1 }
 0xaa2   :  { %10526 = vst [vmem:[%s19333_s7 + $0x1b8] sm:$0xff] %v10462_v55  ;;  %v10025_v38 = vpop.f32.mrb[177].mxu1  ;;  %v11241_v3 = vadd.f32 %v18819_v12, %v10023_v26 }
 0xaa3   :  { %v10026_v58 = vpop.f32.mrb[178].mxu1 }
 0xaa4   :  { %v10028_v60 = vpop.f32.mrb[179].mxu1  ;;  %v11242_v54 = vadd.f32 %v18819_v12, %v10026_v58 }
 0xaa9   :  { %v10031_v5 = vpop.f32.mrb[180].mxu1 }
 0xaaa   :  { %v10033_v43 = vpop.f32.mrb[181].mxu1  ;;  %v11243_v36 = vadd.f32 %v18819_v12, %v10031_v5 }
 0xaab   :  { %v10034_v19 = vpop.f32.mrb[182].mxu1 }
 0xaac   :  { %v10036_v52 = vpop.f32.mrb[183].mxu1  ;;  %v11244_v18 = vadd.f32 %v18819_v12, %v10034_v19 }
 0xab1   :  { %v10039_v57 = vpop.f32.mrb[184].mxu1 }
 0xab2   :  { %v10041_v13 = vpop.f32.mrb[185].mxu1  ;;  %v11245_v10 = vadd.f32 %v18819_v12, %v10039_v57 }
 0xab3   :  { %v10042_v1 = vpop.f32.mrb[186].mxu1 }
 0xab4   :  { %v10044_v61 = vpop.f32.mrb[187].mxu1  ;;  %v11246_v2 = vadd.f32 %v18819_v12, %v10042_v1 }
 0xab9   :  { %v10047_v59 = vpop.f32.mrb[188].mxu1 }
 0xaba   :  { %v10049_v25 = vpop.f32.mrb[189].mxu1  ;;  %v11247_v51 = vadd.f32 %v18819_v12, %v10047_v59 }
 0xabb   :  { %v10050_v29 = vpop.f32.mrb[190].mxu1 }
 0xabc   :  { %v10052_v48 = vpop.f32.mrb[191].mxu1  ;;  %v11248_v63 = vadd.f32 %v18819_v12, %v10050_v29 }
 0xac1   :  { %v11099_v15 = vpop.f32.mrb[192].mxu1 }
 0xac2   :  { %v10321_v37 = vadd.f32 %v11243_v36, %v11099_v15  ;;  %v10312_v20 = vpop.f32.mrb[193].mxu1 }
 0xac3   :  { %v10313_v33 = vadd.f32 %v11241_v3, %v10312_v20  ;;  %v11100_v21 = vpop.f32.mrb[194].mxu1 }
 0xac4   :  { %v10465_v31 = vadd.f32 %v10401_v34, %v10321_v37  ;;  %v10324_v16 = vadd.f32 %v11244_v18, %v11100_v21  ;;  %v10315_v4 = vpop.f32.mrb[195].mxu1 }
 0xac5   :  { %v10463_v22 = vadd.f32 %v10399_v6, %v10313_v33  ;;  %v10316_v50 = vadd.f32 %v11242_v54, %v10315_v4 }
 0xac6   :  { %10529 = vst [vmem:[%s19333_s7 + $0x1d0] sm:$0xff] %v10465_v31  ;;  %v10466_v56 = vadd.f32 %v10402_v53, %v10324_v16 }
 0xac7   :  { %10527 = vst [vmem:[%s19333_s7 + $0x1c0] sm:$0xff] %v10463_v22  ;;  %v10464_v28 = vadd.f32 %v10400_v40, %v10316_v50 }
 0xac8   :  { %10530 = vst [vmem:[%s19333_s7 + $0x1d8] sm:$0xff] %v10466_v56 }
 0xac9   :  { %10528 = vst [vmem:[%s19333_s7 + $0x1c8] sm:$0xff] %v10464_v28  ;;  %v11103_v23 = vpop.f32.mrb[196].mxu1 }
 0xaca   :  { %v10337_v62 = vadd.f32 %v11247_v51, %v11103_v23  ;;  %v10328_v47 = vpop.f32.mrb[197].mxu1 }
 0xacb   :  { %v10329_v46 = vadd.f32 %v11245_v10, %v10328_v47  ;;  %v11104_v30 = vpop.f32.mrb[198].mxu1 }
 0xacc   :  { %v10469_v17 = vadd.f32 %v10405_v14, %v10337_v62  ;;  %v10340_v24 = vadd.f32 %v11248_v63, %v11104_v30  ;;  %v10331_v44 = vpop.f32.mrb[199].mxu1 }
 0xacd   :  { %v10467_v8 = vadd.f32 %v10403_v42, %v10329_v46  ;;  %v10332_v9 = vadd.f32 %v11246_v2, %v10331_v44 }
 0xace   :  { %10533 = vst [vmem:[%s19333_s7 + $0x1f0] sm:$0xff] %v10469_v17  ;;  %v10470_v12 = vadd.f32 %v10406_v7, %v10340_v24 }
 0xacf   :  { %10531 = vst [vmem:[%s19333_s7 + $0x1e0] sm:$0xff] %v10467_v8  ;;  %v10468_v32 = vadd.f32 %v10404_v49, %v10332_v9 }
 0xad0   :  { %10534 = vst [vmem:[%s19333_s7 + $0x1f8] sm:$0xff] %v10470_v12 }
 0xad1   :  { %10532 = vst [vmem:[%s19333_s7 + $0x1e8] sm:$0xff] %v10468_v32 }

</bundles_post_ra>
